<compile_context>
chip_gen: v7x
topology: tpu7x:2x2x1
jax: 0.10.0
libtpu: 0.0.40
codegen_flags: <defaults>
</compile_context>

<pallas_src>
import jax
import jax.numpy as jnp
from jax import lax
from jax.experimental import pallas as pl
from jax.experimental.pallas import tpu as pltpu

EPS = 1e-5  # PyTorch default eps for InstanceNorm2d / BatchNorm2d


# --------------------------------------------------------------------------
# Fused ResBlock kernel: one batch image per grid step.
# --------------------------------------------------------------------------
def _resblock_kernel(x_ref,
                     w1_ref, b1_ref, g1_ref, be1_ref,
                     w2_ref, b2_ref, g2_ref, be2_ref,
                     wc1_ref, bc1_ref, bns_ref, bnb_ref,
                     wh_ref, bh_ref, ww_ref, bw_ref,
                     o_ref,
                     pad_ref, col_ref):
    _, H, W, C = x_ref.shape
    x = x_ref[0].astype(jnp.float32)                   # (H, W, C)

    # One zero-halo scratch serves both 3x3 convs: only its interior is
    # rewritten between them, the 1-px zero border stays valid.
    pad_ref[...] = jnp.zeros_like(pad_ref)

    def conv3x3_in_relu(v, w_ref, b_ref, g_ref, be_ref):
        """3x3 conv (stride 1, pad 1) + bias + InstanceNorm(affine) + ReLU.

        v: (H, W, C) f32.  Returns (H*W, C) f32.  The conv is one im2col
        matmul with contraction 9*C instead of nine C-wide dots.
        """
        pad_ref[pl.ds(1, H), pl.ds(1, W), :] = v
        xp = pad_ref[...]                               # (H+2, W+2, C)
        for t in range(9):                              # build im2col in VMEM
            dh, dw = t // 3, t % 3
            col_ref[:, :, pl.ds(t * C, C)] = xp[dh:dh + H, dw:dw + W, :]
        patches = col_ref[...].reshape(H * W, 9 * C)    # collapse leading dims
        y = jnp.dot(patches, w_ref[...].astype(jnp.float32),
                    preferred_element_type=jnp.float32) + b_ref[...]
        # InstanceNorm2d: per-sample, per-channel stats over H*W (biased var).
        mu = jnp.mean(y, axis=0, keepdims=True)
        var = jnp.mean(jnp.square(y - mu), axis=0, keepdims=True)
        y = (y - mu) * lax.rsqrt(var + EPS) * g_ref[...] + be_ref[...]
        return jnp.maximum(y, 0.0)                      # ReLU

    x2d = x.reshape(H * W, C)
    z2d = conv3x3_in_relu(x, w1_ref, b1_ref, g1_ref, be1_ref) + x2d   # y1 + x
    y2d = conv3x3_in_relu(z2d.reshape(H, W, C),
                          w2_ref, b2_ref, g2_ref, be2_ref)
    y = y2d.reshape(H, W, C)

    # ---- CoordAtt ----
    # The shared 1x1 conv / BN / h_swish are row-wise, so they are applied to
    # the H- and W-pooled halves independently (identical numerics to
    # concat -> transform -> split, but no concat/slice relayouts).
    pool_h = jnp.mean(y, axis=1)                        # (H, C)  avg over width
    pool_w = jnp.mean(y, axis=0)                        # (W, C)  avg over height

    def gate(pool, wz_ref, bz_ref):
        t = jnp.dot(pool, wc1_ref[...].astype(jnp.float32),
                    preferred_element_type=jnp.float32) + bc1_ref[...]
        t = t * bns_ref[...] + bnb_ref[...]             # eval-mode BN (folded)
        t = t * jnp.clip(t + 3.0, 0.0, 6.0) * (1.0 / 6.0)   # h_swish
        z = jnp.dot(t, wz_ref[...].astype(jnp.float32),
                    preferred_element_type=jnp.float32) + bz_ref[...]
        return pl.reciprocal(1.0 + jnp.exp(-z))         # sigmoid

    a_h = gate(pool_h, wh_ref, bh_ref)                  # (H, C)
    a_w = gate(pool_w, ww_ref, bw_ref)                  # (W, C)

    out = y * a_h[:, None, :] * a_w[None, :, :] + x     # CoordAtt(y) + x
    o_ref[0] = out.astype(o_ref.dtype)


# --------------------------------------------------------------------------
# Wrapper: parameter plumbing (done once) + pallas_call
# --------------------------------------------------------------------------
def res_block_forward(x, p):
    B, H, W, C = x.shape
    mip = p["wc1"].shape[-1]

    # im2col weight layout (row index = (dh*3 + dw)*C + cin), built once.
    w1 = p["w1"].reshape(9 * C, C)
    w2 = p["w2"].reshape(9 * C, C)

    # TODO(synk): CoordAtt is not defined in the provided source; we implement
    # standard Coordinate Attention (Hou et al., 2021) with eval-mode
    # BatchNorm2d (running stats folded into a per-channel scale/shift) and
    # reduction=32 -> mip = max(8, C // 32).
    bns = p["bn_g"] * lax.rsqrt(p["bn_rv"] + EPS)
    bnb = p["bn_b"] - p["bn_rm"] * bns

    row = lambda v: v.reshape(1, -1)
    cvec = pl.BlockSpec((1, C), lambda b: (0, 0))
    mvec = pl.BlockSpec((1, mip), lambda b: (0, 0))
    wmat = pl.BlockSpec((9 * C, C), lambda b: (0, 0))

    return pl.pallas_call(
        _resblock_kernel,
        out_shape=jax.ShapeDtypeStruct((B, H, W, C), x.dtype),
        grid_spec=pltpu.PrefetchScalarGridSpec(
            num_scalar_prefetch=0,
            grid=(B,),                                   # one image per step
            in_specs=[
                pl.BlockSpec((1, H, W, C), lambda b: (b, 0, 0, 0)),   # x
                wmat, cvec, cvec, cvec,                  # w1, b1, g1, be1
                wmat, cvec, cvec, cvec,                  # w2, b2, g2, be2
                pl.BlockSpec((C, mip), lambda b: (0, 0)),             # wc1
                mvec, mvec, mvec,                        # bc1, bn scale, bn shift
                pl.BlockSpec((mip, C), lambda b: (0, 0)),             # wh
                cvec,                                    # bh
                pl.BlockSpec((mip, C), lambda b: (0, 0)),             # ww
                cvec,                                    # bw
            ],
            out_specs=pl.BlockSpec((1, H, W, C), lambda b: (b, 0, 0, 0)),
            scratch_shapes=[
                pltpu.VMEM((H + 2, W + 2, C), jnp.float32),  # zero-halo image
                pltpu.VMEM((H, W, 9 * C), jnp.float32),      # im2col patches
            ],
        ),
        compiler_params=pltpu.CompilerParams(
            # batch axis is independent -> v7x's two TensorCores split it
            dimension_semantics=("parallel",),
        ),
    )(x, w1, row(p["b1"]), row(p["g1"]), row(p["be1"]),
      w2, row(p["b2"]), row(p["g2"]), row(p["be2"]),
      p["wc1"], row(p["bc1"]), row(bns), row(bnb),
      p["wh"], row(p["bh"]), p["ww"], row(p["bw"]))


# --------------------------------------------------------------------------
# Pure-JAX reference for correctness checking
# --------------------------------------------------------------------------
def ref_forward(x, p):
    def conv(v, w, b):
        return lax.conv_general_dilated(
            v, w, window_strides=(1, 1), padding="SAME",
            dimension_numbers=("NHWC", "HWIO", "NHWC")) + b.reshape(1, 1, 1, -1)

    def inorm(v, g, be):
        m = jnp.mean(v, axis=(1, 2), keepdims=True)
        var = jnp.mean(jnp.square(v - m), axis=(1, 2), keepdims=True)
        return ((v - m) * lax.rsqrt(var + EPS) * g.reshape(1, 1, 1, -1)
                + be.reshape(1, 1, 1, -1))

    relu = lambda v: jnp.maximum(v, 0.0)
    z = relu(inorm(conv(x, p["w1"], p["b1"]), p["g1"], p["be1"])) + x
    y = relu(inorm(conv(z, p["w2"], p["b2"]), p["g2"], p["be2"]))

    B, H, W, C = y.shape
    x_h = jnp.mean(y, axis=2)                       # (B, H, C)
    x_w = jnp.mean(y, axis=1)                       # (B, W, C)
    cat = jnp.concatenate([x_h, x_w], axis=1)       # (B, H+W, C)
    t = jnp.einsum("blc,cm->blm", cat, p["wc1"]) + p["bc1"]
    t = (t - p["bn_rm"]) * lax.rsqrt(p["bn_rv"] + EPS) * p["bn_g"] + p["bn_b"]
    t = t * jnp.clip(t + 3.0, 0.0, 6.0) / 6.0
    a_h = jax.nn.sigmoid(jnp.einsum("bhm,mc->bhc", t[:, :H], p["wh"]) + p["bh"])
    a_w = jax.nn.sigmoid(jnp.einsum("bwm,mc->bwc", t[:, H:], p["ww"]) + p["bw"])
    return y * a_h[:, :, None, :] * a_w[:, None, :, :] + x


if __name__ == "__main__":
    B, C, H, W = 2, 4, 16, 16          # torch NCHW (2, 4, 16, 16)
    mip = max(8, C // 32)

    keys = jax.random.split(jax.random.PRNGKey(0), 20)
    p = dict(
        w1=0.2 * jax.random.normal(keys[0], (3, 3, C, C), jnp.float32),
        b1=0.05 * jax.random.normal(keys[1], (C,), jnp.float32),
        g1=1.0 + 0.1 * jax.random.normal(keys[2], (C,), jnp.float32),
        be1=0.1 * jax.random.normal(keys[3], (C,), jnp.float32),
        w2=0.2 * jax.random.normal(keys[4], (3, 3, C, C), jnp.float32),
        b2=0.05 * jax.random.normal(keys[5], (C,), jnp.float32),
        g2=1.0 + 0.1 * jax.random.normal(keys[6], (C,), jnp.float32),
        be2=0.1 * jax.random.normal(keys[7], (C,), jnp.float32),
        wc1=0.2 * jax.random.normal(keys[8], (C, mip), jnp.float32),
        bc1=0.05 * jax.random.normal(keys[9], (mip,), jnp.float32),
        bn_g=1.0 + 0.1 * jax.random.normal(keys[10], (mip,), jnp.float32),
        bn_b=0.1 * jax.random.normal(keys[11], (mip,), jnp.float32),
        bn_rm=0.1 * jax.random.normal(keys[12], (mip,), jnp.float32),
        bn_rv=0.5 + jax.random.uniform(keys[13], (mip,), jnp.float32),
        wh=0.2 * jax.random.normal(keys[14], (mip, C), jnp.float32),
        bh=0.05 * jax.random.normal(keys[15], (C,), jnp.float32),
        ww=0.2 * jax.random.normal(keys[16], (mip, C), jnp.float32),
        bw=0.05 * jax.random.normal(keys[17], (C,), jnp.float32),
    )
    # NHWC input (equivalent to torch NCHW (2, 4, 16, 16) permuted).
    x = jax.random.normal(keys[18], (B, H, W, C), jnp.float32)

    out = jax.block_until_ready(jax.jit(res_block_forward)(x, p))
    ref = ref_forward(x, p)

    assert out.shape == (B, H, W, C)
    max_err = float(jnp.max(jnp.abs(out - ref)))
    assert jnp.allclose(out, ref, rtol=1e-4, atol=1e-4), max_err
    print("KERNEL_OK")
</pallas_src>

<mosaic_0001>
module attributes {stable_mosaic.version = 11 : i64} {
  func.func @_resblock_kernel(%arg0: i32, %arg1: memref<1x16x16x4xf32, #tpu.memory_space<vmem>>, %arg2: memref<36x4xf32, #tpu.memory_space<vmem>>, %arg3: memref<1x4xf32, #tpu.memory_space<vmem>>, %arg4: memref<1x4xf32, #tpu.memory_space<vmem>>, %arg5: memref<1x4xf32, #tpu.memory_space<vmem>>, %arg6: memref<36x4xf32, #tpu.memory_space<vmem>>, %arg7: memref<1x4xf32, #tpu.memory_space<vmem>>, %arg8: memref<1x4xf32, #tpu.memory_space<vmem>>, %arg9: memref<1x4xf32, #tpu.memory_space<vmem>>, %arg10: memref<4x8xf32, #tpu.memory_space<vmem>>, %arg11: memref<1x8xf32, #tpu.memory_space<vmem>>, %arg12: memref<1x8xf32, #tpu.memory_space<vmem>>, %arg13: memref<1x8xf32, #tpu.memory_space<vmem>>, %arg14: memref<8x4xf32, #tpu.memory_space<vmem>>, %arg15: memref<1x4xf32, #tpu.memory_space<vmem>>, %arg16: memref<8x4xf32, #tpu.memory_space<vmem>>, %arg17: memref<1x4xf32, #tpu.memory_space<vmem>>, %arg18: memref<1x16x16x4xf32, #tpu.memory_space<vmem>>, %arg19: memref<18x18x4xf32, #tpu.memory_space<vmem>>, %arg20: memref<16x16x36xf32, #tpu.memory_space<vmem>>) attributes {dimension_semantics = [#tpu.dimension_semantics<parallel>], iteration_bounds = array<i64: 2>, scalar_prefetch = 0 : i64, scratch_operands = 2 : i64, tpu.core_type = #tpu.core_type<tc>, window_params = [{transform_indices = @transform_0, window_bounds = array<i64: 1, 16, 16, 4>}, {pipeline_mode = #tpu.pipeline_mode<synchronous>, transform_indices = @transform_1, window_bounds = array<i64: 36, 4>}, {pipeline_mode = #tpu.pipeline_mode<synchronous>, transform_indices = @transform_2, window_bounds = array<i64: 1, 4>}, {pipeline_mode = #tpu.pipeline_mode<synchronous>, transform_indices = @transform_3, window_bounds = array<i64: 1, 4>}, {pipeline_mode = #tpu.pipeline_mode<synchronous>, transform_indices = @transform_4, window_bounds = array<i64: 1, 4>}, {pipeline_mode = #tpu.pipeline_mode<synchronous>, transform_indices = @transform_5, window_bounds = array<i64: 36, 4>}, {pipeline_mode = #tpu.pipeline_mode<synchronous>, transform_indices = @transform_6, window_bounds = array<i64: 1, 4>}, {pipeline_mode = #tpu.pipeline_mode<synchronous>, transform_indices = @transform_7, window_bounds = array<i64: 1, 4>}, {pipeline_mode = #tpu.pipeline_mode<synchronous>, transform_indices = @transform_8, window_bounds = array<i64: 1, 4>}, {pipeline_mode = #tpu.pipeline_mode<synchronous>, transform_indices = @transform_9, window_bounds = array<i64: 4, 8>}, {pipeline_mode = #tpu.pipeline_mode<synchronous>, transform_indices = @transform_10, window_bounds = array<i64: 1, 8>}, {pipeline_mode = #tpu.pipeline_mode<synchronous>, transform_indices = @transform_11, window_bounds = array<i64: 1, 8>}, {pipeline_mode = #tpu.pipeline_mode<synchronous>, transform_indices = @transform_12, window_bounds = array<i64: 1, 8>}, {pipeline_mode = #tpu.pipeline_mode<synchronous>, transform_indices = @transform_13, window_bounds = array<i64: 8, 4>}, {pipeline_mode = #tpu.pipeline_mode<synchronous>, transform_indices = @transform_14, window_bounds = array<i64: 1, 4>}, {pipeline_mode = #tpu.pipeline_mode<synchronous>, transform_indices = @transform_15, window_bounds = array<i64: 8, 4>}, {pipeline_mode = #tpu.pipeline_mode<synchronous>, transform_indices = @transform_16, window_bounds = array<i64: 1, 4>}, {transform_indices = @transform_17, window_bounds = array<i64: 1, 16, 16, 4>}]} {
    %c0 = arith.constant 0 : index
    %c0_0 = arith.constant 0 : index
    %c0_1 = arith.constant 0 : index
    %c0_2 = arith.constant 0 : index
    %0 = vector.load %arg1[%c0, %c0_0, %c0_1, %c0_2] : memref<1x16x16x4xf32, #tpu.memory_space<vmem>>, vector<1x16x16x4xf32>
    %1 = vector.shape_cast %0 : vector<1x16x16x4xf32> to vector<16x16x4xf32>
    %cst = arith.constant 0.000000e+00 : f32
    %2 = vector.broadcast %cst : f32 to vector<18x18x4xf32>
    %c0_3 = arith.constant 0 : index
    %c0_4 = arith.constant 0 : index
    %c0_5 = arith.constant 0 : index
    %3 = vector.load %arg19[%c0_3, %c0_4, %c0_5] : memref<18x18x4xf32, #tpu.memory_space<vmem>>, vector<18x18x4xf32>
    tpu.vector_store %arg19[%c0_3, %c0_4, %c0_5], %2 {strides = array<i32>} : memref<18x18x4xf32, #tpu.memory_space<vmem>>, vector<18x18x4xf32>,
    %4 = vector.shape_cast %1 : vector<16x16x4xf32> to vector<256x4xf32>
    %c1 = arith.constant 1 : index
    %c1_6 = arith.constant 1 : index
    %c0_7 = arith.constant 0 : index
    %5 = vector.load %arg19[%c1, %c1_6, %c0_7] : memref<18x18x4xf32, #tpu.memory_space<vmem>>, vector<16x16x4xf32>
    tpu.vector_store %arg19[%c1, %c1_6, %c0_7], %1 {strides = array<i32>} : memref<18x18x4xf32, #tpu.memory_space<vmem>>, vector<16x16x4xf32>,
    %c0_8 = arith.constant 0 : index
    %c0_9 = arith.constant 0 : index
    %c0_10 = arith.constant 0 : index
    %6 = vector.load %arg19[%c0_8, %c0_9, %c0_10] : memref<18x18x4xf32, #tpu.memory_space<vmem>>, vector<18x18x4xf32>
    %7 = vector.extract_strided_slice %6 {offsets = [0, 0, 0], sizes = [16, 16, 4], strides = [1, 1, 1]} : vector<18x18x4xf32> to vector<16x16x4xf32>
    %c0_11 = arith.constant 0 : index
    %c0_12 = arith.constant 0 : index
    %c0_13 = arith.constant 0 : index
    %8 = vector.load %arg20[%c0_11, %c0_12, %c0_13] : memref<16x16x36xf32, #tpu.memory_space<vmem>>, vector<16x16x4xf32>
    tpu.vector_store %arg20[%c0_11, %c0_12, %c0_13], %7 {strides = array<i32>} : memref<16x16x36xf32, #tpu.memory_space<vmem>>, vector<16x16x4xf32>,
    %9 = vector.extract_strided_slice %6 {offsets = [0, 1, 0], sizes = [16, 16, 4], strides = [1, 1, 1]} : vector<18x18x4xf32> to vector<16x16x4xf32>
    %c0_14 = arith.constant 0 : index
    %c0_15 = arith.constant 0 : index
    %c4 = arith.constant 4 : index
    %10 = vector.load %arg20[%c0_14, %c0_15, %c4] : memref<16x16x36xf32, #tpu.memory_space<vmem>>, vector<16x16x4xf32>
    tpu.vector_store %arg20[%c0_14, %c0_15, %c4], %9 {strides = array<i32>} : memref<16x16x36xf32, #tpu.memory_space<vmem>>, vector<16x16x4xf32>,
    %11 = vector.extract_strided_slice %6 {offsets = [0, 2, 0], sizes = [16, 16, 4], strides = [1, 1, 1]} : vector<18x18x4xf32> to vector<16x16x4xf32>
    %c0_16 = arith.constant 0 : index
    %c0_17 = arith.constant 0 : index
    %c8 = arith.constant 8 : index
    %12 = vector.load %arg20[%c0_16, %c0_17, %c8] : memref<16x16x36xf32, #tpu.memory_space<vmem>>, vector<16x16x4xf32>
    tpu.vector_store %arg20[%c0_16, %c0_17, %c8], %11 {strides = array<i32>} : memref<16x16x36xf32, #tpu.memory_space<vmem>>, vector<16x16x4xf32>,
    %13 = vector.extract_strided_slice %6 {offsets = [1, 0, 0], sizes = [16, 16, 4], strides = [1, 1, 1]} : vector<18x18x4xf32> to vector<16x16x4xf32>
    %c0_18 = arith.constant 0 : index
    %c0_19 = arith.constant 0 : index
    %c12 = arith.constant 12 : index
    %14 = vector.load %arg20[%c0_18, %c0_19, %c12] : memref<16x16x36xf32, #tpu.memory_space<vmem>>, vector<16x16x4xf32>
    tpu.vector_store %arg20[%c0_18, %c0_19, %c12], %13 {strides = array<i32>} : memref<16x16x36xf32, #tpu.memory_space<vmem>>, vector<16x16x4xf32>,
    %15 = vector.extract_strided_slice %6 {offsets = [1, 1, 0], sizes = [16, 16, 4], strides = [1, 1, 1]} : vector<18x18x4xf32> to vector<16x16x4xf32>
    %c0_20 = arith.constant 0 : index
    %c0_21 = arith.constant 0 : index
    %c16 = arith.constant 16 : index
    %16 = vector.load %arg20[%c0_20, %c0_21, %c16] : memref<16x16x36xf32, #tpu.memory_space<vmem>>, vector<16x16x4xf32>
    tpu.vector_store %arg20[%c0_20, %c0_21, %c16], %15 {strides = array<i32>} : memref<16x16x36xf32, #tpu.memory_space<vmem>>, vector<16x16x4xf32>,
    %17 = vector.extract_strided_slice %6 {offsets = [1, 2, 0], sizes = [16, 16, 4], strides = [1, 1, 1]} : vector<18x18x4xf32> to vector<16x16x4xf32>
    %c0_22 = arith.constant 0 : index
    %c0_23 = arith.constant 0 : index
    %c20 = arith.constant 20 : index
    %18 = vector.load %arg20[%c0_22, %c0_23, %c20] : memref<16x16x36xf32, #tpu.memory_space<vmem>>, vector<16x16x4xf32>
    tpu.vector_store %arg20[%c0_22, %c0_23, %c20], %17 {strides = array<i32>} : memref<16x16x36xf32, #tpu.memory_space<vmem>>, vector<16x16x4xf32>,
    %19 = vector.extract_strided_slice %6 {offsets = [2, 0, 0], sizes = [16, 16, 4], strides = [1, 1, 1]} : vector<18x18x4xf32> to vector<16x16x4xf32>
    %c0_24 = arith.constant 0 : index
    %c0_25 = arith.constant 0 : index
    %c24 = arith.constant 24 : index
    %20 = vector.load %arg20[%c0_24, %c0_25, %c24] : memref<16x16x36xf32, #tpu.memory_space<vmem>>, vector<16x16x4xf32>
    tpu.vector_store %arg20[%c0_24, %c0_25, %c24], %19 {strides = array<i32>} : memref<16x16x36xf32, #tpu.memory_space<vmem>>, vector<16x16x4xf32>,
    %21 = vector.extract_strided_slice %6 {offsets = [2, 1, 0], sizes = [16, 16, 4], strides = [1, 1, 1]} : vector<18x18x4xf32> to vector<16x16x4xf32>
    %c0_26 = arith.constant 0 : index
    %c0_27 = arith.constant 0 : index
    %c28 = arith.constant 28 : index
    %22 = vector.load %arg20[%c0_26, %c0_27, %c28] : memref<16x16x36xf32, #tpu.memory_space<vmem>>, vector<16x16x4xf32>
    tpu.vector_store %arg20[%c0_26, %c0_27, %c28], %21 {strides = array<i32>} : memref<16x16x36xf32, #tpu.memory_space<vmem>>, vector<16x16x4xf32>,
    %23 = vector.extract_strided_slice %6 {offsets = [2, 2, 0], sizes = [16, 16, 4], strides = [1, 1, 1]} : vector<18x18x4xf32> to vector<16x16x4xf32>
    %c0_28 = arith.constant 0 : index
    %c0_29 = arith.constant 0 : index
    %c32 = arith.constant 32 : index
    %24 = vector.load %arg20[%c0_28, %c0_29, %c32] : memref<16x16x36xf32, #tpu.memory_space<vmem>>, vector<16x16x4xf32>
    tpu.vector_store %arg20[%c0_28, %c0_29, %c32], %23 {strides = array<i32>} : memref<16x16x36xf32, #tpu.memory_space<vmem>>, vector<16x16x4xf32>,
    %c0_30 = arith.constant 0 : index
    %c0_31 = arith.constant 0 : index
    %c0_32 = arith.constant 0 : index
    %25 = vector.load %arg20[%c0_30, %c0_31, %c0_32] : memref<16x16x36xf32, #tpu.memory_space<vmem>>, vector<16x16x36xf32>
    %26 = vector.shape_cast %25 : vector<16x16x36xf32> to vector<256x36xf32>
    %c0_33 = arith.constant 0 : index
    %c0_34 = arith.constant 0 : index
    %27 = vector.load %arg2[%c0_33, %c0_34] : memref<36x4xf32, #tpu.memory_space<vmem>>, vector<36x4xf32>
    %cst_35 = arith.constant dense<0.000000e+00> : vector<256x4xf32>
    %28 = tpu.matmul %26, %27, %cst_35 {dimension_numbers = #tpu.dot_dimension_numbers<[1], [0], [0], [1], [0, 0, 1, 1], [], []>} : vector<256x36xf32>, vector<36x4xf32>, vector<256x4xf32> -> vector<256x4xf32>
    %c0_36 = arith.constant 0 : index
    %c0_37 = arith.constant 0 : index
    %29 = vector.load %arg3[%c0_36, %c0_37] : memref<1x4xf32, #tpu.memory_space<vmem>>, vector<1x4xf32>
    %30 = vector.broadcast %29 : vector<1x4xf32> to vector<256x4xf32>
    %31 = arith.addf %28, %30 : vector<256x4xf32>
    %cst_38 = arith.constant dense<0.000000e+00> : vector<4xf32>
    %32 = vector.multi_reduction <add>, %31, %cst_38 [0] : vector<256x4xf32> to vector<4xf32>
    %33 = vector.shape_cast %32 : vector<4xf32> to vector<1x4xf32>
    %cst_39 = arith.constant 2.560000e+02 : f32
    %34 = vector.broadcast %cst_39 : f32 to vector<1x4xf32>
    %35 = arith.divf %33, %34 : vector<1x4xf32>
    %36 = vector.broadcast %35 : vector<1x4xf32> to vector<256x4xf32>
    %37 = arith.subf %31, %36 : vector<256x4xf32>
    %38 = arith.mulf %37, %37 : vector<256x4xf32>
    %cst_40 = arith.constant dense<0.000000e+00> : vector<4xf32>
    %39 = vector.multi_reduction <add>, %38, %cst_40 [0] : vector<256x4xf32> to vector<4xf32>
    %40 = vector.shape_cast %39 : vector<4xf32> to vector<1x4xf32>
    %cst_41 = arith.constant 2.560000e+02 : f32
    %41 = vector.broadcast %cst_41 : f32 to vector<1x4xf32>
    %42 = arith.divf %40, %41 : vector<1x4xf32>
    %43 = vector.broadcast %35 : vector<1x4xf32> to vector<256x4xf32>
    %44 = arith.subf %31, %43 : vector<256x4xf32>
    %cst_42 = arith.constant 9.99999974E-6 : f32
    %45 = vector.broadcast %cst_42 : f32 to vector<1x4xf32>
    %46 = arith.addf %42, %45 : vector<1x4xf32>
    %47 = math.rsqrt %46 : vector<1x4xf32>
    %48 = vector.broadcast %47 : vector<1x4xf32> to vector<256x4xf32>
    %49 = arith.mulf %44, %48 : vector<256x4xf32>
    %c0_43 = arith.constant 0 : index
    %c0_44 = arith.constant 0 : index
    %50 = vector.load %arg4[%c0_43, %c0_44] : memref<1x4xf32, #tpu.memory_space<vmem>>, vector<1x4xf32>
    %51 = vector.broadcast %50 : vector<1x4xf32> to vector<256x4xf32>
    %52 = arith.mulf %49, %51 : vector<256x4xf32>
    %c0_45 = arith.constant 0 : index
    %c0_46 = arith.constant 0 : index
    %53 = vector.load %arg5[%c0_45, %c0_46] : memref<1x4xf32, #tpu.memory_space<vmem>>, vector<1x4xf32>
    %54 = vector.broadcast %53 : vector<1x4xf32> to vector<256x4xf32>
    %55 = arith.addf %52, %54 : vector<256x4xf32>
    %cst_47 = arith.constant 0.000000e+00 : f32
    %56 = vector.broadcast %cst_47 : f32 to vector<256x4xf32>
    %57 = arith.maximumf %55, %56 : vector<256x4xf32>
    %58 = arith.addf %57, %4 : vector<256x4xf32>
    %59 = vector.shape_cast %58 : vector<256x4xf32> to vector<16x16x4xf32>
    %c1_48 = arith.constant 1 : index
    %c1_49 = arith.constant 1 : index
    %c0_50 = arith.constant 0 : index
    %60 = vector.load %arg19[%c1_48, %c1_49, %c0_50] : memref<18x18x4xf32, #tpu.memory_space<vmem>>, vector<16x16x4xf32>
    tpu.vector_store %arg19[%c1_48, %c1_49, %c0_50], %59 {strides = array<i32>} : memref<18x18x4xf32, #tpu.memory_space<vmem>>, vector<16x16x4xf32>,
    %c0_51 = arith.constant 0 : index
    %c0_52 = arith.constant 0 : index
    %c0_53 = arith.constant 0 : index
    %61 = vector.load %arg19[%c0_51, %c0_52, %c0_53] : memref<18x18x4xf32, #tpu.memory_space<vmem>>, vector<18x18x4xf32>
    %62 = vector.extract_strided_slice %61 {offsets = [0, 0, 0], sizes = [16, 16, 4], strides = [1, 1, 1]} : vector<18x18x4xf32> to vector<16x16x4xf32>
    %c0_54 = arith.constant 0 : index
    %c0_55 = arith.constant 0 : index
    %c0_56 = arith.constant 0 : index
    %63 = vector.load %arg20[%c0_54, %c0_55, %c0_56] : memref<16x16x36xf32, #tpu.memory_space<vmem>>, vector<16x16x4xf32>
    tpu.vector_store %arg20[%c0_54, %c0_55, %c0_56], %62 {strides = array<i32>} : memref<16x16x36xf32, #tpu.memory_space<vmem>>, vector<16x16x4xf32>,
    %64 = vector.extract_strided_slice %61 {offsets = [0, 1, 0], sizes = [16, 16, 4], strides = [1, 1, 1]} : vector<18x18x4xf32> to vector<16x16x4xf32>
    %c0_57 = arith.constant 0 : index
    %c0_58 = arith.constant 0 : index
    %c4_59 = arith.constant 4 : index
    %65 = vector.load %arg20[%c0_57, %c0_58, %c4_59] : memref<16x16x36xf32, #tpu.memory_space<vmem>>, vector<16x16x4xf32>
    tpu.vector_store %arg20[%c0_57, %c0_58, %c4_59], %64 {strides = array<i32>} : memref<16x16x36xf32, #tpu.memory_space<vmem>>, vector<16x16x4xf32>,
    %66 = vector.extract_strided_slice %61 {offsets = [0, 2, 0], sizes = [16, 16, 4], strides = [1, 1, 1]} : vector<18x18x4xf32> to vector<16x16x4xf32>
    %c0_60 = arith.constant 0 : index
    %c0_61 = arith.constant 0 : index
    %c8_62 = arith.constant 8 : index
    %67 = vector.load %arg20[%c0_60, %c0_61, %c8_62] : memref<16x16x36xf32, #tpu.memory_space<vmem>>, vector<16x16x4xf32>
    tpu.vector_store %arg20[%c0_60, %c0_61, %c8_62], %66 {strides = array<i32>} : memref<16x16x36xf32, #tpu.memory_space<vmem>>, vector<16x16x4xf32>,
    %68 = vector.extract_strided_slice %61 {offsets = [1, 0, 0], sizes = [16, 16, 4], strides = [1, 1, 1]} : vector<18x18x4xf32> to vector<16x16x4xf32>
    %c0_63 = arith.constant 0 : index
    %c0_64 = arith.constant 0 : index
    %c12_65 = arith.constant 12 : index
    %69 = vector.load %arg20[%c0_63, %c0_64, %c12_65] : memref<16x16x36xf32, #tpu.memory_space<vmem>>, vector<16x16x4xf32>
    tpu.vector_store %arg20[%c0_63, %c0_64, %c12_65], %68 {strides = array<i32>} : memref<16x16x36xf32, #tpu.memory_space<vmem>>, vector<16x16x4xf32>,
    %70 = vector.extract_strided_slice %61 {offsets = [1, 1, 0], sizes = [16, 16, 4], strides = [1, 1, 1]} : vector<18x18x4xf32> to vector<16x16x4xf32>
    %c0_66 = arith.constant 0 : index
    %c0_67 = arith.constant 0 : index
    %c16_68 = arith.constant 16 : index
    %71 = vector.load %arg20[%c0_66, %c0_67, %c16_68] : memref<16x16x36xf32, #tpu.memory_space<vmem>>, vector<16x16x4xf32>
    tpu.vector_store %arg20[%c0_66, %c0_67, %c16_68], %70 {strides = array<i32>} : memref<16x16x36xf32, #tpu.memory_space<vmem>>, vector<16x16x4xf32>,
    %72 = vector.extract_strided_slice %61 {offsets = [1, 2, 0], sizes = [16, 16, 4], strides = [1, 1, 1]} : vector<18x18x4xf32> to vector<16x16x4xf32>
    %c0_69 = arith.constant 0 : index
    %c0_70 = arith.constant 0 : index
    %c20_71 = arith.constant 20 : index
    %73 = vector.load %arg20[%c0_69, %c0_70, %c20_71] : memref<16x16x36xf32, #tpu.memory_space<vmem>>, vector<16x16x4xf32>
    tpu.vector_store %arg20[%c0_69, %c0_70, %c20_71], %72 {strides = array<i32>} : memref<16x16x36xf32, #tpu.memory_space<vmem>>, vector<16x16x4xf32>,
    %74 = vector.extract_strided_slice %61 {offsets = [2, 0, 0], sizes = [16, 16, 4], strides = [1, 1, 1]} : vector<18x18x4xf32> to vector<16x16x4xf32>
    %c0_72 = arith.constant 0 : index
    %c0_73 = arith.constant 0 : index
    %c24_74 = arith.constant 24 : index
    %75 = vector.load %arg20[%c0_72, %c0_73, %c24_74] : memref<16x16x36xf32, #tpu.memory_space<vmem>>, vector<16x16x4xf32>
    tpu.vector_store %arg20[%c0_72, %c0_73, %c24_74], %74 {strides = array<i32>} : memref<16x16x36xf32, #tpu.memory_space<vmem>>, vector<16x16x4xf32>,
    %76 = vector.extract_strided_slice %61 {offsets = [2, 1, 0], sizes = [16, 16, 4], strides = [1, 1, 1]} : vector<18x18x4xf32> to vector<16x16x4xf32>
    %c0_75 = arith.constant 0 : index
    %c0_76 = arith.constant 0 : index
    %c28_77 = arith.constant 28 : index
    %77 = vector.load %arg20[%c0_75, %c0_76, %c28_77] : memref<16x16x36xf32, #tpu.memory_space<vmem>>, vector<16x16x4xf32>
    tpu.vector_store %arg20[%c0_75, %c0_76, %c28_77], %76 {strides = array<i32>} : memref<16x16x36xf32, #tpu.memory_space<vmem>>, vector<16x16x4xf32>,
    %78 = vector.extract_strided_slice %61 {offsets = [2, 2, 0], sizes = [16, 16, 4], strides = [1, 1, 1]} : vector<18x18x4xf32> to vector<16x16x4xf32>
    %c0_78 = arith.constant 0 : index
    %c0_79 = arith.constant 0 : index
    %c32_80 = arith.constant 32 : index
    %79 = vector.load %arg20[%c0_78, %c0_79, %c32_80] : memref<16x16x36xf32, #tpu.memory_space<vmem>>, vector<16x16x4xf32>
    tpu.vector_store %arg20[%c0_78, %c0_79, %c32_80], %78 {strides = array<i32>} : memref<16x16x36xf32, #tpu.memory_space<vmem>>, vector<16x16x4xf32>,
    %c0_81 = arith.constant 0 : index
    %c0_82 = arith.constant 0 : index
    %c0_83 = arith.constant 0 : index
    %80 = vector.load %arg20[%c0_81, %c0_82, %c0_83] : memref<16x16x36xf32, #tpu.memory_space<vmem>>, vector<16x16x36xf32>
    %81 = vector.shape_cast %80 : vector<16x16x36xf32> to vector<256x36xf32>
    %c0_84 = arith.constant 0 : index
    %c0_85 = arith.constant 0 : index
    %82 = vector.load %arg6[%c0_84, %c0_85] : memref<36x4xf32, #tpu.memory_space<vmem>>, vector<36x4xf32>
    %cst_86 = arith.constant dense<0.000000e+00> : vector<256x4xf32>
    %83 = tpu.matmul %81, %82, %cst_86 {dimension_numbers = #tpu.dot_dimension_numbers<[1], [0], [0], [1], [0, 0, 1, 1], [], []>} : vector<256x36xf32>, vector<36x4xf32>, vector<256x4xf32> -> vector<256x4xf32>
    %c0_87 = arith.constant 0 : index
    %c0_88 = arith.constant 0 : index
    %84 = vector.load %arg7[%c0_87, %c0_88] : memref<1x4xf32, #tpu.memory_space<vmem>>, vector<1x4xf32>
    %85 = vector.broadcast %84 : vector<1x4xf32> to vector<256x4xf32>
    %86 = arith.addf %83, %85 : vector<256x4xf32>
    %cst_89 = arith.constant dense<0.000000e+00> : vector<4xf32>
    %87 = vector.multi_reduction <add>, %86, %cst_89 [0] : vector<256x4xf32> to vector<4xf32>
    %88 = vector.shape_cast %87 : vector<4xf32> to vector<1x4xf32>
    %cst_90 = arith.constant 2.560000e+02 : f32
    %89 = vector.broadcast %cst_90 : f32 to vector<1x4xf32>
    %90 = arith.divf %88, %89 : vector<1x4xf32>
    %91 = vector.broadcast %90 : vector<1x4xf32> to vector<256x4xf32>
    %92 = arith.subf %86, %91 : vector<256x4xf32>
    %93 = arith.mulf %92, %92 : vector<256x4xf32>
    %cst_91 = arith.constant dense<0.000000e+00> : vector<4xf32>
    %94 = vector.multi_reduction <add>, %93, %cst_91 [0] : vector<256x4xf32> to vector<4xf32>
    %95 = vector.shape_cast %94 : vector<4xf32> to vector<1x4xf32>
    %cst_92 = arith.constant 2.560000e+02 : f32
    %96 = vector.broadcast %cst_92 : f32 to vector<1x4xf32>
    %97 = arith.divf %95, %96 : vector<1x4xf32>
    %98 = vector.broadcast %90 : vector<1x4xf32> to vector<256x4xf32>
    %99 = arith.subf %86, %98 : vector<256x4xf32>
    %cst_93 = arith.constant 9.99999974E-6 : f32
    %100 = vector.broadcast %cst_93 : f32 to vector<1x4xf32>
    %101 = arith.addf %97, %100 : vector<1x4xf32>
    %102 = math.rsqrt %101 : vector<1x4xf32>
    %103 = vector.broadcast %102 : vector<1x4xf32> to vector<256x4xf32>
    %104 = arith.mulf %99, %103 : vector<256x4xf32>
    %c0_94 = arith.constant 0 : index
    %c0_95 = arith.constant 0 : index
    %105 = vector.load %arg8[%c0_94, %c0_95] : memref<1x4xf32, #tpu.memory_space<vmem>>, vector<1x4xf32>
    %106 = vector.broadcast %105 : vector<1x4xf32> to vector<256x4xf32>
    %107 = arith.mulf %104, %106 : vector<256x4xf32>
    %c0_96 = arith.constant 0 : index
    %c0_97 = arith.constant 0 : index
    %108 = vector.load %arg9[%c0_96, %c0_97] : memref<1x4xf32, #tpu.memory_space<vmem>>, vector<1x4xf32>
    %109 = vector.broadcast %108 : vector<1x4xf32> to vector<256x4xf32>
    %110 = arith.addf %107, %109 : vector<256x4xf32>
    %cst_98 = arith.constant 0.000000e+00 : f32
    %111 = vector.broadcast %cst_98 : f32 to vector<256x4xf32>
    %112 = arith.maximumf %110, %111 : vector<256x4xf32>
    %113 = vector.shape_cast %112 : vector<256x4xf32> to vector<16x16x4xf32>
    %cst_99 = arith.constant dense<0.000000e+00> : vector<16x4xf32>
    %114 = vector.multi_reduction <add>, %113, %cst_99 [1] : vector<16x16x4xf32> to vector<16x4xf32>
    %cst_100 = arith.constant 1.600000e+01 : f32
    %115 = vector.broadcast %cst_100 : f32 to vector<16x4xf32>
    %116 = arith.divf %114, %115 : vector<16x4xf32>
    %cst_101 = arith.constant dense<0.000000e+00> : vector<16x4xf32>
    %117 = vector.multi_reduction <add>, %113, %cst_101 [0] : vector<16x16x4xf32> to vector<16x4xf32>
    %cst_102 = arith.constant 1.600000e+01 : f32
    %118 = vector.broadcast %cst_102 : f32 to vector<16x4xf32>
    %119 = arith.divf %117, %118 : vector<16x4xf32>
    %c0_103 = arith.constant 0 : index
    %c0_104 = arith.constant 0 : index
    %120 = vector.load %arg10[%c0_103, %c0_104] : memref<4x8xf32, #tpu.memory_space<vmem>>, vector<4x8xf32>
    %cst_105 = arith.constant dense<0.000000e+00> : vector<16x8xf32>
    %121 = tpu.matmul %116, %120, %cst_105 {dimension_numbers = #tpu.dot_dimension_numbers<[1], [0], [0], [1], [0, 0, 1, 1], [], []>} : vector<16x4xf32>, vector<4x8xf32>, vector<16x8xf32> -> vector<16x8xf32>
    %c0_106 = arith.constant 0 : index
    %c0_107 = arith.constant 0 : index
    %122 = vector.load %arg11[%c0_106, %c0_107] : memref<1x8xf32, #tpu.memory_space<vmem>>, vector<1x8xf32>
    %123 = vector.broadcast %122 : vector<1x8xf32> to vector<16x8xf32>
    %124 = arith.addf %121, %123 : vector<16x8xf32>
    %c0_108 = arith.constant 0 : index
    %c0_109 = arith.constant 0 : index
    %125 = vector.load %arg12[%c0_108, %c0_109] : memref<1x8xf32, #tpu.memory_space<vmem>>, vector<1x8xf32>
    %126 = vector.broadcast %125 : vector<1x8xf32> to vector<16x8xf32>
    %127 = arith.mulf %124, %126 : vector<16x8xf32>
    %c0_110 = arith.constant 0 : index
    %c0_111 = arith.constant 0 : index
    %128 = vector.load %arg13[%c0_110, %c0_111] : memref<1x8xf32, #tpu.memory_space<vmem>>, vector<1x8xf32>
    %129 = vector.broadcast %128 : vector<1x8xf32> to vector<16x8xf32>
    %130 = arith.addf %127, %129 : vector<16x8xf32>
    %cst_112 = arith.constant 3.000000e+00 : f32
    %131 = vector.broadcast %cst_112 : f32 to vector<16x8xf32>
    %132 = arith.addf %130, %131 : vector<16x8xf32>
    %cst_113 = arith.constant 0.000000e+00 : f32
    %cst_114 = arith.constant 6.000000e+00 : f32
    %133 = vector.broadcast %cst_113 : f32 to vector<16x8xf32>
    %134 = arith.maximumf %133, %132 : vector<16x8xf32>
    %135 = vector.broadcast %cst_114 : f32 to vector<16x8xf32>
    %136 = arith.minimumf %135, %134 : vector<16x8xf32>
    %137 = arith.mulf %130, %136 : vector<16x8xf32>
    %cst_115 = arith.constant 0.166666672 : f32
    %138 = vector.broadcast %cst_115 : f32 to vector<16x8xf32>
    %139 = arith.mulf %137, %138 : vector<16x8xf32>
    %c0_116 = arith.constant 0 : index
    %c0_117 = arith.constant 0 : index
    %140 = vector.load %arg14[%c0_116, %c0_117] : memref<8x4xf32, #tpu.memory_space<vmem>>, vector<8x4xf32>
    %cst_118 = arith.constant dense<0.000000e+00> : vector<16x4xf32>
    %141 = tpu.matmul %139, %140, %cst_118 {dimension_numbers = #tpu.dot_dimension_numbers<[1], [0], [0], [1], [0, 0, 1, 1], [], []>} : vector<16x8xf32>, vector<8x4xf32>, vector<16x4xf32> -> vector<16x4xf32>
    %c0_119 = arith.constant 0 : index
    %c0_120 = arith.constant 0 : index
    %142 = vector.load %arg15[%c0_119, %c0_120] : memref<1x4xf32, #tpu.memory_space<vmem>>, vector<1x4xf32>
    %143 = vector.broadcast %142 : vector<1x4xf32> to vector<16x4xf32>
    %144 = arith.addf %141, %143 : vector<16x4xf32>
    %cst_121 = arith.constant 0.000000e+00 : f32
    %145 = vector.broadcast %cst_121 : f32 to vector<16x4xf32>
    %146 = arith.subf %145, %144 : vector<16x4xf32>
    %147 = math.exp %146 : vector<16x4xf32>
    %cst_122 = arith.constant 1.000000e+00 : f32
    %148 = vector.broadcast %cst_122 : f32 to vector<16x4xf32>
    %149 = arith.addf %148, %147 : vector<16x4xf32>
    %150 = tpu.reciprocal %149 : vector<16x4xf32> -> vector<16x4xf32>
    %c0_123 = arith.constant 0 : index
    %c0_124 = arith.constant 0 : index
    %151 = vector.load %arg10[%c0_123, %c0_124] : memref<4x8xf32, #tpu.memory_space<vmem>>, vector<4x8xf32>
    %cst_125 = arith.constant dense<0.000000e+00> : vector<16x8xf32>
    %152 = tpu.matmul %119, %151, %cst_125 {dimension_numbers = #tpu.dot_dimension_numbers<[1], [0], [0], [1], [0, 0, 1, 1], [], []>} : vector<16x4xf32>, vector<4x8xf32>, vector<16x8xf32> -> vector<16x8xf32>
    %c0_126 = arith.constant 0 : index
    %c0_127 = arith.constant 0 : index
    %153 = vector.load %arg11[%c0_126, %c0_127] : memref<1x8xf32, #tpu.memory_space<vmem>>, vector<1x8xf32>
    %154 = vector.broadcast %153 : vector<1x8xf32> to vector<16x8xf32>
    %155 = arith.addf %152, %154 : vector<16x8xf32>
    %c0_128 = arith.constant 0 : index
    %c0_129 = arith.constant 0 : index
    %156 = vector.load %arg12[%c0_128, %c0_129] : memref<1x8xf32, #tpu.memory_space<vmem>>, vector<1x8xf32>
    %157 = vector.broadcast %156 : vector<1x8xf32> to vector<16x8xf32>
    %158 = arith.mulf %155, %157 : vector<16x8xf32>
    %c0_130 = arith.constant 0 : index
    %c0_131 = arith.constant 0 : index
    %159 = vector.load %arg13[%c0_130, %c0_131] : memref<1x8xf32, #tpu.memory_space<vmem>>, vector<1x8xf32>
    %160 = vector.broadcast %159 : vector<1x8xf32> to vector<16x8xf32>
    %161 = arith.addf %158, %160 : vector<16x8xf32>
    %cst_132 = arith.constant 3.000000e+00 : f32
    %162 = vector.broadcast %cst_132 : f32 to vector<16x8xf32>
    %163 = arith.addf %161, %162 : vector<16x8xf32>
    %cst_133 = arith.constant 0.000000e+00 : f32
    %cst_134 = arith.constant 6.000000e+00 : f32
    %164 = vector.broadcast %cst_133 : f32 to vector<16x8xf32>
    %165 = arith.maximumf %164, %163 : vector<16x8xf32>
    %166 = vector.broadcast %cst_134 : f32 to vector<16x8xf32>
    %167 = arith.minimumf %166, %165 : vector<16x8xf32>
    %168 = arith.mulf %161, %167 : vector<16x8xf32>
    %cst_135 = arith.constant 0.166666672 : f32
    %169 = vector.broadcast %cst_135 : f32 to vector<16x8xf32>
    %170 = arith.mulf %168, %169 : vector<16x8xf32>
    %c0_136 = arith.constant 0 : index
    %c0_137 = arith.constant 0 : index
    %171 = vector.load %arg16[%c0_136, %c0_137] : memref<8x4xf32, #tpu.memory_space<vmem>>, vector<8x4xf32>
    %cst_138 = arith.constant dense<0.000000e+00> : vector<16x4xf32>
    %172 = tpu.matmul %170, %171, %cst_138 {dimension_numbers = #tpu.dot_dimension_numbers<[1], [0], [0], [1], [0, 0, 1, 1], [], []>} : vector<16x8xf32>, vector<8x4xf32>, vector<16x4xf32> -> vector<16x4xf32>
    %c0_139 = arith.constant 0 : index
    %c0_140 = arith.constant 0 : index
    %173 = vector.load %arg17[%c0_139, %c0_140] : memref<1x4xf32, #tpu.memory_space<vmem>>, vector<1x4xf32>
    %174 = vector.broadcast %173 : vector<1x4xf32> to vector<16x4xf32>
    %175 = arith.addf %172, %174 : vector<16x4xf32>
    %cst_141 = arith.constant 0.000000e+00 : f32
    %176 = vector.broadcast %cst_141 : f32 to vector<16x4xf32>
    %177 = arith.subf %176, %175 : vector<16x4xf32>
    %178 = math.exp %177 : vector<16x4xf32>
    %cst_142 = arith.constant 1.000000e+00 : f32
    %179 = vector.broadcast %cst_142 : f32 to vector<16x4xf32>
    %180 = arith.addf %179, %178 : vector<16x4xf32>
    %181 = tpu.reciprocal %180 : vector<16x4xf32> -> vector<16x4xf32>
    %182 = vector.shape_cast %150 : vector<16x4xf32> to vector<16x1x4xf32>
    %183 = vector.broadcast %182 : vector<16x1x4xf32> to vector<16x16x4xf32>
    %184 = arith.mulf %113, %183 : vector<16x16x4xf32>
    %185 = vector.shape_cast %181 : vector<16x4xf32> to vector<1x16x4xf32>
    %186 = vector.broadcast %185 : vector<1x16x4xf32> to vector<16x16x4xf32>
    %187 = arith.mulf %184, %186 : vector<16x16x4xf32>
    %188 = arith.addf %187, %1 : vector<16x16x4xf32>
    %c0_143 = arith.constant 0 : index
    %c0_144 = arith.constant 0 : index
    %c0_145 = arith.constant 0 : index
    %c0_146 = arith.constant 0 : index
    %189 = vector.load %arg18[%c0_143, %c0_144, %c0_145, %c0_146] : memref<1x16x16x4xf32, #tpu.memory_space<vmem>>, vector<1x16x16x4xf32>
    %190 = vector.shape_cast %189 : vector<1x16x16x4xf32> to vector<16x16x4xf32>
    %191 = vector.shape_cast %188 : vector<16x16x4xf32> to vector<1x16x16x4xf32>
    tpu.vector_store %arg18[%c0_143, %c0_144, %c0_145, %c0_146], %191 {strides = array<i32>} : memref<1x16x16x4xf32, #tpu.memory_space<vmem>>, vector<1x16x16x4xf32>,
    return
  }
  func.func @transform_0(%arg0: i32) -> (i32, i32, i32, i32) {
    %c0_i32 = arith.constant 0 : i32
    %c0_i32_0 = arith.constant 0 : i32
    %c0_i32_1 = arith.constant 0 : i32
    %c0_i32_2 = arith.constant 0 : i32
    return %arg0, %c0_i32, %c0_i32_0, %c0_i32_1 : i32, i32, i32, i32
  }
  func.func @transform_1(%arg0: i32) -> (i32, i32) {
    %c0_i32 = arith.constant 0 : i32
    %c0_i32_0 = arith.constant 0 : i32
    %c0_i32_1 = arith.constant 0 : i32
    return %c0_i32, %c0_i32_0 : i32, i32
  }
  func.func @transform_2(%arg0: i32) -> (i32, i32) {
    %c0_i32 = arith.constant 0 : i32
    %c0_i32_0 = arith.constant 0 : i32
    %c0_i32_1 = arith.constant 0 : i32
    return %c0_i32, %c0_i32_0 : i32, i32
  }
  func.func @transform_3(%arg0: i32) -> (i32, i32) {
    %c0_i32 = arith.constant 0 : i32
    %c0_i32_0 = arith.constant 0 : i32
    %c0_i32_1 = arith.constant 0 : i32
    return %c0_i32, %c0_i32_0 : i32, i32
  }
  func.func @transform_4(%arg0: i32) -> (i32, i32) {
    %c0_i32 = arith.constant 0 : i32
    %c0_i32_0 = arith.constant 0 : i32
    %c0_i32_1 = arith.constant 0 : i32
    return %c0_i32, %c0_i32_0 : i32, i32
  }
  func.func @transform_5(%arg0: i32) -> (i32, i32) {
    %c0_i32 = arith.constant 0 : i32
    %c0_i32_0 = arith.constant 0 : i32
    %c0_i32_1 = arith.constant 0 : i32
    return %c0_i32, %c0_i32_0 : i32, i32
  }
  func.func @transform_6(%arg0: i32) -> (i32, i32) {
    %c0_i32 = arith.constant 0 : i32
    %c0_i32_0 = arith.constant 0 : i32
    %c0_i32_1 = arith.constant 0 : i32
    return %c0_i32, %c0_i32_0 : i32, i32
  }
  func.func @transform_7(%arg0: i32) -> (i32, i32) {
    %c0_i32 = arith.constant 0 : i32
    %c0_i32_0 = arith.constant 0 : i32
    %c0_i32_1 = arith.constant 0 : i32
    return %c0_i32, %c0_i32_0 : i32, i32
  }
  func.func @transform_8(%arg0: i32) -> (i32, i32) {
    %c0_i32 = arith.constant 0 : i32
    %c0_i32_0 = arith.constant 0 : i32
    %c0_i32_1 = arith.constant 0 : i32
    return %c0_i32, %c0_i32_0 : i32, i32
  }
  func.func @transform_9(%arg0: i32) -> (i32, i32) {
    %c0_i32 = arith.constant 0 : i32
    %c0_i32_0 = arith.constant 0 : i32
    %c0_i32_1 = arith.constant 0 : i32
    return %c0_i32, %c0_i32_0 : i32, i32
  }
  func.func @transform_10(%arg0: i32) -> (i32, i32) {
    %c0_i32 = arith.constant 0 : i32
    %c0_i32_0 = arith.constant 0 : i32
    %c0_i32_1 = arith.constant 0 : i32
    return %c0_i32, %c0_i32_0 : i32, i32
  }
  func.func @transform_11(%arg0: i32) -> (i32, i32) {
    %c0_i32 = arith.constant 0 : i32
    %c0_i32_0 = arith.constant 0 : i32
    %c0_i32_1 = arith.constant 0 : i32
    return %c0_i32, %c0_i32_0 : i32, i32
  }
  func.func @transform_12(%arg0: i32) -> (i32, i32) {
    %c0_i32 = arith.constant 0 : i32
    %c0_i32_0 = arith.constant 0 : i32
    %c0_i32_1 = arith.constant 0 : i32
    return %c0_i32, %c0_i32_0 : i32, i32
  }
  func.func @transform_13(%arg0: i32) -> (i32, i32) {
    %c0_i32 = arith.constant 0 : i32
    %c0_i32_0 = arith.constant 0 : i32
    %c0_i32_1 = arith.constant 0 : i32
    return %c0_i32, %c0_i32_0 : i32, i32
  }
  func.func @transform_14(%arg0: i32) -> (i32, i32) {
    %c0_i32 = arith.constant 0 : i32
    %c0_i32_0 = arith.constant 0 : i32
    %c0_i32_1 = arith.constant 0 : i32
    return %c0_i32, %c0_i32_0 : i32, i32
  }
  func.func @transform_15(%arg0: i32) -> (i32, i32) {
    %c0_i32 = arith.constant 0 : i32
    %c0_i32_0 = arith.constant 0 : i32
    %c0_i32_1 = arith.constant 0 : i32
    return %c0_i32, %c0_i32_0 : i32, i32
  }
  func.func @transform_16(%arg0: i32) -> (i32, i32) {
    %c0_i32 = arith.constant 0 : i32
    %c0_i32_0 = arith.constant 0 : i32
    %c0_i32_1 = arith.constant 0 : i32
    return %c0_i32, %c0_i32_0 : i32, i32
  }
  func.func @transform_17(%arg0: i32) -> (i32, i32, i32, i32) {
    %c0_i32 = arith.constant 0 : i32
    %c0_i32_0 = arith.constant 0 : i32
    %c0_i32_1 = arith.constant 0 : i32
    %c0_i32_2 = arith.constant 0 : i32
    return %arg0, %c0_i32, %c0_i32_0, %c0_i32_1 : i32, i32, i32, i32
  }
}

</mosaic_0001>

<bundles_post_ra>
// kernel: res_block_forward.1
= control target key start
LH: loop header
LB: loop body
LE: loop exit
PB: predicated region body
PF: predicated region fallthrough
CT: control target
= control target key end

     0   :  { %s6774_s24 = smov 0   ;;  %s11087_s0 = inlined_call_operand.vmem [shape: f32[2,16,16,4], index: 0, kind: input, shape index: {}]   ;;  %s11088_s1 = inlined_call_operand.vmem [shape: f32[36,4], index: 1, kind: input, shape index: {}]   ;;  %s11089_s2 = inlined_call_operand.vmem [shape: f32[1,4], index: 2, kind: input, shape index: {}]   ;;  %s11090_s3 = inlined_call_operand.vmem [shape: f32[1,4], index: 3, kind: input, shape index: {}]   ;;  %s11091_s4 = inlined_call_operand.vmem [shape: f32[1,4], index: 4, kind: input, shape index: {}]   ;;  %s11092_s5 = inlined_call_operand.vmem [shape: f32[36,4], index: 5, kind: input, shape index: {}]   ;;  %s11093_s6 = inlined_call_operand.vmem [shape: f32[1,4], index: 6, kind: input, shape index: {}]   ;;  %s11094_s7 = inlined_call_operand.vmem [shape: f32[1,4], index: 7, kind: input, shape index: {}]   ;;  %s11095_s8 = inlined_call_operand.vmem [shape: f32[1,4], index: 8, kind: input, shape index: {}]   ;;  %s11096_s9 = inlined_call_operand.vmem [shape: f32[4,8], index: 9, kind: input, shape index: {}]   ;;  %s11097_s10 = inlined_call_operand.vmem [shape: f32[1,8], index: 10, kind: input, shape index: {}]   ;;  %s11098_s11 = inlined_call_operand.vmem [shape: f32[1,8], index: 11, kind: input, shape index: {}]   ;;  %s11099_s12 = inlined_call_operand.vmem [shape: f32[1,8], index: 12, kind: input, shape index: {}]   ;;  %s11100_s13 = inlined_call_operand.vmem [shape: f32[8,4], index: 13, kind: input, shape index: {}]   ;;  %s11101_s14 = inlined_call_operand.vmem [shape: f32[1,4], index: 14, kind: input, shape index: {}]   ;;  %s11102_s15 = inlined_call_operand.vmem [shape: f32[8,4], index: 15, kind: input, shape index: {}]   ;;  %s11103_s16 = inlined_call_operand.vmem [shape: f32[1,4], index: 16, kind: input, shape index: {}]   ;;  %s11104_s17 = inlined_call_operand.vmem [shape: f32[2,16,16,4], index: 17, kind: output, shape index: {}]  }
   0x1   :  { %11239 = sst [smem:[#allocation79_spill]] %s11087_s0 }
   0x2   :  { %11240 = sst [smem:[#allocation80_spill]] %s11088_s1 }
   0x3 LB: > { %s6290_s25 = sadd.s32 4294967295, %s6672_s24   ;;  %p6294_p0 = scmp.ge.s32.totalorder %s6672_s24, 1  ;;  %s6672_s24 = sphi %s6774_s24, %s27_s24  }
   0x4   : > { %p487_p1 = scmp.lt.s32.totalorder %s6672_s24, 3 }
   0x6   : > { %p488_p2 = pnand %p6294_p0, %p487_p1 }
   0x8   : > { %491 = sbr.rel (%p488_p2) target bundleno = 2995 (0xbb3), region = 88 }
   0xf   : > { %vm584_vm0 = vcmask 25600   ;;  %vm11124_vm1 = vcmask 31744   ;;  %v6674_v0 = vmov 0.0   ;;  %p539_p3 = scmp.lt.s32.totalorder %s6290_s25, 1  ;;  %s11241_s29 = sld [smem:[#allocation79_spill]]  ;;  %vm11113_vm2 = vcmask 1043456  }
  0x10   : > { %585 = vst.msk [vmem:[#allocation2 + $0x10] sm:$0x3] %vm584_vm0, %v6674_v0  ;;  %588 = vst.msk [vmem:[#allocation2 + $0x28] sm:$0x3] %vm584_vm0, %v6674_v0  ;;  %s6675_s30 = smov 4   ;;  %s11171_s18 = smov 8  }
  0x11   : > { %591 = vst.msk [vmem:[#allocation2 + $0x40] sm:$0x3] %vm584_vm0, %v6674_v0  ;;  %594 = vst.msk [vmem:[#allocation2 + $0x58] sm:$0x3] %vm584_vm0, %v6674_v0  ;;  %s12181_s25 = smov (!%p539_p3, %s6290_s25), 1  ;;  %s11107_s19 = smov 12  }
  0x12   : > { %597 = vst.msk [vmem:[#allocation2 + $0x70] sm:$0x3] %vm584_vm0, %v6674_v0  ;;  %600 = vst.msk [vmem:[#allocation2 + $0x88] sm:$0x3] %vm584_vm0, %v6674_v0  ;;  %s11106_s26 = sshll.u32 %s12181_s25, 8  ;;  %s11111_s1 = smov 16  }
  0x13   : > { %603 = vst.msk [vmem:[#allocation2 + $0xa0] sm:$0x3] %vm584_vm0, %v6674_v0  ;;  %606 = vst.msk [vmem:[#allocation2 + $0xb8] sm:$0x3] %vm584_vm0, %v6674_v0  ;;  %s11176_s20 = smov 20   ;;  %s11169_s21 = smov 24  }
  0x14   : > { %609 = vst.msk [vmem:[#allocation2 + $0xd0] sm:$0x3] %vm584_vm0, %v6674_v0  ;;  %612 = vst.msk [vmem:[#allocation2 + $0xe8] sm:$0x3] %vm584_vm0, %v6674_v0  ;;  %s11109_s22 = smov 28   ;;  %s11252_s28 = sld [smem:[#allocation80_spill]] }
  0x15   : > { %615 = vst.msk [vmem:[#allocation2 + $0x100] sm:$0x3] %vm584_vm0, %v6674_v0  ;;  %618 = vst.msk [vmem:[#allocation2 + $0x118] sm:$0x3] %vm584_vm0, %v6674_v0  ;;  %s6848_s0 = scalar_lea.vmem %s11241_s29, %s11106_s26  ;;  %s11256_s29 = smov 28   ;;  %vm11119_vm3 = vcmask 57376  }
  0x16   : > { %621 = vst.msk [vmem:[#allocation2 + $0x130] sm:$0x3] %vm584_vm0, %v6674_v0  ;;  %624 = vst.msk [vmem:[#allocation2 + $0x148] sm:$0x3] %vm584_vm0, %v6674_v0  ;;  %v6851_v1 = vld [vmem:[%s6848_s0] sm:$0xff]  ;;  %v6854_v2 = vld [vmem:[%s6848_s0 + $0x8] sm:$0xff] }
  0x17   : > { %627 = vst.msk [vmem:[#allocation2 + $0x160] sm:$0x3] %vm584_vm0, %v6674_v0  ;;  %630 = vst.msk [vmem:[#allocation2 + $0x178] sm:$0x3] %vm584_vm0, %v6674_v0  ;;  %v6857_v3 = vld [vmem:[%s6848_s0 + $0x10] sm:$0xff]  ;;  %v6870_v7 = vld [vmem:[%s6848_s0 + $0x18] sm:$0xff] }
  0x18   : > { %633 = vst.msk [vmem:[#allocation2 + $0x190] sm:$0x3] %vm584_vm0, %v6674_v0  ;;  %636 = vst.msk [vmem:[#allocation2 + $0x1a8] sm:$0x3] %vm584_vm0, %v6674_v0  ;;  %v672_v4 = vld [vmem:[#allocation2 + $0x10] sm:$0x3] }
  0x19   : > { %582 = vst.msk [vmem:[#allocation2] sm:$0xff] %vm11124_vm1, %v6674_v0  ;;  %583 = vst.msk [vmem:[#allocation2 + $0x8] sm:$0xff] %vm11124_vm1, %v6674_v0  ;;  %808 = vrot.lane.b32.xlu1 %v672_v4, %s6675_s30  ;;  %v6873_v8 = vld [vmem:[%s6848_s0 + $0x20] sm:$0xff]  ;;  %v6878_v9 = vld [vmem:[%s6848_s0 + $0x28] sm:$0xff]  ;;  %s11257_s23 = smov 16   ;;  %vm948_vm4 = vcmask 64545  }
  0x1a   : > { %586 = vst.msk [vmem:[#allocation2 + $0x18] sm:$0xff] %vm11124_vm1, %v6674_v0  ;;  %587 = vst.msk [vmem:[#allocation2 + $0x20] sm:$0xff] %vm11124_vm1, %v6674_v0  ;;  %v6883_v10 = vld [vmem:[%s6848_s0 + $0x30] sm:$0xff]  ;;  %v6886_v11 = vld [vmem:[%s6848_s0 + $0x38] sm:$0xff]  ;;  %vm11121_vm5 = vcmask 97346   ;;  %vm950_vm6 = vcmask 64544  }
  0x1b   : > { %589 = vst.msk [vmem:[#allocation2 + $0x30] sm:$0xff] %vm11124_vm1, %v6674_v0  ;;  %590 = vst.msk [vmem:[#allocation2 + $0x38] sm:$0xff] %vm11124_vm1, %v6674_v0  ;;  %v6937_v21 = vld [vmem:[%s6848_s0 + $0x40] sm:$0xff]  ;;  %v6940_v22 = vld [vmem:[%s6848_s0 + $0x48] sm:$0xff]  ;;  %vm11125_vm7 = vcmask 91200   ;;  %vm11123_vm8 = vcmask 97344  }
  0x1c   : > { %592 = vst.msk [vmem:[#allocation2 + $0x48] sm:$0xff] %vm11124_vm1, %v6674_v0  ;;  %593 = vst.msk [vmem:[#allocation2 + $0x50] sm:$0xff] %vm11124_vm1, %v6674_v0  ;;  %v2270_v26 = vld [vmem:[%s11252_s28] sm:$0xff]  ;;  %v2271_v27 = vld [vmem:[%s11252_s28 + $0x8] sm:$0xff]  ;;  %vm11122_vm9 = vcmask 130144   ;;  %vm11117_vm10 = vcmask 162944  }
  0x1d   : > { %595 = vst.msk [vmem:[#allocation2 + $0x60] sm:$0xff] %vm11124_vm1, %v6674_v0  ;;  %596 = vst.msk [vmem:[#allocation2 + $0x68] sm:$0xff] %vm11124_vm1, %v6674_v0  ;;  %v6612_v28 = vpack.c.bf16 %v2271_v27, %v2270_v26  ;;  %v2272_v29 = vld [vmem:[%s11252_s28 + $0x10] sm:$0xff]  ;;  %v2273_v30 = vld [vmem:[%s11252_s28 + $0x18] sm:$0xff]  ;;  %vm11116_vm11 = vcmask 162945   ;;  %vm1474_vm12 = vcmask 155776  }
  0x1e   : > { %598 = vst.msk [vmem:[#allocation2 + $0x78] sm:$0xff] %vm11124_vm1, %v6674_v0  ;;  %599 = vst.msk [vmem:[#allocation2 + $0x80] sm:$0xff] %vm11124_vm1, %v6674_v0  ;;  %v6616_v31 = vpack.c.bf16 %v2273_v30, %v2272_v29  ;;  %v2274_v32 = vld [vmem:[%s11252_s28 + $0x20] sm:$0xf]  ;;  %v7009_v33 = vld [vmem:[%s6848_s0 + $0x50] sm:$0xff]  ;;  %vm1667_vm13 = vcmask 195744  }
  0x1f   : > { %601 = vst.msk [vmem:[#allocation2 + $0x90] sm:$0xff] %vm11124_vm1, %v6674_v0  ;;  %602 = vst.msk [vmem:[#allocation2 + $0x98] sm:$0xff] %vm11124_vm1, %v6674_v0  ;;  %6613 = vmatprep.subr.bf16.mxu0 %v6612_v28  ;;  %v7012_v34 = vld [vmem:[%s6848_s0 + $0x58] sm:$0xff]  ;;  %v7071_v44 = vld [vmem:[%s6848_s0 + $0x60] sm:$0xff]  ;;  %vm1665_vm14 = vcmask 195746   ;;  %vm11168_vm15 = vcmask 189600  }
  0x20   : > { %604 = vst.msk [vmem:[#allocation2 + $0xa8] sm:$0xff] %vm11124_vm1, %v6674_v0  ;;  %605 = vst.msk [vmem:[#allocation2 + $0xb0] sm:$0xff] %vm11124_vm1, %v6674_v0  ;;  %v670_v5 = vld [vmem:[#allocation2] sm:$0xff]  ;;  %v671_v6 = vld [vmem:[#allocation2 + $0x8] sm:$0xff]  ;;  %6615 = vmatpush3.bf16.msra.mxu0 %v6612_v28  ;;  %vm11114_vm0 = vcmask 228544   ;;  %s11581_s26 = smov 20  }
  0x21   : > { %607 = vst.msk [vmem:[#allocation2 + $0xc0] sm:$0xff] %vm11124_vm1, %v6674_v0  ;;  %608 = vst.msk [vmem:[#allocation2 + $0xc8] sm:$0xff] %vm11124_vm1, %v6674_v0  ;;  %804 = vrot.lane.b32.xlu0 %v670_v5, %s6675_s30  ;;  %999 = vrot.lane.b32.xlu1 %v670_v5, %s11171_s18  ;;  %v7074_v45 = vld [vmem:[%s6848_s0 + $0x68] sm:$0xff] }
  0x22   : > { %610 = vst.msk [vmem:[#allocation2 + $0xd8] sm:$0xff] %vm11124_vm1, %v6674_v0  ;;  %611 = vst.msk [vmem:[#allocation2 + $0xe0] sm:$0xff] %vm11124_vm1, %v6674_v0  ;;  %6617 = vmatprep.subr.bf16.mxu0 %v6616_v31 }
  0x23   : > { %613 = vst.msk [vmem:[#allocation2 + $0xf0] sm:$0xff] %vm11124_vm1, %v6674_v0  ;;  %614 = vst.msk [vmem:[#allocation2 + $0xf8] sm:$0xff] %vm11124_vm1, %v6674_v0 }
  0x24   : > { %616 = vst.msk [vmem:[#allocation2 + $0x108] sm:$0xff] %vm11124_vm1, %v6674_v0  ;;  %617 = vst.msk [vmem:[#allocation2 + $0x110] sm:$0xff] %vm11124_vm1, %v6674_v0  ;;  %6619 = vmatpush3.bf16.msra.mxu0 %v6616_v31 }
  0x25   : > { %619 = vst.msk [vmem:[#allocation2 + $0x120] sm:$0xff] %vm11124_vm1, %v6674_v0  ;;  %620 = vst.msk [vmem:[#allocation2 + $0x128] sm:$0xff] %vm11124_vm1, %v6674_v0  ;;  %806 = vrot.lane.b32.xlu0 %v671_v6, %s6675_s30  ;;  %1003 = vrot.lane.b32.xlu1 %v672_v4, %s11171_s18 }
  0x26   : > { %622 = vst.msk [vmem:[#allocation2 + $0x138] sm:$0xff] %vm11124_vm1, %v6674_v0  ;;  %623 = vst.msk [vmem:[#allocation2 + $0x140] sm:$0xff] %vm11124_vm1, %v6674_v0  ;;  %6484 = vmatprep.subr.msk.mxu0 %vm11113_vm2, %v2274_v32 }
  0x27   : > { %625 = vst.msk [vmem:[#allocation2 + $0x150] sm:$0xff] %vm11124_vm1, %v6674_v0  ;;  %626 = vst.msk [vmem:[#allocation2 + $0x158] sm:$0xff] %vm11124_vm1, %v6674_v0 }
  0x28   : > { %628 = vst.msk [vmem:[#allocation2 + $0x168] sm:$0xff] %vm11124_vm1, %v6674_v0  ;;  %629 = vst.msk [vmem:[#allocation2 + $0x170] sm:$0xff] %vm11124_vm1, %v6674_v0  ;;  %6485 = vmatpush3.msk.msra.mxu0 %vm11113_vm2, %v2274_v32  ;;  %vm11167_vm2 = vcmask 261344  }
  0x29   : > { %631 = vst.msk [vmem:[#allocation2 + $0x180] sm:$0xff] %vm11124_vm1, %v6674_v0  ;;  %632 = vst.msk [vmem:[#allocation2 + $0x188] sm:$0xff] %vm11124_vm1, %v6674_v0  ;;  %1001 = vrot.lane.b32.xlu0 %v671_v6, %s11171_s18 }
  0x2a   : > { %634 = vst.msk [vmem:[#allocation2 + $0x198] sm:$0xff] %vm11124_vm1, %v6674_v0  ;;  %635 = vst.msk [vmem:[#allocation2 + $0x1a0] sm:$0xff] %vm11124_vm1, %v6674_v0 }
  0x2b   : > { %11242 = vst [vmem:[#allocation4_spill] sm:$0xff] %v6851_v1  ;;  %11243 = vst [vmem:[#allocation5_spill] sm:$0xff] %v6854_v2 }
  0x2c   : > { %11244 = vst [vmem:[#allocation6_spill] sm:$0xff] %v6857_v3  ;;  %638 = vst.msk [vmem:[#allocation2 + $0x19] sm:$0xff] %vm11124_vm1, %v6851_v1 }
  0x2d   : > { %639 = vst.msk [vmem:[#allocation2 + $0x21] sm:$0xff] %vm11124_vm1, %v6854_v2  ;;  %640 = vst.msk [vmem:[#allocation2 + $0x31] sm:$0xff] %vm11124_vm1, %v6857_v3 }
  0x2e   : > { %724 = vst.msk [vmem:[#allocation3] sm:$0xff] %vm11124_vm1, %v670_v5  ;;  %725 = vst.msk [vmem:[#allocation3 + $0x8] sm:$0xff] %vm11124_vm1, %v671_v6 }
  0x2f   : > { %11245 = vst [vmem:[#allocation7_spill] sm:$0xff] %v6870_v7  ;;  %11246 = vst [vmem:[#allocation8_spill] sm:$0xff] %v6873_v8 }
  0x30   : > { %641 = vst.msk [vmem:[#allocation2 + $0x39] sm:$0xff] %vm11124_vm1, %v6870_v7  ;;  %11247 = vst [vmem:[#allocation9_spill] sm:$0xff] %v6878_v9 }
  0x31   : > { %642 = vst.msk [vmem:[#allocation2 + $0x49] sm:$0xff] %vm11124_vm1, %v6873_v8  ;;  %11248 = vst [vmem:[#allocation10_spill] sm:$0xff] %v6883_v10 }
  0x32   : > { %11249 = vst [vmem:[#allocation11_spill] sm:$0xff] %v6886_v11  ;;  %643 = vst.msk [vmem:[#allocation2 + $0x51] sm:$0xff] %vm11124_vm1, %v6878_v9 }
  0x33   : > { %644 = vst.msk [vmem:[#allocation2 + $0x61] sm:$0xff] %vm11124_vm1, %v6883_v10  ;;  %645 = vst.msk [vmem:[#allocation2 + $0x69] sm:$0xff] %vm11124_vm1, %v6886_v11  ;;  %v673_v13 = vld [vmem:[#allocation2 + $0x18] sm:$0xff] }
  0x34   : > { %v674_v12 = vld [vmem:[#allocation2 + $0x20] sm:$0xff]  ;;  %726 = vst.msk [vmem:[#allocation3 + $0x10] sm:$0xff] %vm11124_vm1, %v673_v13  ;;  %v6898_v14 = vld [vmem:[#allocation2 + $0x30] sm:$0xff]  ;;  %1196 = vrot.lane.b32.xlu0 %v673_v13, %s11107_s19  ;;  %v675_v20 = vld [vmem:[#allocation2 + $0x28] sm:$0x3] }
  0x35   : > { %727 = vst.msk [vmem:[#allocation3 + $0x18] sm:$0xff] %vm11124_vm1, %v674_v12  ;;  %728 = vst.msk [vmem:[#allocation3 + $0x20] sm:$0xff] %vm11124_vm1, %v6898_v14  ;;  %1198 = vrot.lane.b32.xlu1 %v674_v12, %s11107_s19 }
  0x36   : > { %11250 = vst [vmem:[#allocation12_spill] sm:$0xff] %v6937_v21  ;;  %11251 = vst [vmem:[#allocation13_spill] sm:$0xff] %v6940_v22 }
  0x37   : > { %v6902_v15 = vld [vmem:[#allocation2 + $0x38] sm:$0xff]  ;;  %646 = vst.msk [vmem:[#allocation2 + $0x79] sm:$0xff] %vm11124_vm1, %v6937_v21  ;;  %647 = vst.msk [vmem:[#allocation2 + $0x81] sm:$0xff] %vm11124_vm1, %v6940_v22  ;;  %v678_v25 = vld [vmem:[#allocation2 + $0x40] sm:$0x3] }
  0x38   : > { %v6906_v16 = vld [vmem:[#allocation2 + $0x48] sm:$0xff]  ;;  %729 = vst.msk [vmem:[#allocation3 + $0x28] sm:$0xff] %vm11124_vm1, %v6902_v15  ;;  %1326 = vrot.lane.b32.xlu0 %v673_v13, %s11111_s1  ;;  %11253 = vst [vmem:[#allocation14_spill] sm:$0xff] %v7009_v33 }
  0x39   : > { %v6910_v17 = vld [vmem:[#allocation2 + $0x50] sm:$0xff]  ;;  %730 = vst.msk [vmem:[#allocation3 + $0x30] sm:$0xff] %vm11124_vm1, %v6906_v16  ;;  %1328 = vrot.lane.b32.xlu1 %v674_v12, %s11111_s1  ;;  %11254 = vst [vmem:[#allocation15_spill] sm:$0xff] %v7012_v34  ;;  %v681_v37 = vld [vmem:[#allocation2 + $0x58] sm:$0x3] }
  0x3a   : > { %v6914_v18 = vld [vmem:[#allocation2 + $0x68] sm:$0xff]  ;;  %731 = vst.msk [vmem:[#allocation3 + $0x38] sm:$0xff] %vm11124_vm1, %v6910_v17  ;;  %v6920_v19 = vld [vmem:[#allocation2 + $0x60] sm:$0xff]  ;;  %648 = vst.msk [vmem:[#allocation2 + $0x91] sm:$0xff] %vm11124_vm1, %v7009_v33 }
  0x3b   : > { %733 = vst.msk [vmem:[#allocation3 + $0x48] sm:$0xff] %vm11124_vm1, %v6914_v18  ;;  %732 = vst.msk [vmem:[#allocation3 + $0x40] sm:$0xff] %vm11124_vm1, %v6920_v19  ;;  %v684_v56 = vld [vmem:[#allocation2 + $0x70] sm:$0x3] }
  0x3c   : > { %1330 = vrot.lane.b32.xlu0 %v675_v20, %s11111_s1  ;;  %649 = vst.msk [vmem:[#allocation2 + $0x99] sm:$0xff] %vm11124_vm1, %v7012_v34  ;;  %11258 = vst [vmem:[#allocation16_spill] sm:$0xff] %v7071_v44 }
  0x3d   : > { %810 = vrot.lane.b32.xlu1 %v673_v13, %s6675_s30  ;;  %11259 = vst [vmem:[#allocation17_spill] sm:$0xff] %v7074_v45  ;;  %650 = vst.msk [vmem:[#allocation2 + $0xa9] sm:$0xff] %vm11124_vm1, %v7071_v44 }
  0x3e   : > { %v6952_v23 = vld [vmem:[#allocation2 + $0x80] sm:$0xff]  ;;  %v6954_v24 = vld [vmem:[#allocation2 + $0x78] sm:$0xff]  ;;  %651 = vst.msk [vmem:[#allocation2 + $0xb1] sm:$0xff] %vm11124_vm1, %v7074_v45  ;;  %v687_v32 = vld [vmem:[#allocation2 + $0x88] sm:$0x3] }
  0x3f   : > { %735 = vst.msk [vmem:[#allocation3 + $0x58] sm:$0xff] %vm11124_vm1, %v6952_v23  ;;  %734 = vst.msk [vmem:[#allocation3 + $0x50] sm:$0xff] %vm11124_vm1, %v6954_v24 }
  0x40   : > { %812 = vrot.lane.b32.xlu0 %v674_v12, %s6675_s30 }
  0x41   : > { %814 = vrot.lane.b32.xlu1 %v675_v20, %s6675_s30  ;;  %v7027_v36 = vld [vmem:[#allocation2 + $0x90] sm:$0xff] }
  0x42   : > { %736 = vst.msk [vmem:[#allocation3 + $0x60] sm:$0xff] %vm11124_vm1, %v7027_v36 }
  0x43   : > { %v7025_v35 = vld [vmem:[#allocation2 + $0x98] sm:$0xff] }
  0x44   : > { %1521 = vrot.lane.b32.xlu0 %v673_v13, %s11176_s20  ;;  %737 = vst.msk [vmem:[#allocation3 + $0x68] sm:$0xff] %vm11124_vm1, %v7025_v35  ;;  %v7093_v51 = vld [vmem:[#allocation2 + $0xa8] sm:$0xff] }
  0x45   : > { %1523 = vrot.lane.b32.xlu1 %v674_v12, %s11176_s20  ;;  %v7091_v50 = vld [vmem:[#allocation2 + $0xb0] sm:$0xff]  ;;  %738 = vst.msk [vmem:[#allocation3 + $0x70] sm:$0xff] %vm11124_vm1, %v7093_v51 }
  0x46   : > { %739 = vst.msk [vmem:[#allocation3 + $0x78] sm:$0xff] %vm11124_vm1, %v7091_v50 }
  0x48   : > { %1525 = vrot.lane.b32.xlu0 %v675_v20, %s11176_s20 }
  0x49   : > { %1005 = vrot.lane.b32.xlu1 %v673_v13, %s11171_s18 }
  0x4c   : > { %1007 = vrot.lane.b32.xlu0 %v674_v12, %s11171_s18 }
  0x4d   : > { %1009 = vrot.lane.b32.xlu1 %v675_v20, %s11171_s18 }
  0x50   : > { %1718 = vrot.lane.b32.xlu0 %v6898_v14, %s11169_s21 }
  0x51   : > { %1720 = vrot.lane.b32.xlu1 %v6902_v15, %s11169_s21 }
  0x54   : > { %1200 = vrot.lane.b32.xlu0 %v6898_v14, %s11107_s19 }
  0x55   : > { %1202 = vrot.lane.b32.xlu1 %v6902_v15, %s11107_s19  ;;  %s11174_s19 = smov 32  }
  0x58   : > { %1848 = vrot.lane.b32.xlu0 %v6898_v14, %s11109_s22 }
  0x59   : > { %1850 = vrot.lane.b32.xlu1 %v6902_v15, %s11109_s22 }
  0x5c   : > { %1332 = vrot.lane.b32.xlu0 %v6898_v14, %s11111_s1 }
  0x5d   : > { %1334 = vrot.lane.b32.xlu1 %v6902_v15, %s11111_s1 }
  0x60   : > { %1336 = vrot.lane.b32.xlu0 %v678_v25, %s11111_s1 }
  0x61   : > { %1852 = vrot.lane.b32.xlu1 %v678_v25, %s11109_s22  ;;  %s11255_s22 = smov 12  }
  0x64   : > { %2043 = vrot.lane.b32.xlu0 %v6898_v14, %s11174_s19 }
  0x65   : > { %2045 = vrot.lane.b32.xlu1 %v6902_v15, %s11174_s19 }
  0x68   : > { %816 = vrot.lane.b32.xlu0 %v6898_v14, %s6675_s30 }
  0x69   : > { %818 = vrot.lane.b32.xlu1 %v6902_v15, %s6675_s30 }
  0x6c   : > { %820 = vrot.lane.b32.xlu0 %v678_v25, %s6675_s30 }
  0x6d   : > { %1527 = vrot.lane.b32.xlu1 %v6898_v14, %s11176_s20 }
  0x70   : > { %1529 = vrot.lane.b32.xlu0 %v6902_v15, %s11176_s20 }
  0x71   : > { %1531 = vrot.lane.b32.xlu1 %v678_v25, %s11176_s20 }
  0x74   : > { %2047 = vrot.lane.b32.xlu0 %v678_v25, %s11174_s19 }
  0x75   : > { %1011 = vrot.lane.b32.xlu1 %v6898_v14, %s11171_s18 }
  0x78   : > { %1013 = vrot.lane.b32.xlu0 %v6902_v15, %s11171_s18  ;;  %v7149_v15 = vld [vmem:[%s6848_s0 + $0x70] sm:$0xff] }
  0x79   : > { %1015 = vrot.lane.b32.xlu1 %v678_v25, %s11171_s18  ;;  %11260 = vst [vmem:[#allocation18_spill] sm:$0xff] %v7149_v15  ;;  %652 = vst.msk [vmem:[#allocation2 + $0xc1] sm:$0xff] %vm11124_vm1, %v7149_v15 }
  0x7c   : > { %1722 = vrot.lane.b32.xlu0 %v6906_v16, %s11169_s21 }
  0x7d   : > { %1724 = vrot.lane.b32.xlu1 %v6910_v17, %s11169_s21 }
  0x80   : > { %1204 = vrot.lane.b32.xlu0 %v6906_v16, %s11255_s22  ;;  %v7171_v26 = vld [vmem:[#allocation2 + $0xc0] sm:$0xff] }
  0x81   : > { %1206 = vrot.lane.b32.xlu1 %v6910_v17, %s11255_s22  ;;  %740 = vst.msk [vmem:[#allocation3 + $0x80] sm:$0xff] %vm11124_vm1, %v7171_v26 }
  0x84   : > { %1854 = vrot.lane.b32.xlu0 %v6906_v16, %s11256_s29 }
  0x85   : > { %1856 = vrot.lane.b32.xlu1 %v6910_v17, %s11256_s29 }
  0x88   : > { %1338 = vrot.lane.b32.xlu0 %v6906_v16, %s11257_s23 }
  0x89   : > { %1340 = vrot.lane.b32.xlu1 %v6910_v17, %s11257_s23 }
  0x8b   : > { %v809_v38 = vpop.permute.xlu1 %808 }
  0x8c   : > { %1342 = vrot.lane.b32.xlu0 %v681_v37, %s11257_s23  ;;  %953 = vst.msk [vmem:[#allocation3 + $0xf] sm:$0x1] %vm11119_vm3, %v809_v38 }
  0x8d   : > { %1858 = vrot.lane.b32.xlu1 %v681_v37, %s11256_s29 }
  0x90   : > { %2049 = vrot.lane.b32.xlu0 %v6906_v16, %s11174_s19 }
  0x91   : > { %2051 = vrot.lane.b32.xlu1 %v6910_v17, %s11174_s19 }
  0x93   : > { %v805_v39 = vpop.permute.xlu0 %804  ;;  %v1000_v40 = vpop.permute.xlu1 %999 }
  0x94   : > { %822 = vrot.lane.b32.xlu0 %v6906_v16, %s6675_s30  ;;  %949 = vst.msk [vmem:[#allocation3 - $0x1] sm:$0xfe] %vm948_vm4, %v805_v39 }
  0x95   : > { %824 = vrot.lane.b32.xlu1 %v6910_v17, %s6675_s30  ;;  %1144 = vst.msk [vmem:[#allocation3 - $0x2] sm:$0xfc] %vm11121_vm5, %v1000_v40 }
  0x97   : > { %v807_v41 = vpop.permute.xlu0 %806  ;;  %v1004_v42 = vpop.permute.xlu1 %1003 }
  0x98   : > { %826 = vrot.lane.b32.xlu0 %v681_v37, %s6675_s30  ;;  %951 = vst.msk [vmem:[#allocation3 + $0x7] sm:$0xff] %vm950_vm6, %v807_v41 }
  0x99   : > { %1533 = vrot.lane.b32.xlu1 %v6906_v16, %s11176_s20  ;;  %1148 = vst.msk [vmem:[#allocation3 + $0xe] sm:$0x3] %vm11125_vm7, %v1004_v42 }
  0x9b   : > { %v1002_v43 = vpop.permute.xlu0 %1001 }
  0x9c   : > { %1535 = vrot.lane.b32.xlu0 %v6910_v17, %s11176_s20  ;;  %1146 = vst.msk [vmem:[#allocation3 + $0x6] sm:$0xff] %vm11123_vm8, %v1002_v43 }
  0x9d   : > { %1537 = vrot.lane.b32.xlu1 %v681_v37, %s11176_s20 }
  0xa0   : > { %2053 = vrot.lane.b32.xlu0 %v681_v37, %s11174_s19 }
  0xa1   : > { %1017 = vrot.lane.b32.xlu1 %v6906_v16, %s11171_s18  ;;  %v7152_v16 = vld [vmem:[%s6848_s0 + $0x78] sm:$0xff] }
  0xa2   : > { %11261 = vst [vmem:[#allocation19_spill] sm:$0xff] %v7152_v16  ;;  %653 = vst.msk [vmem:[#allocation2 + $0xc9] sm:$0xff] %vm11124_vm1, %v7152_v16 }
  0xa4   : > { %1019 = vrot.lane.b32.xlu0 %v6910_v17, %s11171_s18 }
  0xa5   : > { %1021 = vrot.lane.b32.xlu1 %v681_v37, %s11171_s18 }
  0xa6   : > { %v1197_v47 = vpop.permute.xlu0 %1196 }
  0xa7   : > { %v1199_v46 = vpop.permute.xlu1 %1198  ;;  %1293 = vst.msk [vmem:[#allocation3] sm:$0xff] %vm11122_vm9, %v1197_v47 }
  0xa8   : > { %1294 = vst.msk [vmem:[#allocation3 + $0x8] sm:$0xff] %vm11122_vm9, %v1199_v46  ;;  %1726 = vrot.lane.b32.xlu0 %v6920_v19, %s11169_s21 }
  0xa9   : > { %1728 = vrot.lane.b32.xlu1 %v6914_v18, %s11169_s21  ;;  %v7169_v25 = vld [vmem:[#allocation2 + $0xc8] sm:$0xff] }
  0xaa   : > { %v1327_v49 = vpop.permute.xlu0 %1326  ;;  %741 = vst.msk [vmem:[#allocation3 + $0x88] sm:$0xff] %vm11124_vm1, %v7169_v25 }
  0xab   : > { %v1329_v48 = vpop.permute.xlu1 %1328  ;;  %1471 = vst.msk [vmem:[#allocation3 - $0x1] sm:$0xfe] %vm11116_vm11, %v1327_v49 }
  0xac   : > { %1473 = vst.msk [vmem:[#allocation3 + $0x7] sm:$0xff] %vm11117_vm10, %v1329_v48  ;;  %1208 = vrot.lane.b32.xlu0 %v6920_v19, %s11255_s22 }
  0xad   : > { %1210 = vrot.lane.b32.xlu1 %v6914_v18, %s11255_s22 }
  0xae   : > { %v1331_v53 = vpop.permute.xlu0 %1330 }
  0xaf   : > { %v811_v52 = vpop.permute.xlu1 %810  ;;  %1475 = vst.msk [vmem:[#allocation3 + $0xf] sm:$0x1] %vm1474_vm12, %v1331_v53 }
  0xb0   : > { %954 = vst.msk [vmem:[#allocation3 + $0xf] sm:$0xfe] %vm948_vm4, %v811_v52  ;;  %1860 = vrot.lane.b32.xlu0 %v6920_v19, %s11256_s29 }
  0xb1   : > { %1862 = vrot.lane.b32.xlu1 %v6914_v18, %s11256_s29 }
  0xb2   : > { %v813_v55 = vpop.permute.xlu0 %812 }
  0xb3   : > { %v815_v54 = vpop.permute.xlu1 %814  ;;  %955 = vst.msk [vmem:[#allocation3 + $0x17] sm:$0xff] %vm950_vm6, %v813_v55 }
  0xb4   : > { %956 = vst.msk [vmem:[#allocation3 + $0x1f] sm:$0x1] %vm11119_vm3, %v815_v54  ;;  %1344 = vrot.lane.b32.xlu0 %v6920_v19, %s11257_s23 }
  0xb5   : > { %1346 = vrot.lane.b32.xlu1 %v6914_v18, %s11257_s23 }
  0xb6   : > { %v1522_v58 = vpop.permute.xlu0 %1521 }
  0xb7   : > { %v1524_v57 = vpop.permute.xlu1 %1523  ;;  %1666 = vst.msk [vmem:[#allocation3 - $0x2] sm:$0xfc] %vm1665_vm14, %v1522_v58 }
  0xb8   : > { %1668 = vst.msk [vmem:[#allocation3 + $0x6] sm:$0xff] %vm1667_vm13, %v1524_v57  ;;  %1348 = vrot.lane.b32.xlu0 %v684_v56, %s11257_s23  ;;  %v7232_v57 = vld [vmem:[%s6848_s0 + $0x88] sm:$0xff] }
  0xb9   : > { %1864 = vrot.lane.b32.xlu1 %v684_v56, %s11256_s29  ;;  %11268 = vst [vmem:[#allocation21_spill] sm:$0xff] %v7232_v57  ;;  %655 = vst.msk [vmem:[#allocation2 + $0xe1] sm:$0xff] %vm11124_vm1, %v7232_v57 }
  0xba   : > { %v1526_v60 = vpop.permute.xlu0 %1525 }
  0xbb   : > { %v1006_v59 = vpop.permute.xlu1 %1005  ;;  %1670 = vst.msk [vmem:[#allocation3 + $0xe] sm:$0x3] %vm11168_vm15, %v1526_v60 }
  0xbc   : > { %1149 = vst.msk [vmem:[#allocation3 + $0xe] sm:$0xfc] %vm11121_vm5, %v1006_v59  ;;  %2055 = vrot.lane.b32.xlu0 %v6920_v19, %s11174_s19 }
  0xbd   : > { %2057 = vrot.lane.b32.xlu1 %v6914_v18, %s11174_s19 }
  0xbe   : > { %v1008_v62 = vpop.permute.xlu0 %1007 }
  0xbf   : > { %v1010_v61 = vpop.permute.xlu1 %1009  ;;  %1150 = vst.msk [vmem:[#allocation3 + $0x16] sm:$0xff] %vm11123_vm8, %v1008_v62 }
  0xc0   : > { %1151 = vst.msk [vmem:[#allocation3 + $0x1e] sm:$0x3] %vm11125_vm7, %v1010_v61  ;;  %828 = vrot.lane.b32.xlu0 %v6920_v19, %s6675_s30 }
  0xc1   : > { %830 = vrot.lane.b32.xlu1 %v6914_v18, %s6675_s30 }
  0xc2   : > { %v1719_v0 = vpop.permute.xlu0 %1718 }
  0xc3   : > { %v1721_v63 = vpop.permute.xlu1 %1720  ;;  %1815 = vst.msk [vmem:[#allocation3] sm:$0xff] %vm11114_vm0, %v1719_v0 }
  0xc4   : > { %1816 = vst.msk [vmem:[#allocation3 + $0x8] sm:$0xff] %vm11114_vm0, %v1721_v63  ;;  %832 = vrot.lane.b32.xlu0 %v684_v56, %s6675_s30  ;;  %vm11115_vm0 = vcmask 261345  }
  0xc5   : > { %1539 = vrot.lane.b32.xlu1 %v6920_v19, %s11176_s20 }
  0xc6   : > { %v1201_v5 = vpop.permute.xlu0 %1200 }
  0xc7   : > { %v1203_v4 = vpop.permute.xlu1 %1202  ;;  %1295 = vst.msk [vmem:[#allocation3 + $0x10] sm:$0xff] %vm11122_vm9, %v1201_v5 }
  0xc8   : > { %1296 = vst.msk [vmem:[#allocation3 + $0x18] sm:$0xff] %vm11122_vm9, %v1203_v4  ;;  %1541 = vrot.lane.b32.xlu0 %v6914_v18, %s11176_s20 }
  0xc9   : > { %1543 = vrot.lane.b32.xlu1 %v684_v56, %s11176_s20 }
  0xca   : > { %v1849_v12 = vpop.permute.xlu0 %1848 }
  0xcb   : > { %v1851_v6 = vpop.permute.xlu1 %1850  ;;  %1993 = vst.msk [vmem:[#allocation3 - $0x1] sm:$0xfe] %vm11115_vm0, %v1849_v12  ;;  %vm11166_vm0 = vcmask 254176  }
  0xcc   : > { %1995 = vst.msk [vmem:[#allocation3 + $0x7] sm:$0xff] %vm11167_vm2, %v1851_v6  ;;  %2059 = vrot.lane.b32.xlu0 %v684_v56, %s11174_s19  ;;  %v690_v6 = vld [vmem:[#allocation2 + $0xa0] sm:$0x3] }
  0xcd   : > { %1023 = vrot.lane.b32.xlu1 %v6920_v19, %s11171_s18 }
  0xce   : > { %v1333_v14 = vpop.permute.xlu0 %1332 }
  0xcf   : > { %v1335_v13 = vpop.permute.xlu1 %1334  ;;  %1476 = vst.msk [vmem:[#allocation3 + $0xf] sm:$0xfe] %vm11116_vm11, %v1333_v14  ;;  %vm11165_vm11 = vcmask 294144  }
  0xd0   : > { %1477 = vst.msk [vmem:[#allocation3 + $0x17] sm:$0xff] %vm11117_vm10, %v1335_v13  ;;  %1025 = vrot.lane.b32.xlu0 %v6914_v18, %s11171_s18  ;;  %vm11118_vm10 = vcmask 294146  }
  0xd1   : > { %1027 = vrot.lane.b32.xlu1 %v684_v56, %s11171_s18  ;;  %v7229_v56 = vld [vmem:[%s6848_s0 + $0x80] sm:$0xff] }
  0xd2   : > { %v1337_v19 = vpop.permute.xlu0 %1336  ;;  %11267 = vst [vmem:[#allocation20_spill] sm:$0xff] %v7229_v56  ;;  %654 = vst.msk [vmem:[#allocation2 + $0xd9] sm:$0xff] %vm11124_vm1, %v7229_v56 }
  0xd3   : > { %v1853_v17 = vpop.permute.xlu1 %1852  ;;  %1478 = vst.msk [vmem:[#allocation3 + $0x1f] sm:$0x1] %vm1474_vm12, %v1337_v19 }
  0xd4   : > { %1997 = vst.msk [vmem:[#allocation3 + $0xf] sm:$0x1] %vm11166_vm0, %v1853_v17  ;;  %1730 = vrot.lane.b32.xlu0 %v6954_v24, %s11169_s21 }
  0xd5   : > { %1732 = vrot.lane.b32.xlu1 %v6952_v23, %s11169_s21 }
  0xd6   : > { %v2044_v20 = vpop.permute.xlu0 %2043 }
  0xd7   : > { %v2046_v18 = vpop.permute.xlu1 %2045  ;;  %2188 = vst.msk [vmem:[#allocation3 - $0x2] sm:$0xfc] %vm11118_vm10, %v2044_v20  ;;  %vm11164_vm10 = vcmask 293888  }
  0xd8   : > { %2190 = vst.msk [vmem:[#allocation3 + $0x6] sm:$0xff] %vm11165_vm11, %v2046_v18  ;;  %1212 = vrot.lane.b32.xlu0 %v6954_v24, %s11255_s22 }
  0xd9   : > { %1214 = vrot.lane.b32.xlu1 %v6952_v23, %s11255_s22  ;;  %v7249_v60 = vld [vmem:[#allocation2 + $0xe0] sm:$0xff]  ;;  %v7251_v61 = vld [vmem:[#allocation2 + $0xd8] sm:$0xff] }
  0xda   : > { %v817_v28 = vpop.permute.xlu0 %816  ;;  %743 = vst.msk [vmem:[#allocation3 + $0x98] sm:$0xff] %vm11124_vm1, %v7249_v60  ;;  %742 = vst.msk [vmem:[#allocation3 + $0x90] sm:$0xff] %vm11124_vm1, %v7251_v61 }
  0xdb   : > { %v819_v27 = vpop.permute.xlu1 %818  ;;  %957 = vst.msk [vmem:[#allocation3 + $0x1f] sm:$0xfe] %vm948_vm4, %v817_v28 }
  0xdc   : > { %958 = vst.msk [vmem:[#allocation3 + $0x27] sm:$0xff] %vm950_vm6, %v819_v27  ;;  %1866 = vrot.lane.b32.xlu0 %v6954_v24, %s11256_s29 }
  0xdd   : > { %1868 = vrot.lane.b32.xlu1 %v6952_v23, %s11256_s29 }
  0xde   : > { %v821_v30 = vpop.permute.xlu0 %820 }
  0xdf   : > { %v1528_v29 = vpop.permute.xlu1 %1527  ;;  %v2238_v31 = vld [vmem:[#allocation3] sm:$0xff]  ;;  %959 = vst.msk [vmem:[#allocation3 + $0x2f] sm:$0x1] %vm11119_vm3, %v821_v30  ;;  %vm11120_vm3 = vcmask 288000  }
  0xe0   : > { %1671 = vst.msk [vmem:[#allocation3 + $0xe] sm:$0xfc] %vm1665_vm14, %v1528_v29  ;;  %6486 = vmatprep.mubr.msk.f32.mxu0 %vm11164_vm10, %v2238_v31  ;;  %1350 = vrot.lane.b32.xlu0 %v6954_v24, %s11257_s23 }
  0xe1   : > { %1352 = vrot.lane.b32.xlu1 %v6952_v23, %s11257_s23 }
  0xe2   : > { %v1530_v38 = vpop.permute.xlu0 %1529 }
  0xe3   : > { %v1532_v37 = vpop.permute.xlu1 %1531  ;;  %1672 = vst.msk [vmem:[#allocation3 + $0x16] sm:$0xff] %vm1667_vm13, %v1530_v38 }
  0xe4   : > { %1673 = vst.msk [vmem:[#allocation3 + $0x1e] sm:$0x3] %vm11168_vm15, %v1532_v37  ;;  %1354 = vrot.lane.b32.xlu0 %v687_v32, %s11257_s23 }
  0xe5   : > { %1870 = vrot.lane.b32.xlu1 %v687_v32, %s11256_s29 }
  0xe6   : > { %v2048_v40 = vpop.permute.xlu0 %2047 }
  0xe7   : > { %v1012_v39 = vpop.permute.xlu1 %1011  ;;  %2192 = vst.msk [vmem:[#allocation3 + $0xe] sm:$0x3] %vm11120_vm3, %v2048_v40  ;;  %vm11262_vm3 = vcmask 228544   ;;  %v7312_v40 = vld [vmem:[%s6848_s0 + $0x98] sm:$0xff] }
  0xe8   : > { %1152 = vst.msk [vmem:[#allocation3 + $0x1e] sm:$0xfc] %vm11121_vm5, %v1012_v39  ;;  %2061 = vrot.lane.b32.xlu0 %v6954_v24, %s11174_s19  ;;  %vm11263_vm5 = vmmov %vm11262_vm3  ;;  %v7309_v39 = vld [vmem:[%s6848_s0 + $0x90] sm:$0xff] }
  0xe9   : > { %2063 = vrot.lane.b32.xlu1 %v6952_v23, %s11174_s19  ;;  %11280 = vst [vmem:[#allocation22_spill] sm:$0xff] %v7309_v39  ;;  %11281 = vst [vmem:[#allocation23_spill] sm:$0xff] %v7312_v40 }
  0xea   : > { %v1014_v42 = vpop.permute.xlu0 %1013  ;;  %656 = vst.msk [vmem:[#allocation2 + $0xf1] sm:$0xff] %vm11124_vm1, %v7309_v39  ;;  %657 = vst.msk [vmem:[#allocation2 + $0xf9] sm:$0xff] %vm11124_vm1, %v7312_v40 }
  0xeb   : > { %v1016_v41 = vpop.permute.xlu1 %1015  ;;  %1153 = vst.msk [vmem:[#allocation3 + $0x26] sm:$0xff] %vm11123_vm8, %v1014_v42 }
  0xec   : > { %1154 = vst.msk [vmem:[#allocation3 + $0x2e] sm:$0x3] %vm11125_vm7, %v1016_v41  ;;  %834 = vrot.lane.b32.xlu0 %v6954_v24, %s6675_s30 }
  0xed   : > { %836 = vrot.lane.b32.xlu1 %v6952_v23, %s6675_s30 }
  0xee   : > { %v1723_v46 = vpop.permute.xlu0 %1722  ;;  %v2239_v47 = vld [vmem:[#allocation3 + $0x8] sm:$0xff] }
  0xef   : > { %v1725_v43 = vpop.permute.xlu1 %1724  ;;  %1817 = vst.msk [vmem:[#allocation3 + $0x10] sm:$0xff] %vm11263_vm5, %v1723_v46  ;;  %6487 = vmatmul.mubr.msk.f32.vlgmr.msra.gmra.mrb[0].mxu0 %vm11164_vm10, %v2239_v47  ;;  %vm11265_vm5 = vcmask 162944  }
  0xf0   : > { %1818 = vst.msk [vmem:[#allocation3 + $0x18] sm:$0xff] %vm11262_vm3, %v1725_v43  ;;  %838 = vrot.lane.b32.xlu0 %v687_v32, %s6675_s30  ;;  %vm11264_vm3 = vcmask 261345  }
  0xf1   : > { %1545 = vrot.lane.b32.xlu1 %v6954_v24, %s11176_s20  ;;  %v7329_v43 = vld [vmem:[#allocation2 + $0xf8] sm:$0xff]  ;;  %v7331_v46 = vld [vmem:[#allocation2 + $0xf0] sm:$0xff] }
  0xf2   : > { %v1205_v49 = vpop.permute.xlu0 %1204  ;;  %745 = vst.msk [vmem:[#allocation3 + $0xa8] sm:$0xff] %vm11124_vm1, %v7329_v43  ;;  %744 = vst.msk [vmem:[#allocation3 + $0xa0] sm:$0xff] %vm11124_vm1, %v7331_v46 }
  0xf3   : > { %v1207_v48 = vpop.permute.xlu1 %1206  ;;  %1297 = vst.msk [vmem:[#allocation3 + $0x20] sm:$0xff] %vm11122_vm9, %v1205_v49 }
  0xf4   : > { %1298 = vst.msk [vmem:[#allocation3 + $0x28] sm:$0xff] %vm11122_vm9, %v1207_v48  ;;  %1547 = vrot.lane.b32.xlu0 %v6952_v23, %s11176_s20  ;;  %vm11266_vm9 = vcmask 162945  }
  0xf5   : > { %1549 = vrot.lane.b32.xlu1 %v687_v32, %s11176_s20 }
  0xf6   : > { %v1855_v53 = vpop.permute.xlu0 %1854 }
  0xf7   : > { %v1857_v52 = vpop.permute.xlu1 %1856  ;;  %1998 = vst.msk [vmem:[#allocation3 + $0xf] sm:$0xfe] %vm11264_vm3, %v1855_v53  ;;  %vm11270_vm3 = vcmask 57376  }
  0xf8   : > { %1999 = vst.msk [vmem:[#allocation3 + $0x17] sm:$0xff] %vm11167_vm2, %v1857_v52  ;;  %2065 = vrot.lane.b32.xlu0 %v687_v32, %s11174_s19 }
  0xf9   : > { %1029 = vrot.lane.b32.xlu1 %v6954_v24, %s11171_s18 }
  0xfa   : > { %v1339_v55 = vpop.permute.xlu0 %1338 }
  0xfb   : > { %v1341_v54 = vpop.permute.xlu1 %1340  ;;  %1479 = vst.msk [vmem:[#allocation3 + $0x1f] sm:$0xfe] %vm11266_vm9, %v1339_v55  ;;  %vm11269_vm9 = vcmask 294146  }
  0xfc   : > { %1480 = vst.msk [vmem:[#allocation3 + $0x27] sm:$0xff] %vm11265_vm5, %v1341_v54  ;;  %1031 = vrot.lane.b32.xlu0 %v6952_v23, %s11171_s18  ;;  %vm11271_vm5 = vcmask 97346   ;;  %v693_v54 = vld [vmem:[#allocation2 + $0xb8] sm:$0x3] }
  0xfd   : > { %1033 = vrot.lane.b32.xlu1 %v687_v32, %s11171_s18 }
  0xfe   : > { %v1343_v58 = vpop.permute.xlu0 %1342 }
  0xff   : > { %v1859_v24 = vpop.permute.xlu1 %1858  ;;  %1481 = vst.msk [vmem:[#allocation3 + $0x2f] sm:$0x1] %vm1474_vm12, %v1343_v58 }
 0x100   : > { %2000 = vst.msk [vmem:[#allocation3 + $0x1f] sm:$0x1] %vm11166_vm0, %v1859_v24  ;;  %1734 = vrot.lane.b32.xlu0 %v7027_v36, %s11169_s21 }
 0x101   : > { %1736 = vrot.lane.b32.xlu1 %v7025_v35, %s11169_s21 }
 0x102   : > { %v2050_v23 = vpop.permute.xlu0 %2049 }
 0x103   : > { %v2052_v59 = vpop.permute.xlu1 %2051  ;;  %2193 = vst.msk [vmem:[#allocation3 + $0xe] sm:$0xfc] %vm11269_vm9, %v2050_v23  ;;  %vm11272_vm9 = vcmask 288000  }
 0x104   : > { %2194 = vst.msk [vmem:[#allocation3 + $0x16] sm:$0xff] %vm11165_vm11, %v2052_v59  ;;  %1216 = vrot.lane.b32.xlu0 %v7027_v36, %s11255_s22 }
 0x105   : > { %1218 = vrot.lane.b32.xlu1 %v7025_v35, %s11255_s22 }
 0x106   : > { %v823_v63 = vpop.permute.xlu0 %822 }
 0x107   : > { %v825_v62 = vpop.permute.xlu1 %824  ;;  %960 = vst.msk [vmem:[#allocation3 + $0x2f] sm:$0xfe] %vm948_vm4, %v823_v63 }
 0x108   : > { %961 = vst.msk [vmem:[#allocation3 + $0x37] sm:$0xff] %vm950_vm6, %v825_v62  ;;  %1872 = vrot.lane.b32.xlu0 %v7027_v36, %s11256_s29 }
 0x109   : > { %1874 = vrot.lane.b32.xlu1 %v7025_v35, %s11256_s29 }
 0x10a   : > { %v827_v4 = vpop.permute.xlu0 %826 }
 0x10b   : > { %v1534_v0 = vpop.permute.xlu1 %1533  ;;  %v2240_v5 = vld [vmem:[#allocation3 + $0x10] sm:$0xff]  ;;  %962 = vst.msk [vmem:[#allocation3 + $0x3f] sm:$0x1] %vm11270_vm3, %v827_v4  ;;  %vm11273_vm3 = vcmask 228544  }
 0x10c   : > { %1674 = vst.msk [vmem:[#allocation3 + $0x1e] sm:$0xfc] %vm1665_vm14, %v1534_v0  ;;  %6489 = vmatprep.mubr.msk.f32.mxu0 %vm11164_vm10, %v2240_v5  ;;  %1356 = vrot.lane.b32.xlu0 %v7027_v36, %s11257_s23 }
 0x10d   : > { %1358 = vrot.lane.b32.xlu1 %v7025_v35, %s11257_s23 }
 0x10e   : > { %v1536_v13 = vpop.permute.xlu0 %1535 }
 0x10f   : > { %v1538_v12 = vpop.permute.xlu1 %1537  ;;  %1675 = vst.msk [vmem:[#allocation3 + $0x26] sm:$0xff] %vm1667_vm13, %v1536_v13 }
 0x110   : > { %1676 = vst.msk [vmem:[#allocation3 + $0x2e] sm:$0x3] %vm11168_vm15, %v1538_v12  ;;  %1360 = vrot.lane.b32.xlu0 %v690_v6, %s11257_s23 }
 0x111   : > { %1876 = vrot.lane.b32.xlu1 %v690_v6, %s11256_s29 }
 0x112   : > { %v2054_v17 = vpop.permute.xlu0 %2053 }
 0x113   : > { %v1018_v14 = vpop.permute.xlu1 %1017  ;;  %2195 = vst.msk [vmem:[#allocation3 + $0x1e] sm:$0x3] %vm11272_vm9, %v2054_v17  ;;  %vm11275_vm9 = vcmask 130144  }
 0x114   : > { %1155 = vst.msk [vmem:[#allocation3 + $0x2e] sm:$0xfc] %vm11271_vm5, %v1018_v14  ;;  %2067 = vrot.lane.b32.xlu0 %v7027_v36, %s11174_s19  ;;  %vm11274_vm5 = vmmov %vm11273_vm3 }
 0x115   : > { %2069 = vrot.lane.b32.xlu1 %v7025_v35, %s11174_s19 }
 0x116   : > { %v1020_v18 = vpop.permute.xlu0 %1019 }
 0x117   : > { %v1022_v19 = vpop.permute.xlu1 %1021  ;;  %1156 = vst.msk [vmem:[#allocation3 + $0x36] sm:$0xff] %vm11123_vm8, %v1020_v18  ;;  %vm11276_vm8 = vmmov %vm11275_vm9  ;;  %v7395_v18 = vld [vmem:[%s6848_s0 + $0xa8] sm:$0xff] }
 0x118   : > { %1157 = vst.msk [vmem:[#allocation3 + $0x3e] sm:$0x3] %vm11125_vm7, %v1022_v19  ;;  %840 = vrot.lane.b32.xlu0 %v7027_v36, %s6675_s30  ;;  %v7392_v19 = vld [vmem:[%s6848_s0 + $0xa0] sm:$0xff]  ;;  %11295 = vst [vmem:[#allocation25_spill] sm:$0xff] %v7395_v18 }
 0x119   : > { %842 = vrot.lane.b32.xlu1 %v7025_v35, %s6675_s30  ;;  %11294 = vst [vmem:[#allocation24_spill] sm:$0xff] %v7392_v19  ;;  %658 = vst.msk [vmem:[#allocation2 + $0x109] sm:$0xff] %vm11124_vm1, %v7392_v19 }
 0x11a   : > { %v1727_v27 = vpop.permute.xlu0 %1726  ;;  %v2241_v28 = vld [vmem:[#allocation3 + $0x18] sm:$0xff]  ;;  %659 = vst.msk [vmem:[#allocation2 + $0x111] sm:$0xff] %vm11124_vm1, %v7395_v18 }
 0x11b   : > { %v1729_v20 = vpop.permute.xlu1 %1728  ;;  %1819 = vst.msk [vmem:[#allocation3 + $0x20] sm:$0xff] %vm11274_vm5, %v1727_v27  ;;  %6490 = vmatmul.mubr.msk.f32.gmra.mrb[2].mxu0 %vm11164_vm10, %v2241_v28  ;;  %vm11278_vm5 = vcmask 162944  }
 0x11c   : > { %1820 = vst.msk [vmem:[#allocation3 + $0x28] sm:$0xff] %vm11273_vm3, %v1729_v20  ;;  %844 = vrot.lane.b32.xlu0 %v690_v6, %s6675_s30  ;;  %vm11277_vm3 = vcmask 261345  }
 0x11d   : > { %1551 = vrot.lane.b32.xlu1 %v7027_v36, %s11176_s20 }
 0x11e   : > { %v1209_v30 = vpop.permute.xlu0 %1208 }
 0x11f   : > { %v1211_v29 = vpop.permute.xlu1 %1210  ;;  %1299 = vst.msk [vmem:[#allocation3 + $0x30] sm:$0xff] %vm11276_vm8, %v1209_v30  ;;  %vm11279_vm8 = vcmask 162945  }
 0x120   : > { %1300 = vst.msk [vmem:[#allocation3 + $0x38] sm:$0xff] %vm11275_vm9, %v1211_v29  ;;  %1553 = vrot.lane.b32.xlu0 %v7025_v35, %s11176_s20  ;;  %vm11282_vm9 = vcmask 294146   ;;  %v7415_v29 = vld [vmem:[#allocation2 + $0x108] sm:$0xff] }
 0x121   : > { %1555 = vrot.lane.b32.xlu1 %v690_v6, %s11176_s20  ;;  %v7413_v28 = vld [vmem:[#allocation2 + $0x110] sm:$0xff]  ;;  %746 = vst.msk [vmem:[#allocation3 + $0xb0] sm:$0xff] %vm11124_vm1, %v7415_v29 }
 0x122   : > { %v1861_v32 = vpop.permute.xlu0 %1860  ;;  %747 = vst.msk [vmem:[#allocation3 + $0xb8] sm:$0xff] %vm11124_vm1, %v7413_v28 }
 0x123   : > { %v1863_v31 = vpop.permute.xlu1 %1862  ;;  %2001 = vst.msk [vmem:[#allocation3 + $0x1f] sm:$0xfe] %vm11277_vm3, %v1861_v32  ;;  %vm11283_vm3 = vcmask 57376  }
 0x124   : > { %2002 = vst.msk [vmem:[#allocation3 + $0x27] sm:$0xff] %vm11167_vm2, %v1863_v31  ;;  %2071 = vrot.lane.b32.xlu0 %v690_v6, %s11174_s19 }
 0x125   : > { %1035 = vrot.lane.b32.xlu1 %v7027_v36, %s11171_s18 }
 0x126   : > { %v1345_v38 = vpop.permute.xlu0 %1344 }
 0x127   : > { %v1347_v37 = vpop.permute.xlu1 %1346  ;;  %1482 = vst.msk [vmem:[#allocation3 + $0x2f] sm:$0xfe] %vm11279_vm8, %v1345_v38  ;;  %vm11285_vm8 = vcmask 288000  }
 0x128   : > { %1483 = vst.msk [vmem:[#allocation3 + $0x37] sm:$0xff] %vm11278_vm5, %v1347_v37  ;;  %1037 = vrot.lane.b32.xlu0 %v7025_v35, %s11171_s18  ;;  %vm11284_vm5 = vcmask 97346  }
 0x129   : > { %1039 = vrot.lane.b32.xlu1 %v690_v6, %s11171_s18 }
 0x12a   : > { %v1349_v41 = vpop.permute.xlu0 %1348 }
 0x12b   : > { %v1865_v36 = vpop.permute.xlu1 %1864  ;;  %1484 = vst.msk [vmem:[#allocation3 + $0x3f] sm:$0x1] %vm1474_vm12, %v1349_v41 }
 0x12c   : > { %2003 = vst.msk [vmem:[#allocation3 + $0x2f] sm:$0x1] %vm11166_vm0, %v1865_v36  ;;  %1738 = vrot.lane.b32.xlu0 %v7093_v51, %s11169_s21  ;;  %v696_v36 = vld [vmem:[#allocation2 + $0xd0] sm:$0x3] }
 0x12d   : > { %1740 = vrot.lane.b32.xlu1 %v7091_v50, %s11169_s21 }
 0x12e   : > { %v2056_v35 = vpop.permute.xlu0 %2055 }
 0x12f   : > { %v2058_v42 = vpop.permute.xlu1 %2057  ;;  %2196 = vst.msk [vmem:[#allocation3 + $0x1e] sm:$0xfc] %vm11282_vm9, %v2056_v35  ;;  %vm11286_vm9 = vcmask 97344  }
 0x130   : > { %2197 = vst.msk [vmem:[#allocation3 + $0x26] sm:$0xff] %vm11165_vm11, %v2058_v42  ;;  %1220 = vrot.lane.b32.xlu0 %v7093_v51, %s11255_s22 }
 0x131   : > { %1222 = vrot.lane.b32.xlu1 %v7091_v50, %s11255_s22 }
 0x132   : > { %v829_v48 = vpop.permute.xlu0 %828 }
 0x133   : > { %v831_v47 = vpop.permute.xlu1 %830  ;;  %963 = vst.msk [vmem:[#allocation3 + $0x3f] sm:$0xfe] %vm948_vm4, %v829_v48 }
 0x134   : > { %964 = vst.msk [vmem:[#allocation3 + $0x47] sm:$0xff] %vm950_vm6, %v831_v47  ;;  %1878 = vrot.lane.b32.xlu0 %v7093_v51, %s11256_s29 }
 0x135   : > { %1880 = vrot.lane.b32.xlu1 %v7091_v50, %s11256_s29 }
 0x136   : > { %v833_v52 = vpop.permute.xlu0 %832 }
 0x137   : > { %v1540_v49 = vpop.permute.xlu1 %1539  ;;  %v2242_v53 = vld [vmem:[#allocation3 + $0x20] sm:$0xff]  ;;  %965 = vst.msk [vmem:[#allocation3 + $0x4f] sm:$0x1] %vm11283_vm3, %v833_v52  ;;  %vm11287_vm3 = vcmask 228544  }
 0x138   : > { %1677 = vst.msk [vmem:[#allocation3 + $0x2e] sm:$0xfc] %vm1665_vm14, %v1540_v49  ;;  %6492 = vmatprep.mubr.msk.f32.mxu0 %vm11164_vm10, %v2242_v53  ;;  %1362 = vrot.lane.b32.xlu0 %v7093_v51, %s11257_s23 }
 0x139   : > { %1364 = vrot.lane.b32.xlu1 %v7091_v50, %s11257_s23 }
 0x13a   : > { %v1542_v24 = vpop.permute.xlu0 %1541 }
 0x13b   : > { %v1544_v55 = vpop.permute.xlu1 %1543  ;;  %1678 = vst.msk [vmem:[#allocation3 + $0x36] sm:$0xff] %vm1667_vm13, %v1542_v24 }
 0x13c   : > { %1679 = vst.msk [vmem:[#allocation3 + $0x3e] sm:$0x3] %vm11168_vm15, %v1544_v55  ;;  %1366 = vrot.lane.b32.xlu0 %v693_v54, %s11257_s23 }
 0x13d   : > { %1882 = vrot.lane.b32.xlu1 %v693_v54, %s11256_s29 }
 0x13e   : > { %v2060_v59 = vpop.permute.xlu0 %2059 }
 0x13f   : > { %v1024_v58 = vpop.permute.xlu1 %1023  ;;  %2198 = vst.msk [vmem:[#allocation3 + $0x2e] sm:$0x3] %vm11285_vm8, %v2060_v59  ;;  %vm11289_vm8 = vcmask 130144  }
 0x140   : > { %1158 = vst.msk [vmem:[#allocation3 + $0x3e] sm:$0xfc] %vm11284_vm5, %v1024_v58  ;;  %2073 = vrot.lane.b32.xlu0 %v7093_v51, %s11174_s19  ;;  %vm11288_vm5 = vmmov %vm11287_vm3 }
 0x141   : > { %2075 = vrot.lane.b32.xlu1 %v7091_v50, %s11174_s19 }
 0x142   : > { %v1026_v62 = vpop.permute.xlu0 %1025 }
 0x143   : > { %v1028_v23 = vpop.permute.xlu1 %1027  ;;  %1159 = vst.msk [vmem:[#allocation3 + $0x46] sm:$0xff] %vm11286_vm9, %v1026_v62  ;;  %vm11290_vm9 = vmmov %vm11289_vm8 }
 0x144   : > { %1160 = vst.msk [vmem:[#allocation3 + $0x4e] sm:$0x3] %vm11125_vm7, %v1028_v23  ;;  %846 = vrot.lane.b32.xlu0 %v7093_v51, %s6675_s30 }
 0x145   : > { %848 = vrot.lane.b32.xlu1 %v7091_v50, %s6675_s30 }
 0x146   : > { %v1731_v0 = vpop.permute.xlu0 %1730  ;;  %v2243_v4 = vld [vmem:[#allocation3 + $0x28] sm:$0xff] }
 0x147   : > { %v1733_v63 = vpop.permute.xlu1 %1732  ;;  %1821 = vst.msk [vmem:[#allocation3 + $0x30] sm:$0xff] %vm11288_vm5, %v1731_v0  ;;  %6493 = vmatmul.mubr.msk.f32.gmra.mrb[4].mxu0 %vm11164_vm10, %v2243_v4  ;;  %vm11292_vm5 = vcmask 162944   ;;  %v7475_v0 = vld [vmem:[%s6848_s0 + $0xb8] sm:$0xff] }
 0x148   : > { %1822 = vst.msk [vmem:[#allocation3 + $0x38] sm:$0xff] %vm11287_vm3, %v1733_v63  ;;  %850 = vrot.lane.b32.xlu0 %v693_v54, %s6675_s30  ;;  %vm11291_vm3 = vcmask 261345   ;;  %v7472_v63 = vld [vmem:[%s6848_s0 + $0xb0] sm:$0xff]  ;;  %11309 = vst [vmem:[#allocation27_spill] sm:$0xff] %v7475_v0 }
 0x149   : > { %1557 = vrot.lane.b32.xlu1 %v7093_v51, %s11176_s20  ;;  %11308 = vst [vmem:[#allocation26_spill] sm:$0xff] %v7472_v63  ;;  %660 = vst.msk [vmem:[#allocation2 + $0x121] sm:$0xff] %vm11124_vm1, %v7472_v63 }
 0x14a   : > { %v1213_v6 = vpop.permute.xlu0 %1212  ;;  %661 = vst.msk [vmem:[#allocation2 + $0x129] sm:$0xff] %vm11124_vm1, %v7475_v0 }
 0x14b   : > { %v1215_v5 = vpop.permute.xlu1 %1214  ;;  %1301 = vst.msk [vmem:[#allocation3 + $0x40] sm:$0xff] %vm11290_vm9, %v1213_v6  ;;  %vm11296_vm9 = vcmask 294146  }
 0x14c   : > { %1302 = vst.msk [vmem:[#allocation3 + $0x48] sm:$0xff] %vm11289_vm8, %v1215_v5  ;;  %1559 = vrot.lane.b32.xlu0 %v7091_v50, %s11176_s20  ;;  %vm11293_vm8 = vcmask 162945  }
 0x14d   : > { %1561 = vrot.lane.b32.xlu1 %v693_v54, %s11176_s20 }
 0x14e   : > { %v1867_v13 = vpop.permute.xlu0 %1866 }
 0x14f   : > { %v1869_v12 = vpop.permute.xlu1 %1868  ;;  %2004 = vst.msk [vmem:[#allocation3 + $0x2f] sm:$0xfe] %vm11291_vm3, %v1867_v13  ;;  %vm11297_vm3 = vcmask 57376  }
 0x150   : > { %2005 = vst.msk [vmem:[#allocation3 + $0x37] sm:$0xff] %vm11167_vm2, %v1869_v12  ;;  %2077 = vrot.lane.b32.xlu0 %v693_v54, %s11174_s19  ;;  %v7495_v12 = vld [vmem:[#allocation2 + $0x120] sm:$0xff] }
 0x151   : > { %1041 = vrot.lane.b32.xlu1 %v7093_v51, %s11171_s18  ;;  %v7493_v6 = vld [vmem:[#allocation2 + $0x128] sm:$0xff]  ;;  %748 = vst.msk [vmem:[#allocation3 + $0xc0] sm:$0xff] %vm11124_vm1, %v7495_v12 }
 0x152   : > { %v1351_v17 = vpop.permute.xlu0 %1350  ;;  %749 = vst.msk [vmem:[#allocation3 + $0xc8] sm:$0xff] %vm11124_vm1, %v7493_v6 }
 0x153   : > { %v1353_v14 = vpop.permute.xlu1 %1352  ;;  %1485 = vst.msk [vmem:[#allocation3 + $0x3f] sm:$0xfe] %vm11293_vm8, %v1351_v17  ;;  %vm11299_vm8 = vcmask 288000  }
 0x154   : > { %1486 = vst.msk [vmem:[#allocation3 + $0x47] sm:$0xff] %vm11292_vm5, %v1353_v14  ;;  %1043 = vrot.lane.b32.xlu0 %v7091_v50, %s11171_s18  ;;  %vm11298_vm5 = vcmask 97346  }
 0x155   : > { %1045 = vrot.lane.b32.xlu1 %v693_v54, %s11171_s18 }
 0x156   : > { %v1355_v20 = vpop.permute.xlu0 %1354 }
 0x157   : > { %v1871_v51 = vpop.permute.xlu1 %1870  ;;  %1487 = vst.msk [vmem:[#allocation3 + $0x4f] sm:$0x1] %vm1474_vm12, %v1355_v20 }
 0x158   : > { %2006 = vst.msk [vmem:[#allocation3 + $0x3f] sm:$0x1] %vm11166_vm0, %v1871_v51  ;;  %1742 = vrot.lane.b32.xlu0 %v7171_v26, %s11169_s21 }
 0x159   : > { %1744 = vrot.lane.b32.xlu1 %v7169_v25, %s11169_s21 }
 0x15a   : > { %v2062_v27 = vpop.permute.xlu0 %2061 }
 0x15b   : > { %v2064_v50 = vpop.permute.xlu1 %2063  ;;  %2199 = vst.msk [vmem:[#allocation3 + $0x2e] sm:$0xfc] %vm11296_vm9, %v2062_v27  ;;  %vm11300_vm9 = vcmask 97344  }
 0x15c   : > { %2200 = vst.msk [vmem:[#allocation3 + $0x36] sm:$0xff] %vm11165_vm11, %v2064_v50  ;;  %1224 = vrot.lane.b32.xlu0 %v7171_v26, %s11255_s22  ;;  %v699_v50 = vld [vmem:[#allocation2 + $0xe8] sm:$0x3] }
 0x15d   : > { %1226 = vrot.lane.b32.xlu1 %v7169_v25, %s11255_s22 }
 0x15e   : > { %v835_v31 = vpop.permute.xlu0 %834 }
 0x15f   : > { %v837_v30 = vpop.permute.xlu1 %836  ;;  %966 = vst.msk [vmem:[#allocation3 + $0x4f] sm:$0xfe] %vm948_vm4, %v835_v31 }
 0x160   : > { %967 = vst.msk [vmem:[#allocation3 + $0x57] sm:$0xff] %vm950_vm6, %v837_v30  ;;  %1884 = vrot.lane.b32.xlu0 %v7171_v26, %s11256_s29 }
 0x161   : > { %1886 = vrot.lane.b32.xlu1 %v7169_v25, %s11256_s29 }
 0x162   : > { %v839_v37 = vpop.permute.xlu0 %838 }
 0x163   : > { %v1546_v32 = vpop.permute.xlu1 %1545  ;;  %v2244_v38 = vld [vmem:[#allocation3 + $0x30] sm:$0xff]  ;;  %968 = vst.msk [vmem:[#allocation3 + $0x5f] sm:$0x1] %vm11297_vm3, %v839_v37  ;;  %vm11301_vm3 = vcmask 228544  }
 0x164   : > { %1680 = vst.msk [vmem:[#allocation3 + $0x3e] sm:$0xfc] %vm1665_vm14, %v1546_v32  ;;  %6495 = vmatprep.mubr.msk.f32.mxu0 %vm11164_vm10, %v2244_v38  ;;  %1368 = vrot.lane.b32.xlu0 %v7171_v26, %s11257_s23 }
 0x165   : > { %1370 = vrot.lane.b32.xlu1 %v7169_v25, %s11257_s23 }
 0x166   : > { %v1548_v42 = vpop.permute.xlu0 %1547 }
 0x167   : > { %v1550_v41 = vpop.permute.xlu1 %1549  ;;  %1681 = vst.msk [vmem:[#allocation3 + $0x46] sm:$0xff] %vm1667_vm13, %v1548_v42 }
 0x168   : > { %1682 = vst.msk [vmem:[#allocation3 + $0x4e] sm:$0x3] %vm11168_vm15, %v1550_v41  ;;  %1372 = vrot.lane.b32.xlu0 %v696_v36, %s11257_s23 }
 0x169   : > { %1888 = vrot.lane.b32.xlu1 %v696_v36, %s11256_s29 }
 0x16a   : > { %v2066_v47 = vpop.permute.xlu0 %2065 }
 0x16b   : > { %v1030_v35 = vpop.permute.xlu1 %1029  ;;  %2201 = vst.msk [vmem:[#allocation3 + $0x3e] sm:$0x3] %vm11299_vm8, %v2066_v47  ;;  %vm11303_vm8 = vcmask 130144  }
 0x16c   : > { %1161 = vst.msk [vmem:[#allocation3 + $0x4e] sm:$0xfc] %vm11298_vm5, %v1030_v35  ;;  %2079 = vrot.lane.b32.xlu0 %v7171_v26, %s11174_s19  ;;  %vm11302_vm5 = vmmov %vm11301_vm3 }
 0x16d   : > { %2081 = vrot.lane.b32.xlu1 %v7169_v25, %s11174_s19 }
 0x16e   : > { %v1032_v49 = vpop.permute.xlu0 %1031 }
 0x16f   : > { %v1034_v48 = vpop.permute.xlu1 %1033  ;;  %1162 = vst.msk [vmem:[#allocation3 + $0x56] sm:$0xff] %vm11300_vm9, %v1032_v49  ;;  %vm11304_vm9 = vmmov %vm11303_vm8 }
 0x170   : > { %1163 = vst.msk [vmem:[#allocation3 + $0x5e] sm:$0x3] %vm11125_vm7, %v1034_v48  ;;  %852 = vrot.lane.b32.xlu0 %v7171_v26, %s6675_s30 }
 0x171   : > { %854 = vrot.lane.b32.xlu1 %v7169_v25, %s6675_s30 }
 0x172   : > { %v1735_v53 = vpop.permute.xlu0 %1734  ;;  %v2245_v54 = vld [vmem:[#allocation3 + $0x38] sm:$0xff] }
 0x173   : > { %v1737_v52 = vpop.permute.xlu1 %1736  ;;  %1823 = vst.msk [vmem:[#allocation3 + $0x40] sm:$0xff] %vm11302_vm5, %v1735_v53  ;;  %6496 = vmatmul.mubr.msk.f32.gmra.mrb[6].mxu0 %vm11164_vm10, %v2245_v54  ;;  %vm11306_vm5 = vcmask 162944   ;;  %v7552_v54 = vld [vmem:[%s6848_s0 + $0xc0] sm:$0xff] }
 0x174   : > { %1824 = vst.msk [vmem:[#allocation3 + $0x48] sm:$0xff] %vm11301_vm3, %v1737_v52  ;;  %856 = vrot.lane.b32.xlu0 %v696_v36, %s6675_s30  ;;  %vm11305_vm3 = vcmask 261345   ;;  %11322 = vst [vmem:[#allocation28_spill] sm:$0xff] %v7552_v54 }
 0x175   : > { %1563 = vrot.lane.b32.xlu1 %v7171_v26, %s11176_s20  ;;  %662 = vst.msk [vmem:[#allocation2 + $0x139] sm:$0xff] %vm11124_vm1, %v7552_v54 }
 0x176   : > { %v1217_v24 = vpop.permute.xlu0 %1216 }
 0x177   : > { %v1219_v55 = vpop.permute.xlu1 %1218  ;;  %1303 = vst.msk [vmem:[#allocation3 + $0x50] sm:$0xff] %vm11304_vm9, %v1217_v24  ;;  %vm11310_vm9 = vcmask 294146  }
 0x178   : > { %1304 = vst.msk [vmem:[#allocation3 + $0x58] sm:$0xff] %vm11303_vm8, %v1219_v55  ;;  %1565 = vrot.lane.b32.xlu0 %v7169_v25, %s11176_s20  ;;  %vm11307_vm8 = vcmask 162945   ;;  %v7555_v55 = vld [vmem:[%s6848_s0 + $0xc8] sm:$0xff] }
 0x179   : > { %1567 = vrot.lane.b32.xlu1 %v696_v36, %s11176_s20  ;;  %11323 = vst [vmem:[#allocation29_spill] sm:$0xff] %v7555_v55  ;;  %663 = vst.msk [vmem:[#allocation2 + $0x141] sm:$0xff] %vm11124_vm1, %v7555_v55 }
 0x17a   : > { %v1873_v59 = vpop.permute.xlu0 %1872 }
 0x17b   : > { %v1875_v58 = vpop.permute.xlu1 %1874  ;;  %2007 = vst.msk [vmem:[#allocation3 + $0x3f] sm:$0xfe] %vm11305_vm3, %v1873_v59  ;;  %vm11311_vm3 = vcmask 57376  }
 0x17c   : > { %2008 = vst.msk [vmem:[#allocation3 + $0x47] sm:$0xff] %vm11167_vm2, %v1875_v58  ;;  %2083 = vrot.lane.b32.xlu0 %v696_v36, %s11174_s19 }
 0x17d   : > { %1047 = vrot.lane.b32.xlu1 %v7171_v26, %s11171_s18 }
 0x17e   : > { %v1357_v62 = vpop.permute.xlu0 %1356 }
 0x17f   : > { %v1359_v23 = vpop.permute.xlu1 %1358  ;;  %1488 = vst.msk [vmem:[#allocation3 + $0x4f] sm:$0xfe] %vm11307_vm8, %v1357_v62  ;;  %vm11313_vm8 = vcmask 288000  }
 0x180   : > { %1489 = vst.msk [vmem:[#allocation3 + $0x57] sm:$0xff] %vm11306_vm5, %v1359_v23  ;;  %1049 = vrot.lane.b32.xlu0 %v7169_v25, %s11171_s18  ;;  %vm11312_vm5 = vcmask 97346   ;;  %v7573_v59 = vld [vmem:[#allocation2 + $0x140] sm:$0xff]  ;;  %v7575_v23 = vld [vmem:[#allocation2 + $0x138] sm:$0xff] }
 0x181   : > { %1051 = vrot.lane.b32.xlu1 %v696_v36, %s11171_s18  ;;  %751 = vst.msk [vmem:[#allocation3 + $0xd8] sm:$0xff] %vm11124_vm1, %v7573_v59  ;;  %750 = vst.msk [vmem:[#allocation3 + $0xd0] sm:$0xff] %vm11124_vm1, %v7575_v23 }
 0x182   : > { %v1361_v4 = vpop.permute.xlu0 %1360 }
 0x183   : > { %v1877_v26 = vpop.permute.xlu1 %1876  ;;  %1490 = vst.msk [vmem:[#allocation3 + $0x5f] sm:$0x1] %vm1474_vm12, %v1361_v4 }
 0x184   : > { %2009 = vst.msk [vmem:[#allocation3 + $0x4f] sm:$0x1] %vm11166_vm0, %v1877_v26  ;;  %1746 = vrot.lane.b32.xlu0 %v7251_v61, %s11169_s21 }
 0x185   : > { %1748 = vrot.lane.b32.xlu1 %v7249_v60, %s11169_s21 }
 0x186   : > { %v2068_v5 = vpop.permute.xlu0 %2067 }
 0x187   : > { %v2070_v25 = vpop.permute.xlu1 %2069  ;;  %2202 = vst.msk [vmem:[#allocation3 + $0x3e] sm:$0xfc] %vm11310_vm9, %v2068_v5  ;;  %vm11314_vm9 = vcmask 97344  }
 0x188   : > { %2203 = vst.msk [vmem:[#allocation3 + $0x46] sm:$0xff] %vm11165_vm11, %v2070_v25  ;;  %1228 = vrot.lane.b32.xlu0 %v7251_v61, %s11255_s22 }
 0x189   : > { %1230 = vrot.lane.b32.xlu1 %v7249_v60, %s11255_s22 }
 0x18a   : > { %v841_v14 = vpop.permute.xlu0 %840 }
 0x18b   : > { %v843_v13 = vpop.permute.xlu1 %842  ;;  %969 = vst.msk [vmem:[#allocation3 + $0x5f] sm:$0xfe] %vm948_vm4, %v841_v14 }
 0x18c   : > { %970 = vst.msk [vmem:[#allocation3 + $0x67] sm:$0xff] %vm950_vm6, %v843_v13  ;;  %1890 = vrot.lane.b32.xlu0 %v7251_v61, %s11256_s29  ;;  %v702_v13 = vld [vmem:[#allocation2 + $0x100] sm:$0x3] }
 0x18d   : > { %1892 = vrot.lane.b32.xlu1 %v7249_v60, %s11256_s29 }
 0x18e   : > { %v845_v51 = vpop.permute.xlu0 %844 }
 0x18f   : > { %v1552_v17 = vpop.permute.xlu1 %1551  ;;  %v2246_v20 = vld [vmem:[#allocation3 + $0x40] sm:$0xff]  ;;  %971 = vst.msk [vmem:[#allocation3 + $0x6f] sm:$0x1] %vm11311_vm3, %v845_v51  ;;  %vm11315_vm3 = vcmask 228544  }
 0x190   : > { %1683 = vst.msk [vmem:[#allocation3 + $0x4e] sm:$0xfc] %vm1665_vm14, %v1552_v17  ;;  %6498 = vmatprep.mubr.msk.f32.mxu0 %vm11164_vm10, %v2246_v20  ;;  %1374 = vrot.lane.b32.xlu0 %v7251_v61, %s11257_s23 }
 0x191   : > { %1376 = vrot.lane.b32.xlu1 %v7249_v60, %s11257_s23 }
 0x192   : > { %v1554_v30 = vpop.permute.xlu0 %1553 }
 0x193   : > { %v1556_v27 = vpop.permute.xlu1 %1555  ;;  %1684 = vst.msk [vmem:[#allocation3 + $0x56] sm:$0xff] %vm1667_vm13, %v1554_v30 }
 0x194   : > { %1685 = vst.msk [vmem:[#allocation3 + $0x5e] sm:$0x3] %vm11168_vm15, %v1556_v27  ;;  %1378 = vrot.lane.b32.xlu0 %v699_v50, %s11257_s23 }
 0x195   : > { %1894 = vrot.lane.b32.xlu1 %v699_v50, %s11256_s29 }
 0x196   : > { %v2072_v32 = vpop.permute.xlu0 %2071 }
 0x197   : > { %v1036_v31 = vpop.permute.xlu1 %1035  ;;  %2204 = vst.msk [vmem:[#allocation3 + $0x4e] sm:$0x3] %vm11313_vm8, %v2072_v32  ;;  %vm11317_vm8 = vcmask 130144  }
 0x198   : > { %1164 = vst.msk [vmem:[#allocation3 + $0x5e] sm:$0xfc] %vm11312_vm5, %v1036_v31  ;;  %2085 = vrot.lane.b32.xlu0 %v7251_v61, %s11174_s19  ;;  %vm11316_vm5 = vmmov %vm11315_vm3 }
 0x199   : > { %2087 = vrot.lane.b32.xlu1 %v7249_v60, %s11174_s19 }
 0x19a   : > { %v1038_v38 = vpop.permute.xlu0 %1037 }
 0x19b   : > { %v1040_v37 = vpop.permute.xlu1 %1039  ;;  %1165 = vst.msk [vmem:[#allocation3 + $0x66] sm:$0xff] %vm11314_vm9, %v1038_v38  ;;  %vm11318_vm9 = vmmov %vm11317_vm8 }
 0x19c   : > { %1166 = vst.msk [vmem:[#allocation3 + $0x6e] sm:$0x3] %vm11125_vm7, %v1040_v37  ;;  %858 = vrot.lane.b32.xlu0 %v7251_v61, %s6675_s30 }
 0x19d   : > { %860 = vrot.lane.b32.xlu1 %v7249_v60, %s6675_s30 }
 0x19e   : > { %v1739_v41 = vpop.permute.xlu0 %1738  ;;  %v2247_v42 = vld [vmem:[#allocation3 + $0x48] sm:$0xff] }
 0x19f   : > { %v1741_v36 = vpop.permute.xlu1 %1740  ;;  %1825 = vst.msk [vmem:[#allocation3 + $0x50] sm:$0xff] %vm11316_vm5, %v1739_v41  ;;  %6499 = vmatmul.mubr.msk.f32.gmra.mrb[8].mxu0 %vm11164_vm10, %v2247_v42  ;;  %vm11320_vm5 = vcmask 162944  }
 0x1a0   : > { %1826 = vst.msk [vmem:[#allocation3 + $0x58] sm:$0xff] %vm11315_vm3, %v1741_v36  ;;  %862 = vrot.lane.b32.xlu0 %v699_v50, %s6675_s30  ;;  %vm11319_vm3 = vcmask 261345  }
 0x1a1   : > { %1569 = vrot.lane.b32.xlu1 %v7251_v61, %s11176_s20 }
 0x1a2   : > { %v1221_v47 = vpop.permute.xlu0 %1220 }
 0x1a3   : > { %v1223_v35 = vpop.permute.xlu1 %1222  ;;  %1305 = vst.msk [vmem:[#allocation3 + $0x60] sm:$0xff] %vm11318_vm9, %v1221_v47  ;;  %vm11324_vm9 = vcmask 294146  }
 0x1a4   : > { %1306 = vst.msk [vmem:[#allocation3 + $0x68] sm:$0xff] %vm11317_vm8, %v1223_v35  ;;  %1571 = vrot.lane.b32.xlu0 %v7249_v60, %s11176_s20  ;;  %vm11321_vm8 = vcmask 162945  }
 0x1a5   : > { %1573 = vrot.lane.b32.xlu1 %v699_v50, %s11176_s20 }
 0x1a6   : > { %v1879_v49 = vpop.permute.xlu0 %1878 }
 0x1a7   : > { %v1881_v48 = vpop.permute.xlu1 %1880  ;;  %2010 = vst.msk [vmem:[#allocation3 + $0x4f] sm:$0xfe] %vm11319_vm3, %v1879_v49  ;;  %vm11325_vm3 = vcmask 57376   ;;  %v7634_v49 = vld [vmem:[%s6848_s0 + $0xd0] sm:$0xff] }
 0x1a8   : > { %2011 = vst.msk [vmem:[#allocation3 + $0x57] sm:$0xff] %vm11167_vm2, %v1881_v48  ;;  %2089 = vrot.lane.b32.xlu0 %v699_v50, %s11174_s19  ;;  %11336 = vst [vmem:[#allocation30_spill] sm:$0xff] %v7634_v49 }
 0x1a9   : > { %1053 = vrot.lane.b32.xlu1 %v7251_v61, %s11171_s18  ;;  %664 = vst.msk [vmem:[#allocation2 + $0x151] sm:$0xff] %vm11124_vm1, %v7634_v49 }
 0x1aa   : > { %v1363_v53 = vpop.permute.xlu0 %1362 }
 0x1ab   : > { %v1365_v52 = vpop.permute.xlu1 %1364  ;;  %1491 = vst.msk [vmem:[#allocation3 + $0x5f] sm:$0xfe] %vm11321_vm8, %v1363_v53  ;;  %vm11327_vm8 = vcmask 288000  }
 0x1ac   : > { %1492 = vst.msk [vmem:[#allocation3 + $0x67] sm:$0xff] %vm11320_vm5, %v1365_v52  ;;  %1055 = vrot.lane.b32.xlu0 %v7249_v60, %s11171_s18  ;;  %vm11326_vm5 = vcmask 97346   ;;  %v7637_v52 = vld [vmem:[%s6848_s0 + $0xd8] sm:$0xff] }
 0x1ad   : > { %1057 = vrot.lane.b32.xlu1 %v699_v50, %s11171_s18  ;;  %11337 = vst [vmem:[#allocation31_spill] sm:$0xff] %v7637_v52  ;;  %665 = vst.msk [vmem:[#allocation2 + $0x159] sm:$0xff] %vm11124_vm1, %v7637_v52 }
 0x1ae   : > { %v1367_v24 = vpop.permute.xlu0 %1366 }
 0x1af   : > { %v1883_v61 = vpop.permute.xlu1 %1882  ;;  %1493 = vst.msk [vmem:[#allocation3 + $0x6f] sm:$0x1] %vm1474_vm12, %v1367_v24 }
 0x1b0   : > { %2012 = vst.msk [vmem:[#allocation3 + $0x5f] sm:$0x1] %vm11166_vm0, %v1883_v61  ;;  %1750 = vrot.lane.b32.xlu0 %v7331_v46, %s11169_s21 }
 0x1b1   : > { %1752 = vrot.lane.b32.xlu1 %v7329_v43, %s11169_s21 }
 0x1b2   : > { %v2074_v58 = vpop.permute.xlu0 %2073 }
 0x1b3   : > { %v2076_v60 = vpop.permute.xlu1 %2075  ;;  %2205 = vst.msk [vmem:[#allocation3 + $0x4e] sm:$0xfc] %vm11324_vm9, %v2074_v58  ;;  %vm11328_vm9 = vcmask 97344  }
 0x1b4   : > { %2206 = vst.msk [vmem:[#allocation3 + $0x56] sm:$0xff] %vm11165_vm11, %v2076_v60  ;;  %1232 = vrot.lane.b32.xlu0 %v7331_v46, %s11255_s22  ;;  %v7655_v24 = vld [vmem:[#allocation2 + $0x158] sm:$0xff]  ;;  %v7657_v60 = vld [vmem:[#allocation2 + $0x150] sm:$0xff] }
 0x1b5   : > { %1234 = vrot.lane.b32.xlu1 %v7329_v43, %s11255_s22  ;;  %753 = vst.msk [vmem:[#allocation3 + $0xe8] sm:$0xff] %vm11124_vm1, %v7655_v24  ;;  %752 = vst.msk [vmem:[#allocation3 + $0xe0] sm:$0xff] %vm11124_vm1, %v7657_v60 }
 0x1b6   : > { %v847_v26 = vpop.permute.xlu0 %846 }
 0x1b7   : > { %v849_v62 = vpop.permute.xlu1 %848  ;;  %972 = vst.msk [vmem:[#allocation3 + $0x6f] sm:$0xfe] %vm948_vm4, %v847_v26 }
 0x1b8   : > { %973 = vst.msk [vmem:[#allocation3 + $0x77] sm:$0xff] %vm950_vm6, %v849_v62  ;;  %1896 = vrot.lane.b32.xlu0 %v7331_v46, %s11256_s29 }
 0x1b9   : > { %1898 = vrot.lane.b32.xlu1 %v7329_v43, %s11256_s29 }
 0x1ba   : > { %v851_v25 = vpop.permute.xlu0 %850 }
 0x1bb   : > { %v1558_v4 = vpop.permute.xlu1 %1557  ;;  %v2248_v5 = vld [vmem:[#allocation3 + $0x50] sm:$0xff]  ;;  %974 = vst.msk [vmem:[#allocation3 + $0x7f] sm:$0x1] %vm11325_vm3, %v851_v25  ;;  %vm11329_vm3 = vcmask 228544  }
 0x1bc   : > { %1686 = vst.msk [vmem:[#allocation3 + $0x5e] sm:$0xfc] %vm1665_vm14, %v1558_v4  ;;  %6501 = vmatprep.mubr.msk.f32.mxu0 %vm11164_vm10, %v2248_v5  ;;  %1380 = vrot.lane.b32.xlu0 %v7331_v46, %s11257_s23  ;;  %v705_v5 = vld [vmem:[#allocation2 + $0x118] sm:$0x3] }
 0x1bd   : > { %1382 = vrot.lane.b32.xlu1 %v7329_v43, %s11257_s23 }
 0x1be   : > { %v1560_v17 = vpop.permute.xlu0 %1559 }
 0x1bf   : > { %v1562_v14 = vpop.permute.xlu1 %1561  ;;  %1687 = vst.msk [vmem:[#allocation3 + $0x66] sm:$0xff] %vm1667_vm13, %v1560_v17 }
 0x1c0   : > { %1688 = vst.msk [vmem:[#allocation3 + $0x6e] sm:$0x3] %vm11168_vm15, %v1562_v14  ;;  %1384 = vrot.lane.b32.xlu0 %v702_v13, %s11257_s23 }
 0x1c1   : > { %1900 = vrot.lane.b32.xlu1 %v702_v13, %s11256_s29 }
 0x1c2   : > { %v7598_v20 = vpop.f32.mrb[0].mxu0  ;;  %v2078_v50 = vpop.permute.xlu0 %2077 }
 0x1c3   : > { %v1042_v51 = vpop.permute.xlu1 %1041  ;;  %v7601_v27 = vpop.f32.mrb[1].mxu0  ;;  %2207 = vst.msk [vmem:[#allocation3 + $0x5e] sm:$0x3] %vm11327_vm8, %v2078_v50  ;;  %vm11331_vm8 = vcmask 130144  }
 0x1c4   : > { %1167 = vst.msk [vmem:[#allocation3 + $0x6e] sm:$0xfc] %vm11326_vm5, %v1042_v51  ;;  %2091 = vrot.lane.b32.xlu0 %v7331_v46, %s11174_s19  ;;  %vm11330_vm5 = vmmov %vm11329_vm3 }
 0x1c5   : > { %2093 = vrot.lane.b32.xlu1 %v7329_v43, %s11174_s19 }
 0x1c6   : > { %v1044_v31 = vpop.permute.xlu0 %1043 }
 0x1c7   : > { %v1046_v30 = vpop.permute.xlu1 %1045  ;;  %1168 = vst.msk [vmem:[#allocation3 + $0x76] sm:$0xff] %vm11328_vm9, %v1044_v31  ;;  %vm11332_vm9 = vmmov %vm11331_vm8 }
 0x1c8   : > { %1169 = vst.msk [vmem:[#allocation3 + $0x7e] sm:$0x3] %vm11125_vm7, %v1046_v30  ;;  %864 = vrot.lane.b32.xlu0 %v7331_v46, %s6675_s30 }
 0x1c9   : > { %866 = vrot.lane.b32.xlu1 %v7329_v43, %s6675_s30 }
 0x1ca   : > { %v1743_v37 = vpop.permute.xlu0 %1742  ;;  %v2249_v38 = vld [vmem:[#allocation3 + $0x58] sm:$0xff] }
 0x1cb   : > { %v1745_v32 = vpop.permute.xlu1 %1744  ;;  %1827 = vst.msk [vmem:[#allocation3 + $0x60] sm:$0xff] %vm11330_vm5, %v1743_v37  ;;  %6502 = vmatmul.mubr.msk.f32.gmra.mrb[10].mxu0 %vm11164_vm10, %v2249_v38  ;;  %vm11334_vm5 = vcmask 162944  }
 0x1cc   : > { %1828 = vst.msk [vmem:[#allocation3 + $0x68] sm:$0xff] %vm11329_vm3, %v1745_v32  ;;  %868 = vrot.lane.b32.xlu0 %v702_v13, %s6675_s30  ;;  %vm11333_vm3 = vcmask 261345  }
 0x1cd   : > { %1575 = vrot.lane.b32.xlu1 %v7331_v46, %s11176_s20 }
 0x1ce   : > { %v1225_v41 = vpop.permute.xlu0 %1224 }
 0x1cf   : > { %v1227_v36 = vpop.permute.xlu1 %1226  ;;  %1307 = vst.msk [vmem:[#allocation3 + $0x70] sm:$0xff] %vm11332_vm9, %v1225_v41  ;;  %vm11338_vm9 = vcmask 294146  }
 0x1d0   : > { %1308 = vst.msk [vmem:[#allocation3 + $0x78] sm:$0xff] %vm11331_vm8, %v1227_v36  ;;  %1577 = vrot.lane.b32.xlu0 %v7329_v43, %s11176_s20  ;;  %vm11335_vm8 = vcmask 162945  }
 0x1d1   : > { %1579 = vrot.lane.b32.xlu1 %v702_v13, %s11176_s20 }
 0x1d2   : > { %v1885_v35 = vpop.permute.xlu0 %1884 }
 0x1d3   : > { %v1887_v42 = vpop.permute.xlu1 %1886  ;;  %2013 = vst.msk [vmem:[#allocation3 + $0x5f] sm:$0xfe] %vm11333_vm3, %v1885_v35  ;;  %vm11339_vm3 = vcmask 57376  }
 0x1d4   : > { %2014 = vst.msk [vmem:[#allocation3 + $0x67] sm:$0xff] %vm11167_vm2, %v1887_v42  ;;  %2095 = vrot.lane.b32.xlu0 %v702_v13, %s11174_s19 }
 0x1d5   : > { %1059 = vrot.lane.b32.xlu1 %v7331_v46, %s11171_s18 }
 0x1d6   : > { %v1369_v48 = vpop.permute.xlu0 %1368 }
 0x1d7   : > { %v1371_v47 = vpop.permute.xlu1 %1370  ;;  %1494 = vst.msk [vmem:[#allocation3 + $0x6f] sm:$0xfe] %vm11335_vm8, %v1369_v48  ;;  %vm11341_vm8 = vcmask 288000  }
 0x1d8   : > { %1495 = vst.msk [vmem:[#allocation3 + $0x77] sm:$0xff] %vm11334_vm5, %v1371_v47  ;;  %1061 = vrot.lane.b32.xlu0 %v7329_v43, %s11171_s18  ;;  %vm11340_vm5 = vcmask 97346  }
 0x1d9   : > { %1063 = vrot.lane.b32.xlu1 %v702_v13, %s11171_s18 }
 0x1da   : > { %v1373_v53 = vpop.permute.xlu0 %1372 }
 0x1db   : > { %v1889_v46 = vpop.permute.xlu1 %1888  ;;  %1496 = vst.msk [vmem:[#allocation3 + $0x7f] sm:$0x1] %vm1474_vm12, %v1373_v53  ;;  %v7718_v53 = vld [vmem:[%s6848_s0 + $0xe0] sm:$0xff] }
 0x1dc   : > { %2015 = vst.msk [vmem:[#allocation3 + $0x6f] sm:$0x1] %vm11166_vm0, %v1889_v46  ;;  %1754 = vrot.lane.b32.xlu0 %v7415_v29, %s11169_s21  ;;  %11350 = vst [vmem:[#allocation32_spill] sm:$0xff] %v7718_v53 }
 0x1dd   : > { %1756 = vrot.lane.b32.xlu1 %v7413_v28, %s11169_s21  ;;  %666 = vst.msk [vmem:[#allocation2 + $0x169] sm:$0xff] %vm11124_vm1, %v7718_v53 }
 0x1de   : > { %v2080_v43 = vpop.permute.xlu0 %2079 }
 0x1df   : > { %v2082_v61 = vpop.permute.xlu1 %2081  ;;  %2208 = vst.msk [vmem:[#allocation3 + $0x5e] sm:$0xfc] %vm11338_vm9, %v2080_v43  ;;  %vm11342_vm9 = vcmask 97344  }
 0x1e0   : > { %2209 = vst.msk [vmem:[#allocation3 + $0x66] sm:$0xff] %vm11165_vm11, %v2082_v61  ;;  %1236 = vrot.lane.b32.xlu0 %v7415_v29, %s11255_s22  ;;  %v7721_v61 = vld [vmem:[%s6848_s0 + $0xe8] sm:$0xff] }
 0x1e1   : > { %1238 = vrot.lane.b32.xlu1 %v7413_v28, %s11255_s22  ;;  %11351 = vst [vmem:[#allocation33_spill] sm:$0xff] %v7721_v61  ;;  %667 = vst.msk [vmem:[#allocation2 + $0x171] sm:$0xff] %vm11124_vm1, %v7721_v61 }
 0x1e2   : > { %v853_v62 = vpop.permute.xlu0 %852 }
 0x1e3   : > { %v855_v58 = vpop.permute.xlu1 %854  ;;  %975 = vst.msk [vmem:[#allocation3 + $0x7f] sm:$0xfe] %vm948_vm4, %v853_v62 }
 0x1e4   : > { %976 = vst.msk [vmem:[#allocation3 + $0x87] sm:$0xff] %vm950_vm6, %v855_v58  ;;  %1902 = vrot.lane.b32.xlu0 %v7415_v29, %s11256_s29 }
 0x1e5   : > { %1904 = vrot.lane.b32.xlu1 %v7413_v28, %s11256_s29 }
 0x1e6   : > { %v857_v4 = vpop.permute.xlu0 %856 }
 0x1e7   : > { %v1564_v26 = vpop.permute.xlu1 %1563  ;;  %v2250_v25 = vld [vmem:[#allocation3 + $0x60] sm:$0xff]  ;;  %977 = vst.msk [vmem:[#allocation3 + $0x8f] sm:$0x1] %vm11339_vm3, %v857_v4  ;;  %vm11343_vm3 = vcmask 228544  }
 0x1e8   : > { %1689 = vst.msk [vmem:[#allocation3 + $0x6e] sm:$0xfc] %vm1665_vm14, %v1564_v26  ;;  %6504 = vmatprep.mubr.msk.f32.mxu0 %vm11164_vm10, %v2250_v25  ;;  %1386 = vrot.lane.b32.xlu0 %v7415_v29, %s11257_s23  ;;  %v7739_v62 = vld [vmem:[#allocation2 + $0x170] sm:$0xff]  ;;  %v7741_v26 = vld [vmem:[#allocation2 + $0x168] sm:$0xff] }
 0x1e9   : > { %1388 = vrot.lane.b32.xlu1 %v7413_v28, %s11257_s23  ;;  %755 = vst.msk [vmem:[#allocation3 + $0xf8] sm:$0xff] %vm11124_vm1, %v7739_v62  ;;  %754 = vst.msk [vmem:[#allocation3 + $0xf0] sm:$0xff] %vm11124_vm1, %v7741_v26 }
 0x1ea   : > { %v1566_v14 = vpop.permute.xlu0 %1565 }
 0x1eb   : > { %v1568_v13 = vpop.permute.xlu1 %1567  ;;  %1690 = vst.msk [vmem:[#allocation3 + $0x76] sm:$0xff] %vm1667_vm13, %v1566_v14 }
 0x1ec   : > { %1691 = vst.msk [vmem:[#allocation3 + $0x7e] sm:$0x3] %vm11168_vm15, %v1568_v13  ;;  %1390 = vrot.lane.b32.xlu0 %v705_v5, %s11257_s23 }
 0x1ed   : > { %1906 = vrot.lane.b32.xlu1 %v705_v5, %s11256_s29 }
 0x1ee   : > { %v7682_v51 = vpop.f32.mrb[2].mxu0  ;;  %v2084_v50 = vpop.permute.xlu0 %2083 }
 0x1ef   : > { %v1048_v17 = vpop.permute.xlu1 %1047  ;;  %v7685_v30 = vpop.f32.mrb[3].mxu0  ;;  %2210 = vst.msk [vmem:[#allocation3 + $0x6e] sm:$0x3] %vm11341_vm8, %v2084_v50  ;;  %vm11345_vm8 = vcmask 130144  }
 0x1f0   : > { %1170 = vst.msk [vmem:[#allocation3 + $0x7e] sm:$0xfc] %vm11340_vm5, %v1048_v17  ;;  %2097 = vrot.lane.b32.xlu0 %v7415_v29, %s11174_s19  ;;  %vm11344_vm5 = vmmov %vm11343_vm3  ;;  %v708_v17 = vld [vmem:[#allocation2 + $0x130] sm:$0x3] }
 0x1f1   : > { %2099 = vrot.lane.b32.xlu1 %v7413_v28, %s11174_s19 }
 0x1f2   : > { %v1050_v32 = vpop.permute.xlu0 %1049 }
 0x1f3   : > { %v1052_v31 = vpop.permute.xlu1 %1051  ;;  %1171 = vst.msk [vmem:[#allocation3 + $0x86] sm:$0xff] %vm11342_vm9, %v1050_v32  ;;  %vm11346_vm9 = vmmov %vm11345_vm8 }
 0x1f4   : > { %1172 = vst.msk [vmem:[#allocation3 + $0x8e] sm:$0x3] %vm11125_vm7, %v1052_v31  ;;  %870 = vrot.lane.b32.xlu0 %v7415_v29, %s6675_s30 }
 0x1f5   : > { %872 = vrot.lane.b32.xlu1 %v7413_v28, %s6675_s30 }
 0x1f6   : > { %v1747_v38 = vpop.permute.xlu0 %1746  ;;  %v2251_v36 = vld [vmem:[#allocation3 + $0x68] sm:$0xff] }
 0x1f7   : > { %v1749_v37 = vpop.permute.xlu1 %1748  ;;  %1829 = vst.msk [vmem:[#allocation3 + $0x70] sm:$0xff] %vm11344_vm5, %v1747_v38  ;;  %6505 = vmatmul.mubr.msk.f32.gmra.mrb[12].mxu0 %vm11164_vm10, %v2251_v36  ;;  %vm11348_vm5 = vcmask 162944  }
 0x1f8   : > { %1830 = vst.msk [vmem:[#allocation3 + $0x78] sm:$0xff] %vm11343_vm3, %v1749_v37  ;;  %874 = vrot.lane.b32.xlu0 %v705_v5, %s6675_s30  ;;  %vm11347_vm3 = vcmask 261345  }
 0x1f9   : > { %1581 = vrot.lane.b32.xlu1 %v7415_v29, %s11176_s20 }
 0x1fa   : > { %v1229_v42 = vpop.permute.xlu0 %1228 }
 0x1fb   : > { %v1231_v41 = vpop.permute.xlu1 %1230  ;;  %1309 = vst.msk [vmem:[#allocation3 + $0x80] sm:$0xff] %vm11346_vm9, %v1229_v42  ;;  %vm11352_vm9 = vcmask 294146  }
 0x1fc   : > { %1310 = vst.msk [vmem:[#allocation3 + $0x88] sm:$0xff] %vm11345_vm8, %v1231_v41  ;;  %1583 = vrot.lane.b32.xlu0 %v7413_v28, %s11176_s20  ;;  %vm11349_vm8 = vcmask 162945  }
 0x1fd   : > { %1585 = vrot.lane.b32.xlu1 %v705_v5, %s11176_s20 }
 0x1fe   : > { %v1891_v47 = vpop.permute.xlu0 %1890 }
 0x1ff   : > { %v1893_v35 = vpop.permute.xlu1 %1892  ;;  %2016 = vst.msk [vmem:[#allocation3 + $0x6f] sm:$0xfe] %vm11347_vm3, %v1891_v47  ;;  %vm11353_vm3 = vcmask 57376  }
 0x200   : > { %2017 = vst.msk [vmem:[#allocation3 + $0x77] sm:$0xff] %vm11167_vm2, %v1893_v35  ;;  %2101 = vrot.lane.b32.xlu0 %v705_v5, %s11174_s19 }
 0x201   : > { %1065 = vrot.lane.b32.xlu1 %v7415_v29, %s11171_s18 }
 0x202   : > { %v1375_v46 = vpop.permute.xlu0 %1374 }
 0x203   : > { %v1377_v48 = vpop.permute.xlu1 %1376  ;;  %1497 = vst.msk [vmem:[#allocation3 + $0x7f] sm:$0xfe] %vm11349_vm8, %v1375_v46  ;;  %vm11355_vm8 = vcmask 288000  }
 0x204   : > { %1498 = vst.msk [vmem:[#allocation3 + $0x87] sm:$0xff] %vm11348_vm5, %v1377_v48  ;;  %1067 = vrot.lane.b32.xlu0 %v7413_v28, %s11171_s18  ;;  %vm11354_vm5 = vcmask 97346  }
 0x205   : > { %1069 = vrot.lane.b32.xlu1 %v705_v5, %s11171_s18 }
 0x206   : > { %v1379_v43 = vpop.permute.xlu0 %1378 }
 0x207   : > { %v1895_v29 = vpop.permute.xlu1 %1894  ;;  %1499 = vst.msk [vmem:[#allocation3 + $0x8f] sm:$0x1] %vm1474_vm12, %v1379_v43 }
 0x208   : > { %2018 = vst.msk [vmem:[#allocation3 + $0x7f] sm:$0x1] %vm11166_vm0, %v1895_v29  ;;  %1758 = vrot.lane.b32.xlu0 %v7495_v12, %s11169_s21 }
 0x209   : > { %1760 = vrot.lane.b32.xlu1 %v7493_v6, %s11169_s21 }
 0x20a   : > { %v2086_v28 = vpop.permute.xlu0 %2085 }
 0x20b   : > { %v2088_v58 = vpop.permute.xlu1 %2087  ;;  %2211 = vst.msk [vmem:[#allocation3 + $0x6e] sm:$0xfc] %vm11352_vm9, %v2086_v28  ;;  %vm11356_vm9 = vcmask 97344  }
 0x20c   : > { %2212 = vst.msk [vmem:[#allocation3 + $0x76] sm:$0xff] %vm11165_vm11, %v2088_v58  ;;  %1240 = vrot.lane.b32.xlu0 %v7495_v12, %s11255_s22 }
 0x20d   : > { %1242 = vrot.lane.b32.xlu1 %v7493_v6, %s11255_s22 }
 0x20e   : > { %v859_v25 = vpop.permute.xlu0 %858 }
 0x20f   : > { %v861_v4 = vpop.permute.xlu1 %860  ;;  %978 = vst.msk [vmem:[#allocation3 + $0x8f] sm:$0xfe] %vm948_vm4, %v859_v25  ;;  %v7802_v25 = vld [vmem:[%s6848_s0 + $0xf0] sm:$0xff] }
 0x210   : > { %979 = vst.msk [vmem:[#allocation3 + $0x97] sm:$0xff] %vm950_vm6, %v861_v4  ;;  %1908 = vrot.lane.b32.xlu0 %v7495_v12, %s11256_s29  ;;  %11364 = vst [vmem:[#allocation34_spill] sm:$0xff] %v7802_v25 }
 0x211   : > { %1910 = vrot.lane.b32.xlu1 %v7493_v6, %s11256_s29  ;;  %668 = vst.msk [vmem:[#allocation2 + $0x181] sm:$0xff] %vm11124_vm1, %v7802_v25 }
 0x212   : > { %v863_v13 = vpop.permute.xlu0 %862 }
 0x213   : > { %v1570_v5 = vpop.permute.xlu1 %1569  ;;  %v2252_v14 = vld [vmem:[#allocation3 + $0x70] sm:$0xff]  ;;  %980 = vst.msk [vmem:[#allocation3 + $0x9f] sm:$0x1] %vm11353_vm3, %v863_v13  ;;  %vm11357_vm3 = vcmask 228544  }
 0x214   : > { %1692 = vst.msk [vmem:[#allocation3 + $0x7e] sm:$0xfc] %vm1665_vm14, %v1570_v5  ;;  %6507 = vmatprep.mubr.msk.f32.mxu0 %vm11164_vm10, %v2252_v14  ;;  %1392 = vrot.lane.b32.xlu0 %v7495_v12, %s11257_s23  ;;  %v7805_v5 = vld [vmem:[%s6848_s0 + $0xf8] sm:$0xff] }
 0x215   : > { %1394 = vrot.lane.b32.xlu1 %v7493_v6, %s11257_s23  ;;  %11365 = vst [vmem:[#allocation35_spill] sm:$0xff] %v7805_v5  ;;  %669 = vst.msk [vmem:[#allocation2 + $0x189] sm:$0xff] %vm11124_vm1, %v7805_v5 }
 0x216   : > { %v1572_v31 = vpop.permute.xlu0 %1571 }
 0x217   : > { %v1574_v50 = vpop.permute.xlu1 %1573  ;;  %1693 = vst.msk [vmem:[#allocation3 + $0x86] sm:$0xff] %vm1667_vm13, %v1572_v31 }
 0x218   : > { %1694 = vst.msk [vmem:[#allocation3 + $0x8e] sm:$0x3] %vm11168_vm15, %v1574_v50  ;;  %1396 = vrot.lane.b32.xlu0 %v708_v17, %s11257_s23 }
 0x219   : > { %1912 = vrot.lane.b32.xlu1 %v708_v17, %s11256_s29 }
 0x21a   : > { %v7766_v37 = vpop.f32.mrb[4].mxu0  ;;  %v2090_v38 = vpop.permute.xlu0 %2089 }
 0x21b   : > { %v1054_v32 = vpop.permute.xlu1 %1053  ;;  %v7769_v36 = vpop.f32.mrb[5].mxu0  ;;  %2213 = vst.msk [vmem:[#allocation3 + $0x7e] sm:$0x3] %vm11355_vm8, %v2090_v38  ;;  %vm11359_vm8 = vcmask 130144  }
 0x21c   : > { %1173 = vst.msk [vmem:[#allocation3 + $0x8e] sm:$0xfc] %vm11354_vm5, %v1054_v32  ;;  %2103 = vrot.lane.b32.xlu0 %v7495_v12, %s11174_s19  ;;  %vm11358_vm5 = vmmov %vm11357_vm3 }
 0x21d   : > { %2105 = vrot.lane.b32.xlu1 %v7493_v6, %s11174_s19 }
 0x21e   : > { %v1056_v42 = vpop.permute.xlu0 %1055 }
 0x21f   : > { %v1058_v41 = vpop.permute.xlu1 %1057  ;;  %1174 = vst.msk [vmem:[#allocation3 + $0x96] sm:$0xff] %vm11356_vm9, %v1056_v42  ;;  %vm11360_vm9 = vmmov %vm11359_vm8 }
 0x220   : > { %1175 = vst.msk [vmem:[#allocation3 + $0x9e] sm:$0x3] %vm11125_vm7, %v1058_v41  ;;  %876 = vrot.lane.b32.xlu0 %v7495_v12, %s6675_s30  ;;  %v711_v41 = vld [vmem:[#allocation2 + $0x148] sm:$0x3] }
 0x221   : > { %878 = vrot.lane.b32.xlu1 %v7493_v6, %s6675_s30 }
 0x222   : > { %v1751_v47 = vpop.permute.xlu0 %1750  ;;  %v2253_v48 = vld [vmem:[#allocation3 + $0x78] sm:$0xff] }
 0x223   : > { %v1753_v35 = vpop.permute.xlu1 %1752  ;;  %1831 = vst.msk [vmem:[#allocation3 + $0x80] sm:$0xff] %vm11358_vm5, %v1751_v47  ;;  %6508 = vmatmul.mubr.msk.f32.gmra.mrb[14].mxu0 %vm11164_vm10, %v2253_v48  ;;  %vm11362_vm5 = vcmask 162944  }
 0x224   : > { %1832 = vst.msk [vmem:[#allocation3 + $0x88] sm:$0xff] %vm11357_vm3, %v1753_v35  ;;  %880 = vrot.lane.b32.xlu0 %v708_v17, %s6675_s30  ;;  %vm11361_vm3 = vcmask 261345  }
 0x225   : > { %1587 = vrot.lane.b32.xlu1 %v7495_v12, %s11176_s20 }
 0x226   : > { %v1233_v29 = vpop.permute.xlu0 %1232 }
 0x227   : > { %v1235_v46 = vpop.permute.xlu1 %1234  ;;  %1311 = vst.msk [vmem:[#allocation3 + $0x90] sm:$0xff] %vm11360_vm9, %v1233_v29  ;;  %vm11366_vm9 = vcmask 294146  }
 0x228   : > { %1312 = vst.msk [vmem:[#allocation3 + $0x98] sm:$0xff] %vm11359_vm8, %v1235_v46  ;;  %1589 = vrot.lane.b32.xlu0 %v7493_v6, %s11176_s20  ;;  %vm11363_vm8 = vcmask 162945  }
 0x229   : > { %1591 = vrot.lane.b32.xlu1 %v708_v17, %s11176_s20 }
 0x22a   : > { %v1897_v58 = vpop.permute.xlu0 %1896 }
 0x22b   : > { %v1899_v43 = vpop.permute.xlu1 %1898  ;;  %2019 = vst.msk [vmem:[#allocation3 + $0x7f] sm:$0xfe] %vm11361_vm3, %v1897_v58  ;;  %vm11367_vm3 = vcmask 57376  }
 0x22c   : > { %2020 = vst.msk [vmem:[#allocation3 + $0x87] sm:$0xff] %vm11167_vm2, %v1899_v43  ;;  %2107 = vrot.lane.b32.xlu0 %v708_v17, %s11174_s19 }
 0x22d   : > { %1071 = vrot.lane.b32.xlu1 %v7495_v12, %s11171_s18 }
 0x22e   : > { %v1381_v4 = vpop.permute.xlu0 %1380 }
 0x22f   : > { %v1383_v28 = vpop.permute.xlu1 %1382  ;;  %1500 = vst.msk [vmem:[#allocation3 + $0x8f] sm:$0xfe] %vm11363_vm8, %v1381_v4  ;;  %vm11369_vm8 = vcmask 288000  }
 0x230   : > { %1501 = vst.msk [vmem:[#allocation3 + $0x97] sm:$0xff] %vm11362_vm5, %v1383_v28  ;;  %1073 = vrot.lane.b32.xlu0 %v7493_v6, %s11171_s18  ;;  %vm11368_vm5 = vcmask 97346  }
 0x231   : > { %1075 = vrot.lane.b32.xlu1 %v708_v17, %s11171_s18 }
 0x232   : > { %v1385_v13 = vpop.permute.xlu0 %1384 }
 0x233   : > { %v1901_v12 = vpop.permute.xlu1 %1900  ;;  %1502 = vst.msk [vmem:[#allocation3 + $0x9f] sm:$0x1] %vm1474_vm12, %v1385_v13 }
 0x234   : > { %2021 = vst.msk [vmem:[#allocation3 + $0x8f] sm:$0x1] %vm11166_vm0, %v1901_v12  ;;  %1762 = vrot.lane.b32.xlu0 %v7575_v23, %s11169_s21 }
 0x235   : > { %1764 = vrot.lane.b32.xlu1 %v7573_v59, %s11169_s21 }
 0x236   : > { %v2092_v6 = vpop.permute.xlu0 %2091 }
 0x237   : > { %v2094_v14 = vpop.permute.xlu1 %2093  ;;  %2214 = vst.msk [vmem:[#allocation3 + $0x7e] sm:$0xfc] %vm11366_vm9, %v2092_v6  ;;  %vm11370_vm9 = vcmask 97344  }
 0x238   : > { %2215 = vst.msk [vmem:[#allocation3 + $0x86] sm:$0xff] %vm11165_vm11, %v2094_v14  ;;  %1244 = vrot.lane.b32.xlu0 %v7575_v23, %s11255_s22 }
 0x239   : > { %1246 = vrot.lane.b32.xlu1 %v7573_v59, %s11255_s22 }
 0x23a   : > { %v865_v50 = vpop.permute.xlu0 %864 }
 0x23b   : > { %v867_v17 = vpop.permute.xlu1 %866  ;;  %981 = vst.msk [vmem:[#allocation3 + $0x9f] sm:$0xfe] %vm948_vm4, %v865_v50 }
 0x23c   : > { %982 = vst.msk [vmem:[#allocation3 + $0xa7] sm:$0xff] %vm950_vm6, %v867_v17  ;;  %1914 = vrot.lane.b32.xlu0 %v7575_v23, %s11256_s29 }
 0x23d   : > { %1916 = vrot.lane.b32.xlu1 %v7573_v59, %s11256_s29 }
 0x23e   : > { %v869_v32 = vpop.permute.xlu0 %868 }
 0x23f   : > { %v1576_v31 = vpop.permute.xlu1 %1575  ;;  %v2254_v38 = vld [vmem:[#allocation3 + $0x80] sm:$0xff]  ;;  %983 = vst.msk [vmem:[#allocation3 + $0xaf] sm:$0x1] %vm11367_vm3, %v869_v32  ;;  %vm11371_vm3 = vcmask 228544  }
 0x240   : > { %1695 = vst.msk [vmem:[#allocation3 + $0x8e] sm:$0xfc] %vm1665_vm14, %v1576_v31  ;;  %6510 = vmatprep.mubr.msk.f32.mxu0 %vm11164_vm10, %v2254_v38  ;;  %1398 = vrot.lane.b32.xlu0 %v7575_v23, %s11257_s23 }
 0x241   : > { %1400 = vrot.lane.b32.xlu1 %v7573_v59, %s11257_s23 }
 0x242   : > { %v1578_v35 = vpop.permute.xlu0 %1577 }
 0x243   : > { %v1580_v42 = vpop.permute.xlu1 %1579  ;;  %1696 = vst.msk [vmem:[#allocation3 + $0x96] sm:$0xff] %vm1667_vm13, %v1578_v35 }
 0x244   : > { %1697 = vst.msk [vmem:[#allocation3 + $0x9e] sm:$0x3] %vm11168_vm15, %v1580_v42  ;;  %1402 = vrot.lane.b32.xlu0 %v711_v41, %s11257_s23 }
 0x245   : > { %1918 = vrot.lane.b32.xlu1 %v711_v41, %s11256_s29 }
 0x246   : > { %v7842_v48 = vpop.f32.mrb[6].mxu0  ;;  %v2096_v46 = vpop.permute.xlu0 %2095 }
 0x247   : > { %v1060_v47 = vpop.permute.xlu1 %1059  ;;  %v7845_v29 = vpop.f32.mrb[7].mxu0  ;;  %2216 = vst.msk [vmem:[#allocation3 + $0x8e] sm:$0x3] %vm11369_vm8, %v2096_v46  ;;  %vm11373_vm8 = vcmask 130144  }
 0x248   : > { %1176 = vst.msk [vmem:[#allocation3 + $0x9e] sm:$0xfc] %vm11368_vm5, %v1060_v47  ;;  %2109 = vrot.lane.b32.xlu0 %v7575_v23, %s11174_s19  ;;  %vm11372_vm5 = vmmov %vm11371_vm3 }
 0x249   : > { %2111 = vrot.lane.b32.xlu1 %v7573_v59, %s11174_s19 }
 0x24a   : > { %v1062_v58 = vpop.permute.xlu0 %1061 }
 0x24b   : > { %v1064_v43 = vpop.permute.xlu1 %1063  ;;  %1177 = vst.msk [vmem:[#allocation3 + $0xa6] sm:$0xff] %vm11370_vm9, %v1062_v58  ;;  %vm11374_vm9 = vmmov %vm11373_vm8 }
 0x24c   : > { %1178 = vst.msk [vmem:[#allocation3 + $0xae] sm:$0x3] %vm11125_vm7, %v1064_v43  ;;  %882 = vrot.lane.b32.xlu0 %v7575_v23, %s6675_s30  ;;  %v714_v43 = vld [vmem:[#allocation2 + $0x160] sm:$0x3] }
 0x24d   : > { %884 = vrot.lane.b32.xlu1 %v7573_v59, %s6675_s30 }
 0x24e   : > { %v1755_v4 = vpop.permute.xlu0 %1754  ;;  %v2255_v12 = vld [vmem:[#allocation3 + $0x88] sm:$0xff] }
 0x24f   : > { %v1757_v28 = vpop.permute.xlu1 %1756  ;;  %1833 = vst.msk [vmem:[#allocation3 + $0x90] sm:$0xff] %vm11372_vm5, %v1755_v4  ;;  %6511 = vmatmul.mubr.msk.f32.gmra.mrb[16].mxu0 %vm11164_vm10, %v2255_v12  ;;  %vm11376_vm5 = vcmask 162944  }
 0x250   : > { %1834 = vst.msk [vmem:[#allocation3 + $0x98] sm:$0xff] %vm11371_vm3, %v1757_v28  ;;  %886 = vrot.lane.b32.xlu0 %v711_v41, %s6675_s30  ;;  %vm11375_vm3 = vcmask 261345  }
 0x251   : > { %1593 = vrot.lane.b32.xlu1 %v7575_v23, %s11176_s20 }
 0x252   : > { %v1237_v14 = vpop.permute.xlu0 %1236 }
 0x253   : > { %v1239_v13 = vpop.permute.xlu1 %1238  ;;  %1313 = vst.msk [vmem:[#allocation3 + $0xa0] sm:$0xff] %vm11374_vm9, %v1237_v14  ;;  %vm11378_vm9 = vcmask 294146  }
 0x254   : > { %1314 = vst.msk [vmem:[#allocation3 + $0xa8] sm:$0xff] %vm11373_vm8, %v1239_v13  ;;  %1595 = vrot.lane.b32.xlu0 %v7573_v59, %s11176_s20  ;;  %vm11377_vm8 = vcmask 162945  }
 0x255   : > { %1597 = vrot.lane.b32.xlu1 %v711_v41, %s11176_s20 }
 0x256   : > { %v1903_v17 = vpop.permute.xlu0 %1902 }
 0x257   : > { %v1905_v6 = vpop.permute.xlu1 %1904  ;;  %2022 = vst.msk [vmem:[#allocation3 + $0x8f] sm:$0xfe] %vm11375_vm3, %v1903_v17  ;;  %vm11379_vm3 = vcmask 57376  }
 0x258   : > { %2023 = vst.msk [vmem:[#allocation3 + $0x97] sm:$0xff] %vm11167_vm2, %v1905_v6  ;;  %2113 = vrot.lane.b32.xlu0 %v711_v41, %s11174_s19 }
 0x259   : > { %1077 = vrot.lane.b32.xlu1 %v7575_v23, %s11171_s18 }
 0x25a   : > { %v1387_v31 = vpop.permute.xlu0 %1386 }
 0x25b   : > { %v1389_v50 = vpop.permute.xlu1 %1388  ;;  %1503 = vst.msk [vmem:[#allocation3 + $0x9f] sm:$0xfe] %vm11377_vm8, %v1387_v31  ;;  %vm11381_vm8 = vcmask 288000  }
 0x25c   : > { %1504 = vst.msk [vmem:[#allocation3 + $0xa7] sm:$0xff] %vm11376_vm5, %v1389_v50  ;;  %1079 = vrot.lane.b32.xlu0 %v7573_v59, %s11171_s18  ;;  %vm11380_vm5 = vcmask 97346  }
 0x25d   : > { %1081 = vrot.lane.b32.xlu1 %v711_v41, %s11171_s18 }
 0x25e   : > { %v1391_v38 = vpop.permute.xlu0 %1390 }
 0x25f   : > { %v1907_v32 = vpop.permute.xlu1 %1906  ;;  %1505 = vst.msk [vmem:[#allocation3 + $0xaf] sm:$0x1] %vm1474_vm12, %v1391_v38 }
 0x260   : > { %2024 = vst.msk [vmem:[#allocation3 + $0x9f] sm:$0x1] %vm11166_vm0, %v1907_v32  ;;  %1766 = vrot.lane.b32.xlu0 %v7657_v60, %s11169_s21 }
 0x261   : > { %1768 = vrot.lane.b32.xlu1 %v7655_v24, %s11169_s21 }
 0x262   : > { %v2098_v42 = vpop.permute.xlu0 %2097 }
 0x263   : > { %v2100_v23 = vpop.permute.xlu1 %2099  ;;  %2217 = vst.msk [vmem:[#allocation3 + $0x8e] sm:$0xfc] %vm11378_vm9, %v2098_v42  ;;  %vm11382_vm9 = vcmask 97344  }
 0x264   : > { %2218 = vst.msk [vmem:[#allocation3 + $0x96] sm:$0xff] %vm11165_vm11, %v2100_v23  ;;  %1248 = vrot.lane.b32.xlu0 %v7657_v60, %s11255_s22 }
 0x265   : > { %1250 = vrot.lane.b32.xlu1 %v7655_v24, %s11255_s22 }
 0x266   : > { %v871_v41 = vpop.permute.xlu0 %870 }
 0x267   : > { %v873_v59 = vpop.permute.xlu1 %872  ;;  %984 = vst.msk [vmem:[#allocation3 + $0xaf] sm:$0xfe] %vm948_vm4, %v871_v41 }
 0x268   : > { %985 = vst.msk [vmem:[#allocation3 + $0xb7] sm:$0xff] %vm950_vm6, %v873_v59  ;;  %1920 = vrot.lane.b32.xlu0 %v7657_v60, %s11256_s29 }
 0x269   : > { %1922 = vrot.lane.b32.xlu1 %v7655_v24, %s11256_s29 }
 0x26a   : > { %v875_v47 = vpop.permute.xlu0 %874 }
 0x26b   : > { %v1582_v35 = vpop.permute.xlu1 %1581  ;;  %v2256_v46 = vld [vmem:[#allocation3 + $0x90] sm:$0xff]  ;;  %986 = vst.msk [vmem:[#allocation3 + $0xbf] sm:$0x1] %vm11379_vm3, %v875_v47  ;;  %vm11383_vm3 = vcmask 228544  }
 0x26c   : > { %1698 = vst.msk [vmem:[#allocation3 + $0x9e] sm:$0xfc] %vm1665_vm14, %v1582_v35  ;;  %6513 = vmatprep.mubr.msk.f32.mxu0 %vm11164_vm10, %v2256_v46  ;;  %1404 = vrot.lane.b32.xlu0 %v7657_v60, %s11257_s23 }
 0x26d   : > { %1406 = vrot.lane.b32.xlu1 %v7655_v24, %s11257_s23 }
 0x26e   : > { %v1584_v28 = vpop.permute.xlu0 %1583 }
 0x26f   : > { %v1586_v58 = vpop.permute.xlu1 %1585  ;;  %1699 = vst.msk [vmem:[#allocation3 + $0xa6] sm:$0xff] %vm1667_vm13, %v1584_v28 }
 0x270   : > { %1700 = vst.msk [vmem:[#allocation3 + $0xae] sm:$0x3] %vm11168_vm15, %v1586_v58  ;;  %1408 = vrot.lane.b32.xlu0 %v714_v43, %s11257_s23 }
 0x271   : > { %1924 = vrot.lane.b32.xlu1 %v714_v43, %s11256_s29 }
 0x272   : > { %v7908_v12 = vpop.f32.mrb[8].mxu0  ;;  %v2102_v13 = vpop.permute.xlu0 %2101 }
 0x273   : > { %v1066_v4 = vpop.permute.xlu1 %1065  ;;  %v7911_v14 = vpop.f32.mrb[9].mxu0  ;;  %2219 = vst.msk [vmem:[#allocation3 + $0x9e] sm:$0x3] %vm11381_vm8, %v2102_v13  ;;  %vm11385_vm8 = vcmask 130144  }
 0x274   : > { %1179 = vst.msk [vmem:[#allocation3 + $0xae] sm:$0xfc] %vm11380_vm5, %v1066_v4  ;;  %2115 = vrot.lane.b32.xlu0 %v7657_v60, %s11174_s19  ;;  %vm11384_vm5 = vmmov %vm11383_vm3 }
 0x275   : > { %2117 = vrot.lane.b32.xlu1 %v7655_v24, %s11174_s19 }
 0x276   : > { %v1068_v17 = vpop.permute.xlu0 %1067 }
 0x277   : > { %v1070_v6 = vpop.permute.xlu1 %1069  ;;  %1180 = vst.msk [vmem:[#allocation3 + $0xb6] sm:$0xff] %vm11382_vm9, %v1068_v17  ;;  %vm11386_vm9 = vmmov %vm11385_vm8 }
 0x278   : > { %1181 = vst.msk [vmem:[#allocation3 + $0xbe] sm:$0x3] %vm11125_vm7, %v1070_v6  ;;  %888 = vrot.lane.b32.xlu0 %v7657_v60, %s6675_s30  ;;  %v717_v6 = vld [vmem:[#allocation2 + $0x178] sm:$0x3] }
 0x279   : > { %890 = vrot.lane.b32.xlu1 %v7655_v24, %s6675_s30 }
 0x27a   : > { %v1759_v31 = vpop.permute.xlu0 %1758  ;;  %v2257_v32 = vld [vmem:[#allocation3 + $0x98] sm:$0xff] }
 0x27b   : > { %v1761_v50 = vpop.permute.xlu1 %1760  ;;  %1835 = vst.msk [vmem:[#allocation3 + $0xa0] sm:$0xff] %vm11384_vm5, %v1759_v31  ;;  %6514 = vmatmul.mubr.msk.f32.gmra.mrb[18].mxu0 %vm11164_vm10, %v2257_v32  ;;  %vm11388_vm5 = vcmask 162944  }
 0x27c   : > { %1836 = vst.msk [vmem:[#allocation3 + $0xa8] sm:$0xff] %vm11383_vm3, %v1761_v50  ;;  %892 = vrot.lane.b32.xlu0 %v714_v43, %s6675_s30  ;;  %vm11387_vm3 = vcmask 261345  }
 0x27d   : > { %1599 = vrot.lane.b32.xlu1 %v7657_v60, %s11176_s20 }
 0x27e   : > { %v1241_v23 = vpop.permute.xlu0 %1240 }
 0x27f   : > { %v1243_v38 = vpop.permute.xlu1 %1242  ;;  %1315 = vst.msk [vmem:[#allocation3 + $0xb0] sm:$0xff] %vm11386_vm9, %v1241_v23  ;;  %vm11390_vm9 = vcmask 294146  }
 0x280   : > { %1316 = vst.msk [vmem:[#allocation3 + $0xb8] sm:$0xff] %vm11385_vm8, %v1243_v38  ;;  %1601 = vrot.lane.b32.xlu0 %v7655_v24, %s11176_s20  ;;  %vm11389_vm8 = vcmask 162945  }
 0x281   : > { %1603 = vrot.lane.b32.xlu1 %v714_v43, %s11176_s20 }
 0x282   : > { %v1909_v59 = vpop.permute.xlu0 %1908 }
 0x283   : > { %v1911_v42 = vpop.permute.xlu1 %1910  ;;  %2025 = vst.msk [vmem:[#allocation3 + $0x9f] sm:$0xfe] %vm11387_vm3, %v1909_v59  ;;  %vm11391_vm3 = vcmask 57376  }
 0x284   : > { %2026 = vst.msk [vmem:[#allocation3 + $0xa7] sm:$0xff] %vm11167_vm2, %v1911_v42  ;;  %2119 = vrot.lane.b32.xlu0 %v714_v43, %s11174_s19 }
 0x285   : > { %1083 = vrot.lane.b32.xlu1 %v7657_v60, %s11171_s18 }
 0x286   : > { %v1393_v35 = vpop.permute.xlu0 %1392 }
 0x287   : > { %v1395_v41 = vpop.permute.xlu1 %1394  ;;  %1506 = vst.msk [vmem:[#allocation3 + $0xaf] sm:$0xfe] %vm11389_vm8, %v1393_v35  ;;  %vm11393_vm8 = vcmask 288000  }
 0x288   : > { %1507 = vst.msk [vmem:[#allocation3 + $0xb7] sm:$0xff] %vm11388_vm5, %v1395_v41  ;;  %1085 = vrot.lane.b32.xlu0 %v7655_v24, %s11171_s18  ;;  %vm11392_vm5 = vcmask 97346  }
 0x289   : > { %1087 = vrot.lane.b32.xlu1 %v714_v43, %s11171_s18 }
 0x28a   : > { %v1397_v46 = vpop.permute.xlu0 %1396 }
 0x28b   : > { %v1913_v47 = vpop.permute.xlu1 %1912  ;;  %1508 = vst.msk [vmem:[#allocation3 + $0xbf] sm:$0x1] %vm1474_vm12, %v1397_v46 }
 0x28c   : > { %2027 = vst.msk [vmem:[#allocation3 + $0xaf] sm:$0x1] %vm11166_vm0, %v1913_v47  ;;  %1770 = vrot.lane.b32.xlu0 %v7741_v26, %s11169_s21 }
 0x28d   : > { %1772 = vrot.lane.b32.xlu1 %v7739_v62, %s11169_s21 }
 0x28e   : > { %v2104_v58 = vpop.permute.xlu0 %2103 }
 0x28f   : > { %v2106_v60 = vpop.permute.xlu1 %2105  ;;  %2220 = vst.msk [vmem:[#allocation3 + $0x9e] sm:$0xfc] %vm11390_vm9, %v2104_v58  ;;  %vm11394_vm9 = vcmask 97344  }
 0x290   : > { %2221 = vst.msk [vmem:[#allocation3 + $0xa6] sm:$0xff] %vm11165_vm11, %v2106_v60  ;;  %1252 = vrot.lane.b32.xlu0 %v7741_v26, %s11255_s22 }
 0x291   : > { %1254 = vrot.lane.b32.xlu1 %v7739_v62, %s11255_s22 }
 0x292   : > { %v877_v43 = vpop.permute.xlu0 %876 }
 0x293   : > { %v879_v24 = vpop.permute.xlu1 %878  ;;  %987 = vst.msk [vmem:[#allocation3 + $0xbf] sm:$0xfe] %vm948_vm4, %v877_v43 }
 0x294   : > { %988 = vst.msk [vmem:[#allocation3 + $0xc7] sm:$0xff] %vm950_vm6, %v879_v24  ;;  %1926 = vrot.lane.b32.xlu0 %v7741_v26, %s11256_s29 }
 0x295   : > { %1928 = vrot.lane.b32.xlu1 %v7739_v62, %s11256_s29 }
 0x296   : > { %v881_v4 = vpop.permute.xlu0 %880 }
 0x297   : > { %v1588_v28 = vpop.permute.xlu1 %1587  ;;  %v2258_v13 = vld [vmem:[#allocation3 + $0xa0] sm:$0xff]  ;;  %989 = vst.msk [vmem:[#allocation3 + $0xcf] sm:$0x1] %vm11391_vm3, %v881_v4  ;;  %vm11395_vm3 = vcmask 228544   ;;  %v719_v4 = vld [vmem:[#allocation2 + $0x188] sm:$0xff] }
 0x298   : > { %1701 = vst.msk [vmem:[#allocation3 + $0xae] sm:$0xfc] %vm1665_vm14, %v1588_v28  ;;  %6516 = vmatprep.mubr.msk.f32.mxu0 %vm11164_vm10, %v2258_v13  ;;  %1410 = vrot.lane.b32.xlu0 %v7741_v26, %s11257_s23 }
 0x299   : > { %1412 = vrot.lane.b32.xlu1 %v7739_v62, %s11257_s23 }
 0x29a   : > { %v1590_v50 = vpop.permute.xlu0 %1589 }
 0x29b   : > { %v1592_v17 = vpop.permute.xlu1 %1591  ;;  %1702 = vst.msk [vmem:[#allocation3 + $0xb6] sm:$0xff] %vm1667_vm13, %v1590_v50 }
 0x29c   : > { %1703 = vst.msk [vmem:[#allocation3 + $0xbe] sm:$0x3] %vm11168_vm15, %v1592_v17  ;;  %1414 = vrot.lane.b32.xlu0 %v717_v6, %s11257_s23  ;;  %v718_v17 = vld [vmem:[#allocation2 + $0x180] sm:$0xff] }
 0x29d   : > { %1930 = vrot.lane.b32.xlu1 %v717_v6, %s11256_s29 }
 0x29e   : > { %v2108_v32 = vpop.permute.xlu0 %2107  ;;  %v7975_v38 = vpop.f32.mrb[10].mxu0 }
 0x29f   : > { %v1072_v31 = vpop.permute.xlu1 %1071  ;;  %2222 = vst.msk [vmem:[#allocation3 + $0xae] sm:$0x3] %vm11393_vm8, %v2108_v32  ;;  %v7978_v23 = vpop.f32.mrb[11].mxu0  ;;  %vm11397_vm8 = vcmask 130144  }
 0x2a0   : > { %1182 = vst.msk [vmem:[#allocation3 + $0xbe] sm:$0xfc] %vm11392_vm5, %v1072_v31  ;;  %2121 = vrot.lane.b32.xlu0 %v7741_v26, %s11174_s19  ;;  %vm11396_vm5 = vmmov %vm11395_vm3 }
 0x2a1   : > { %2123 = vrot.lane.b32.xlu1 %v7739_v62, %s11174_s19 }
 0x2a2   : > { %v1074_v59 = vpop.permute.xlu0 %1073 }
 0x2a3   : > { %v1076_v42 = vpop.permute.xlu1 %1075  ;;  %1183 = vst.msk [vmem:[#allocation3 + $0xc6] sm:$0xff] %vm11394_vm9, %v1074_v59  ;;  %vm11398_vm9 = vmmov %vm11397_vm8 }
 0x2a4   : > { %1184 = vst.msk [vmem:[#allocation3 + $0xce] sm:$0x3] %vm11125_vm7, %v1076_v42  ;;  %894 = vrot.lane.b32.xlu0 %v7741_v26, %s6675_s30 }
 0x2a5   : > { %896 = vrot.lane.b32.xlu1 %v7739_v62, %s6675_s30 }
 0x2a6   : > { %v1763_v35 = vpop.permute.xlu0 %1762  ;;  %v2259_v47 = vld [vmem:[#allocation3 + $0xa8] sm:$0xff] }
 0x2a7   : > { %v1765_v41 = vpop.permute.xlu1 %1764  ;;  %1837 = vst.msk [vmem:[#allocation3 + $0xb0] sm:$0xff] %vm11396_vm5, %v1763_v35  ;;  %6517 = vmatmul.mubr.msk.f32.gmra.mrb[20].mxu0 %vm11164_vm10, %v2259_v47  ;;  %vm11400_vm5 = vcmask 162944  }
 0x2a8   : > { %1838 = vst.msk [vmem:[#allocation3 + $0xb8] sm:$0xff] %vm11395_vm3, %v1765_v41  ;;  %898 = vrot.lane.b32.xlu0 %v717_v6, %s6675_s30  ;;  %vm11399_vm3 = vcmask 261345   ;;  %v720_v41 = vld [vmem:[#allocation2 + $0x190] sm:$0x3] }
 0x2a9   : > { %1605 = vrot.lane.b32.xlu1 %v7741_v26, %s11176_s20 }
 0x2aa   : > { %v1245_v60 = vpop.permute.xlu0 %1244 }
 0x2ab   : > { %v1247_v46 = vpop.permute.xlu1 %1246  ;;  %1317 = vst.msk [vmem:[#allocation3 + $0xc0] sm:$0xff] %vm11398_vm9, %v1245_v60  ;;  %vm11402_vm9 = vcmask 294146  }
 0x2ac   : > { %1318 = vst.msk [vmem:[#allocation3 + $0xc8] sm:$0xff] %vm11397_vm8, %v1247_v46  ;;  %1607 = vrot.lane.b32.xlu0 %v7739_v62, %s11176_s20  ;;  %vm11401_vm8 = vcmask 162945  }
 0x2ad   : > { %1609 = vrot.lane.b32.xlu1 %v717_v6, %s11176_s20 }
 0x2ae   : > { %v1915_v24 = vpop.permute.xlu0 %1914 }
 0x2af   : > { %v1917_v58 = vpop.permute.xlu1 %1916  ;;  %2028 = vst.msk [vmem:[#allocation3 + $0xaf] sm:$0xfe] %vm11399_vm3, %v1915_v24  ;;  %vm11403_vm3 = vcmask 57376  }
 0x2b0   : > { %2029 = vst.msk [vmem:[#allocation3 + $0xb7] sm:$0xff] %vm11167_vm2, %v1917_v58  ;;  %2125 = vrot.lane.b32.xlu0 %v717_v6, %s11174_s19 }
 0x2b1   : > { %1089 = vrot.lane.b32.xlu1 %v7741_v26, %s11171_s18 }
 0x2b2   : > { %v1399_v28 = vpop.permute.xlu0 %1398 }
 0x2b3   : > { %v1401_v43 = vpop.permute.xlu1 %1400  ;;  %1509 = vst.msk [vmem:[#allocation3 + $0xbf] sm:$0xfe] %vm11401_vm8, %v1399_v28  ;;  %vm11405_vm8 = vcmask 288000  }
 0x2b4   : > { %1510 = vst.msk [vmem:[#allocation3 + $0xc7] sm:$0xff] %vm11400_vm5, %v1401_v43  ;;  %1091 = vrot.lane.b32.xlu0 %v7739_v62, %s11171_s18  ;;  %vm11404_vm5 = vcmask 97346  }
 0x2b5   : > { %1093 = vrot.lane.b32.xlu1 %v717_v6, %s11171_s18 }
 0x2b6   : > { %v1403_v50 = vpop.permute.xlu0 %1402 }
 0x2b7   : > { %v1919_v13 = vpop.permute.xlu1 %1918  ;;  %1511 = vst.msk [vmem:[#allocation3 + $0xcf] sm:$0x1] %vm1474_vm12, %v1403_v50 }
 0x2b8   : > { %2030 = vst.msk [vmem:[#allocation3 + $0xbf] sm:$0x1] %vm11166_vm0, %v1919_v13  ;;  %1774 = vrot.lane.b32.xlu0 %v718_v17, %s11169_s21 }
 0x2b9   : > { %1776 = vrot.lane.b32.xlu1 %v719_v4, %s11169_s21 }
 0x2ba   : > { %v2110_v31 = vpop.permute.xlu0 %2109 }
 0x2bb   : > { %v2112_v26 = vpop.permute.xlu1 %2111  ;;  %2223 = vst.msk [vmem:[#allocation3 + $0xae] sm:$0xfc] %vm11402_vm9, %v2110_v31  ;;  %vm11406_vm9 = vcmask 97344   ;;  %v722_v31 = vld [vmem:[#allocation2 + $0x1a0] sm:$0xff] }
 0x2bc   : > { %2224 = vst.msk [vmem:[#allocation3 + $0xb6] sm:$0xff] %vm11165_vm11, %v2112_v26  ;;  %1256 = vrot.lane.b32.xlu0 %v718_v17, %s11255_s22 }
 0x2bd   : > { %1258 = vrot.lane.b32.xlu1 %v719_v4, %s11255_s22 }
 0x2be   : > { %v883_v6 = vpop.permute.xlu0 %882 }
 0x2bf   : > { %v885_v62 = vpop.permute.xlu1 %884  ;;  %990 = vst.msk [vmem:[#allocation3 + $0xcf] sm:$0xfe] %vm948_vm4, %v883_v6  ;;  %v721_v6 = vld [vmem:[#allocation2 + $0x198] sm:$0xff] }
 0x2c0   : > { %991 = vst.msk [vmem:[#allocation3 + $0xd7] sm:$0xff] %vm950_vm6, %v885_v62  ;;  %1932 = vrot.lane.b32.xlu0 %v718_v17, %s11256_s29 }
 0x2c1   : > { %1934 = vrot.lane.b32.xlu1 %v719_v4, %s11256_s29 }
 0x2c2   : > { %v887_v42 = vpop.permute.xlu0 %886 }
 0x2c3   : > { %v1594_v32 = vpop.permute.xlu1 %1593  ;;  %v2260_v59 = vld [vmem:[#allocation3 + $0xb0] sm:$0xff]  ;;  %992 = vst.msk [vmem:[#allocation3 + $0xdf] sm:$0x1] %vm11403_vm3, %v887_v42  ;;  %vm11407_vm3 = vcmask 228544  }
 0x2c4   : > { %1704 = vst.msk [vmem:[#allocation3 + $0xbe] sm:$0xfc] %vm1665_vm14, %v1594_v32  ;;  %6519 = vmatprep.mubr.msk.f32.mxu0 %vm11164_vm10, %v2260_v59  ;;  %1416 = vrot.lane.b32.xlu0 %v718_v17, %s11257_s23  ;;  %v723_v59 = vld [vmem:[#allocation2 + $0x1a8] sm:$0x3] }
 0x2c5   : > { %1418 = vrot.lane.b32.xlu1 %v719_v4, %s11257_s23 }
 0x2c6   : > { %v1596_v47 = vpop.permute.xlu0 %1595 }
 0x2c7   : > { %v1598_v35 = vpop.permute.xlu1 %1597  ;;  %1705 = vst.msk [vmem:[#allocation3 + $0xc6] sm:$0xff] %vm1667_vm13, %v1596_v47 }
 0x2c8   : > { %1706 = vst.msk [vmem:[#allocation3 + $0xce] sm:$0x3] %vm11168_vm15, %v1598_v35  ;;  %1420 = vrot.lane.b32.xlu0 %v720_v41, %s11257_s23 }
 0x2c9   : > { %1936 = vrot.lane.b32.xlu1 %v720_v41, %s11256_s29 }
 0x2ca   : > { %v2114_v60 = vpop.permute.xlu0 %2113  ;;  %v8033_v58 = vpop.f32.mrb[12].mxu0 }
 0x2cb   : > { %v1078_v46 = vpop.permute.xlu1 %1077  ;;  %2225 = vst.msk [vmem:[#allocation3 + $0xbe] sm:$0x3] %vm11405_vm8, %v2114_v60  ;;  %v8036_v24 = vpop.f32.mrb[13].mxu0  ;;  %vm11409_vm8 = vcmask 130144  }
 0x2cc   : > { %1185 = vst.msk [vmem:[#allocation3 + $0xce] sm:$0xfc] %vm11404_vm5, %v1078_v46  ;;  %2127 = vrot.lane.b32.xlu0 %v718_v17, %s11174_s19  ;;  %vm11408_vm5 = vmmov %vm11407_vm3 }
 0x2cd   : > { %2129 = vrot.lane.b32.xlu1 %v719_v4, %s11174_s19 }
 0x2ce   : > { %v1080_v28 = vpop.permute.xlu0 %1079 }
 0x2cf   : > { %v1082_v43 = vpop.permute.xlu1 %1081  ;;  %1186 = vst.msk [vmem:[#allocation3 + $0xd6] sm:$0xff] %vm11406_vm9, %v1080_v28  ;;  %vm11410_vm9 = vmmov %vm11409_vm8 }
 0x2d0   : > { %1187 = vst.msk [vmem:[#allocation3 + $0xde] sm:$0x3] %vm11125_vm7, %v1082_v43  ;;  %1611 = vrot.lane.b32.xlu0 %v718_v17, %s11176_s20 }
 0x2d1   : > { %1613 = vrot.lane.b32.xlu1 %v719_v4, %s11176_s20 }
 0x2d2   : > { %v1767_v50 = vpop.permute.xlu0 %1766  ;;  %v2261_v26 = vld [vmem:[#allocation3 + $0xb8] sm:$0xff] }
 0x2d3   : > { %v1769_v13 = vpop.permute.xlu1 %1768  ;;  %1839 = vst.msk [vmem:[#allocation3 + $0xc0] sm:$0xff] %vm11408_vm5, %v1767_v50  ;;  %6520 = vmatmul.mubr.msk.f32.gmra.mrb[22].mxu0 %vm11164_vm10, %v2261_v26  ;;  %vm11412_vm5 = vcmask 162944  }
 0x2d4   : > { %1840 = vst.msk [vmem:[#allocation3 + $0xc8] sm:$0xff] %vm11407_vm3, %v1769_v13  ;;  %1615 = vrot.lane.b32.xlu0 %v720_v41, %s11176_s20  ;;  %vm11411_vm3 = vcmask 261345  }
 0x2d5   : > { %2131 = vrot.lane.b32.xlu1 %v720_v41, %s11174_s19 }
 0x2d6   : > { %v1249_v4 = vpop.permute.xlu0 %1248 }
 0x2d7   : > { %v1251_v62 = vpop.permute.xlu1 %1250  ;;  %1319 = vst.msk [vmem:[#allocation3 + $0xd0] sm:$0xff] %vm11410_vm9, %v1249_v4  ;;  %vm11414_vm9 = vcmask 294146  }
 0x2d8   : > { %1320 = vst.msk [vmem:[#allocation3 + $0xd8] sm:$0xff] %vm11409_vm8, %v1251_v62  ;;  %1778 = vrot.lane.b32.xlu0 %v721_v6, %s11169_s21  ;;  %vm11413_vm8 = vcmask 162945  }
 0x2d9   : > { %1780 = vrot.lane.b32.xlu1 %v722_v31, %s11169_s21 }
 0x2da   : > { %v1921_v32 = vpop.permute.xlu0 %1920 }
 0x2db   : > { %v1923_v17 = vpop.permute.xlu1 %1922  ;;  %2031 = vst.msk [vmem:[#allocation3 + $0xbf] sm:$0xfe] %vm11411_vm3, %v1921_v32  ;;  %vm11415_vm3 = vcmask 57376  }
 0x2dc   : > { %2032 = vst.msk [vmem:[#allocation3 + $0xc7] sm:$0xff] %vm11167_vm2, %v1923_v17  ;;  %1938 = vrot.lane.b32.xlu0 %v721_v6, %s11256_s29 }
 0x2dd   : > { %1940 = vrot.lane.b32.xlu1 %v722_v31, %s11256_s29 }
 0x2de   : > { %v1405_v41 = vpop.permute.xlu0 %1404 }
 0x2df   : > { %v1407_v42 = vpop.permute.xlu1 %1406  ;;  %1512 = vst.msk [vmem:[#allocation3 + $0xcf] sm:$0xfe] %vm11413_vm8, %v1405_v41  ;;  %vm11417_vm8 = vcmask 288000  }
 0x2e0   : > { %1513 = vst.msk [vmem:[#allocation3 + $0xd7] sm:$0xff] %vm11412_vm5, %v1407_v42  ;;  %1942 = vrot.lane.b32.xlu0 %v723_v59, %s11256_s29  ;;  %vm11416_vm5 = vcmask 97346  }
 0x2e1   : > { %2133 = vrot.lane.b32.xlu1 %v721_v6, %s11174_s19 }
 0x2e2   : > { %v1409_v47 = vpop.permute.xlu0 %1408 }
 0x2e3   : > { %v1925_v35 = vpop.permute.xlu1 %1924  ;;  %1514 = vst.msk [vmem:[#allocation3 + $0xdf] sm:$0x1] %vm1474_vm12, %v1409_v47 }
 0x2e4   : > { %2033 = vst.msk [vmem:[#allocation3 + $0xcf] sm:$0x1] %vm11166_vm0, %v1925_v35  ;;  %2135 = vrot.lane.b32.xlu0 %v722_v31, %s11174_s19 }
 0x2e5   : > { %2137 = vrot.lane.b32.xlu1 %v723_v59, %s11174_s19 }
 0x2e6   : > { %v2116_v60 = vpop.permute.xlu0 %2115 }
 0x2e7   : > { %v2118_v46 = vpop.permute.xlu1 %2117  ;;  %2226 = vst.msk [vmem:[#allocation3 + $0xbe] sm:$0xfc] %vm11414_vm9, %v2116_v60  ;;  %vm11418_vm9 = vcmask 97344  }
 0x2e8   : > { %2227 = vst.msk [vmem:[#allocation3 + $0xc6] sm:$0xff] %vm11165_vm11, %v2118_v46 }
 0x2ea   : > { %v889_v28 = vpop.permute.xlu0 %888 }
 0x2eb   : > { %v891_v43 = vpop.permute.xlu1 %890  ;;  %993 = vst.msk [vmem:[#allocation3 + $0xdf] sm:$0xfe] %vm948_vm4, %v889_v28 }
 0x2ec   : > { %994 = vst.msk [vmem:[#allocation3 + $0xe7] sm:$0xff] %vm950_vm6, %v891_v43 }
 0x2ee   : > { %v893_v50 = vpop.permute.xlu0 %892 }
 0x2ef   : > { %v1600_v13 = vpop.permute.xlu1 %1599  ;;  %v2262_v26 = vld [vmem:[#allocation3 + $0xc0] sm:$0xff]  ;;  %995 = vst.msk [vmem:[#allocation3 + $0xef] sm:$0x1] %vm11415_vm3, %v893_v50  ;;  %vm11419_vm3 = vcmask 228544  }
 0x2f0   : > { %1707 = vst.msk [vmem:[#allocation3 + $0xce] sm:$0xfc] %vm1665_vm14, %v1600_v13  ;;  %6522 = vmatprep.mubr.msk.f32.mxu0 %vm11164_vm10, %v2262_v26  ;;  %vm11420_vm1 = vmmov %vm11419_vm3 }
 0x2f2   : > { %v1602_v62 = vpop.permute.xlu0 %1601 }
 0x2f3   : > { %v1604_v31 = vpop.permute.xlu1 %1603  ;;  %1708 = vst.msk [vmem:[#allocation3 + $0xd6] sm:$0xff] %vm1667_vm13, %v1602_v62 }
 0x2f4   : > { %1709 = vst.msk [vmem:[#allocation3 + $0xde] sm:$0x3] %vm11168_vm15, %v1604_v31 }
 0x2f6   : > { %v2120_v4 = vpop.permute.xlu0 %2119  ;;  %v8075_v17 = vpop.f32.mrb[14].mxu0 }
 0x2f7   : > { %v1084_v6 = vpop.permute.xlu1 %1083  ;;  %2228 = vst.msk [vmem:[#allocation3 + $0xce] sm:$0x3] %vm11417_vm8, %v2120_v4  ;;  %v8078_v32 = vpop.f32.mrb[15].mxu0 }
 0x2f8   : > { %1188 = vst.msk [vmem:[#allocation3 + $0xde] sm:$0xfc] %vm11416_vm5, %v1084_v6  ;;  %vm11421_vm5 = vcmask 130144  }
 0x2f9   : > { %vm11422_vm8 = vmmov %vm11421_vm5 }
 0x2fa   : > { %v1086_v59 = vpop.permute.xlu0 %1085 }
 0x2fb   : > { %v1088_v42 = vpop.permute.xlu1 %1087  ;;  %1189 = vst.msk [vmem:[#allocation3 + $0xe6] sm:$0xff] %vm11418_vm9, %v1086_v59  ;;  %vm11423_vm9 = vcmask 261345  }
 0x2fc   : > { %1190 = vst.msk [vmem:[#allocation3 + $0xee] sm:$0x3] %vm11125_vm7, %v1088_v42  ;;  %vm11425_vm7 = vcmask 162945  }
 0x2fe   : > { %v1771_v35 = vpop.permute.xlu0 %1770  ;;  %v2263_v47 = vld [vmem:[#allocation3 + $0xc8] sm:$0xff] }
 0x2ff   : > { %v1773_v41 = vpop.permute.xlu1 %1772  ;;  %1841 = vst.msk [vmem:[#allocation3 + $0xd0] sm:$0xff] %vm11420_vm1, %v1771_v35  ;;  %6523 = vmatmul.mubr.msk.f32.gmra.mrb[24].mxu0 %vm11164_vm10, %v2263_v47  ;;  %vm11426_vm1 = vcmask 294146  }
 0x300   : > { %1842 = vst.msk [vmem:[#allocation3 + $0xd8] sm:$0xff] %vm11419_vm3, %v1773_v41  ;;  %vm11424_vm3 = vcmask 162944  }
 0x302   : > { %v1253_v60 = vpop.permute.xlu0 %1252 }
 0x303   : > { %v1255_v46 = vpop.permute.xlu1 %1254  ;;  %1321 = vst.msk [vmem:[#allocation3 + $0xe0] sm:$0xff] %vm11422_vm8, %v1253_v60  ;;  %vm11429_vm8 = vcmask 288000  }
 0x304   : > { %1322 = vst.msk [vmem:[#allocation3 + $0xe8] sm:$0xff] %vm11421_vm5, %v1255_v46  ;;  %vm11428_vm5 = vcmask 97346  }
 0x306   : > { %v1927_v28 = vpop.permute.xlu0 %1926 }
 0x307   : > { %v1929_v43 = vpop.permute.xlu1 %1928  ;;  %2034 = vst.msk [vmem:[#allocation3 + $0xcf] sm:$0xfe] %vm11423_vm9, %v1927_v28  ;;  %vm11430_vm9 = vcmask 91200  }
 0x308   : > { %2035 = vst.msk [vmem:[#allocation3 + $0xd7] sm:$0xff] %vm11167_vm2, %v1929_v43 }
 0x30a   : > { %v1411_v50 = vpop.permute.xlu0 %1410 }
 0x30b   : > { %v1413_v13 = vpop.permute.xlu1 %1412  ;;  %1515 = vst.msk [vmem:[#allocation3 + $0xdf] sm:$0xfe] %vm11425_vm7, %v1411_v50  ;;  %vm11427_vm7 = vcmask 57376  }
 0x30c   : > { %1516 = vst.msk [vmem:[#allocation3 + $0xe7] sm:$0xff] %vm11424_vm3, %v1413_v13  ;;  %vm11431_vm3 = vcmask 97344  }
 0x30e   : > { %v1415_v31 = vpop.permute.xlu0 %1414 }
 0x30f   : > { %v1931_v26 = vpop.permute.xlu1 %1930  ;;  %1517 = vst.msk [vmem:[#allocation3 + $0xef] sm:$0x1] %vm1474_vm12, %v1415_v31 }
 0x310   : > { %2036 = vst.msk [vmem:[#allocation3 + $0xdf] sm:$0x1] %vm11166_vm0, %v1931_v26 }
 0x312   : > { %v2122_v6 = vpop.permute.xlu0 %2121 }
 0x313   : > { %v2124_v62 = vpop.permute.xlu1 %2123  ;;  %2229 = vst.msk [vmem:[#allocation3 + $0xce] sm:$0xfc] %vm11426_vm1, %v2122_v6  ;;  %vm11432_vm1 = vcmask 228544  }
 0x314   : > { %2230 = vst.msk [vmem:[#allocation3 + $0xd6] sm:$0xff] %vm11165_vm11, %v2124_v62 }
 0x316   : > { %v895_v42 = vpop.permute.xlu0 %894 }
 0x317   : > { %v897_v4 = vpop.permute.xlu1 %896  ;;  %996 = vst.msk [vmem:[#allocation3 + $0xef] sm:$0xfe] %vm948_vm4, %v895_v42 }
 0x318   : > { %997 = vst.msk [vmem:[#allocation3 + $0xf7] sm:$0xff] %vm950_vm6, %v897_v4 }
 0x31a   : > { %v899_v41 = vpop.permute.xlu0 %898 }
 0x31b   : > { %v1606_v59 = vpop.permute.xlu1 %1605  ;;  %v2264_v35 = vld [vmem:[#allocation3 + $0xd0] sm:$0xff]  ;;  %998 = vst.msk [vmem:[#allocation3 + $0xff] sm:$0x1] %vm11427_vm7, %v899_v41  ;;  %vm11433_vm7 = vmmov %vm11432_vm1 }
 0x31c   : > { %1710 = vst.msk [vmem:[#allocation3 + $0xde] sm:$0xfc] %vm1665_vm14, %v1606_v59  ;;  %6525 = vmatprep.mubr.msk.f32.mxu0 %vm11164_vm10, %v2264_v35 }
 0x31e   : > { %v1608_v46 = vpop.permute.xlu0 %1607 }
 0x31f   : > { %v1610_v47 = vpop.permute.xlu1 %1609  ;;  %1711 = vst.msk [vmem:[#allocation3 + $0xe6] sm:$0xff] %vm1667_vm13, %v1608_v46 }
 0x320   : > { %1712 = vst.msk [vmem:[#allocation3 + $0xee] sm:$0x3] %vm11168_vm15, %v1610_v47 }
 0x322   : > { %v2126_v43 = vpop.permute.xlu0 %2125  ;;  %v8103_v28 = vpop.f32.mrb[16].mxu0 }
 0x323   : > { %v1090_v60 = vpop.permute.xlu1 %1089  ;;  %2231 = vst.msk [vmem:[#allocation3 + $0xde] sm:$0x3] %vm11429_vm8, %v2126_v43  ;;  %v8106_v13 = vpop.f32.mrb[17].mxu0 }
 0x324   : > { %1191 = vst.msk [vmem:[#allocation3 + $0xee] sm:$0xfc] %vm11428_vm5, %v1090_v60  ;;  %vm11434_vm5 = vcmask 130144  }
 0x325   : > { %vm11435_vm8 = vmmov %vm11434_vm5 }
 0x326   : > { %v1092_v26 = vpop.permute.xlu0 %1091 }
 0x327   : > { %v1094_v50 = vpop.permute.xlu1 %1093  ;;  %1192 = vst.msk [vmem:[#allocation3 + $0xf6] sm:$0xff] %vm11431_vm3, %v1092_v26  ;;  %vm11437_vm3 = vcmask 162944  }
 0x328   : > { %1193 = vst.msk [vmem:[#allocation3 + $0xfe] sm:$0x3] %vm11430_vm9, %v1094_v50  ;;  %vm11436_vm9 = vcmask 261345  }
 0x32a   : > { %v1775_v62 = vpop.permute.xlu0 %1774  ;;  %v2265_v6 = vld [vmem:[#allocation3 + $0xd8] sm:$0xff] }
 0x32b   : > { %v1777_v31 = vpop.permute.xlu1 %1776  ;;  %1843 = vst.msk [vmem:[#allocation3 + $0xe0] sm:$0xff] %vm11433_vm7, %v1775_v62  ;;  %6526 = vmatmul.mubr.msk.f32.gmra.mrb[26].mxu0 %vm11164_vm10, %v2265_v6  ;;  %vm11439_vm7 = vcmask 294146  }
 0x32c   : > { %1844 = vst.msk [vmem:[#allocation3 + $0xe8] sm:$0xff] %vm11432_vm1, %v1777_v31  ;;  %vm11438_vm1 = vcmask 162945  }
 0x32e   : > { %v1257_v42 = vpop.permute.xlu0 %1256 }
 0x32f   : > { %v1259_v4 = vpop.permute.xlu1 %1258  ;;  %1323 = vst.msk [vmem:[#allocation3 + $0xf0] sm:$0xff] %vm11435_vm8, %v1257_v42  ;;  %vm11441_vm8 = vcmask 228544  }
 0x330   : > { %1324 = vst.msk [vmem:[#allocation3 + $0xf8] sm:$0xff] %vm11434_vm5, %v1259_v4  ;;  %vm11440_vm5 = vcmask 288000  }
 0x332   : > { %v1933_v41 = vpop.permute.xlu0 %1932 }
 0x333   : > { %v1935_v59 = vpop.permute.xlu1 %1934  ;;  %2037 = vst.msk [vmem:[#allocation3 + $0xdf] sm:$0xfe] %vm11436_vm9, %v1933_v41  ;;  %vm11442_vm9 = vmmov %vm11441_vm8 }
 0x334   : > { %2038 = vst.msk [vmem:[#allocation3 + $0xe7] sm:$0xff] %vm11167_vm2, %v1935_v59 }
 0x336   : > { %v1417_v47 = vpop.permute.xlu0 %1416 }
 0x337   : > { %v1419_v35 = vpop.permute.xlu1 %1418  ;;  %1518 = vst.msk [vmem:[#allocation3 + $0xef] sm:$0xfe] %vm11438_vm1, %v1417_v47  ;;  %vm11444_vm1 = vmmov %vm11439_vm7 }
 0x338   : > { %1519 = vst.msk [vmem:[#allocation3 + $0xf7] sm:$0xff] %vm11437_vm3, %v1419_v35  ;;  %vm11443_vm3 = vcmask 261345  }
 0x33a   : > { %v1421_v60 = vpop.permute.xlu0 %1420 }
 0x33b   : > { %v1937_v46 = vpop.permute.xlu1 %1936  ;;  %1520 = vst.msk [vmem:[#allocation3 + $0xff] sm:$0x1] %vm1474_vm12, %v1421_v60 }
 0x33c   : > { %2039 = vst.msk [vmem:[#allocation3 + $0xef] sm:$0x1] %vm11166_vm0, %v1937_v46 }
 0x33e   : > { %v2128_v50 = vpop.permute.xlu0 %2127 }
 0x33f   : > { %v2130_v43 = vpop.permute.xlu1 %2129  ;;  %2232 = vst.msk [vmem:[#allocation3 + $0xde] sm:$0xfc] %vm11439_vm7, %v2128_v50  ;;  %vm11445_vm7 = vmmov %vm11440_vm5 }
 0x340   : > { %2233 = vst.msk [vmem:[#allocation3 + $0xe6] sm:$0xff] %vm11165_vm11, %v2130_v43 }
 0x342   : > { %v1612_v31 = vpop.permute.xlu0 %1611 }
 0x343   : > { %v1614_v26 = vpop.permute.xlu1 %1613  ;;  %1713 = vst.msk [vmem:[#allocation3 + $0xee] sm:$0xfc] %vm1665_vm14, %v1612_v31 }
 0x344   : > { %1714 = vst.msk [vmem:[#allocation3 + $0xf6] sm:$0xff] %vm1667_vm13, %v1614_v26 }
 0x346   : > { %v1616_v6 = vpop.permute.xlu0 %1615 }
 0x347   : > { %v2132_v62 = vpop.permute.xlu1 %2131  ;;  %v2266_v4 = vld [vmem:[#allocation3 + $0xe0] sm:$0xff]  ;;  %1715 = vst.msk [vmem:[#allocation3 + $0xfe] sm:$0x3] %vm11168_vm15, %v1616_v6 }
 0x348   : > { %2234 = vst.msk [vmem:[#allocation3 + $0xee] sm:$0x3] %vm11440_vm5, %v2132_v62  ;;  %6528 = vmatprep.mubr.msk.f32.mxu0 %vm11164_vm10, %v2266_v4  ;;  %vm11446_vm5 = vcmask 31744  }
 0x34a   : > { %v1779_v59 = vpop.permute.xlu0 %1778 }
 0x34b   : > { %v1781_v42 = vpop.permute.xlu1 %1780  ;;  %1845 = vst.msk [vmem:[#allocation3 + $0xf0] sm:$0xff] %vm11442_vm9, %v1779_v59  ;;  %vm11448_vm9 = vmmov %vm11446_vm5 }
 0x34c   : > { %1846 = vst.msk [vmem:[#allocation3 + $0xf8] sm:$0xff] %vm11441_vm8, %v1781_v42  ;;  %vm11447_vm8 = vmmov %vm11446_vm5 }
 0x34e   : > { %v1939_v47 = vpop.permute.xlu0 %1938  ;;  %v8131_v46 = vpop.f32.mrb[18].mxu0 }
 0x34f   : > { %v1941_v41 = vpop.permute.xlu1 %1940  ;;  %v2267_v35 = vld [vmem:[#allocation3 + $0xe8] sm:$0xff]  ;;  %2040 = vst.msk [vmem:[#allocation3 + $0xef] sm:$0xfe] %vm11443_vm3, %v1939_v47  ;;  %v8135_v60 = vpop.f32.mrb[19].mxu0  ;;  %vm11449_vm3 = vmmov %vm11446_vm5 }
 0x350   : > { %2041 = vst.msk [vmem:[#allocation3 + $0xf7] sm:$0xff] %vm11167_vm2, %v1941_v41  ;;  %6529 = vmatmul.mubr.msk.f32.gmra.mrb[28].mxu0 %vm11164_vm10, %v2267_v35  ;;  %v8154_v35 = vld [vmem:[%s11089_s2] ss:$0 sm:$0xff] }
 0x351   : > { %v8158_v47 = vadd.f32 %v7598_v20, %v8154_v35  ;;  %v8192_v55 = vadd.f32 %v7766_v37, %v8154_v35  ;;  %v8276_v0 = vadd.f32 %v8131_v46, %v8154_v35 }
 0x352   : > { %v1943_v50 = vpop.permute.xlu0 %1942 }
 0x353   : > { %v2134_v43 = vpop.permute.xlu1 %2133  ;;  %2042 = vst.msk [vmem:[#allocation3 + $0xff] sm:$0x1] %vm11166_vm0, %v1943_v50  ;;  %v8166_v50 = vadd.f32 %v8154_v35, %v7685_v30  ;;  %v8184_v30 = vadd.f32 %v8154_v35, %v7769_v36 }
 0x354   : > { %2235 = vst.msk [vmem:[#allocation3 + $0xee] sm:$0xfc] %vm11444_vm1, %v2134_v43  ;;  %v8162_v43 = vadd.f32 %v8154_v35, %v7601_v27  ;;  %v8180_v27 = vadd.f32 %v7682_v51, %v8154_v35  ;;  %vm11450_vm1 = vmmov %vm11449_vm3  ;;  %v8196_v51 = vadd.f32 %v8154_v35, %v7845_v29  ;;  %v8216_v29 = vadd.f32 %v7908_v12, %v8154_v35 }
 0x355   : > { %v2611_v20 = vsel %vm11448_vm9, %v8166_v50, 0.0  ;;  %v2615_v52 = vsel %vm11450_vm1, %v8184_v30, 0.0  ;;  %vm11454_vm9 = vmmov %vm11450_vm1  ;;  %v8232_v12 = vadd.f32 %v8154_v35, %v8036_v24 }
 0x356   : > { %v2136_v31 = vpop.permute.xlu0 %2135  ;;  %v2613_v53 = vsel %vm11449_vm3, %v8180_v27, 0.0  ;;  %vm11455_vm3 = vmmov %vm11450_vm1 }
 0x357   : > { %v2138_v26 = vpop.permute.xlu1 %2137  ;;  %2236 = vst.msk [vmem:[#allocation3 + $0xf6] sm:$0xff] %vm11165_vm11, %v2136_v31  ;;  %v2609_v31 = vsel %vm11446_vm5, %v8158_v47, 0.0  ;;  %vm11452_vm5 = vmmov %vm11450_vm1 }
 0x358   : > { %2237 = vst.msk [vmem:[#allocation3 + $0xfe] sm:$0x3] %vm11445_vm7, %v2138_v26  ;;  %vm11451_vm7 = vmmov %vm11450_vm1 }
 0x359   : > { %v2617_v36 = vsel %vm11451_vm7, %v8192_v55, 0.0  ;;  %vm11456_vm7 = vmmov %vm11450_vm1 }
 0x35e   : > { %v2268_v62 = vld [vmem:[#allocation3 + $0xf0] sm:$0xff] }
 0x35f   : > { %v2269_v6 = vld [vmem:[#allocation3 + $0xf8] sm:$0xff]  ;;  %6531 = vmatprep.mubr.msk.f32.mxu0 %vm11164_vm10, %v2268_v62  ;;  %v2608_v62 = vsel %vm11447_vm8, %v8162_v43, 0.0  ;;  %vm11453_vm8 = vmmov %vm11450_vm1 }
 0x360   : > { %6532 = vmatmul.mubr.msk.f32.gmra.mrb[30].mxu0 %vm11164_vm10, %v2269_v6  ;;  %v2610_v5 = vadd.f32 %v2609_v31, %v2608_v62 }
 0x362   : > { %v2612_v61 = vadd.f32 %v2611_v20, %v2610_v5  ;;  %v2619_v5 = vsel %vm11452_vm5, %v8196_v51, 0.0  ;;  %v8204_v20 = vadd.f32 %v7842_v48, %v8154_v35  ;;  %v8220_v48 = vadd.f32 %v8154_v35, %v7978_v23  ;;  %vm11457_vm5 = vmmov %vm11450_vm1 }
 0x364   : > { %v2614_v49 = vadd.f32 %v2613_v53, %v2612_v61  ;;  %v8208_v53 = vadd.f32 %v8154_v35, %v7911_v14  ;;  %v2621_v37 = vsel %vm11453_vm8, %v8204_v20, 0.0  ;;  %v2625_v14 = vsel %vm11455_vm3, %v8216_v29, 0.0  ;;  %vm11458_vm8 = vmmov %vm11450_vm1 }
 0x365   : > { %vm11460_vm3 = vmmov %vm11450_vm1 }
 0x366   : > { %v2616_v31 = vadd.f32 %v2615_v52, %v2614_v49  ;;  %v2623_v49 = vsel %vm11454_vm9, %v8208_v53, 0.0  ;;  %vm11459_vm9 = vmmov %vm11450_vm1 }
 0x368   : > { %v2618_v62 = vadd.f32 %v2617_v36, %v2616_v31  ;;  %v2627_v36 = vsel %vm11450_vm1, %v8220_v48, 0.0 }
 0x36a   : > { %v2620_v61 = vadd.f32 %v2619_v5, %v2618_v62  ;;  %v8228_v62 = vadd.f32 %v7975_v38, %v8154_v35  ;;  %v8244_v38 = vadd.f32 %v8154_v35, %v8078_v32 }
 0x36c   : > { %v2622_v52 = vadd.f32 %v2621_v37, %v2620_v61  ;;  %v2629_v23 = vsel %vm11456_vm7, %v8228_v62, 0.0  ;;  %v2631_v37 = vsel %vm11457_vm5, %v8232_v12, 0.0  ;;  %vm11461_vm7 = vmmov %vm11450_vm1 }
 0x36d   : > { %vm11462_vm5 = vmmov %vm11450_vm1 }
 0x36e   : > { %v2624_v31 = vadd.f32 %v2623_v49, %v2622_v52  ;;  %v8240_v52 = vadd.f32 %v8033_v58, %v8154_v35  ;;  %v8256_v58 = vadd.f32 %v8154_v35, %v8106_v13 }
 0x370   : > { %v2626_v5 = vadd.f32 %v2625_v14, %v2624_v31  ;;  %v2633_v24 = vsel %vm11458_vm8, %v8240_v52, 0.0  ;;  %v2635_v14 = vsel %vm11459_vm9, %v8244_v38, 0.0  ;;  %vm11463_vm8 = vmmov %vm11450_vm1 }
 0x371   : > { %vm11464_vm9 = vmmov %vm11450_vm1 }
 0x372   : > { %v2628_v61 = vadd.f32 %v2627_v36, %v2626_v5  ;;  %v8252_v5 = vadd.f32 %v8075_v17, %v8154_v35  ;;  %v8268_v17 = vadd.f32 %v8154_v35, %v8135_v60  ;;  %v2645_v60 = vsel %vm11463_vm8, %v8276_v0, 0.0  ;;  %vm11468_vm8 = vmmov %vm11450_vm1 }
 0x374   : > { %v2630_v49 = vadd.f32 %v2629_v23, %v2628_v61  ;;  %v2637_v32 = vsel %vm11460_vm3, %v8252_v5, 0.0  ;;  %vm11465_vm3 = vmmov %vm11450_vm1 }
 0x376   : > { %v2632_v31 = vadd.f32 %v2631_v37, %v2630_v49  ;;  %v2639_v37 = vsel %vm11450_vm1, %v8256_v58, 0.0 }
 0x378   : > { %v2634_v36 = vadd.f32 %v2633_v24, %v2632_v31  ;;  %v8264_v31 = vadd.f32 %v8103_v28, %v8154_v35 }
 0x37a   : > { %v8143_v4 = vpop.f32.mrb[20].mxu0  ;;  %v2636_v61 = vadd.f32 %v2635_v14, %v2634_v36  ;;  %v2641_v24 = vsel %vm11461_vm7, %v8264_v31, 0.0  ;;  %v2643_v14 = vsel %vm11462_vm5, %v8268_v17, 0.0  ;;  %vm11466_vm7 = vmmov %vm11450_vm1 }
 0x37b   : > { %v8145_v42 = vpop.f32.mrb[21].mxu0  ;;  %vm11467_vm5 = vmmov %vm11450_vm1 }
 0x37c   : > { %v2638_v54 = vadd.f32 %v2637_v32, %v2636_v61  ;;  %v8280_v28 = vadd.f32 %v8154_v35, %v8145_v42 }
 0x37e   : > { %v2640_v13 = vadd.f32 %v2639_v37, %v2638_v54  ;;  %v2647_v54 = vsel %vm11464_vm9, %v8280_v28, 0.0  ;;  %v8288_v37 = vadd.f32 %v8143_v4, %v8154_v35  ;;  %vm11469_vm9 = vmmov %vm11450_vm1 }
 0x380   : > { %v2642_v36 = vadd.f32 %v2641_v24, %v2640_v13  ;;  %v2649_v42 = vsel %vm11465_vm3, %v8288_v37, 0.0  ;;  %vm11470_vm3 = vmmov %vm11450_vm1 }
 0x382   : > { %v2644_v61 = vadd.f32 %v2643_v14, %v2642_v36 }
 0x384   : > { %v2646_v32 = vadd.f32 %v2645_v60, %v2644_v61 }
 0x386   : > { %v2648_v13 = vadd.f32 %v2647_v54, %v2646_v32 }
 0x388   : > { %v2650_v14 = vadd.f32 %v2649_v42, %v2648_v13 }
 0x3a6   : > { %v8147_v59 = vpop.f32.mrb[22].mxu0 }
 0x3a7   : > { %v8149_v41 = vpop.f32.mrb[23].mxu0  ;;  %v8300_v36 = vadd.f32 %v8147_v59, %v8154_v35 }
 0x3a8   : > { %v8292_v46 = vadd.f32 %v8154_v35, %v8149_v41 }
 0x3a9   : > { %v2653_v41 = vsel %vm11466_vm7, %v8300_v36, 0.0  ;;  %vm11471_vm7 = vmmov %vm11450_vm1 }
 0x3aa   : > { %v2651_v24 = vsel %vm11450_vm1, %v8292_v46, 0.0 }
 0x3ab   : > { %v2652_v61 = vadd.f32 %v2651_v24, %v2650_v14 }
 0x3ad   : > { %v2654_v54 = vadd.f32 %v2653_v41, %v2652_v61 }
 0x3d2   : > { %v8168_v26 = vpop.f32.mrb[24].mxu0 }
 0x3d3   : > { %v8174_v6 = vpop.f32.mrb[25].mxu0  ;;  %v8312_v32 = vadd.f32 %v8168_v26, %v8154_v35 }
 0x3d4   : > { %v8304_v4 = vadd.f32 %v8154_v35, %v8174_v6 }
 0x3d5   : > { %v2657_v6 = vsel %vm11468_vm8, %v8312_v32, 0.0  ;;  %vm11473_vm8 = vmmov %vm11450_vm1 }
 0x3d6   : > { %v2655_v60 = vsel %vm11467_vm5, %v8304_v4, 0.0  ;;  %vm11472_vm5 = vmmov %vm11450_vm1 }
 0x3d7   : > { %v2656_v59 = vadd.f32 %v2655_v60, %v2654_v54 }
 0x3d9   : > { %v2658_v24 = vadd.f32 %v2657_v6, %v2656_v59 }
 0x3fe   : > { %v6527_v23 = vpop.f32.mrb[26].mxu0 }
 0x3ff   : > { %v2579_v49 = vpop.f32.mrb[27].mxu0  ;;  %v8322_v14 = vadd.f32 %v6527_v23, %v8154_v35 }
 0x400   : > { %v8315_v13 = vadd.f32 %v8154_v35, %v2579_v49 }
 0x401   : > { %v2661_v26 = vsel %vm11470_vm3, %v8322_v14, 0.0  ;;  %vm11475_vm3 = vmmov %vm11450_vm1 }
 0x402   : > { %v2659_v42 = vsel %vm11469_vm9, %v8315_v13, 0.0  ;;  %vm11474_vm9 = vmmov %vm11450_vm1 }
 0x403   : > { %v2660_v63 = vadd.f32 %v2659_v42, %v2658_v24 }
 0x405   : > { %v2662_v54 = vadd.f32 %v2661_v26, %v2660_v63  ;;  %v3022_v26 = vld [vmem:[#allocation2 + $0x8] sm:$0xff] }
 0x406   : > { %3157 = vrot.lane.b32.xlu1 %v3022_v26, %s6675_s30  ;;  %3076 = vst.msk [vmem:[#allocation3 + $0x8] sm:$0xff] %vm11474_vm9, %v3022_v26  ;;  %vm11479_vm9 = vmmov %vm11450_vm1 }
 0x423   : > { %v6530_v61 = vpop.f32.mrb[28].mxu0 }
 0x424   : > { %v2589_v41 = vpop.f32.mrb[29].mxu0  ;;  %v2595_v49 = vadd.f32 %v6530_v61, %v8154_v35 }
 0x425   : > { %v2590_v60 = vadd.f32 %v8154_v35, %v2589_v41 }
 0x426   : > { %v2665_v40 = vsel %vm11471_vm7, %v2595_v49, 0.0  ;;  %vm11476_vm7 = vmmov %vm11450_vm1 }
 0x427   : > { %v2663_v18 = vsel %vm11450_vm1, %v2590_v60, 0.0 }
 0x428   : > { %v2664_v19 = vadd.f32 %v2663_v18, %v2662_v54  ;;  %v3021_v18 = vld [vmem:[#allocation2] sm:$0xff] }
 0x429   : > { %3155 = vrot.lane.b32.xlu0 %v3021_v18, %s6675_s30  ;;  %3075 = vst.msk [vmem:[#allocation3] sm:$0xff] %vm11475_vm3, %v3021_v18  ;;  %3347 = vrot.lane.b32.xlu1 %v3021_v18, %s11171_s18  ;;  %vm11480_vm3 = vmmov %vm11450_vm1 }
 0x42a   : > { %v2666_v59 = vadd.f32 %v2665_v40, %v2664_v19 }
 0x433   : > { %v6533_v6 = vpop.f32.mrb[30].mxu0 }
 0x434   : > { %v2599_v23 = vpop.f32.mrb[31].mxu0  ;;  %v2605_v42 = vadd.f32 %v6533_v6, %v8154_v35 }
 0x435   : > { %v2600_v24 = vadd.f32 %v8154_v35, %v2599_v23 }
 0x436   : > { %v2669_v61 = vsel %vm11473_vm8, %v2605_v42, 0.0  ;;  %vm11478_vm8 = vmmov %vm11450_vm1 }
 0x437   : > { %v2667_v39 = vsel %vm11472_vm5, %v2600_v24, 0.0  ;;  %vm11477_vm5 = vmmov %vm11450_vm1 }
 0x438   : > { %v2668_v57 = vadd.f32 %v2667_v39, %v2666_v59 }
 0x43a   : > { %v2670_v56 = vadd.f32 %v2669_v61, %v2668_v57 }
 0x43c   : > { %v2671_v41 = vrot.slane %v2670_v56, 4 }
 0x43e   : > { %v2672_v63 = vadd.f32 %v2671_v41, %v2670_v56 }
 0x440   : > { %v2673_v40 = vrot.slane %v2672_v63, 2 }
 0x442   : > { %v2674_v19 = vadd.f32 %v2673_v40, %v2672_v63 }
 0x444   : > { %v2675_v54 = vrot.slane %v2674_v19, 1 }
 0x446   : > { %v2676_v39 = vadd.f32 %v2675_v54, %v2674_v19 }
 0x448   : > { %v8339_v35 = vmul.f32 0.00390625, %v2676_v39 }
 0x44a   : > { %v8342_v56 = vsub.f32 %v2590_v60, %v8339_v35  ;;  %v8345_v57 = vsub.f32 %v2595_v49, %v8339_v35  ;;  %v8348_v59 = vsub.f32 %v2600_v24, %v8339_v35  ;;  %v8351_v6 = vsub.f32 %v2605_v42, %v8339_v35  ;;  %v3023_v49 = vld [vmem:[#allocation2 + $0x10] sm:$0x3] }
 0x44b   : > { %v8355_v23 = vsub.f32 %v8162_v43, %v8339_v35  ;;  %v8359_v61 = vsub.f32 %v8158_v47, %v8339_v35  ;;  %v8363_v60 = vsub.f32 %v8166_v50, %v8339_v35  ;;  %3159 = vrot.lane.b32.xlu0 %v3023_v49, %s6675_s30  ;;  %v8368_v24 = vsub.f32 %v8180_v27, %v8339_v35 }
 0x44c   : > { %3351 = vrot.lane.b32.xlu1 %v3023_v49, %s11171_s18  ;;  %v8377_v47 = vsub.f32 %v8184_v30, %v8339_v35  ;;  %v8384_v27 = vsub.f32 %v8192_v55, %v8339_v35  ;;  %v8392_v30 = vsub.f32 %v8196_v51, %v8339_v35  ;;  %v8399_v55 = vsub.f32 %v8204_v20, %v8339_v35 }
 0x44d   : > { %v2711_v42 = vmul.f32 %v8355_v23, %v8355_v23  ;;  %v2712_v43 = vmul.f32 %v8359_v61, %v8359_v61  ;;  %v2713_v50 = vmul.f32 %v8363_v60, %v8363_v60  ;;  %v2714_v41 = vmul.f32 %v8368_v24, %v8368_v24 }
 0x44e   : > { %v2715_v18 = vmul.f32 %v8377_v47, %v8377_v47  ;;  %v2716_v39 = vmul.f32 %v8384_v27, %v8384_v27  ;;  %v8406_v51 = vsub.f32 %v8208_v53, %v8339_v35  ;;  %v8413_v20 = vsub.f32 %v8216_v29, %v8339_v35 }
 0x44f   : > { %3349 = vrot.lane.b32.xlu0 %v3022_v26, %s11171_s18  ;;  %v2743_v63 = vsel %vm11450_vm1, %v2711_v42, 0.0  ;;  %v2744_v40 = vsel %vm11476_vm7, %v2712_v43, 0.0  ;;  %v2746_v26 = vsel %vm11477_vm5, %v2713_v50, 0.0  ;;  %v2748_v49 = vsel %vm11478_vm8, %v2714_v41, 0.0  ;;  %vm11481_vm7 = vmmov %vm11450_vm1 }
 0x450   : > { %v2745_v19 = vadd.f32 %v2744_v40, %v2743_v63  ;;  %v2717_v43 = vmul.f32 %v8392_v30, %v8392_v30  ;;  %v2750_v50 = vsel %vm11479_vm9, %v2715_v18, 0.0  ;;  %v2718_v40 = vmul.f32 %v8399_v55, %v8399_v55  ;;  %vm11482_vm5 = vmmov %vm11450_vm1 }
 0x451   : > { %v2752_v41 = vsel %vm11480_vm3, %v2716_v39, 0.0  ;;  %v8420_v53 = vsub.f32 %v8220_v48, %v8339_v35  ;;  %v8427_v29 = vsub.f32 %v8228_v62, %v8339_v35  ;;  %v8434_v48 = vsub.f32 %v8232_v12, %v8339_v35  ;;  %vm11483_vm8 = vmmov %vm11450_vm1 }
 0x452   : > { %v2747_v54 = vadd.f32 %v2746_v26, %v2745_v19  ;;  %v2719_v26 = vmul.f32 %v8406_v51, %v8406_v51  ;;  %v2754_v18 = vsel %vm11450_vm1, %v2717_v43, 0.0  ;;  %v2756_v39 = vsel %vm11481_vm7, %v2718_v40, 0.0  ;;  %vm11484_vm9 = vmmov %vm11450_vm1 }
 0x453   : > { %v8441_v62 = vsub.f32 %v8240_v52, %v8339_v35  ;;  %v8448_v12 = vsub.f32 %v8244_v38, %v8339_v35  ;;  %v8455_v52 = vsub.f32 %v8252_v5, %v8339_v35  ;;  %vm11485_vm3 = vmmov %vm11450_vm1  ;;  %v8462_v38 = vsub.f32 %v8256_v58, %v8339_v35 }
 0x454   : > { %v2749_v42 = vadd.f32 %v2748_v49, %v2747_v54  ;;  %v2720_v49 = vmul.f32 %v8413_v20, %v8413_v20  ;;  %v2758_v43 = vsel %vm11482_vm5, %v2719_v26, 0.0  ;;  %v8469_v5 = vsub.f32 %v8264_v31, %v8339_v35  ;;  %vm11486_vm7 = vmmov %vm11450_vm1 }
 0x455   : > { %v8476_v58 = vsub.f32 %v8268_v17, %v8339_v35  ;;  %vm11487_vm5 = vmmov %vm11450_vm1  ;;  %v8483_v31 = vsub.f32 %v8276_v0, %v8339_v35  ;;  %v8490_v17 = vsub.f32 %v8280_v28, %v8339_v35  ;;  %v8497_v0 = vsub.f32 %v8288_v37, %v8339_v35 }
 0x456   : > { %v2751_v63 = vadd.f32 %v2750_v50, %v2749_v42  ;;  %v2721_v50 = vmul.f32 %v8420_v53, %v8420_v53  ;;  %v2760_v40 = vsel %vm11483_vm8, %v2720_v49, 0.0  ;;  %vm11488_vm8 = vmmov %vm11450_vm1  ;;  %v8504_v28 = vsub.f32 %v8292_v46, %v8339_v35 }
 0x457   : > { %v8511_v37 = vsub.f32 %v8300_v36, %v8339_v35  ;;  %v8518_v46 = vsub.f32 %v8304_v4, %v8339_v35  ;;  %v8525_v36 = vsub.f32 %v8312_v32, %v8339_v35  ;;  %v8532_v4 = vsub.f32 %v8315_v13, %v8339_v35 }
 0x458   : > { %v2753_v19 = vadd.f32 %v2752_v41, %v2751_v63  ;;  %v2722_v41 = vmul.f32 %v8427_v29, %v8427_v29  ;;  %v2762_v26 = vsel %vm11484_vm9, %v2721_v50, 0.0  ;;  %vm11489_vm9 = vmmov %vm11450_vm1  ;;  %v8539_v32 = vsub.f32 %v8322_v14, %v8339_v35 }
 0x459   : > { %v2737_v13 = vmul.f32 %v8532_v4, %v8532_v4  ;;  %v2739_v14 = vmul.f32 %v8342_v56, %v8342_v56 }
 0x45a   : > { %v2755_v54 = vadd.f32 %v2754_v18, %v2753_v19  ;;  %v2723_v18 = vmul.f32 %v8434_v48, %v8434_v48  ;;  %v2764_v49 = vsel %vm11485_vm3, %v2722_v41, 0.0  ;;  %vm11490_vm3 = vmmov %vm11450_vm1 }
 0x45c   : > { %v2757_v42 = vadd.f32 %v2756_v39, %v2755_v54  ;;  %v2724_v39 = vmul.f32 %v8441_v62, %v8441_v62  ;;  %v2766_v50 = vsel %vm11450_vm1, %v2723_v18, 0.0 }
 0x45e   : > { %v2759_v63 = vadd.f32 %v2758_v43, %v2757_v42  ;;  %v2725_v43 = vmul.f32 %v8448_v12, %v8448_v12  ;;  %v2768_v41 = vsel %vm11486_vm7, %v2724_v39, 0.0  ;;  %vm11491_vm7 = vmmov %vm11450_vm1 }
 0x460   : > { %v2761_v19 = vadd.f32 %v2760_v40, %v2759_v63  ;;  %v2726_v40 = vmul.f32 %v8455_v52, %v8455_v52  ;;  %v2770_v18 = vsel %vm11487_vm5, %v2725_v43, 0.0  ;;  %vm11492_vm5 = vmmov %vm11450_vm1 }
 0x462   : > { %v2763_v54 = vadd.f32 %v2762_v26, %v2761_v19  ;;  %v2727_v26 = vmul.f32 %v8462_v38, %v8462_v38  ;;  %v2772_v39 = vsel %vm11488_vm8, %v2726_v40, 0.0  ;;  %vm11493_vm8 = vmmov %vm11450_vm1 }
 0x464   : > { %v2765_v42 = vadd.f32 %v2764_v49, %v2763_v54  ;;  %v2728_v49 = vmul.f32 %v8469_v5, %v8469_v5  ;;  %v2774_v43 = vsel %vm11489_vm9, %v2727_v26, 0.0  ;;  %vm11494_vm9 = vmmov %vm11450_vm1 }
 0x466   : > { %v2767_v63 = vadd.f32 %v2766_v50, %v2765_v42  ;;  %v2729_v50 = vmul.f32 %v8476_v58, %v8476_v58  ;;  %v2776_v40 = vsel %vm11490_vm3, %v2728_v49, 0.0  ;;  %vm11495_vm3 = vmmov %vm11450_vm1 }
 0x468   : > { %v2769_v19 = vadd.f32 %v2768_v41, %v2767_v63  ;;  %v2730_v41 = vmul.f32 %v8483_v31, %v8483_v31  ;;  %v2778_v26 = vsel %vm11450_vm1, %v2729_v50, 0.0 }
 0x46a   : > { %v2771_v54 = vadd.f32 %v2770_v18, %v2769_v19  ;;  %v2731_v18 = vmul.f32 %v8490_v17, %v8490_v17  ;;  %v2780_v49 = vsel %vm11491_vm7, %v2730_v41, 0.0  ;;  %vm11496_vm7 = vmmov %vm11450_vm1 }
 0x46c   : > { %v2773_v42 = vadd.f32 %v2772_v39, %v2771_v54  ;;  %v2732_v39 = vmul.f32 %v8497_v0, %v8497_v0  ;;  %v2782_v50 = vsel %vm11492_vm5, %v2731_v18, 0.0  ;;  %vm11497_vm5 = vmmov %vm11450_vm1 }
 0x46d   : > { %v2794_v35 = vsel %vm11497_vm5, %v2737_v13, 0.0  ;;  %vm11502_vm5 = vmmov %vm11450_vm1 }
 0x46e   : > { %v2775_v63 = vadd.f32 %v2774_v43, %v2773_v42  ;;  %v2733_v43 = vmul.f32 %v8504_v28, %v8504_v28  ;;  %v2784_v41 = vsel %vm11493_vm8, %v2732_v39, 0.0  ;;  %vm11498_vm8 = vmmov %vm11450_vm1 }
 0x470   : > { %v2777_v19 = vadd.f32 %v2776_v40, %v2775_v63  ;;  %v2734_v40 = vmul.f32 %v8511_v37, %v8511_v37  ;;  %v2786_v18 = vsel %vm11494_vm9, %v2733_v43, 0.0  ;;  %v2738_v43 = vmul.f32 %v8539_v32, %v8539_v32  ;;  %vm11499_vm9 = vmmov %vm11450_vm1 }
 0x472   : > { %v2779_v54 = vadd.f32 %v2778_v26, %v2777_v19  ;;  %v2735_v26 = vmul.f32 %v8518_v46, %v8518_v46  ;;  %v2788_v39 = vsel %vm11495_vm3, %v2734_v40, 0.0  ;;  %v2740_v40 = vmul.f32 %v8345_v57, %v8345_v57  ;;  %vm11500_vm3 = vmmov %vm11450_vm1 }
 0x474   : > { %v2781_v42 = vadd.f32 %v2780_v49, %v2779_v54  ;;  %v2736_v49 = vmul.f32 %v8525_v36, %v8525_v36 }
 0x476   : > { %v2783_v63 = vadd.f32 %v2782_v50, %v2781_v42  ;;  %v2790_v50 = vsel %vm11450_vm1, %v2735_v26, 0.0  ;;  %v2741_v26 = vmul.f32 %v8348_v59, %v8348_v59 }
 0x478   : > { %v2785_v19 = vadd.f32 %v2784_v41, %v2783_v63  ;;  %v2792_v41 = vsel %vm11496_vm7, %v2736_v49, 0.0  ;;  %v2742_v49 = vmul.f32 %v8351_v6, %v8351_v6  ;;  %v2802_v13 = vsel %vm11450_vm1, %v2741_v26, 0.0  ;;  %vm11501_vm7 = vmmov %vm11450_vm1 }
 0x479   : > { %vm11506_vm1 = vcmask 97344  }
 0x47a   : > { %v2787_v54 = vadd.f32 %v2786_v18, %v2785_v19 }
 0x47c   : > { %v2789_v42 = vadd.f32 %v2788_v39, %v2787_v54  ;;  %v2796_v54 = vsel %vm11498_vm8, %v2738_v43, 0.0  ;;  %vm11503_vm8 = vcmask 97346  }
 0x47e   : > { %v2791_v63 = vadd.f32 %v2790_v50, %v2789_v42  ;;  %v2798_v42 = vsel %vm11499_vm9, %v2739_v14, 0.0  ;;  %vm11504_vm9 = vcmask 57376  }
 0x480   : > { %v2793_v19 = vadd.f32 %v2792_v41, %v2791_v63  ;;  %v2800_v63 = vsel %vm11500_vm3, %v2740_v40, 0.0  ;;  %v8567_v40 = vld [vmem:[%s11090_s3] ss:$0 sm:$0xff]  ;;  %vm11505_vm3 = vcmask 91200  }
 0x482   : > { %v2795_v18 = vadd.f32 %v2794_v35, %v2793_v19  ;;  %v2804_v35 = vsel %vm11501_vm7, %v2742_v49, 0.0  ;;  %vm11507_vm7 = vmmov %vm11502_vm5 }
 0x484   : > { %v2797_v39 = vadd.f32 %v2796_v54, %v2795_v18 }
 0x486   : > { %v2799_v50 = vadd.f32 %v2798_v42, %v2797_v39 }
 0x488   : > { %v2801_v41 = vadd.f32 %v2800_v63, %v2799_v50 }
 0x48a   : > { %v2803_v19 = vadd.f32 %v2802_v13, %v2801_v41 }
 0x48c   : > { %v2805_v16 = vadd.f32 %v2804_v35, %v2803_v19 }
 0x48e   : > { %v2806_v43 = vrot.slane %v2805_v16, 4 }
 0x490   : > { %v2807_v18 = vadd.f32 %v2806_v43, %v2805_v16 }
 0x492   : > { %v2808_v54 = vrot.slane %v2807_v18, 2 }
 0x494   : > { %v2809_v15 = vadd.f32 %v2808_v54, %v2807_v18 }
 0x496   : > { %v2810_v45 = vrot.slane %v2809_v15, 1 }
 0x498   : > { %v2811_v44 = vadd.f32 %v2810_v45, %v2809_v15 }
 0x49a   : > { %v2812_v14 = vmul.f32 0.00390625, %v2811_v44  ;;  %v8576_v44 = vld [vmem:[%s11091_s4] ss:$0 sm:$0xff] }
 0x49c   : > { %v2813_v39 = vadd.f32 1e-05, %v2812_v14 }
 0x49e   : > { %6646 = vrsqrt.f32 %v2813_v39 }
 0x4a8   : > { %v6647_v42 = vpop.eup %6646 }
 0x4a9   : > { %v2845_v26 = vmul.f32 %v6647_v42, %v8348_v59  ;;  %v2815_v50 = vmul.f32 %v6647_v42, %v8355_v23  ;;  %v2816_v49 = vmul.f32 %v6647_v42, %v8359_v61  ;;  %v2817_v16 = vmul.f32 %v6647_v42, %v8363_v60 }
 0x4aa   : > { %v2818_v45 = vmul.f32 %v6647_v42, %v8368_v24  ;;  %v2819_v15 = vmul.f32 %v6647_v42, %v8377_v47  ;;  %v2820_v63 = vmul.f32 %v6647_v42, %v8384_v27  ;;  %v2821_v41 = vmul.f32 %v6647_v42, %v8392_v30 }
 0x4ab   : > { %v2884_v59 = vmul.f32 %v8567_v40, %v2845_v26  ;;  %v2822_v23 = vmul.f32 %v6647_v42, %v8399_v55  ;;  %v2823_v61 = vmul.f32 %v6647_v42, %v8406_v51  ;;  %v2824_v60 = vmul.f32 %v6647_v42, %v8413_v20 }
 0x4ac   : > { %v2825_v13 = vmul.f32 %v6647_v42, %v8420_v53  ;;  %v2826_v19 = vmul.f32 %v6647_v42, %v8427_v29  ;;  %v2827_v24 = vmul.f32 %v6647_v42, %v8434_v48  ;;  %v2828_v47 = vmul.f32 %v6647_v42, %v8441_v62 }
 0x4ad   : > { %v2923_v27 = vadd.f32 %v8576_v44, %v2884_v59  ;;  %v2829_v30 = vmul.f32 %v6647_v42, %v8448_v12  ;;  %v2830_v35 = vmul.f32 %v6647_v42, %v8455_v52  ;;  %v2831_v55 = vmul.f32 %v6647_v42, %v8462_v38 }
 0x4ae   : > { %v2832_v51 = vmul.f32 %v6647_v42, %v8469_v5  ;;  %v2833_v20 = vmul.f32 %v6647_v42, %v8476_v58  ;;  %v2834_v53 = vmul.f32 %v6647_v42, %v8483_v31  ;;  %v2835_v29 = vmul.f32 %v6647_v42, %v8490_v17 }
 0x4af   : > { %v2955_v43 = vmax.f32 %v2923_v27, 0.0  ;;  %v2836_v48 = vmul.f32 %v6647_v42, %v8497_v0  ;;  %v2837_v62 = vmul.f32 %v6647_v42, %v8504_v28  ;;  %v2838_v18 = vmul.f32 %v6647_v42, %v8511_v37 }
 0x4b0   : > { %v2839_v12 = vmul.f32 %v6647_v42, %v8518_v46  ;;  %v2840_v52 = vmul.f32 %v6647_v42, %v8525_v36  ;;  %v2841_v38 = vmul.f32 %v6647_v42, %v8532_v4  ;;  %v2842_v5 = vmul.f32 %v6647_v42, %v8539_v32 }
 0x4b1   : > { %v2987_v58 = vadd.f32 %v2955_v43, %v7802_v25  ;;  %v2843_v31 = vmul.f32 %v6647_v42, %v8342_v56  ;;  %v2844_v17 = vmul.f32 %v6647_v42, %v8345_v57  ;;  %v2846_v0 = vmul.f32 %v6647_v42, %v8351_v6  ;;  %v4603_v25 = vld [vmem:[%s11092_s5 + $0x10] sm:$0xff] }
 0x4b2   : > { %v2854_v28 = vmul.f32 %v8567_v40, %v2815_v50  ;;  %v2855_v37 = vmul.f32 %v8567_v40, %v2816_v49  ;;  %v2856_v46 = vmul.f32 %v8567_v40, %v2817_v16  ;;  %v2857_v36 = vmul.f32 %v8567_v40, %v2818_v45 }
 0x4b3   : > { %3019 = vst.msk [vmem:[#allocation2 + $0x181] sm:$0xff] %vm11502_vm5, %v2987_v58  ;;  %v2858_v4 = vmul.f32 %v8567_v40, %v2819_v15  ;;  %v2859_v32 = vmul.f32 %v8567_v40, %v2820_v63  ;;  %v2860_v56 = vmul.f32 %v8567_v40, %v2821_v41  ;;  %v2861_v57 = vmul.f32 %v8567_v40, %v2822_v23 }
 0x4b4   : > { %v2862_v6 = vmul.f32 %v8567_v40, %v2823_v61  ;;  %v2863_v54 = vmul.f32 %v8567_v40, %v2824_v60  ;;  %v2864_v14 = vmul.f32 %v8567_v40, %v2825_v13  ;;  %v2865_v39 = vmul.f32 %v8567_v40, %v2826_v19  ;;  %v3158_v60 = vpop.permute.xlu1 %3157  ;;  %v3156_v13 = vpop.permute.xlu0 %3155 }
 0x4b5   : > { %v2866_v42 = vmul.f32 %v8567_v40, %v2827_v24  ;;  %v2867_v26 = vmul.f32 %v8567_v40, %v2828_v47  ;;  %v2868_v50 = vmul.f32 %v8567_v40, %v2829_v30  ;;  %v2869_v49 = vmul.f32 %v8567_v40, %v2830_v35  ;;  %3300 = vst.msk [vmem:[#allocation3 + $0x7] sm:$0xff] %vm950_vm6, %v3158_v60 }
 0x4b6   : > { %v2870_v16 = vmul.f32 %v8567_v40, %v2831_v55  ;;  %v2871_v45 = vmul.f32 %v8567_v40, %v2832_v51  ;;  %v2872_v15 = vmul.f32 %v8567_v40, %v2833_v20  ;;  %v2873_v63 = vmul.f32 %v8567_v40, %v2834_v53  ;;  %3299 = vst.msk [vmem:[#allocation3 - $0x1] sm:$0xfe] %vm948_vm4, %v3156_v13 }
 0x4b7   : > { %v2874_v41 = vmul.f32 %v8567_v40, %v2835_v29  ;;  %v2875_v59 = vmul.f32 %v8567_v40, %v2836_v48  ;;  %v2876_v23 = vmul.f32 %v8567_v40, %v2837_v62  ;;  %v2877_v61 = vmul.f32 %v8567_v40, %v2838_v18 }
 0x4b8   : > { %v2878_v19 = vmul.f32 %v8567_v40, %v2839_v12  ;;  %v2879_v24 = vmul.f32 %v8567_v40, %v2840_v52  ;;  %v2880_v47 = vmul.f32 %v8567_v40, %v2841_v38  ;;  %v2881_v27 = vmul.f32 %v8567_v40, %v2842_v5  ;;  %v3348_v12 = vpop.permute.xlu1 %3347 }
 0x4b9   : > { %v2882_v30 = vmul.f32 %v8567_v40, %v2843_v31  ;;  %v2883_v35 = vmul.f32 %v8567_v40, %v2844_v17  ;;  %v2885_v55 = vmul.f32 %v8567_v40, %v2846_v0  ;;  %v8644_v51 = vadd.f32 %v8576_v44, %v2854_v28  ;;  %3491 = vst.msk [vmem:[#allocation3 - $0x2] sm:$0xfc] %vm11503_vm8, %v3348_v12  ;;  %vm11508_vm8 = vmmov %vm11502_vm5 }
 0x4ba   : > { %v8647_v20 = vadd.f32 %v8576_v44, %v2855_v37  ;;  %v8650_v53 = vadd.f32 %v8576_v44, %v2856_v46  ;;  %v8653_v29 = vadd.f32 %v8576_v44, %v2857_v36  ;;  %v8656_v43 = vadd.f32 %v8576_v44, %v2858_v4 }
 0x4bb   : > { %v8659_v48 = vadd.f32 %v8576_v44, %v2859_v32  ;;  %v8662_v40 = vadd.f32 %v8576_v44, %v2860_v56  ;;  %v8665_v62 = vadd.f32 %v8576_v44, %v2861_v57  ;;  %v8668_v18 = vadd.f32 %v8576_v44, %v2862_v6 }
 0x4bc   : > { %v8671_v52 = vadd.f32 %v8576_v44, %v2863_v54  ;;  %v8674_v38 = vadd.f32 %v8576_v44, %v2864_v14  ;;  %v8677_v5 = vadd.f32 %v8576_v44, %v2865_v39  ;;  %v8680_v58 = vadd.f32 %v8576_v44, %v2866_v42 }
 0x4bd   : > { %v3160_v31 = vpop.permute.xlu0 %3159  ;;  %v8684_v17 = vadd.f32 %v8576_v44, %v2867_v26  ;;  %v8687_v0 = vadd.f32 %v8576_v44, %v2868_v50  ;;  %v8690_v28 = vadd.f32 %v8576_v44, %v2869_v49  ;;  %v8693_v37 = vadd.f32 %v8576_v44, %v2870_v16 }
 0x4be   : > { %3301 = vst.msk [vmem:[#allocation3 + $0xf] sm:$0x1] %vm11504_vm9, %v3160_v31  ;;  %v8697_v46 = vadd.f32 %v8576_v44, %v2871_v45  ;;  %v8700_v36 = vadd.f32 %v8576_v44, %v2872_v15  ;;  %v8703_v4 = vadd.f32 %v8576_v44, %v2873_v63  ;;  %v8706_v32 = vadd.f32 %v8576_v44, %v2874_v41  ;;  %v3352_v14 = vpop.permute.xlu1 %3351  ;;  %vm11512_vm9 = vmmov %vm11502_vm5 }
 0x4bf   : > { %v8709_v56 = vadd.f32 %v8576_v44, %v2875_v59  ;;  %v8712_v57 = vadd.f32 %v8576_v44, %v2876_v23  ;;  %v8715_v6 = vadd.f32 %v8576_v44, %v2877_v61  ;;  %v8718_v54 = vadd.f32 %v8576_v44, %v2878_v19  ;;  %3493 = vst.msk [vmem:[#allocation3 + $0xe] sm:$0x3] %vm11505_vm3, %v3352_v14  ;;  %v11509_v14 = vld [vmem:[#allocation16_spill] sm:$0xff]  ;;  %vm11513_vm3 = vmmov %vm11502_vm5 }
 0x4c0   : > { %v8721_v39 = vadd.f32 %v8576_v44, %v2879_v24  ;;  %v8724_v42 = vadd.f32 %v8576_v44, %v2880_v47  ;;  %v8727_v26 = vadd.f32 %v8576_v44, %v2881_v27  ;;  %v8730_v50 = vadd.f32 %v8576_v44, %v2882_v30 }
 0x4c1   : > { %v3350_v49 = vpop.permute.xlu0 %3349  ;;  %v8734_v16 = vadd.f32 %v8576_v44, %v2883_v35  ;;  %v8737_v45 = vadd.f32 %v8576_v44, %v2885_v55  ;;  %v2925_v15 = vmax.f32 %v8644_v51, 0.0  ;;  %v2926_v63 = vmax.f32 %v8647_v20, 0.0 }
 0x4c2   : > { %3492 = vst.msk [vmem:[#allocation3 + $0x6] sm:$0xff] %vm11506_vm1, %v3350_v49  ;;  %v2927_v41 = vmax.f32 %v8650_v53, 0.0  ;;  %v2928_v59 = vmax.f32 %v8653_v29, 0.0  ;;  %v2929_v23 = vmax.f32 %v8656_v43, 0.0  ;;  %v2930_v61 = vmax.f32 %v8659_v48, 0.0  ;;  %vm11514_vm1 = vmmov %vm11513_vm3 }
 0x4c3   : > { %v2931_v60 = vmax.f32 %v8662_v40, 0.0  ;;  %v2932_v13 = vmax.f32 %v8665_v62, 0.0  ;;  %v2933_v44 = vmax.f32 %v8668_v18, 0.0  ;;  %v2934_v19 = vmax.f32 %v8671_v52, 0.0  ;;  %vm11515_vm10 = vmmov %vm11514_vm1 }
 0x4c4   : > { %v2935_v24 = vmax.f32 %v8674_v38, 0.0  ;;  %v2936_v47 = vmax.f32 %v8677_v5, 0.0  ;;  %v2937_v27 = vmax.f32 %v8680_v58, 0.0  ;;  %v2938_v30 = vmax.f32 %v8684_v17, 0.0  ;;  %vm11549_vm11 = vmmov %vm11514_vm1 }
 0x4c5   : > { %v2939_v35 = vmax.f32 %v8687_v0, 0.0  ;;  %v2940_v55 = vmax.f32 %v8690_v28, 0.0  ;;  %v2941_v51 = vmax.f32 %v8693_v37, 0.0  ;;  %v2942_v20 = vmax.f32 %v8697_v46, 0.0  ;;  %vm11550_vm0 = vmmov %vm11514_vm1 }
 0x4c6   : > { %v2943_v53 = vmax.f32 %v8700_v36, 0.0  ;;  %v2944_v29 = vmax.f32 %v8703_v4, 0.0  ;;  %v2945_v43 = vmax.f32 %v8706_v32, 0.0  ;;  %v2946_v48 = vmax.f32 %v8709_v56, 0.0  ;;  %vm11551_vm2 = vmmov %vm11550_vm0 }
 0x4c7   : > { %v2947_v40 = vmax.f32 %v8712_v57, 0.0  ;;  %v2948_v62 = vmax.f32 %v8715_v6, 0.0  ;;  %v2949_v18 = vmax.f32 %v8718_v54, 0.0  ;;  %v2950_v12 = vmax.f32 %v8721_v39, 0.0  ;;  %vm11552_vm15 = vmmov %vm11550_vm0 }
 0x4c8   : > { %v2951_v52 = vmax.f32 %v8724_v42, 0.0  ;;  %v2952_v38 = vmax.f32 %v8727_v26, 0.0  ;;  %v2953_v5 = vmax.f32 %v8730_v50, 0.0  ;;  %v2954_v58 = vmax.f32 %v8734_v16, 0.0  ;;  %v11510_v42 = vld [vmem:[#allocation17_spill] sm:$0xff]  ;;  %v11511_v50 = vld [vmem:[#allocation18_spill] sm:$0xff] }
 0x4c9   : > { %v2956_v31 = vmax.f32 %v8737_v45, 0.0  ;;  %v2957_v17 = vadd.f32 %v2925_v15, %v6851_v1  ;;  %v2958_v0 = vadd.f32 %v2926_v63, %v6854_v2  ;;  %v2959_v28 = vadd.f32 %v2927_v41, %v6857_v3  ;;  %v11516_v16 = vld [vmem:[#allocation19_spill] sm:$0xff]  ;;  %v11517_v15 = vld [vmem:[#allocation20_spill] sm:$0xff]  ;;  %v11518_v41 = vld [vmem:[#allocation21_spill] sm:$0xff] }
 0x4ca   : > { %v2960_v37 = vadd.f32 %v2928_v59, %v6870_v7  ;;  %v2961_v46 = vadd.f32 %v2929_v23, %v6873_v8  ;;  %v2962_v36 = vadd.f32 %v2930_v61, %v6878_v9  ;;  %v2963_v4 = vadd.f32 %v2931_v60, %v6883_v10  ;;  %v11519_v23 = vld [vmem:[#allocation22_spill] sm:$0xff]  ;;  %v11524_v60 = vld [vmem:[#allocation23_spill] sm:$0xff] }
 0x4cb   : > { %v2964_v32 = vadd.f32 %v2932_v13, %v6886_v11  ;;  %v2965_v56 = vadd.f32 %v2933_v44, %v6937_v21  ;;  %v2966_v57 = vadd.f32 %v2934_v19, %v6940_v22  ;;  %v2967_v6 = vadd.f32 %v2935_v24, %v7009_v33  ;;  %2989 = vst.msk [vmem:[#allocation2 + $0x19] sm:$0xff] %vm11507_vm7, %v2957_v17  ;;  %vm11520_vm7 = vmmov %vm11514_vm1  ;;  %v11525_v44 = vld [vmem:[#allocation24_spill] sm:$0xff]  ;;  %v11526_v24 = vld [vmem:[#allocation25_spill] sm:$0xff] }
 0x4cc   : > { %2990 = vst.msk [vmem:[#allocation2 + $0x21] sm:$0xff] %vm11502_vm5, %v2958_v0  ;;  %v2968_v54 = vadd.f32 %v2936_v47, %v7012_v34  ;;  %v2969_v39 = vadd.f32 %v2937_v27, %v11509_v14  ;;  %v2970_v26 = vadd.f32 %v2938_v30, %v11510_v42  ;;  %v2971_v49 = vadd.f32 %v2939_v35, %v11511_v50  ;;  %vm11521_vm5 = vmmov %vm11514_vm1  ;;  %v11527_v27 = vld [vmem:[#allocation26_spill] sm:$0xff]  ;;  %v11531_v35 = vld [vmem:[#allocation27_spill] sm:$0xff] }
 0x4cd   : > { %2991 = vst.msk [vmem:[#allocation2 + $0x31] sm:$0xff] %vm11508_vm8, %v2959_v28  ;;  %v2972_v45 = vadd.f32 %v2940_v55, %v11516_v16  ;;  %v2973_v63 = vadd.f32 %v2941_v51, %v11517_v15  ;;  %v2974_v59 = vadd.f32 %v2942_v20, %v11518_v41  ;;  %v2975_v61 = vadd.f32 %v2943_v53, %v11519_v23  ;;  %vm11522_vm8 = vmmov %vm11514_vm1  ;;  %v11532_v51 = vld [vmem:[#allocation28_spill] sm:$0xff]  ;;  %v11533_v53 = vld [vmem:[#allocation29_spill] sm:$0xff] }
 0x4ce   : > { %2992 = vst.msk [vmem:[#allocation2 + $0x39] sm:$0xff] %vm11512_vm9, %v2960_v37  ;;  %vm11523_vm9 = vmmov %vm11514_vm1  ;;  %v2976_v13 = vadd.f32 %v2944_v29, %v11524_v60  ;;  %v2977_v19 = vadd.f32 %v2945_v43, %v11525_v44  ;;  %v2978_v47 = vadd.f32 %v2946_v48, %v11526_v24  ;;  %v2979_v30 = vadd.f32 %v2947_v40, %v11527_v27  ;;  %v11534_v17 = vld [vmem:[#allocation30_spill] sm:$0xff]  ;;  %v11539_v48 = vld [vmem:[#allocation31_spill] sm:$0xff] }
 0x4cf   : > { %2993 = vst.msk [vmem:[#allocation2 + $0x49] sm:$0xff] %vm11513_vm3, %v2961_v46  ;;  %vm11529_vm3 = vmmov %vm11514_vm1  ;;  %v2980_v55 = vadd.f32 %v2948_v62, %v11531_v35  ;;  %v2981_v20 = vadd.f32 %v2949_v18, %v11532_v51  ;;  %v2982_v29 = vadd.f32 %v2950_v12, %v11533_v53  ;;  %v2983_v43 = vadd.f32 %v2951_v52, %v11534_v17  ;;  %v11540_v0 = vld [vmem:[#allocation32_spill] sm:$0xff]  ;;  %v11541_v37 = vld [vmem:[#allocation33_spill] sm:$0xff] }
 0x4d0   : > { %2994 = vst.msk [vmem:[#allocation2 + $0x51] sm:$0xff] %vm11514_vm1, %v2962_v36  ;;  %3002 = vst.msk [vmem:[#allocation2 + $0xb1] sm:$0xff] %vm11514_vm1, %v2970_v26  ;;  %v2984_v40 = vadd.f32 %v2952_v38, %v11539_v48  ;;  %v2985_v28 = vadd.f32 %v2953_v5, %v11540_v0  ;;  %v2986_v62 = vadd.f32 %v2954_v58, %v11541_v37  ;;  %v11542_v46 = vld [vmem:[#allocation35_spill] sm:$0xff]  ;;  %v4604_v0 = vld [vmem:[%s11092_s5 + $0x18] sm:$0xff] }
 0x4d1   : > { %2995 = vst.msk [vmem:[#allocation2 + $0x61] sm:$0xff] %vm11515_vm10, %v2963_v4  ;;  %vm11528_vm10 = vmmov %vm11514_vm1  ;;  %v2988_v18 = vadd.f32 %v2956_v31, %v11542_v46  ;;  %v6624_v17 = vpack.c.bf16 %v4604_v0, %v4603_v25 }
 0x4d2   : > { %2996 = vst.msk [vmem:[#allocation2 + $0x69] sm:$0xff] %vm11520_vm7, %v2964_v32  ;;  %vm11530_vm7 = vmmov %vm11514_vm1  ;;  %v8835_v52 = vld [vmem:[#allocation2 + $0x18] sm:$0xff] }
 0x4d3   : > { %2997 = vst.msk [vmem:[#allocation2 + $0x79] sm:$0xff] %vm11521_vm5, %v2965_v56  ;;  %vm11535_vm5 = vmmov %vm11514_vm1  ;;  %v8833_v12 = vld [vmem:[#allocation2 + $0x20] sm:$0xff]  ;;  %3541 = vrot.lane.b32.xlu0 %v8835_v52, %s11255_s22 }
 0x4d4   : > { %2998 = vst.msk [vmem:[#allocation2 + $0x81] sm:$0xff] %vm11522_vm8, %v2966_v57  ;;  %vm11536_vm8 = vmmov %vm11514_vm1  ;;  %3543 = vrot.lane.b32.xlu1 %v8833_v12, %s11255_s22  ;;  %v8847_v5 = vld [vmem:[#allocation2 + $0x30] sm:$0xff] }
 0x4d5   : > { %2999 = vst.msk [vmem:[#allocation2 + $0x91] sm:$0xff] %vm11523_vm9, %v2967_v6  ;;  %vm11537_vm9 = vmmov %vm11514_vm1  ;;  %v8845_v38 = vld [vmem:[#allocation2 + $0x38] sm:$0xff] }
 0x4d6   : > { %3000 = vst.msk [vmem:[#allocation2 + $0x99] sm:$0xff] %vm11528_vm10, %v2968_v54  ;;  %vm11538_vm10 = vmmov %vm11514_vm1  ;;  %v8855_v31 = vld [vmem:[#allocation2 + $0x48] sm:$0xff] }
 0x4d7   : > { %3001 = vst.msk [vmem:[#allocation2 + $0xa9] sm:$0xff] %vm11529_vm3, %v2969_v39  ;;  %vm11543_vm3 = vmmov %vm11514_vm1  ;;  %v8853_v58 = vld [vmem:[#allocation2 + $0x50] sm:$0xff]  ;;  %3670 = vrot.lane.b32.xlu0 %v8835_v52, %s11257_s23  ;;  %v3032_v25 = vld [vmem:[#allocation2 + $0x58] sm:$0x3] }
 0x4d8   : > { %3003 = vst.msk [vmem:[#allocation2 + $0xc1] sm:$0xff] %vm11530_vm7, %v2971_v49  ;;  %vm11544_vm7 = vmmov %vm11514_vm1  ;;  %v8863_v4 = vld [vmem:[#allocation2 + $0x60] sm:$0xff]  ;;  %3672 = vrot.lane.b32.xlu1 %v8833_v12, %s11257_s23 }
 0x4d9   : > { %3004 = vst.msk [vmem:[#allocation2 + $0xc9] sm:$0xff] %vm11535_vm5, %v2972_v45  ;;  %vm11545_vm5 = vmmov %vm11514_vm1  ;;  %v8861_v36 = vld [vmem:[#allocation2 + $0x68] sm:$0xff] }
 0x4da   : > { %3005 = vst.msk [vmem:[#allocation2 + $0xd9] sm:$0xff] %vm11536_vm8, %v2973_v63  ;;  %vm11546_vm8 = vmmov %vm11514_vm1  ;;  %v8871_v56 = vld [vmem:[#allocation2 + $0x78] sm:$0xff]  ;;  %v3026_v45 = vld [vmem:[#allocation2 + $0x28] sm:$0x3] }
 0x4db   : > { %3006 = vst.msk [vmem:[#allocation2 + $0xe1] sm:$0xff] %vm11537_vm9, %v2974_v59  ;;  %vm11547_vm9 = vmmov %vm11514_vm1  ;;  %v8869_v32 = vld [vmem:[#allocation2 + $0x80] sm:$0xff]  ;;  %3674 = vrot.lane.b32.xlu0 %v3026_v45, %s11257_s23 }
 0x4dc   : > { %3007 = vst.msk [vmem:[#allocation2 + $0xf1] sm:$0xff] %vm11538_vm10, %v2975_v61  ;;  %vm11548_vm10 = vmmov %vm11514_vm1  ;;  %v8883_v6 = vld [vmem:[#allocation2 + $0x90] sm:$0xff]  ;;  %3161 = vrot.lane.b32.xlu1 %v8835_v52, %s6675_s30 }
 0x4dd   : > { %3008 = vst.msk [vmem:[#allocation2 + $0xf9] sm:$0xff] %vm11543_vm3, %v2976_v13  ;;  %vm11553_vm3 = vmmov %vm11550_vm0  ;;  %v8881_v57 = vld [vmem:[#allocation2 + $0x98] sm:$0xff] }
 0x4de   : > { %3009 = vst.msk [vmem:[#allocation2 + $0x109] sm:$0xff] %vm11514_vm1, %v2977_v19  ;;  %vm11554_vm1 = vmmov %vm11550_vm0  ;;  %v8889_v54 = vld [vmem:[#allocation2 + $0xb0] sm:$0xff]  ;;  %v8891_v39 = vld [vmem:[#allocation2 + $0xa8] sm:$0xff] }
 0x4df   : > { %3010 = vst.msk [vmem:[#allocation2 + $0x111] sm:$0xff] %vm11544_vm7, %v2978_v47  ;;  %vm11558_vm7 = vmmov %vm11550_vm0  ;;  %v8899_v49 = vld [vmem:[#allocation2 + $0xc0] sm:$0xff]  ;;  %3163 = vrot.lane.b32.xlu0 %v8833_v12, %s6675_s30 }
 0x4e0   : > { %3011 = vst.msk [vmem:[#allocation2 + $0x121] sm:$0xff] %vm11545_vm5, %v2979_v30  ;;  %vm11559_vm5 = vmmov %vm11550_vm0  ;;  %v8897_v26 = vld [vmem:[#allocation2 + $0xc8] sm:$0xff]  ;;  %3165 = vrot.lane.b32.xlu1 %v3026_v45, %s6675_s30 }
 0x4e1   : > { %3012 = vst.msk [vmem:[#allocation2 + $0x129] sm:$0xff] %vm11546_vm8, %v2980_v55  ;;  %vm11560_vm8 = vmmov %vm11550_vm0  ;;  %v8907_v59 = vld [vmem:[#allocation2 + $0xd8] sm:$0xff] }
 0x4e2   : > { %3013 = vst.msk [vmem:[#allocation2 + $0x139] sm:$0xff] %vm11547_vm9, %v2981_v20  ;;  %vm11561_vm9 = vmmov %vm11550_vm0  ;;  %v8905_v63 = vld [vmem:[#allocation2 + $0xe0] sm:$0xff] }
 0x4e3   : > { %3014 = vst.msk [vmem:[#allocation2 + $0x141] sm:$0xff] %vm11548_vm10, %v2982_v29  ;;  %vm11562_vm10 = vmmov %vm11550_vm0  ;;  %v8918_v13 = vld [vmem:[#allocation2 + $0xf0] sm:$0xff]  ;;  %3862 = vrot.lane.b32.xlu0 %v8835_v52, %s11176_s20 }
 0x4e4   : > { %3015 = vst.msk [vmem:[#allocation2 + $0x151] sm:$0xff] %vm11549_vm11, %v2983_v43  ;;  %vm11555_vm11 = vmmov %vm11550_vm0  ;;  %v8916_v61 = vld [vmem:[#allocation2 + $0xf8] sm:$0xff]  ;;  %3864 = vrot.lane.b32.xlu1 %v8833_v12, %s11176_s20 }
 0x4e5   : > { %3016 = vst.msk [vmem:[#allocation2 + $0x159] sm:$0xff] %vm11550_vm0, %v2984_v40  ;;  %3082 = vst.msk [vmem:[#allocation3 + $0x38] sm:$0xff] %vm11550_vm0, %v8853_v58  ;;  %v8926_v47 = vld [vmem:[#allocation2 + $0x108] sm:$0xff] }
 0x4e6   : > { %3017 = vst.msk [vmem:[#allocation2 + $0x169] sm:$0xff] %vm11551_vm2, %v2985_v28  ;;  %vm11556_vm2 = vmmov %vm11550_vm0  ;;  %v8924_v19 = vld [vmem:[#allocation2 + $0x110] sm:$0xff] }
 0x4e7   : > { %3018 = vst.msk [vmem:[#allocation2 + $0x171] sm:$0xff] %vm11552_vm15, %v2986_v62  ;;  %vm11557_vm15 = vmmov %vm11550_vm0  ;;  %v8934_v55 = vld [vmem:[#allocation2 + $0x120] sm:$0xff]  ;;  %3866 = vrot.lane.b32.xlu0 %v3026_v45, %s11176_s20  ;;  %s11586_s20 = smov 24  }
 0x4e8   : > { %3020 = vst.msk [vmem:[#allocation2 + $0x189] sm:$0xff] %vm11553_vm3, %v2988_v18  ;;  %vm11563_vm3 = vmmov %vm11550_vm0  ;;  %v8932_v30 = vld [vmem:[#allocation2 + $0x128] sm:$0xff]  ;;  %3353 = vrot.lane.b32.xlu1 %v8835_v52, %s11171_s18  ;;  %v3029_v18 = vld [vmem:[#allocation2 + $0x40] sm:$0x3] }
 0x4e9   : > { %3078 = vst.msk [vmem:[#allocation3 + $0x18] sm:$0xff] %vm11554_vm1, %v8833_v12  ;;  %vm11564_vm1 = vmmov %vm11550_vm0  ;;  %v8942_v29 = vld [vmem:[#allocation2 + $0x138] sm:$0xff] }
 0x4ea   : > { %3077 = vst.msk [vmem:[#allocation3 + $0x10] sm:$0xff] %vm11555_vm11, %v8835_v52  ;;  %vm11565_vm11 = vmmov %vm11550_vm0  ;;  %v8940_v20 = vld [vmem:[#allocation2 + $0x140] sm:$0xff]  ;;  %v4602_v52 = vld [vmem:[%s11092_s5 + $0x8] sm:$0xff] }
 0x4eb   : > { %3080 = vst.msk [vmem:[#allocation3 + $0x28] sm:$0xff] %vm11556_vm2, %v8845_v38  ;;  %vm11566_vm2 = vmmov %vm11550_vm0  ;;  %v8953_v40 = vld [vmem:[#allocation2 + $0x150] sm:$0xff]  ;;  %3355 = vrot.lane.b32.xlu0 %v8833_v12, %s11171_s18  ;;  %v4601_v12 = vld [vmem:[%s11092_s5] sm:$0xff] }
 0x4ec   : > { %3079 = vst.msk [vmem:[#allocation3 + $0x20] sm:$0xff] %vm11557_vm15, %v8847_v5  ;;  %vm11567_vm15 = vmmov %vm11550_vm0  ;;  %v8951_v43 = vld [vmem:[#allocation2 + $0x158] sm:$0xff]  ;;  %3357 = vrot.lane.b32.xlu1 %v3026_v45, %s11171_s18  ;;  %v6620_v45 = vpack.c.bf16 %v4602_v52, %v4601_v12  ;;  %v4605_v12 = vld [vmem:[%s11092_s5 + $0x20] sm:$0xf]  ;;  %s11584_s18 = smov 8  }
 0x4ed   : > { %3081 = vst.msk [vmem:[#allocation3 + $0x30] sm:$0xff] %vm11558_vm7, %v8855_v31  ;;  %vm11568_vm7 = vmmov %vm11550_vm0  ;;  %v8961_v62 = vld [vmem:[#allocation2 + $0x168] sm:$0xff] }
 0x4ee   : > { %3084 = vst.msk [vmem:[#allocation3 + $0x48] sm:$0xff] %vm11559_vm5, %v8861_v36  ;;  %vm11569_vm5 = vmmov %vm11550_vm0  ;;  %v8959_v28 = vld [vmem:[#allocation2 + $0x170] sm:$0xff]  ;;  %6621 = vmatprep.subr.bf16.mxu1 %v6620_v45 }
 0x4ef   : > { %3083 = vst.msk [vmem:[#allocation3 + $0x40] sm:$0xff] %vm11560_vm8, %v8863_v4  ;;  %vm11570_vm8 = vmmov %vm11550_vm0  ;;  %4056 = vrot.lane.b32.xlu0 %v8847_v5, %s11169_s21  ;;  %6623 = vmatpush3.bf16.msra.mxu1 %v6620_v45 }
 0x4f0   : > { %3086 = vst.msk [vmem:[#allocation3 + $0x58] sm:$0xff] %vm11561_vm9, %v8869_v32  ;;  %vm11571_vm9 = vmmov %vm11550_vm0  ;;  %4058 = vrot.lane.b32.xlu1 %v8845_v38, %s11169_s21  ;;  %6625 = vmatprep.subr.bf16.mxu1 %v6624_v17 }
 0x4f1   : > { %3085 = vst.msk [vmem:[#allocation3 + $0x50] sm:$0xff] %vm11562_vm10, %v8871_v56  ;;  %vm11572_vm10 = vmmov %vm11550_vm0 }
 0x4f2   : > { %3088 = vst.msk [vmem:[#allocation3 + $0x68] sm:$0xff] %vm11563_vm3, %v8881_v57  ;;  %vm11573_vm3 = vmmov %vm11550_vm0 }
 0x4f3   : > { %3087 = vst.msk [vmem:[#allocation3 + $0x60] sm:$0xff] %vm11564_vm1, %v8883_v6  ;;  %vm11574_vm1 = vmmov %vm11550_vm0  ;;  %3545 = vrot.lane.b32.xlu0 %v8847_v5, %s11255_s22  ;;  %6627 = vmatpush3.bf16.msra.mxu1 %v6624_v17 }
 0x4f4   : > { %3090 = vst.msk [vmem:[#allocation3 + $0x78] sm:$0xff] %vm11565_vm11, %v8889_v54  ;;  %vm11575_vm11 = vmmov %vm11550_vm0  ;;  %3547 = vrot.lane.b32.xlu1 %v8845_v38, %s11255_s22 }
 0x4f5   : > { %3089 = vst.msk [vmem:[#allocation3 + $0x70] sm:$0xff] %vm11566_vm2, %v8891_v39  ;;  %vm11576_vm2 = vmmov %vm11550_vm0 }
 0x4f6   : > { %3092 = vst.msk [vmem:[#allocation3 + $0x88] sm:$0xff] %vm11567_vm15, %v8897_v26  ;;  %vm11577_vm15 = vmmov %vm11550_vm0 }
 0x4f7   : > { %3091 = vst.msk [vmem:[#allocation3 + $0x80] sm:$0xff] %vm11550_vm0, %v8899_v49  ;;  %3104 = vst.msk [vmem:[#allocation3 + $0xe8] sm:$0xff] %vm11550_vm0, %v8951_v43  ;;  %4185 = vrot.lane.b32.xlu0 %v8847_v5, %s11256_s29 }
 0x4f8   : > { %3094 = vst.msk [vmem:[#allocation3 + $0x98] sm:$0xff] %vm11568_vm7, %v8905_v63  ;;  %vm11578_vm7 = vmmov %vm11550_vm0  ;;  %4187 = vrot.lane.b32.xlu1 %v8845_v38, %s11256_s29 }
 0x4f9   : > { %3093 = vst.msk [vmem:[#allocation3 + $0x90] sm:$0xff] %vm11569_vm5, %v8907_v59  ;;  %vm11579_vm5 = vmmov %vm11550_vm0 }
 0x4fa   : > { %3096 = vst.msk [vmem:[#allocation3 + $0xa8] sm:$0xff] %vm11570_vm8, %v8916_v61  ;;  %vm11580_vm8 = vmmov %vm11550_vm0  ;;  %vm11592_vm0 = vcmask 97346  }
 0x4fb   : > { %3095 = vst.msk [vmem:[#allocation3 + $0xa0] sm:$0xff] %vm11571_vm9, %v8918_v13  ;;  %3676 = vrot.lane.b32.xlu0 %v8847_v5, %s11257_s23  ;;  %vm11582_vm9 = vcmask 1043456  }
 0x4fc   : > { %3098 = vst.msk [vmem:[#allocation3 + $0xb8] sm:$0xff] %vm11572_vm10, %v8924_v19  ;;  %3678 = vrot.lane.b32.xlu1 %v8845_v38, %s11257_s23  ;;  %6542 = vmatprep.subr.msk.mxu1 %vm11582_vm9, %v4605_v12  ;;  %vm11583_vm10 = vmmov %vm11582_vm9  ;;  %vm11596_vm9 = vcmask 228544  }
 0x4fd   : > { %3097 = vst.msk [vmem:[#allocation3 + $0xb0] sm:$0xff] %vm11573_vm3, %v8926_v47  ;;  %6543 = vmatpush3.msk.msra.mxu1 %vm11583_vm10, %v4605_v12  ;;  %vm11587_vm3 = vcmask 130144   ;;  %vm11597_vm10 = vmmov %vm11596_vm9 }
 0x4fe   : > { %3100 = vst.msk [vmem:[#allocation3 + $0xc8] sm:$0xff] %vm11574_vm1, %v8932_v30  ;;  %vm11588_vm1 = vmmov %vm11587_vm3 }
 0x4ff   : > { %3099 = vst.msk [vmem:[#allocation3 + $0xc0] sm:$0xff] %vm11575_vm11, %v8934_v55  ;;  %3680 = vrot.lane.b32.xlu0 %v3029_v18, %s11257_s23  ;;  %vm11589_vm11 = vcmask 162944  }
 0x500   : > { %3102 = vst.msk [vmem:[#allocation3 + $0xd8] sm:$0xff] %vm11576_vm2, %v8940_v20  ;;  %4189 = vrot.lane.b32.xlu1 %v3029_v18, %s11256_s29  ;;  %vm11590_vm2 = vcmask 162945  }
 0x501   : > { %3101 = vst.msk [vmem:[#allocation3 + $0xd0] sm:$0xff] %vm11577_vm15, %v8942_v29  ;;  %vm11591_vm15 = vcmask 57376  }
 0x502   : > { %3103 = vst.msk [vmem:[#allocation3 + $0xe0] sm:$0xff] %vm11578_vm7, %v8953_v40  ;;  %vm11593_vm7 = vcmask 189600  }
 0x503   : > { %3106 = vst.msk [vmem:[#allocation3 + $0xf8] sm:$0xff] %vm11579_vm5, %v8959_v28  ;;  %4377 = vrot.lane.b32.xlu0 %v8847_v5, %s11174_s19  ;;  %vm11594_vm5 = vcmask 91200  }
 0x504   : > { %3105 = vst.msk [vmem:[#allocation3 + $0xf0] sm:$0xff] %vm11580_vm8, %v8961_v62  ;;  %4379 = vrot.lane.b32.xlu1 %v8845_v38, %s11174_s19  ;;  %s11585_s19 = smov 32   ;;  %vm11595_vm8 = vcmask 97344  }
 0x507   : > { %3167 = vrot.lane.b32.xlu0 %v8847_v5, %s6675_s30 }
 0x508   : > { %3169 = vrot.lane.b32.xlu1 %v8845_v38, %s6675_s30 }
 0x50b   : > { %3171 = vrot.lane.b32.xlu0 %v3029_v18, %s6675_s30 }
 0x50c   : > { %3868 = vrot.lane.b32.xlu1 %v8847_v5, %s11581_s26 }
 0x50f   : > { %3870 = vrot.lane.b32.xlu0 %v8845_v38, %s11581_s26 }
 0x510   : > { %3872 = vrot.lane.b32.xlu1 %v3029_v18, %s11581_s26 }
 0x513   : > { %4381 = vrot.lane.b32.xlu0 %v3029_v18, %s11585_s19 }
 0x514   : > { %3359 = vrot.lane.b32.xlu1 %v8847_v5, %s11584_s18 }
 0x517   : > { %3361 = vrot.lane.b32.xlu0 %v8845_v38, %s11584_s18 }
 0x518   : > { %3363 = vrot.lane.b32.xlu1 %v3029_v18, %s11584_s18 }
 0x51b   : > { %4060 = vrot.lane.b32.xlu0 %v8855_v31, %s11586_s20 }
 0x51c   : > { %4062 = vrot.lane.b32.xlu1 %v8853_v58, %s11586_s20 }
 0x51f   : > { %3549 = vrot.lane.b32.xlu0 %v8855_v31, %s11255_s22 }
 0x520   : > { %3551 = vrot.lane.b32.xlu1 %v8853_v58, %s11255_s22 }
 0x523   : > { %4191 = vrot.lane.b32.xlu0 %v8855_v31, %s11256_s29 }
 0x524   : > { %4193 = vrot.lane.b32.xlu1 %v8853_v58, %s11256_s29 }
 0x527   : > { %3682 = vrot.lane.b32.xlu0 %v8855_v31, %s11257_s23 }
 0x528   : > { %3684 = vrot.lane.b32.xlu1 %v8853_v58, %s11257_s23 }
 0x52b   : > { %3686 = vrot.lane.b32.xlu0 %v3032_v25, %s11257_s23 }
 0x52c   : > { %4195 = vrot.lane.b32.xlu1 %v3032_v25, %s11256_s29 }
 0x52f   : > { %4383 = vrot.lane.b32.xlu0 %v8855_v31, %s11585_s19 }
 0x530   : > { %4385 = vrot.lane.b32.xlu1 %v8853_v58, %s11585_s19 }
 0x533   : > { %3173 = vrot.lane.b32.xlu0 %v8855_v31, %s6675_s30 }
 0x534   : > { %3175 = vrot.lane.b32.xlu1 %v8853_v58, %s6675_s30 }
 0x537   : > { %3177 = vrot.lane.b32.xlu0 %v3032_v25, %s6675_s30 }
 0x538   : > { %3874 = vrot.lane.b32.xlu1 %v8855_v31, %s11581_s26 }
 0x53b   : > { %3876 = vrot.lane.b32.xlu0 %v8853_v58, %s11581_s26 }
 0x53c   : > { %3878 = vrot.lane.b32.xlu1 %v3032_v25, %s11581_s26 }
 0x53f   : > { %4387 = vrot.lane.b32.xlu0 %v3032_v25, %s11585_s19 }
 0x540   : > { %3365 = vrot.lane.b32.xlu1 %v8855_v31, %s11584_s18 }
 0x543   : > { %3367 = vrot.lane.b32.xlu0 %v8853_v58, %s11584_s18 }
 0x544   : > { %3369 = vrot.lane.b32.xlu1 %v3032_v25, %s11584_s18  ;;  %v3035_v25 = vld [vmem:[#allocation2 + $0x70] sm:$0x3] }
 0x545   : > { %v3542_v0 = vpop.permute.xlu0 %3541 }
 0x546   : > { %v3544_v17 = vpop.permute.xlu1 %3543  ;;  %3637 = vst.msk [vmem:[#allocation3] sm:$0xff] %vm11588_vm1, %v3542_v0 }
 0x547   : > { %3638 = vst.msk [vmem:[#allocation3 + $0x8] sm:$0xff] %vm11587_vm3, %v3544_v17  ;;  %4064 = vrot.lane.b32.xlu0 %v8863_v4, %s11586_s20  ;;  %vm11598_vm3 = vmmov %vm11588_vm1 }
 0x548   : > { %4066 = vrot.lane.b32.xlu1 %v8861_v36, %s11586_s20 }
 0x549   : > { %v3671_v5 = vpop.permute.xlu0 %3670 }
 0x54a   : > { %v3673_v38 = vpop.permute.xlu1 %3672  ;;  %3814 = vst.msk [vmem:[#allocation3 - $0x1] sm:$0xfe] %vm11590_vm2, %v3671_v5  ;;  %vm11600_vm2 = vcmask 261345  }
 0x54b   : > { %3815 = vst.msk [vmem:[#allocation3 + $0x7] sm:$0xff] %vm11589_vm11, %v3673_v38  ;;  %3553 = vrot.lane.b32.xlu0 %v8863_v4, %s11255_s22  ;;  %vm11599_vm11 = vcmask 261344  }
 0x54c   : > { %3555 = vrot.lane.b32.xlu1 %v8861_v36, %s11255_s22 }
 0x54d   : > { %v3675_v31 = vpop.permute.xlu0 %3674 }
 0x54e   : > { %v3162_v58 = vpop.permute.xlu1 %3161  ;;  %3816 = vst.msk [vmem:[#allocation3 + $0xf] sm:$0x1] %vm1474_vm12, %v3675_v31 }
 0x54f   : > { %3302 = vst.msk [vmem:[#allocation3 + $0xf] sm:$0xfe] %vm948_vm4, %v3162_v58  ;;  %4197 = vrot.lane.b32.xlu0 %v8863_v4, %s11256_s29 }
 0x550   : > { %4199 = vrot.lane.b32.xlu1 %v8861_v36, %s11256_s29 }
 0x551   : > { %v3164_v52 = vpop.permute.xlu0 %3163 }
 0x552   : > { %v3166_v18 = vpop.permute.xlu1 %3165  ;;  %3303 = vst.msk [vmem:[#allocation3 + $0x17] sm:$0xff] %vm950_vm6, %v3164_v52 }
 0x553   : > { %3304 = vst.msk [vmem:[#allocation3 + $0x1f] sm:$0x1] %vm11591_vm15, %v3166_v18  ;;  %3688 = vrot.lane.b32.xlu0 %v8863_v4, %s11257_s23  ;;  %vm11601_vm15 = vcmask 162944  }
 0x554   : > { %3690 = vrot.lane.b32.xlu1 %v8861_v36, %s11257_s23 }
 0x555   : > { %v3863_v12 = vpop.permute.xlu0 %3862 }
 0x556   : > { %v3865_v45 = vpop.permute.xlu1 %3864  ;;  %4006 = vst.msk [vmem:[#allocation3 - $0x2] sm:$0xfc] %vm1665_vm14, %v3863_v12 }
 0x557   : > { %4007 = vst.msk [vmem:[#allocation3 + $0x6] sm:$0xff] %vm1667_vm13, %v3865_v45  ;;  %3692 = vrot.lane.b32.xlu0 %v3035_v25, %s11257_s23 }
 0x558   : > { %4201 = vrot.lane.b32.xlu1 %v3035_v25, %s11256_s29 }
 0x559   : > { %v3867_v0 = vpop.permute.xlu0 %3866 }
 0x55a   : > { %v3354_v17 = vpop.permute.xlu1 %3353  ;;  %4008 = vst.msk [vmem:[#allocation3 + $0xe] sm:$0x3] %vm11593_vm7, %v3867_v0  ;;  %vm11603_vm7 = vcmask 254176  }
 0x55b   : > { %3494 = vst.msk [vmem:[#allocation3 + $0xe] sm:$0xfc] %vm11592_vm0, %v3354_v17  ;;  %4389 = vrot.lane.b32.xlu0 %v8863_v4, %s11585_s19  ;;  %vm11602_vm0 = vcmask 162945  }
 0x55c   : > { %4391 = vrot.lane.b32.xlu1 %v8861_v36, %s11585_s19 }
 0x55d   : > { %v3356_v5 = vpop.permute.xlu0 %3355 }
 0x55e   : > { %v3358_v38 = vpop.permute.xlu1 %3357  ;;  %3495 = vst.msk [vmem:[#allocation3 + $0x16] sm:$0xff] %vm11595_vm8, %v3356_v5  ;;  %vm11605_vm8 = vcmask 294146  }
 0x55f   : > { %3496 = vst.msk [vmem:[#allocation3 + $0x1e] sm:$0x3] %vm11594_vm5, %v3358_v38  ;;  %3179 = vrot.lane.b32.xlu0 %v8863_v4, %s6675_s30  ;;  %vm11604_vm5 = vcmask 294144  }
 0x560   : > { %3181 = vrot.lane.b32.xlu1 %v8861_v36, %s6675_s30 }
 0x561   : > { %v4057_v31 = vpop.permute.xlu0 %4056 }
 0x562   : > { %v4059_v58 = vpop.permute.xlu1 %4058  ;;  %4152 = vst.msk [vmem:[#allocation3] sm:$0xff] %vm11597_vm10, %v4057_v31  ;;  %vm11607_vm10 = vcmask 293888  }
 0x563   : > { %4153 = vst.msk [vmem:[#allocation3 + $0x8] sm:$0xff] %vm11596_vm9, %v4059_v58  ;;  %3183 = vrot.lane.b32.xlu0 %v3035_v25, %s6675_s30  ;;  %vm11606_vm9 = vcmask 57376  }
 0x564   : > { %3880 = vrot.lane.b32.xlu1 %v8863_v4, %s11581_s26 }
 0x565   : > { %v3546_v52 = vpop.permute.xlu0 %3545 }
 0x566   : > { %v3548_v18 = vpop.permute.xlu1 %3547  ;;  %3639 = vst.msk [vmem:[#allocation3 + $0x10] sm:$0xff] %vm11588_vm1, %v3546_v52  ;;  %vm11609_vm1 = vcmask 97346  }
 0x567   : > { %3640 = vst.msk [vmem:[#allocation3 + $0x18] sm:$0xff] %vm11598_vm3, %v3548_v18  ;;  %3882 = vrot.lane.b32.xlu0 %v8861_v36, %s11581_s26  ;;  %vm11608_vm3 = vcmask 189600  }
 0x568   : > { %3884 = vrot.lane.b32.xlu1 %v3035_v25, %s11581_s26 }
 0x569   : > { %v4186_v12 = vpop.permute.xlu0 %4185 }
 0x56a   : > { %v4188_v45 = vpop.permute.xlu1 %4187  ;;  %4329 = vst.msk [vmem:[#allocation3 - $0x1] sm:$0xfe] %vm11600_vm2, %v4186_v12  ;;  %vm11611_vm2 = vcmask 91200  }
 0x56b   : > { %4330 = vst.msk [vmem:[#allocation3 + $0x7] sm:$0xff] %vm11599_vm11, %v4188_v45  ;;  %4393 = vrot.lane.b32.xlu0 %v3035_v25, %s11585_s19  ;;  %vm11610_vm11 = vcmask 288000  }
 0x56c   : > { %3371 = vrot.lane.b32.xlu1 %v8863_v4, %s11584_s18 }
 0x56d   : > { %v3677_v0 = vpop.permute.xlu0 %3676 }
 0x56e   : > { %v3679_v17 = vpop.permute.xlu1 %3678  ;;  %3817 = vst.msk [vmem:[#allocation3 + $0xf] sm:$0xfe] %vm11602_vm0, %v3677_v0  ;;  %vm11613_vm0 = vcmask 228544  }
 0x56f   : > { %3818 = vst.msk [vmem:[#allocation3 + $0x17] sm:$0xff] %vm11601_vm15, %v3679_v17  ;;  %3373 = vrot.lane.b32.xlu0 %v8861_v36, %s11584_s18  ;;  %v3038_v17 = vld [vmem:[#allocation2 + $0x88] sm:$0x3]  ;;  %vm11612_vm15 = vcmask 97344  }
 0x570   : > { %3375 = vrot.lane.b32.xlu1 %v3035_v25, %s11584_s18 }
 0x571   : > { %v3681_v5 = vpop.permute.xlu0 %3680 }
 0x572   : > { %v4190_v38 = vpop.permute.xlu1 %4189  ;;  %3819 = vst.msk [vmem:[#allocation3 + $0x1f] sm:$0x1] %vm1474_vm12, %v3681_v5 }
 0x573   : > { %4331 = vst.msk [vmem:[#allocation3 + $0xf] sm:$0x1] %vm11603_vm7, %v4190_v38  ;;  %4068 = vrot.lane.b32.xlu0 %v8871_v56, %s11586_s20  ;;  %vm11614_vm7 = vmmov %vm11613_vm0 }
 0x574   : > { %4070 = vrot.lane.b32.xlu1 %v8869_v32, %s11586_s20 }
 0x575   : > { %v4378_v58 = vpop.permute.xlu0 %4377 }
 0x576   : > { %v4380_v4 = vpop.permute.xlu1 %4379  ;;  %4521 = vst.msk [vmem:[#allocation3 - $0x2] sm:$0xfc] %vm11605_vm8, %v4378_v58  ;;  %vm11616_vm8 = vcmask 130144  }
 0x577   : > { %4522 = vst.msk [vmem:[#allocation3 + $0x6] sm:$0xff] %vm11604_vm5, %v4380_v4  ;;  %3557 = vrot.lane.b32.xlu0 %v8871_v56, %s11255_s22  ;;  %vm11615_vm5 = vmmov %vm11607_vm10 }
 0x578   : > { %3559 = vrot.lane.b32.xlu1 %v8869_v32, %s11255_s22 }
 0x579   : > { %v3168_v25 = vpop.permute.xlu0 %3167 }
 0x57a   : > { %v3170_v36 = vpop.permute.xlu1 %3169  ;;  %3305 = vst.msk [vmem:[#allocation3 + $0x1f] sm:$0xfe] %vm948_vm4, %v3168_v25 }
 0x57b   : > { %3306 = vst.msk [vmem:[#allocation3 + $0x27] sm:$0xff] %vm950_vm6, %v3170_v36  ;;  %4203 = vrot.lane.b32.xlu0 %v8871_v56, %s11256_s29 }
 0x57c   : > { %4205 = vrot.lane.b32.xlu1 %v8869_v32, %s11256_s29 }
 0x57d   : > { %v3172_v18 = vpop.permute.xlu0 %3171 }
 0x57e   : > { %v3869_v31 = vpop.permute.xlu1 %3868  ;;  %v4569_v52 = vld [vmem:[#allocation3] sm:$0xff]  ;;  %3307 = vst.msk [vmem:[#allocation3 + $0x2f] sm:$0x1] %vm11606_vm9, %v3172_v18  ;;  %vm11617_vm9 = vmmov %vm11616_vm8 }
 0x57f   : > { %4009 = vst.msk [vmem:[#allocation3 + $0xe] sm:$0xfc] %vm1665_vm14, %v3869_v31  ;;  %6544 = vmatprep.mubr.msk.f32.mxu1 %vm11607_vm10, %v4569_v52  ;;  %3694 = vrot.lane.b32.xlu0 %v8871_v56, %s11257_s23  ;;  %vm11618_vm10 = vcmask 261344  }
 0x580   : > { %3696 = vrot.lane.b32.xlu1 %v8869_v32, %s11257_s23 }
 0x581   : > { %v3871_v12 = vpop.permute.xlu0 %3870 }
 0x582   : > { %v3873_v45 = vpop.permute.xlu1 %3872  ;;  %4010 = vst.msk [vmem:[#allocation3 + $0x16] sm:$0xff] %vm1667_vm13, %v3871_v12 }
 0x583   : > { %4011 = vst.msk [vmem:[#allocation3 + $0x1e] sm:$0x3] %vm11608_vm3, %v3873_v45  ;;  %3698 = vrot.lane.b32.xlu0 %v3038_v17, %s11257_s23  ;;  %vm11619_vm3 = vcmask 261345  }
 0x584   : > { %4207 = vrot.lane.b32.xlu1 %v3038_v17, %s11256_s29 }
 0x585   : > { %v4382_v38 = vpop.permute.xlu0 %4381 }
 0x586   : > { %v3360_v0 = vpop.permute.xlu1 %3359  ;;  %4523 = vst.msk [vmem:[#allocation3 + $0xe] sm:$0x3] %vm11610_vm11, %v4382_v38  ;;  %vm11621_vm11 = vcmask 162945  }
 0x587   : > { %3497 = vst.msk [vmem:[#allocation3 + $0x1e] sm:$0xfc] %vm11609_vm1, %v3360_v0  ;;  %4395 = vrot.lane.b32.xlu0 %v8871_v56, %s11585_s19  ;;  %vm11620_vm1 = vcmask 162944  }
 0x588   : > { %4397 = vrot.lane.b32.xlu1 %v8869_v32, %s11585_s19 }
 0x589   : > { %v3362_v4 = vpop.permute.xlu0 %3361 }
 0x58a   : > { %v3364_v5 = vpop.permute.xlu1 %3363  ;;  %3498 = vst.msk [vmem:[#allocation3 + $0x26] sm:$0xff] %vm11612_vm15, %v3362_v4  ;;  %vm11623_vm15 = vcmask 294144  }
 0x58b   : > { %3499 = vst.msk [vmem:[#allocation3 + $0x2e] sm:$0x3] %vm11611_vm2, %v3364_v5  ;;  %3185 = vrot.lane.b32.xlu0 %v8871_v56, %s6675_s30  ;;  %vm11622_vm2 = vcmask 254176  }
 0x58c   : > { %3187 = vrot.lane.b32.xlu1 %v8869_v32, %s6675_s30 }
 0x58d   : > { %v4061_v36 = vpop.permute.xlu0 %4060  ;;  %v4570_v25 = vld [vmem:[#allocation3 + $0x8] sm:$0xff] }
 0x58e   : > { %v4063_v58 = vpop.permute.xlu1 %4062  ;;  %4154 = vst.msk [vmem:[#allocation3 + $0x10] sm:$0xff] %vm11614_vm7, %v4061_v36  ;;  %6545 = vmatmul.mubr.msk.f32.vlgmr.msra.gmra.mrb[0].mxu1 %vm11615_vm5, %v4570_v25  ;;  %vm11625_vm7 = vcmask 57376  }
 0x58f   : > { %4155 = vst.msk [vmem:[#allocation3 + $0x18] sm:$0xff] %vm11613_vm0, %v4063_v58  ;;  %3189 = vrot.lane.b32.xlu0 %v3038_v17, %s6675_s30  ;;  %vm11624_vm0 = vcmask 294146  }
 0x590   : > { %3886 = vrot.lane.b32.xlu1 %v8871_v56, %s11581_s26 }
 0x591   : > { %v3550_v18 = vpop.permute.xlu0 %3549 }
 0x592   : > { %v3552_v31 = vpop.permute.xlu1 %3551  ;;  %3641 = vst.msk [vmem:[#allocation3 + $0x20] sm:$0xff] %vm11617_vm9, %v3550_v18  ;;  %vm11627_vm9 = vcmask 97346  }
 0x593   : > { %3642 = vst.msk [vmem:[#allocation3 + $0x28] sm:$0xff] %vm11616_vm8, %v3552_v31  ;;  %3888 = vrot.lane.b32.xlu0 %v8869_v32, %s11581_s26  ;;  %vm11626_vm8 = vcmask 189600  }
 0x594   : > { %3890 = vrot.lane.b32.xlu1 %v3038_v17, %s11581_s26 }
 0x595   : > { %v4192_v45 = vpop.permute.xlu0 %4191 }
 0x596   : > { %v4194_v52 = vpop.permute.xlu1 %4193  ;;  %4332 = vst.msk [vmem:[#allocation3 + $0xf] sm:$0xfe] %vm11619_vm3, %v4192_v45  ;;  %vm11629_vm3 = vcmask 91200  }
 0x597   : > { %4333 = vst.msk [vmem:[#allocation3 + $0x17] sm:$0xff] %vm11618_vm10, %v4194_v52  ;;  %4399 = vrot.lane.b32.xlu0 %v3038_v17, %s11585_s19  ;;  %v3041_v52 = vld [vmem:[#allocation2 + $0xa0] sm:$0x3]  ;;  %vm11628_vm10 = vcmask 288000  }
 0x598   : > { %3377 = vrot.lane.b32.xlu1 %v8871_v56, %s11584_s18 }
 0x599   : > { %v3683_v0 = vpop.permute.xlu0 %3682 }
 0x59a   : > { %v3685_v12 = vpop.permute.xlu1 %3684  ;;  %3820 = vst.msk [vmem:[#allocation3 + $0x1f] sm:$0xfe] %vm11621_vm11, %v3683_v0  ;;  %vm11631_vm11 = vcmask 228544  }
 0x59b   : > { %3821 = vst.msk [vmem:[#allocation3 + $0x27] sm:$0xff] %vm11620_vm1, %v3685_v12  ;;  %3379 = vrot.lane.b32.xlu0 %v8869_v32, %s11584_s18  ;;  %vm11630_vm1 = vcmask 97344  }
 0x59c   : > { %3381 = vrot.lane.b32.xlu1 %v3038_v17, %s11584_s18 }
 0x59d   : > { %v3687_v5 = vpop.permute.xlu0 %3686 }
 0x59e   : > { %v4196_v38 = vpop.permute.xlu1 %4195  ;;  %3822 = vst.msk [vmem:[#allocation3 + $0x2f] sm:$0x1] %vm1474_vm12, %v3687_v5 }
 0x59f   : > { %4334 = vst.msk [vmem:[#allocation3 + $0x1f] sm:$0x1] %vm11622_vm2, %v4196_v38  ;;  %4072 = vrot.lane.b32.xlu0 %v8883_v6, %s11586_s20  ;;  %vm11632_vm2 = vmmov %vm11631_vm11 }
 0x5a0   : > { %4074 = vrot.lane.b32.xlu1 %v8881_v57, %s11586_s20 }
 0x5a1   : > { %v4384_v4 = vpop.permute.xlu0 %4383 }
 0x5a2   : > { %v4386_v56 = vpop.permute.xlu1 %4385  ;;  %4524 = vst.msk [vmem:[#allocation3 + $0xe] sm:$0xfc] %vm11624_vm0, %v4384_v4  ;;  %vm11634_vm0 = vcmask 130144  }
 0x5a3   : > { %4525 = vst.msk [vmem:[#allocation3 + $0x16] sm:$0xff] %vm11623_vm15, %v4386_v56  ;;  %3561 = vrot.lane.b32.xlu0 %v8883_v6, %s11255_s22  ;;  %vm11633_vm15 = vmmov %vm11615_vm5 }
 0x5a4   : > { %3563 = vrot.lane.b32.xlu1 %v8881_v57, %s11255_s22 }
 0x5a5   : > { %v3174_v17 = vpop.permute.xlu0 %3173 }
 0x5a6   : > { %v3176_v32 = vpop.permute.xlu1 %3175  ;;  %3308 = vst.msk [vmem:[#allocation3 + $0x2f] sm:$0xfe] %vm948_vm4, %v3174_v17 }
 0x5a7   : > { %3309 = vst.msk [vmem:[#allocation3 + $0x37] sm:$0xff] %vm950_vm6, %v3176_v32  ;;  %4209 = vrot.lane.b32.xlu0 %v8883_v6, %s11256_s29 }
 0x5a8   : > { %4211 = vrot.lane.b32.xlu1 %v8881_v57, %s11256_s29 }
 0x5a9   : > { %v3178_v36 = vpop.permute.xlu0 %3177 }
 0x5aa   : > { %v3875_v58 = vpop.permute.xlu1 %3874  ;;  %v4571_v25 = vld [vmem:[#allocation3 + $0x10] sm:$0xff]  ;;  %3310 = vst.msk [vmem:[#allocation3 + $0x3f] sm:$0x1] %vm11625_vm7, %v3178_v36  ;;  %vm11635_vm7 = vmmov %vm11634_vm0 }
 0x5ab   : > { %4012 = vst.msk [vmem:[#allocation3 + $0x1e] sm:$0xfc] %vm1665_vm14, %v3875_v58  ;;  %6547 = vmatprep.mubr.msk.f32.mxu1 %vm11615_vm5, %v4571_v25  ;;  %3700 = vrot.lane.b32.xlu0 %v8883_v6, %s11257_s23  ;;  %vm11636_vm5 = vcmask 261344  }
 0x5ac   : > { %3702 = vrot.lane.b32.xlu1 %v8881_v57, %s11257_s23 }
 0x5ad   : > { %v3877_v18 = vpop.permute.xlu0 %3876 }
 0x5ae   : > { %v3879_v31 = vpop.permute.xlu1 %3878  ;;  %4013 = vst.msk [vmem:[#allocation3 + $0x26] sm:$0xff] %vm1667_vm13, %v3877_v18 }
 0x5af   : > { %4014 = vst.msk [vmem:[#allocation3 + $0x2e] sm:$0x3] %vm11626_vm8, %v3879_v31  ;;  %3704 = vrot.lane.b32.xlu0 %v3041_v52, %s11257_s23  ;;  %vm11637_vm8 = vcmask 261345  }
 0x5b0   : > { %4213 = vrot.lane.b32.xlu1 %v3041_v52, %s11256_s29 }
 0x5b1   : > { %v4388_v12 = vpop.permute.xlu0 %4387 }
 0x5b2   : > { %v3366_v45 = vpop.permute.xlu1 %3365  ;;  %4526 = vst.msk [vmem:[#allocation3 + $0x1e] sm:$0x3] %vm11628_vm10, %v4388_v12  ;;  %vm11639_vm10 = vcmask 162945  }
 0x5b3   : > { %3500 = vst.msk [vmem:[#allocation3 + $0x2e] sm:$0xfc] %vm11627_vm9, %v3366_v45  ;;  %4401 = vrot.lane.b32.xlu0 %v8883_v6, %s11585_s19  ;;  %vm11638_vm9 = vcmask 162944  }
 0x5b4   : > { %4403 = vrot.lane.b32.xlu1 %v8881_v57, %s11585_s19 }
 0x5b5   : > { %v3368_v38 = vpop.permute.xlu0 %3367 }
 0x5b6   : > { %v3370_v0 = vpop.permute.xlu1 %3369  ;;  %3501 = vst.msk [vmem:[#allocation3 + $0x36] sm:$0xff] %vm11630_vm1, %v3368_v38  ;;  %vm11641_vm1 = vcmask 294144  }
 0x5b7   : > { %3502 = vst.msk [vmem:[#allocation3 + $0x3e] sm:$0x3] %vm11629_vm3, %v3370_v0  ;;  %3191 = vrot.lane.b32.xlu0 %v8883_v6, %s6675_s30  ;;  %vm11640_vm3 = vcmask 254176  }
 0x5b8   : > { %3193 = vrot.lane.b32.xlu1 %v8881_v57, %s6675_s30 }
 0x5b9   : > { %v4065_v56 = vpop.permute.xlu0 %4064  ;;  %v4572_v4 = vld [vmem:[#allocation3 + $0x18] sm:$0xff] }
 0x5ba   : > { %v4067_v5 = vpop.permute.xlu1 %4066  ;;  %4156 = vst.msk [vmem:[#allocation3 + $0x20] sm:$0xff] %vm11632_vm2, %v4065_v56  ;;  %6548 = vmatmul.mubr.msk.f32.gmra.mrb[2].mxu1 %vm11633_vm15, %v4572_v4  ;;  %vm11643_vm2 = vcmask 57376  }
 0x5bb   : > { %4157 = vst.msk [vmem:[#allocation3 + $0x28] sm:$0xff] %vm11631_vm11, %v4067_v5  ;;  %3195 = vrot.lane.b32.xlu0 %v3041_v52, %s6675_s30  ;;  %vm11642_vm11 = vcmask 294146  }
 0x5bc   : > { %3892 = vrot.lane.b32.xlu1 %v8883_v6, %s11581_s26 }
 0x5bd   : > { %v3554_v17 = vpop.permute.xlu0 %3553 }
 0x5be   : > { %v3556_v32 = vpop.permute.xlu1 %3555  ;;  %3643 = vst.msk [vmem:[#allocation3 + $0x30] sm:$0xff] %vm11635_vm7, %v3554_v17  ;;  %vm11645_vm7 = vcmask 97346  }
 0x5bf   : > { %3644 = vst.msk [vmem:[#allocation3 + $0x38] sm:$0xff] %vm11634_vm0, %v3556_v32  ;;  %3894 = vrot.lane.b32.xlu0 %v8881_v57, %s11581_s26  ;;  %vm11644_vm0 = vcmask 189600   ;;  %v3044_v32 = vld [vmem:[#allocation2 + $0xb8] sm:$0x3] }
 0x5c0   : > { %3896 = vrot.lane.b32.xlu1 %v3041_v52, %s11581_s26 }
 0x5c1   : > { %v4198_v36 = vpop.permute.xlu0 %4197 }
 0x5c2   : > { %v4200_v58 = vpop.permute.xlu1 %4199  ;;  %4335 = vst.msk [vmem:[#allocation3 + $0x1f] sm:$0xfe] %vm11637_vm8, %v4198_v36  ;;  %vm11647_vm8 = vcmask 91200  }
 0x5c3   : > { %4336 = vst.msk [vmem:[#allocation3 + $0x27] sm:$0xff] %vm11636_vm5, %v4200_v58  ;;  %4405 = vrot.lane.b32.xlu0 %v3041_v52, %s11585_s19  ;;  %vm11646_vm5 = vcmask 288000  }
 0x5c4   : > { %3383 = vrot.lane.b32.xlu1 %v8883_v6, %s11584_s18 }
 0x5c5   : > { %v3689_v31 = vpop.permute.xlu0 %3688 }
 0x5c6   : > { %v3691_v25 = vpop.permute.xlu1 %3690  ;;  %3823 = vst.msk [vmem:[#allocation3 + $0x2f] sm:$0xfe] %vm11639_vm10, %v3689_v31  ;;  %vm11649_vm10 = vcmask 228544  }
 0x5c7   : > { %3824 = vst.msk [vmem:[#allocation3 + $0x37] sm:$0xff] %vm11638_vm9, %v3691_v25  ;;  %3385 = vrot.lane.b32.xlu0 %v8881_v57, %s11584_s18  ;;  %vm11648_vm9 = vcmask 97344  }
 0x5c8   : > { %3387 = vrot.lane.b32.xlu1 %v3041_v52, %s11584_s18 }
 0x5c9   : > { %v3693_v45 = vpop.permute.xlu0 %3692 }
 0x5ca   : > { %v4202_v18 = vpop.permute.xlu1 %4201  ;;  %3825 = vst.msk [vmem:[#allocation3 + $0x3f] sm:$0x1] %vm1474_vm12, %v3693_v45 }
 0x5cb   : > { %4337 = vst.msk [vmem:[#allocation3 + $0x2f] sm:$0x1] %vm11640_vm3, %v4202_v18  ;;  %4076 = vrot.lane.b32.xlu0 %v8891_v39, %s11586_s20  ;;  %vm11650_vm3 = vmmov %vm11649_vm10 }
 0x5cc   : > { %4078 = vrot.lane.b32.xlu1 %v8889_v54, %s11586_s20 }
 0x5cd   : > { %v4390_v12 = vpop.permute.xlu0 %4389 }
 0x5ce   : > { %v4392_v6 = vpop.permute.xlu1 %4391  ;;  %4527 = vst.msk [vmem:[#allocation3 + $0x1e] sm:$0xfc] %vm11642_vm11, %v4390_v12  ;;  %vm11652_vm11 = vcmask 130144  }
 0x5cf   : > { %4528 = vst.msk [vmem:[#allocation3 + $0x26] sm:$0xff] %vm11641_vm1, %v4392_v6  ;;  %3565 = vrot.lane.b32.xlu0 %v8891_v39, %s11255_s22  ;;  %vm11651_vm1 = vmmov %vm11633_vm15 }
 0x5d0   : > { %3567 = vrot.lane.b32.xlu1 %v8889_v54, %s11255_s22 }
 0x5d1   : > { %v3180_v52 = vpop.permute.xlu0 %3179 }
 0x5d2   : > { %v3182_v57 = vpop.permute.xlu1 %3181  ;;  %3311 = vst.msk [vmem:[#allocation3 + $0x3f] sm:$0xfe] %vm948_vm4, %v3180_v52 }
 0x5d3   : > { %3312 = vst.msk [vmem:[#allocation3 + $0x47] sm:$0xff] %vm950_vm6, %v3182_v57  ;;  %4215 = vrot.lane.b32.xlu0 %v8891_v39, %s11256_s29 }
 0x5d4   : > { %4217 = vrot.lane.b32.xlu1 %v8889_v54, %s11256_s29 }
 0x5d5   : > { %v3184_v38 = vpop.permute.xlu0 %3183 }
 0x5d6   : > { %v3881_v0 = vpop.permute.xlu1 %3880  ;;  %v4573_v5 = vld [vmem:[#allocation3 + $0x20] sm:$0xff]  ;;  %3313 = vst.msk [vmem:[#allocation3 + $0x4f] sm:$0x1] %vm11643_vm2, %v3184_v38  ;;  %vm11653_vm2 = vmmov %vm11652_vm11 }
 0x5d7   : > { %4015 = vst.msk [vmem:[#allocation3 + $0x2e] sm:$0xfc] %vm1665_vm14, %v3881_v0  ;;  %6550 = vmatprep.mubr.msk.f32.mxu1 %vm11633_vm15, %v4573_v5  ;;  %3706 = vrot.lane.b32.xlu0 %v8891_v39, %s11257_s23  ;;  %vm11654_vm15 = vcmask 261344  }
 0x5d8   : > { %3708 = vrot.lane.b32.xlu1 %v8889_v54, %s11257_s23 }
 0x5d9   : > { %v3883_v4 = vpop.permute.xlu0 %3882 }
 0x5da   : > { %v3885_v56 = vpop.permute.xlu1 %3884  ;;  %4016 = vst.msk [vmem:[#allocation3 + $0x36] sm:$0xff] %vm1667_vm13, %v3883_v4 }
 0x5db   : > { %4017 = vst.msk [vmem:[#allocation3 + $0x3e] sm:$0x3] %vm11644_vm0, %v3885_v56  ;;  %3710 = vrot.lane.b32.xlu0 %v3044_v32, %s11257_s23  ;;  %vm11655_vm0 = vcmask 261345  }
 0x5dc   : > { %4219 = vrot.lane.b32.xlu1 %v3044_v32, %s11256_s29 }
 0x5dd   : > { %v4394_v58 = vpop.permute.xlu0 %4393 }
 0x5de   : > { %v3372_v17 = vpop.permute.xlu1 %3371  ;;  %4529 = vst.msk [vmem:[#allocation3 + $0x2e] sm:$0x3] %vm11646_vm5, %v4394_v58  ;;  %vm11657_vm5 = vcmask 162945  }
 0x5df   : > { %3503 = vst.msk [vmem:[#allocation3 + $0x3e] sm:$0xfc] %vm11645_vm7, %v3372_v17  ;;  %4407 = vrot.lane.b32.xlu0 %v8891_v39, %s11585_s19  ;;  %vm11656_vm7 = vcmask 162944  }
 0x5e0   : > { %4409 = vrot.lane.b32.xlu1 %v8889_v54, %s11585_s19 }
 0x5e1   : > { %v3374_v25 = vpop.permute.xlu0 %3373 }
 0x5e2   : > { %v3376_v36 = vpop.permute.xlu1 %3375  ;;  %3504 = vst.msk [vmem:[#allocation3 + $0x46] sm:$0xff] %vm11648_vm9, %v3374_v25  ;;  %vm11659_vm9 = vcmask 294144  }
 0x5e3   : > { %3505 = vst.msk [vmem:[#allocation3 + $0x4e] sm:$0x3] %vm11647_vm8, %v3376_v36  ;;  %3197 = vrot.lane.b32.xlu0 %v8891_v39, %s6675_s30  ;;  %vm11658_vm8 = vcmask 254176  }
 0x5e4   : > { %3199 = vrot.lane.b32.xlu1 %v8889_v54, %s6675_s30 }
 0x5e5   : > { %v4069_v18 = vpop.permute.xlu0 %4068  ;;  %v4574_v45 = vld [vmem:[#allocation3 + $0x28] sm:$0xff] }
 0x5e6   : > { %v4071_v31 = vpop.permute.xlu1 %4070  ;;  %4158 = vst.msk [vmem:[#allocation3 + $0x30] sm:$0xff] %vm11650_vm3, %v4069_v18  ;;  %6551 = vmatmul.mubr.msk.f32.gmra.mrb[4].mxu1 %vm11651_vm1, %v4574_v45  ;;  %vm11661_vm3 = vcmask 57376   ;;  %v3047_v18 = vld [vmem:[#allocation2 + $0xd0] sm:$0x3] }
 0x5e7   : > { %4159 = vst.msk [vmem:[#allocation3 + $0x38] sm:$0xff] %vm11649_vm10, %v4071_v31  ;;  %3201 = vrot.lane.b32.xlu0 %v3044_v32, %s6675_s30  ;;  %vm11660_vm10 = vcmask 294146  }
 0x5e8   : > { %3898 = vrot.lane.b32.xlu1 %v8891_v39, %s11581_s26 }
 0x5e9   : > { %v3558_v12 = vpop.permute.xlu0 %3557 }
 0x5ea   : > { %v3560_v6 = vpop.permute.xlu1 %3559  ;;  %3645 = vst.msk [vmem:[#allocation3 + $0x40] sm:$0xff] %vm11653_vm2, %v3558_v12  ;;  %vm11663_vm2 = vcmask 97346  }
 0x5eb   : > { %3646 = vst.msk [vmem:[#allocation3 + $0x48] sm:$0xff] %vm11652_vm11, %v3560_v6  ;;  %3900 = vrot.lane.b32.xlu0 %v8889_v54, %s11581_s26  ;;  %vm11662_vm11 = vcmask 189600  }
 0x5ec   : > { %3902 = vrot.lane.b32.xlu1 %v3044_v32, %s11581_s26 }
 0x5ed   : > { %v4204_v52 = vpop.permute.xlu0 %4203 }
 0x5ee   : > { %v4206_v57 = vpop.permute.xlu1 %4205  ;;  %4338 = vst.msk [vmem:[#allocation3 + $0x2f] sm:$0xfe] %vm11655_vm0, %v4204_v52  ;;  %vm11665_vm0 = vcmask 91200  }
 0x5ef   : > { %4339 = vst.msk [vmem:[#allocation3 + $0x37] sm:$0xff] %vm11654_vm15, %v4206_v57  ;;  %4411 = vrot.lane.b32.xlu0 %v3044_v32, %s11585_s19  ;;  %vm11664_vm15 = vcmask 288000  }
 0x5f0   : > { %3389 = vrot.lane.b32.xlu1 %v8891_v39, %s11584_s18 }
 0x5f1   : > { %v3695_v38 = vpop.permute.xlu0 %3694 }
 0x5f2   : > { %v3697_v0 = vpop.permute.xlu1 %3696  ;;  %3826 = vst.msk [vmem:[#allocation3 + $0x3f] sm:$0xfe] %vm11657_vm5, %v3695_v38  ;;  %vm11667_vm5 = vcmask 228544  }
 0x5f3   : > { %3827 = vst.msk [vmem:[#allocation3 + $0x47] sm:$0xff] %vm11656_vm7, %v3697_v0  ;;  %3391 = vrot.lane.b32.xlu0 %v8889_v54, %s11584_s18  ;;  %vm11666_vm7 = vcmask 97344  }
 0x5f4   : > { %3393 = vrot.lane.b32.xlu1 %v3044_v32, %s11584_s18 }
 0x5f5   : > { %v3699_v56 = vpop.permute.xlu0 %3698 }
 0x5f6   : > { %v4208_v5 = vpop.permute.xlu1 %4207  ;;  %3828 = vst.msk [vmem:[#allocation3 + $0x4f] sm:$0x1] %vm1474_vm12, %v3699_v56 }
 0x5f7   : > { %4340 = vst.msk [vmem:[#allocation3 + $0x3f] sm:$0x1] %vm11658_vm8, %v4208_v5  ;;  %4080 = vrot.lane.b32.xlu0 %v8899_v49, %s11586_s20  ;;  %vm11668_vm8 = vmmov %vm11667_vm5 }
 0x5f8   : > { %4082 = vrot.lane.b32.xlu1 %v8897_v26, %s11586_s20 }
 0x5f9   : > { %v4396_v4 = vpop.permute.xlu0 %4395 }
 0x5fa   : > { %v4398_v39 = vpop.permute.xlu1 %4397  ;;  %4530 = vst.msk [vmem:[#allocation3 + $0x2e] sm:$0xfc] %vm11660_vm10, %v4396_v4  ;;  %vm11670_vm10 = vcmask 130144  }
 0x5fb   : > { %4531 = vst.msk [vmem:[#allocation3 + $0x36] sm:$0xff] %vm11659_vm9, %v4398_v39  ;;  %3569 = vrot.lane.b32.xlu0 %v8899_v49, %s11255_s22  ;;  %vm11669_vm9 = vmmov %vm11651_vm1 }
 0x5fc   : > { %3571 = vrot.lane.b32.xlu1 %v8897_v26, %s11255_s22 }
 0x5fd   : > { %v3186_v32 = vpop.permute.xlu0 %3185 }
 0x5fe   : > { %v3188_v54 = vpop.permute.xlu1 %3187  ;;  %3314 = vst.msk [vmem:[#allocation3 + $0x4f] sm:$0xfe] %vm948_vm4, %v3186_v32 }
 0x5ff   : > { %3315 = vst.msk [vmem:[#allocation3 + $0x57] sm:$0xff] %vm950_vm6, %v3188_v54  ;;  %4221 = vrot.lane.b32.xlu0 %v8899_v49, %s11256_s29 }
 0x600   : > { %4223 = vrot.lane.b32.xlu1 %v8897_v26, %s11256_s29 }
 0x601   : > { %v3190_v58 = vpop.permute.xlu0 %3189 }
 0x602   : > { %v3887_v17 = vpop.permute.xlu1 %3886  ;;  %v4575_v36 = vld [vmem:[#allocation3 + $0x30] sm:$0xff]  ;;  %3316 = vst.msk [vmem:[#allocation3 + $0x5f] sm:$0x1] %vm11661_vm3, %v3190_v58  ;;  %vm11671_vm3 = vmmov %vm11670_vm10 }
 0x603   : > { %4018 = vst.msk [vmem:[#allocation3 + $0x3e] sm:$0xfc] %vm1665_vm14, %v3887_v17  ;;  %6553 = vmatprep.mubr.msk.f32.mxu1 %vm11651_vm1, %v4575_v36  ;;  %3712 = vrot.lane.b32.xlu0 %v8899_v49, %s11257_s23  ;;  %vm11672_vm1 = vcmask 261344  }
 0x604   : > { %3714 = vrot.lane.b32.xlu1 %v8897_v26, %s11257_s23 }
 0x605   : > { %v3889_v31 = vpop.permute.xlu0 %3888 }
 0x606   : > { %v3891_v25 = vpop.permute.xlu1 %3890  ;;  %4019 = vst.msk [vmem:[#allocation3 + $0x46] sm:$0xff] %vm1667_vm13, %v3889_v31 }
 0x607   : > { %4020 = vst.msk [vmem:[#allocation3 + $0x4e] sm:$0x3] %vm11662_vm11, %v3891_v25  ;;  %3716 = vrot.lane.b32.xlu0 %v3047_v18, %s11257_s23  ;;  %vm11673_vm11 = vcmask 261345  }
 0x608   : > { %4225 = vrot.lane.b32.xlu1 %v3047_v18, %s11256_s29 }
 0x609   : > { %v4400_v6 = vpop.permute.xlu0 %4399 }
 0x60a   : > { %v3378_v45 = vpop.permute.xlu1 %3377  ;;  %4532 = vst.msk [vmem:[#allocation3 + $0x3e] sm:$0x3] %vm11664_vm15, %v4400_v6  ;;  %vm11675_vm15 = vcmask 162945  }
 0x60b   : > { %3506 = vst.msk [vmem:[#allocation3 + $0x4e] sm:$0xfc] %vm11663_vm2, %v3378_v45  ;;  %4413 = vrot.lane.b32.xlu0 %v8899_v49, %s11585_s19  ;;  %vm11674_vm2 = vcmask 162944  }
 0x60c   : > { %4415 = vrot.lane.b32.xlu1 %v8897_v26, %s11585_s19 }
 0x60d   : > { %v3380_v57 = vpop.permute.xlu0 %3379 }
 0x60e   : > { %v3382_v12 = vpop.permute.xlu1 %3381  ;;  %3507 = vst.msk [vmem:[#allocation3 + $0x56] sm:$0xff] %vm11666_vm7, %v3380_v57  ;;  %vm11677_vm7 = vcmask 294144   ;;  %v3050_v57 = vld [vmem:[#allocation2 + $0xe8] sm:$0x3] }
 0x60f   : > { %3508 = vst.msk [vmem:[#allocation3 + $0x5e] sm:$0x3] %vm11665_vm0, %v3382_v12  ;;  %3203 = vrot.lane.b32.xlu0 %v8899_v49, %s6675_s30  ;;  %vm11676_vm0 = vcmask 254176  }
 0x610   : > { %3205 = vrot.lane.b32.xlu1 %v8897_v26, %s6675_s30 }
 0x611   : > { %v4073_v0 = vpop.permute.xlu0 %4072  ;;  %v4576_v38 = vld [vmem:[#allocation3 + $0x38] sm:$0xff] }
 0x612   : > { %v4075_v52 = vpop.permute.xlu1 %4074  ;;  %4160 = vst.msk [vmem:[#allocation3 + $0x40] sm:$0xff] %vm11668_vm8, %v4073_v0  ;;  %6554 = vmatmul.mubr.msk.f32.gmra.mrb[6].mxu1 %vm11669_vm9, %v4576_v38  ;;  %vm11679_vm8 = vcmask 57376  }
 0x613   : > { %4161 = vst.msk [vmem:[#allocation3 + $0x48] sm:$0xff] %vm11667_vm5, %v4075_v52  ;;  %3207 = vrot.lane.b32.xlu0 %v3047_v18, %s6675_s30  ;;  %vm11678_vm5 = vcmask 294146  }
 0x614   : > { %3904 = vrot.lane.b32.xlu1 %v8899_v49, %s11581_s26 }
 0x615   : > { %v3562_v56 = vpop.permute.xlu0 %3561 }
 0x616   : > { %v3564_v5 = vpop.permute.xlu1 %3563  ;;  %3647 = vst.msk [vmem:[#allocation3 + $0x50] sm:$0xff] %vm11671_vm3, %v3562_v56  ;;  %vm11681_vm3 = vcmask 97346  }
 0x617   : > { %3648 = vst.msk [vmem:[#allocation3 + $0x58] sm:$0xff] %vm11670_vm10, %v3564_v5  ;;  %3906 = vrot.lane.b32.xlu0 %v8897_v26, %s11581_s26  ;;  %vm11680_vm10 = vcmask 189600  }
 0x618   : > { %3908 = vrot.lane.b32.xlu1 %v3047_v18, %s11581_s26 }
 0x619   : > { %v4210_v4 = vpop.permute.xlu0 %4209 }
 0x61a   : > { %v4212_v39 = vpop.permute.xlu1 %4211  ;;  %4341 = vst.msk [vmem:[#allocation3 + $0x3f] sm:$0xfe] %vm11673_vm11, %v4210_v4  ;;  %vm11683_vm11 = vcmask 91200  }
 0x61b   : > { %4342 = vst.msk [vmem:[#allocation3 + $0x47] sm:$0xff] %vm11672_vm1, %v4212_v39  ;;  %4417 = vrot.lane.b32.xlu0 %v3047_v18, %s11585_s19  ;;  %vm11682_vm1 = vcmask 288000  }
 0x61c   : > { %3395 = vrot.lane.b32.xlu1 %v8899_v49, %s11584_s18 }
 0x61d   : > { %v3701_v32 = vpop.permute.xlu0 %3700 }
 0x61e   : > { %v3703_v54 = vpop.permute.xlu1 %3702  ;;  %3829 = vst.msk [vmem:[#allocation3 + $0x4f] sm:$0xfe] %vm11675_vm15, %v3701_v32  ;;  %vm11685_vm15 = vcmask 228544  }
 0x61f   : > { %3830 = vst.msk [vmem:[#allocation3 + $0x57] sm:$0xff] %vm11674_vm2, %v3703_v54  ;;  %3397 = vrot.lane.b32.xlu0 %v8897_v26, %s11584_s18  ;;  %vm11684_vm2 = vcmask 97344  }
 0x620   : > { %3399 = vrot.lane.b32.xlu1 %v3047_v18, %s11584_s18 }
 0x621   : > { %v3705_v58 = vpop.permute.xlu0 %3704 }
 0x622   : > { %v4214_v17 = vpop.permute.xlu1 %4213  ;;  %3831 = vst.msk [vmem:[#allocation3 + $0x5f] sm:$0x1] %vm1474_vm12, %v3705_v58 }
 0x623   : > { %4343 = vst.msk [vmem:[#allocation3 + $0x4f] sm:$0x1] %vm11676_vm0, %v4214_v17  ;;  %4084 = vrot.lane.b32.xlu0 %v8907_v59, %s11586_s20  ;;  %vm11686_vm0 = vmmov %vm11685_vm15 }
 0x624   : > { %4086 = vrot.lane.b32.xlu1 %v8905_v63, %s11586_s20 }
 0x625   : > { %v4402_v36 = vpop.permute.xlu0 %4401 }
 0x626   : > { %v4404_v49 = vpop.permute.xlu1 %4403  ;;  %4533 = vst.msk [vmem:[#allocation3 + $0x3e] sm:$0xfc] %vm11678_vm5, %v4402_v36  ;;  %vm11688_vm5 = vcmask 130144  }
 0x627   : > { %4534 = vst.msk [vmem:[#allocation3 + $0x46] sm:$0xff] %vm11677_vm7, %v4404_v49  ;;  %3573 = vrot.lane.b32.xlu0 %v8907_v59, %s11255_s22  ;;  %vm11687_vm7 = vmmov %vm11669_vm9 }
 0x628   : > { %3575 = vrot.lane.b32.xlu1 %v8905_v63, %s11255_s22 }
 0x629   : > { %v3192_v25 = vpop.permute.xlu0 %3191 }
 0x62a   : > { %v3194_v26 = vpop.permute.xlu1 %3193  ;;  %3317 = vst.msk [vmem:[#allocation3 + $0x5f] sm:$0xfe] %vm948_vm4, %v3192_v25 }
 0x62b   : > { %3318 = vst.msk [vmem:[#allocation3 + $0x67] sm:$0xff] %vm950_vm6, %v3194_v26  ;;  %4227 = vrot.lane.b32.xlu0 %v8907_v59, %s11256_s29 }
 0x62c   : > { %4229 = vrot.lane.b32.xlu1 %v8905_v63, %s11256_s29 }
 0x62d   : > { %v3196_v18 = vpop.permute.xlu0 %3195 }
 0x62e   : > { %v3893_v31 = vpop.permute.xlu1 %3892  ;;  %v4577_v45 = vld [vmem:[#allocation3 + $0x40] sm:$0xff]  ;;  %3319 = vst.msk [vmem:[#allocation3 + $0x6f] sm:$0x1] %vm11679_vm8, %v3196_v18  ;;  %vm11689_vm8 = vmmov %vm11688_vm5 }
 0x62f   : > { %4021 = vst.msk [vmem:[#allocation3 + $0x4e] sm:$0xfc] %vm1665_vm14, %v3893_v31  ;;  %6556 = vmatprep.mubr.msk.f32.mxu1 %vm11669_vm9, %v4577_v45  ;;  %3718 = vrot.lane.b32.xlu0 %v8907_v59, %s11257_s23  ;;  %vm11690_vm9 = vcmask 261344  }
 0x630   : > { %3720 = vrot.lane.b32.xlu1 %v8905_v63, %s11257_s23 }
 0x631   : > { %v3895_v12 = vpop.permute.xlu0 %3894 }
 0x632   : > { %v3897_v6 = vpop.permute.xlu1 %3896  ;;  %4022 = vst.msk [vmem:[#allocation3 + $0x56] sm:$0xff] %vm1667_vm13, %v3895_v12 }
 0x633   : > { %4023 = vst.msk [vmem:[#allocation3 + $0x5e] sm:$0x3] %vm11680_vm10, %v3897_v6  ;;  %3722 = vrot.lane.b32.xlu0 %v3050_v57, %s11257_s23  ;;  %vm11691_vm10 = vcmask 261345  }
 0x634   : > { %4231 = vrot.lane.b32.xlu1 %v3050_v57, %s11256_s29 }
 0x635   : > { %v4406_v0 = vpop.permute.xlu0 %4405 }
 0x636   : > { %v3384_v52 = vpop.permute.xlu1 %3383  ;;  %4535 = vst.msk [vmem:[#allocation3 + $0x4e] sm:$0x3] %vm11682_vm1, %v4406_v0  ;;  %vm11693_vm1 = vcmask 162945   ;;  %v3053_v0 = vld [vmem:[#allocation2 + $0x100] sm:$0x3] }
 0x637   : > { %3509 = vst.msk [vmem:[#allocation3 + $0x5e] sm:$0xfc] %vm11681_vm3, %v3384_v52  ;;  %4419 = vrot.lane.b32.xlu0 %v8907_v59, %s11585_s19  ;;  %vm11692_vm3 = vcmask 162944  }
 0x638   : > { %4421 = vrot.lane.b32.xlu1 %v8905_v63, %s11585_s19 }
 0x639   : > { %v3386_v5 = vpop.permute.xlu0 %3385 }
 0x63a   : > { %v3388_v38 = vpop.permute.xlu1 %3387  ;;  %3510 = vst.msk [vmem:[#allocation3 + $0x66] sm:$0xff] %vm11684_vm2, %v3386_v5  ;;  %vm11695_vm2 = vcmask 294144  }
 0x63b   : > { %3511 = vst.msk [vmem:[#allocation3 + $0x6e] sm:$0x3] %vm11683_vm11, %v3388_v38  ;;  %3209 = vrot.lane.b32.xlu0 %v8907_v59, %s6675_s30  ;;  %vm11694_vm11 = vcmask 254176  }
 0x63c   : > { %3211 = vrot.lane.b32.xlu1 %v8905_v63, %s6675_s30 }
 0x63d   : > { %v4077_v39 = vpop.permute.xlu0 %4076  ;;  %v4578_v4 = vld [vmem:[#allocation3 + $0x48] sm:$0xff] }
 0x63e   : > { %v4079_v56 = vpop.permute.xlu1 %4078  ;;  %4162 = vst.msk [vmem:[#allocation3 + $0x50] sm:$0xff] %vm11686_vm0, %v4077_v39  ;;  %6557 = vmatmul.mubr.msk.f32.gmra.mrb[8].mxu1 %vm11687_vm7, %v4578_v4  ;;  %vm11697_vm0 = vcmask 57376  }
 0x63f   : > { %4163 = vst.msk [vmem:[#allocation3 + $0x58] sm:$0xff] %vm11685_vm15, %v4079_v56  ;;  %3213 = vrot.lane.b32.xlu0 %v3050_v57, %s6675_s30  ;;  %vm11696_vm15 = vcmask 294146  }
 0x640   : > { %3910 = vrot.lane.b32.xlu1 %v8907_v59, %s11581_s26 }
 0x641   : > { %v3566_v32 = vpop.permute.xlu0 %3565 }
 0x642   : > { %v3568_v54 = vpop.permute.xlu1 %3567  ;;  %3649 = vst.msk [vmem:[#allocation3 + $0x60] sm:$0xff] %vm11689_vm8, %v3566_v32  ;;  %vm11699_vm8 = vcmask 97346  }
 0x643   : > { %3650 = vst.msk [vmem:[#allocation3 + $0x68] sm:$0xff] %vm11688_vm5, %v3568_v54  ;;  %3912 = vrot.lane.b32.xlu0 %v8905_v63, %s11581_s26  ;;  %vm11698_vm5 = vcmask 189600  }
 0x644   : > { %3914 = vrot.lane.b32.xlu1 %v3050_v57, %s11581_s26 }
 0x645   : > { %v4216_v58 = vpop.permute.xlu0 %4215 }
 0x646   : > { %v4218_v17 = vpop.permute.xlu1 %4217  ;;  %4344 = vst.msk [vmem:[#allocation3 + $0x4f] sm:$0xfe] %vm11691_vm10, %v4216_v58  ;;  %vm11701_vm10 = vcmask 91200  }
 0x647   : > { %4345 = vst.msk [vmem:[#allocation3 + $0x57] sm:$0xff] %vm11690_vm9, %v4218_v17  ;;  %4423 = vrot.lane.b32.xlu0 %v3050_v57, %s11585_s19  ;;  %vm11700_vm9 = vcmask 288000  }
 0x648   : > { %3401 = vrot.lane.b32.xlu1 %v8907_v59, %s11584_s18 }
 0x649   : > { %v3707_v36 = vpop.permute.xlu0 %3706 }
 0x64a   : > { %v3709_v49 = vpop.permute.xlu1 %3708  ;;  %3832 = vst.msk [vmem:[#allocation3 + $0x5f] sm:$0xfe] %vm11693_vm1, %v3707_v36  ;;  %vm11703_vm1 = vcmask 228544  }
 0x64b   : > { %3833 = vst.msk [vmem:[#allocation3 + $0x67] sm:$0xff] %vm11692_vm3, %v3709_v49  ;;  %3403 = vrot.lane.b32.xlu0 %v8905_v63, %s11584_s18  ;;  %vm11702_vm3 = vcmask 97344  }
 0x64c   : > { %3405 = vrot.lane.b32.xlu1 %v3050_v57, %s11584_s18 }
 0x64d   : > { %v3711_v25 = vpop.permute.xlu0 %3710 }
 0x64e   : > { %v4220_v26 = vpop.permute.xlu1 %4219  ;;  %3834 = vst.msk [vmem:[#allocation3 + $0x6f] sm:$0x1] %vm1474_vm12, %v3711_v25 }
 0x64f   : > { %4346 = vst.msk [vmem:[#allocation3 + $0x5f] sm:$0x1] %vm11694_vm11, %v4220_v26  ;;  %4088 = vrot.lane.b32.xlu0 %v8918_v13, %s11586_s20  ;;  %vm11704_vm11 = vmmov %vm11703_vm1 }
 0x650   : > { %4090 = vrot.lane.b32.xlu1 %v8916_v61, %s11586_s20 }
 0x651   : > { %v4408_v31 = vpop.permute.xlu0 %4407 }
 0x652   : > { %v4410_v59 = vpop.permute.xlu1 %4409  ;;  %4536 = vst.msk [vmem:[#allocation3 + $0x4e] sm:$0xfc] %vm11696_vm15, %v4408_v31  ;;  %vm11706_vm15 = vcmask 130144  }
 0x653   : > { %4537 = vst.msk [vmem:[#allocation3 + $0x56] sm:$0xff] %vm11695_vm2, %v4410_v59  ;;  %3577 = vrot.lane.b32.xlu0 %v8918_v13, %s11255_s22  ;;  %vm11705_vm2 = vmmov %vm11687_vm7 }
 0x654   : > { %3579 = vrot.lane.b32.xlu1 %v8916_v61, %s11255_s22 }
 0x655   : > { %v3198_v18 = vpop.permute.xlu0 %3197 }
 0x656   : > { %v3200_v63 = vpop.permute.xlu1 %3199  ;;  %3320 = vst.msk [vmem:[#allocation3 + $0x6f] sm:$0xfe] %vm948_vm4, %v3198_v18 }
 0x657   : > { %3321 = vst.msk [vmem:[#allocation3 + $0x77] sm:$0xff] %vm950_vm6, %v3200_v63  ;;  %4233 = vrot.lane.b32.xlu0 %v8918_v13, %s11256_s29 }
 0x658   : > { %4235 = vrot.lane.b32.xlu1 %v8916_v61, %s11256_s29 }
 0x659   : > { %v3202_v6 = vpop.permute.xlu0 %3201 }
 0x65a   : > { %v3899_v45 = vpop.permute.xlu1 %3898  ;;  %v4579_v12 = vld [vmem:[#allocation3 + $0x50] sm:$0xff]  ;;  %3322 = vst.msk [vmem:[#allocation3 + $0x7f] sm:$0x1] %vm11697_vm0, %v3202_v6  ;;  %vm11707_vm0 = vmmov %vm11706_vm15 }
 0x65b   : > { %4024 = vst.msk [vmem:[#allocation3 + $0x5e] sm:$0xfc] %vm1665_vm14, %v3899_v45  ;;  %6559 = vmatprep.mubr.msk.f32.mxu1 %vm11687_vm7, %v4579_v12  ;;  %3724 = vrot.lane.b32.xlu0 %v8918_v13, %s11257_s23  ;;  %vm11708_vm7 = vcmask 261344  }
 0x65c   : > { %3726 = vrot.lane.b32.xlu1 %v8916_v61, %s11257_s23 }
 0x65d   : > { %v3901_v52 = vpop.permute.xlu0 %3900 }
 0x65e   : > { %v3903_v57 = vpop.permute.xlu1 %3902  ;;  %4025 = vst.msk [vmem:[#allocation3 + $0x66] sm:$0xff] %vm1667_vm13, %v3901_v52 }
 0x65f   : > { %4026 = vst.msk [vmem:[#allocation3 + $0x6e] sm:$0x3] %vm11698_vm5, %v3903_v57  ;;  %3728 = vrot.lane.b32.xlu0 %v3053_v0, %s11257_s23  ;;  %vm11709_vm5 = vcmask 261345  }
 0x660   : > { %4237 = vrot.lane.b32.xlu1 %v3053_v0, %s11256_s29 }
 0x661   : > { %v9469_v5 = vpop.f32.mrb[0].mxu1  ;;  %v4412_v56 = vpop.permute.xlu0 %4411 }
 0x662   : > { %v3390_v38 = vpop.permute.xlu1 %3389  ;;  %v9472_v39 = vpop.f32.mrb[1].mxu1  ;;  %4538 = vst.msk [vmem:[#allocation3 + $0x5e] sm:$0x3] %vm11700_vm9, %v4412_v56  ;;  %vm11711_vm9 = vcmask 162945   ;;  %v3056_v56 = vld [vmem:[#allocation2 + $0x118] sm:$0x3] }
 0x663   : > { %3512 = vst.msk [vmem:[#allocation3 + $0x6e] sm:$0xfc] %vm11699_vm8, %v3390_v38  ;;  %4425 = vrot.lane.b32.xlu0 %v8918_v13, %s11585_s19  ;;  %vm11710_vm8 = vcmask 162944  }
 0x664   : > { %4427 = vrot.lane.b32.xlu1 %v8916_v61, %s11585_s19 }
 0x665   : > { %v3392_v54 = vpop.permute.xlu0 %3391 }
 0x666   : > { %v3394_v4 = vpop.permute.xlu1 %3393  ;;  %3513 = vst.msk [vmem:[#allocation3 + $0x76] sm:$0xff] %vm11702_vm3, %v3392_v54  ;;  %vm11713_vm3 = vcmask 294144  }
 0x667   : > { %3514 = vst.msk [vmem:[#allocation3 + $0x7e] sm:$0x3] %vm11701_vm10, %v3394_v4  ;;  %3215 = vrot.lane.b32.xlu0 %v8918_v13, %s6675_s30  ;;  %vm11712_vm10 = vcmask 254176  }
 0x668   : > { %3217 = vrot.lane.b32.xlu1 %v8916_v61, %s6675_s30 }
 0x669   : > { %v4081_v17 = vpop.permute.xlu0 %4080  ;;  %v4580_v58 = vld [vmem:[#allocation3 + $0x58] sm:$0xff] }
 0x66a   : > { %v4083_v32 = vpop.permute.xlu1 %4082  ;;  %4164 = vst.msk [vmem:[#allocation3 + $0x60] sm:$0xff] %vm11704_vm11, %v4081_v17  ;;  %6560 = vmatmul.mubr.msk.f32.gmra.mrb[10].mxu1 %vm11705_vm2, %v4580_v58  ;;  %vm11715_vm11 = vcmask 57376  }
 0x66b   : > { %4165 = vst.msk [vmem:[#allocation3 + $0x68] sm:$0xff] %vm11703_vm1, %v4083_v32  ;;  %3219 = vrot.lane.b32.xlu0 %v3053_v0, %s6675_s30  ;;  %vm11714_vm1 = vcmask 294146  }
 0x66c   : > { %3916 = vrot.lane.b32.xlu1 %v8918_v13, %s11581_s26 }
 0x66d   : > { %v3570_v36 = vpop.permute.xlu0 %3569 }
 0x66e   : > { %v3572_v49 = vpop.permute.xlu1 %3571  ;;  %3651 = vst.msk [vmem:[#allocation3 + $0x70] sm:$0xff] %vm11707_vm0, %v3570_v36  ;;  %vm11717_vm0 = vcmask 97346  }
 0x66f   : > { %3652 = vst.msk [vmem:[#allocation3 + $0x78] sm:$0xff] %vm11706_vm15, %v3572_v49  ;;  %3918 = vrot.lane.b32.xlu0 %v8916_v61, %s11581_s26  ;;  %vm11716_vm15 = vcmask 189600  }
 0x670   : > { %3920 = vrot.lane.b32.xlu1 %v3053_v0, %s11581_s26 }
 0x671   : > { %v4222_v25 = vpop.permute.xlu0 %4221 }
 0x672   : > { %v4224_v26 = vpop.permute.xlu1 %4223  ;;  %4347 = vst.msk [vmem:[#allocation3 + $0x5f] sm:$0xfe] %vm11709_vm5, %v4222_v25  ;;  %vm11719_vm5 = vcmask 91200  }
 0x673   : > { %4348 = vst.msk [vmem:[#allocation3 + $0x67] sm:$0xff] %vm11708_vm7, %v4224_v26  ;;  %4429 = vrot.lane.b32.xlu0 %v3053_v0, %s11585_s19  ;;  %vm11718_vm7 = vcmask 288000  }
 0x674   : > { %3407 = vrot.lane.b32.xlu1 %v8918_v13, %s11584_s18 }
 0x675   : > { %v3713_v31 = vpop.permute.xlu0 %3712 }
 0x676   : > { %v3715_v59 = vpop.permute.xlu1 %3714  ;;  %3835 = vst.msk [vmem:[#allocation3 + $0x6f] sm:$0xfe] %vm11711_vm9, %v3713_v31  ;;  %vm11721_vm9 = vcmask 228544  }
 0x677   : > { %3836 = vst.msk [vmem:[#allocation3 + $0x77] sm:$0xff] %vm11710_vm8, %v3715_v59  ;;  %3409 = vrot.lane.b32.xlu0 %v8916_v61, %s11584_s18  ;;  %vm11720_vm8 = vcmask 97344  }
 0x678   : > { %3411 = vrot.lane.b32.xlu1 %v3053_v0, %s11584_s18 }
 0x679   : > { %v3717_v18 = vpop.permute.xlu0 %3716 }
 0x67a   : > { %v4226_v63 = vpop.permute.xlu1 %4225  ;;  %3837 = vst.msk [vmem:[#allocation3 + $0x7f] sm:$0x1] %vm1474_vm12, %v3717_v18 }
 0x67b   : > { %4349 = vst.msk [vmem:[#allocation3 + $0x6f] sm:$0x1] %vm11712_vm10, %v4226_v63  ;;  %4092 = vrot.lane.b32.xlu0 %v8926_v47, %s11586_s20  ;;  %vm11722_vm10 = vmmov %vm11721_vm9 }
 0x67c   : > { %4094 = vrot.lane.b32.xlu1 %v8924_v19, %s11586_s20 }
 0x67d   : > { %v4414_v45 = vpop.permute.xlu0 %4413 }
 0x67e   : > { %v4416_v13 = vpop.permute.xlu1 %4415  ;;  %4539 = vst.msk [vmem:[#allocation3 + $0x5e] sm:$0xfc] %vm11714_vm1, %v4414_v45  ;;  %vm11724_vm1 = vcmask 130144  }
 0x67f   : > { %4540 = vst.msk [vmem:[#allocation3 + $0x66] sm:$0xff] %vm11713_vm3, %v4416_v13  ;;  %3581 = vrot.lane.b32.xlu0 %v8926_v47, %s11255_s22  ;;  %vm11723_vm3 = vmmov %vm11705_vm2 }
 0x680   : > { %3583 = vrot.lane.b32.xlu1 %v8924_v19, %s11255_s22 }
 0x681   : > { %v3204_v6 = vpop.permute.xlu0 %3203 }
 0x682   : > { %v3206_v61 = vpop.permute.xlu1 %3205  ;;  %3323 = vst.msk [vmem:[#allocation3 + $0x7f] sm:$0xfe] %vm948_vm4, %v3204_v6 }
 0x683   : > { %3324 = vst.msk [vmem:[#allocation3 + $0x87] sm:$0xff] %vm950_vm6, %v3206_v61  ;;  %4239 = vrot.lane.b32.xlu0 %v8926_v47, %s11256_s29 }
 0x684   : > { %4241 = vrot.lane.b32.xlu1 %v8924_v19, %s11256_s29 }
 0x685   : > { %v3208_v57 = vpop.permute.xlu0 %3207 }
 0x686   : > { %v3905_v12 = vpop.permute.xlu1 %3904  ;;  %v4581_v52 = vld [vmem:[#allocation3 + $0x60] sm:$0xff]  ;;  %3325 = vst.msk [vmem:[#allocation3 + $0x8f] sm:$0x1] %vm11715_vm11, %v3208_v57  ;;  %vm11725_vm11 = vmmov %vm11724_vm1 }
 0x687   : > { %4027 = vst.msk [vmem:[#allocation3 + $0x6e] sm:$0xfc] %vm1665_vm14, %v3905_v12  ;;  %6562 = vmatprep.mubr.msk.f32.mxu1 %vm11705_vm2, %v4581_v52  ;;  %3730 = vrot.lane.b32.xlu0 %v8926_v47, %s11257_s23  ;;  %vm11726_vm2 = vcmask 261344  }
 0x688   : > { %3732 = vrot.lane.b32.xlu1 %v8924_v19, %s11257_s23 }
 0x689   : > { %v3907_v38 = vpop.permute.xlu0 %3906 }
 0x68a   : > { %v3909_v0 = vpop.permute.xlu1 %3908  ;;  %4028 = vst.msk [vmem:[#allocation3 + $0x76] sm:$0xff] %vm1667_vm13, %v3907_v38 }
 0x68b   : > { %4029 = vst.msk [vmem:[#allocation3 + $0x7e] sm:$0x3] %vm11716_vm15, %v3909_v0  ;;  %3734 = vrot.lane.b32.xlu0 %v3056_v56, %s11257_s23  ;;  %vm11727_vm15 = vcmask 261345  }
 0x68c   : > { %4243 = vrot.lane.b32.xlu1 %v3056_v56, %s11256_s29 }
 0x68d   : > { %v9535_v54 = vpop.f32.mrb[2].mxu1  ;;  %v4418_v32 = vpop.permute.xlu0 %4417 }
 0x68e   : > { %v3396_v4 = vpop.permute.xlu1 %3395  ;;  %v9538_v17 = vpop.f32.mrb[3].mxu1  ;;  %4541 = vst.msk [vmem:[#allocation3 + $0x6e] sm:$0x3] %vm11718_vm7, %v4418_v32  ;;  %vm11729_vm7 = vcmask 162945   ;;  %v3059_v32 = vld [vmem:[#allocation2 + $0x130] sm:$0x3] }
 0x68f   : > { %3515 = vst.msk [vmem:[#allocation3 + $0x7e] sm:$0xfc] %vm11717_vm0, %v3396_v4  ;;  %4431 = vrot.lane.b32.xlu0 %v8926_v47, %s11585_s19  ;;  %vm11728_vm0 = vcmask 162944  }
 0x690   : > { %4433 = vrot.lane.b32.xlu1 %v8924_v19, %s11585_s19 }
 0x691   : > { %v3398_v49 = vpop.permute.xlu0 %3397 }
 0x692   : > { %v3400_v58 = vpop.permute.xlu1 %3399  ;;  %3516 = vst.msk [vmem:[#allocation3 + $0x86] sm:$0xff] %vm11720_vm8, %v3398_v49  ;;  %vm11731_vm8 = vcmask 294144  }
 0x693   : > { %3517 = vst.msk [vmem:[#allocation3 + $0x8e] sm:$0x3] %vm11719_vm5, %v3400_v58  ;;  %3221 = vrot.lane.b32.xlu0 %v8926_v47, %s6675_s30  ;;  %vm11730_vm5 = vcmask 254176  }
 0x694   : > { %3223 = vrot.lane.b32.xlu1 %v8924_v19, %s6675_s30 }
 0x695   : > { %v4085_v26 = vpop.permute.xlu0 %4084  ;;  %v4582_v25 = vld [vmem:[#allocation3 + $0x68] sm:$0xff] }
 0x696   : > { %v4087_v36 = vpop.permute.xlu1 %4086  ;;  %4166 = vst.msk [vmem:[#allocation3 + $0x70] sm:$0xff] %vm11722_vm10, %v4085_v26  ;;  %6563 = vmatmul.mubr.msk.f32.gmra.mrb[12].mxu1 %vm11723_vm3, %v4582_v25  ;;  %vm11733_vm10 = vcmask 57376  }
 0x697   : > { %4167 = vst.msk [vmem:[#allocation3 + $0x78] sm:$0xff] %vm11721_vm9, %v4087_v36  ;;  %3225 = vrot.lane.b32.xlu0 %v3056_v56, %s6675_s30  ;;  %vm11732_vm9 = vcmask 294146  }
 0x698   : > { %3922 = vrot.lane.b32.xlu1 %v8926_v47, %s11581_s26 }
 0x699   : > { %v3574_v31 = vpop.permute.xlu0 %3573 }
 0x69a   : > { %v3576_v59 = vpop.permute.xlu1 %3575  ;;  %3653 = vst.msk [vmem:[#allocation3 + $0x80] sm:$0xff] %vm11725_vm11, %v3574_v31  ;;  %vm11735_vm11 = vcmask 97346  }
 0x69b   : > { %3654 = vst.msk [vmem:[#allocation3 + $0x88] sm:$0xff] %vm11724_vm1, %v3576_v59  ;;  %3924 = vrot.lane.b32.xlu0 %v8924_v19, %s11581_s26  ;;  %vm11734_vm1 = vcmask 189600  }
 0x69c   : > { %3926 = vrot.lane.b32.xlu1 %v3056_v56, %s11581_s26 }
 0x69d   : > { %v4228_v18 = vpop.permute.xlu0 %4227 }
 0x69e   : > { %v4230_v63 = vpop.permute.xlu1 %4229  ;;  %4350 = vst.msk [vmem:[#allocation3 + $0x6f] sm:$0xfe] %vm11727_vm15, %v4228_v18  ;;  %vm11737_vm15 = vcmask 91200  }
 0x69f   : > { %4351 = vst.msk [vmem:[#allocation3 + $0x77] sm:$0xff] %vm11726_vm2, %v4230_v63  ;;  %4435 = vrot.lane.b32.xlu0 %v3056_v56, %s11585_s19  ;;  %vm11736_vm2 = vcmask 288000  }
 0x6a0   : > { %3413 = vrot.lane.b32.xlu1 %v8926_v47, %s11584_s18 }
 0x6a1   : > { %v3719_v45 = vpop.permute.xlu0 %3718 }
 0x6a2   : > { %v3721_v13 = vpop.permute.xlu1 %3720  ;;  %3838 = vst.msk [vmem:[#allocation3 + $0x7f] sm:$0xfe] %vm11729_vm7, %v3719_v45  ;;  %vm11739_vm7 = vcmask 228544  }
 0x6a3   : > { %3839 = vst.msk [vmem:[#allocation3 + $0x87] sm:$0xff] %vm11728_vm0, %v3721_v13  ;;  %3415 = vrot.lane.b32.xlu0 %v8924_v19, %s11584_s18  ;;  %vm11738_vm0 = vcmask 97344  }
 0x6a4   : > { %3417 = vrot.lane.b32.xlu1 %v3056_v56, %s11584_s18 }
 0x6a5   : > { %v3723_v6 = vpop.permute.xlu0 %3722 }
 0x6a6   : > { %v4232_v61 = vpop.permute.xlu1 %4231  ;;  %3840 = vst.msk [vmem:[#allocation3 + $0x8f] sm:$0x1] %vm1474_vm12, %v3723_v6 }
 0x6a7   : > { %4352 = vst.msk [vmem:[#allocation3 + $0x7f] sm:$0x1] %vm11730_vm5, %v4232_v61  ;;  %4096 = vrot.lane.b32.xlu0 %v8934_v55, %s11586_s20  ;;  %vm11740_vm5 = vmmov %vm11739_vm7 }
 0x6a8   : > { %4098 = vrot.lane.b32.xlu1 %v8932_v30, %s11586_s20 }
 0x6a9   : > { %v4420_v12 = vpop.permute.xlu0 %4419 }
 0x6aa   : > { %v4422_v47 = vpop.permute.xlu1 %4421  ;;  %4542 = vst.msk [vmem:[#allocation3 + $0x6e] sm:$0xfc] %vm11732_vm9, %v4420_v12  ;;  %vm11742_vm9 = vcmask 130144  }
 0x6ab   : > { %4543 = vst.msk [vmem:[#allocation3 + $0x76] sm:$0xff] %vm11731_vm8, %v4422_v47  ;;  %3585 = vrot.lane.b32.xlu0 %v8934_v55, %s11255_s22  ;;  %vm11741_vm8 = vmmov %vm11723_vm3 }
 0x6ac   : > { %3587 = vrot.lane.b32.xlu1 %v8932_v30, %s11255_s22 }
 0x6ad   : > { %v3210_v57 = vpop.permute.xlu0 %3209 }
 0x6ae   : > { %v3212_v19 = vpop.permute.xlu1 %3211  ;;  %3326 = vst.msk [vmem:[#allocation3 + $0x8f] sm:$0xfe] %vm948_vm4, %v3210_v57 }
 0x6af   : > { %3327 = vst.msk [vmem:[#allocation3 + $0x97] sm:$0xff] %vm950_vm6, %v3212_v19  ;;  %4245 = vrot.lane.b32.xlu0 %v8934_v55, %s11256_s29 }
 0x6b0   : > { %4247 = vrot.lane.b32.xlu1 %v8932_v30, %s11256_s29 }
 0x6b1   : > { %v3214_v0 = vpop.permute.xlu0 %3213 }
 0x6b2   : > { %v3911_v52 = vpop.permute.xlu1 %3910  ;;  %v4583_v38 = vld [vmem:[#allocation3 + $0x70] sm:$0xff]  ;;  %3328 = vst.msk [vmem:[#allocation3 + $0x9f] sm:$0x1] %vm11733_vm10, %v3214_v0  ;;  %vm11743_vm10 = vmmov %vm11742_vm9 }
 0x6b3   : > { %4030 = vst.msk [vmem:[#allocation3 + $0x7e] sm:$0xfc] %vm1665_vm14, %v3911_v52  ;;  %6565 = vmatprep.mubr.msk.f32.mxu1 %vm11723_vm3, %v4583_v38  ;;  %3736 = vrot.lane.b32.xlu0 %v8934_v55, %s11257_s23  ;;  %vm11744_vm3 = vcmask 261344  }
 0x6b4   : > { %3738 = vrot.lane.b32.xlu1 %v8932_v30, %s11257_s23 }
 0x6b5   : > { %v3913_v4 = vpop.permute.xlu0 %3912 }
 0x6b6   : > { %v3915_v56 = vpop.permute.xlu1 %3914  ;;  %4031 = vst.msk [vmem:[#allocation3 + $0x86] sm:$0xff] %vm1667_vm13, %v3913_v4 }
 0x6b7   : > { %4032 = vst.msk [vmem:[#allocation3 + $0x8e] sm:$0x3] %vm11734_vm1, %v3915_v56  ;;  %3740 = vrot.lane.b32.xlu0 %v3059_v32, %s11257_s23  ;;  %vm11745_vm1 = vcmask 261345  }
 0x6b8   : > { %4249 = vrot.lane.b32.xlu1 %v3059_v32, %s11256_s29 }
 0x6b9   : > { %v9601_v49 = vpop.f32.mrb[4].mxu1  ;;  %v4424_v36 = vpop.permute.xlu0 %4423 }
 0x6ba   : > { %v3402_v58 = vpop.permute.xlu1 %3401  ;;  %v9604_v26 = vpop.f32.mrb[5].mxu1  ;;  %4544 = vst.msk [vmem:[#allocation3 + $0x7e] sm:$0x3] %vm11736_vm2, %v4424_v36  ;;  %vm11747_vm2 = vcmask 162945   ;;  %v3062_v36 = vld [vmem:[#allocation2 + $0x148] sm:$0x3] }
 0x6bb   : > { %3518 = vst.msk [vmem:[#allocation3 + $0x8e] sm:$0xfc] %vm11735_vm11, %v3402_v58  ;;  %4437 = vrot.lane.b32.xlu0 %v8934_v55, %s11585_s19  ;;  %vm11746_vm11 = vcmask 162944  }
 0x6bc   : > { %4439 = vrot.lane.b32.xlu1 %v8932_v30, %s11585_s19 }
 0x6bd   : > { %v3404_v59 = vpop.permute.xlu0 %3403 }
 0x6be   : > { %v3406_v25 = vpop.permute.xlu1 %3405  ;;  %3519 = vst.msk [vmem:[#allocation3 + $0x96] sm:$0xff] %vm11738_vm0, %v3404_v59  ;;  %vm11749_vm0 = vcmask 294144  }
 0x6bf   : > { %3520 = vst.msk [vmem:[#allocation3 + $0x9e] sm:$0x3] %vm11737_vm15, %v3406_v25  ;;  %3227 = vrot.lane.b32.xlu0 %v8934_v55, %s6675_s30  ;;  %vm11748_vm15 = vcmask 254176  }
 0x6c0   : > { %3229 = vrot.lane.b32.xlu1 %v8932_v30, %s6675_s30 }
 0x6c1   : > { %v4089_v63 = vpop.permute.xlu0 %4088  ;;  %v4584_v18 = vld [vmem:[#allocation3 + $0x78] sm:$0xff] }
 0x6c2   : > { %v4091_v31 = vpop.permute.xlu1 %4090  ;;  %4168 = vst.msk [vmem:[#allocation3 + $0x80] sm:$0xff] %vm11740_vm5, %v4089_v63  ;;  %6566 = vmatmul.mubr.msk.f32.gmra.mrb[14].mxu1 %vm11741_vm8, %v4584_v18  ;;  %vm11751_vm5 = vcmask 57376  }
 0x6c3   : > { %4169 = vst.msk [vmem:[#allocation3 + $0x88] sm:$0xff] %vm11739_vm7, %v4091_v31  ;;  %3231 = vrot.lane.b32.xlu0 %v3059_v32, %s6675_s30  ;;  %vm11750_vm7 = vcmask 294146  }
 0x6c4   : > { %3928 = vrot.lane.b32.xlu1 %v8934_v55, %s11581_s26 }
 0x6c5   : > { %v3578_v45 = vpop.permute.xlu0 %3577 }
 0x6c6   : > { %v3580_v13 = vpop.permute.xlu1 %3579  ;;  %3655 = vst.msk [vmem:[#allocation3 + $0x90] sm:$0xff] %vm11743_vm10, %v3578_v45  ;;  %vm11753_vm10 = vcmask 97346  }
 0x6c7   : > { %3656 = vst.msk [vmem:[#allocation3 + $0x98] sm:$0xff] %vm11742_vm9, %v3580_v13  ;;  %3930 = vrot.lane.b32.xlu0 %v8932_v30, %s11581_s26  ;;  %vm11752_vm9 = vcmask 189600  }
 0x6c8   : > { %3932 = vrot.lane.b32.xlu1 %v3059_v32, %s11581_s26 }
 0x6c9   : > { %v4234_v6 = vpop.permute.xlu0 %4233 }
 0x6ca   : > { %v4236_v61 = vpop.permute.xlu1 %4235  ;;  %4353 = vst.msk [vmem:[#allocation3 + $0x7f] sm:$0xfe] %vm11745_vm1, %v4234_v6  ;;  %vm11755_vm1 = vcmask 91200  }
 0x6cb   : > { %4354 = vst.msk [vmem:[#allocation3 + $0x87] sm:$0xff] %vm11744_vm3, %v4236_v61  ;;  %4441 = vrot.lane.b32.xlu0 %v3059_v32, %s11585_s19  ;;  %vm11754_vm3 = vcmask 288000  }
 0x6cc   : > { %3419 = vrot.lane.b32.xlu1 %v8934_v55, %s11584_s18 }
 0x6cd   : > { %v3725_v12 = vpop.permute.xlu0 %3724 }
 0x6ce   : > { %v3727_v47 = vpop.permute.xlu1 %3726  ;;  %3841 = vst.msk [vmem:[#allocation3 + $0x8f] sm:$0xfe] %vm11747_vm2, %v3725_v12  ;;  %vm11757_vm2 = vcmask 228544  }
 0x6cf   : > { %3842 = vst.msk [vmem:[#allocation3 + $0x97] sm:$0xff] %vm11746_vm11, %v3727_v47  ;;  %3421 = vrot.lane.b32.xlu0 %v8932_v30, %s11584_s18  ;;  %vm11756_vm11 = vcmask 97344  }
 0x6d0   : > { %3423 = vrot.lane.b32.xlu1 %v3059_v32, %s11584_s18 }
 0x6d1   : > { %v3729_v57 = vpop.permute.xlu0 %3728 }
 0x6d2   : > { %v4238_v19 = vpop.permute.xlu1 %4237  ;;  %3843 = vst.msk [vmem:[#allocation3 + $0x9f] sm:$0x1] %vm1474_vm12, %v3729_v57 }
 0x6d3   : > { %4355 = vst.msk [vmem:[#allocation3 + $0x8f] sm:$0x1] %vm11748_vm15, %v4238_v19  ;;  %4100 = vrot.lane.b32.xlu0 %v8942_v29, %s11586_s20  ;;  %vm11758_vm15 = vmmov %vm11757_vm2 }
 0x6d4   : > { %4102 = vrot.lane.b32.xlu1 %v8940_v20, %s11586_s20 }
 0x6d5   : > { %v4426_v52 = vpop.permute.xlu0 %4425 }
 0x6d6   : > { %v4428_v55 = vpop.permute.xlu1 %4427  ;;  %4545 = vst.msk [vmem:[#allocation3 + $0x7e] sm:$0xfc] %vm11750_vm7, %v4426_v52  ;;  %vm11760_vm7 = vcmask 130144  }
 0x6d7   : > { %4546 = vst.msk [vmem:[#allocation3 + $0x86] sm:$0xff] %vm11749_vm0, %v4428_v55  ;;  %3589 = vrot.lane.b32.xlu0 %v8942_v29, %s11255_s22  ;;  %vm11759_vm0 = vmmov %vm11741_vm8 }
 0x6d8   : > { %3591 = vrot.lane.b32.xlu1 %v8940_v20, %s11255_s22 }
 0x6d9   : > { %v3216_v0 = vpop.permute.xlu0 %3215 }
 0x6da   : > { %v3218_v30 = vpop.permute.xlu1 %3217  ;;  %3329 = vst.msk [vmem:[#allocation3 + $0x9f] sm:$0xfe] %vm948_vm4, %v3216_v0 }
 0x6db   : > { %3330 = vst.msk [vmem:[#allocation3 + $0xa7] sm:$0xff] %vm950_vm6, %v3218_v30  ;;  %4251 = vrot.lane.b32.xlu0 %v8942_v29, %s11256_s29 }
 0x6dc   : > { %4253 = vrot.lane.b32.xlu1 %v8940_v20, %s11256_s29 }
 0x6dd   : > { %v3220_v56 = vpop.permute.xlu0 %3219 }
 0x6de   : > { %v3917_v38 = vpop.permute.xlu1 %3916  ;;  %v4585_v4 = vld [vmem:[#allocation3 + $0x80] sm:$0xff]  ;;  %3331 = vst.msk [vmem:[#allocation3 + $0xaf] sm:$0x1] %vm11751_vm5, %v3220_v56  ;;  %vm11761_vm5 = vmmov %vm11760_vm7 }
 0x6df   : > { %4033 = vst.msk [vmem:[#allocation3 + $0x8e] sm:$0xfc] %vm1665_vm14, %v3917_v38  ;;  %6568 = vmatprep.mubr.msk.f32.mxu1 %vm11741_vm8, %v4585_v4  ;;  %3742 = vrot.lane.b32.xlu0 %v8942_v29, %s11257_s23  ;;  %vm11762_vm8 = vcmask 261344  }
 0x6e0   : > { %3744 = vrot.lane.b32.xlu1 %v8940_v20, %s11257_s23 }
 0x6e1   : > { %v3919_v58 = vpop.permute.xlu0 %3918 }
 0x6e2   : > { %v3921_v32 = vpop.permute.xlu1 %3920  ;;  %4034 = vst.msk [vmem:[#allocation3 + $0x96] sm:$0xff] %vm1667_vm13, %v3919_v58 }
 0x6e3   : > { %4035 = vst.msk [vmem:[#allocation3 + $0x9e] sm:$0x3] %vm11752_vm9, %v3921_v32  ;;  %3746 = vrot.lane.b32.xlu0 %v3062_v36, %s11257_s23  ;;  %vm11763_vm9 = vcmask 261345  }
 0x6e4   : > { %4255 = vrot.lane.b32.xlu1 %v3062_v36, %s11256_s29 }
 0x6e5   : > { %v9667_v59 = vpop.f32.mrb[6].mxu1  ;;  %v4430_v31 = vpop.permute.xlu0 %4429 }
 0x6e6   : > { %v3408_v25 = vpop.permute.xlu1 %3407  ;;  %v9670_v63 = vpop.f32.mrb[7].mxu1  ;;  %4547 = vst.msk [vmem:[#allocation3 + $0x8e] sm:$0x3] %vm11754_vm3, %v4430_v31  ;;  %vm11765_vm3 = vcmask 162945   ;;  %v3065_v31 = vld [vmem:[#allocation2 + $0x160] sm:$0x3] }
 0x6e7   : > { %3521 = vst.msk [vmem:[#allocation3 + $0x9e] sm:$0xfc] %vm11753_vm10, %v3408_v25  ;;  %4443 = vrot.lane.b32.xlu0 %v8942_v29, %s11585_s19  ;;  %vm11764_vm10 = vcmask 162944  }
 0x6e8   : > { %4445 = vrot.lane.b32.xlu1 %v8940_v20, %s11585_s19 }
 0x6e9   : > { %v3410_v13 = vpop.permute.xlu0 %3409 }
 0x6ea   : > { %v3412_v18 = vpop.permute.xlu1 %3411  ;;  %3522 = vst.msk [vmem:[#allocation3 + $0xa6] sm:$0xff] %vm11756_vm11, %v3410_v13  ;;  %vm11767_vm11 = vcmask 294144  }
 0x6eb   : > { %3523 = vst.msk [vmem:[#allocation3 + $0xae] sm:$0x3] %vm11755_vm1, %v3412_v18  ;;  %3233 = vrot.lane.b32.xlu0 %v8942_v29, %s6675_s30  ;;  %vm11766_vm1 = vcmask 254176  }
 0x6ec   : > { %3235 = vrot.lane.b32.xlu1 %v8940_v20, %s6675_s30 }
 0x6ed   : > { %v4093_v61 = vpop.permute.xlu0 %4092  ;;  %v4586_v6 = vld [vmem:[#allocation3 + $0x88] sm:$0xff] }
 0x6ee   : > { %v4095_v45 = vpop.permute.xlu1 %4094  ;;  %4170 = vst.msk [vmem:[#allocation3 + $0x90] sm:$0xff] %vm11758_vm15, %v4093_v61  ;;  %6569 = vmatmul.mubr.msk.f32.gmra.mrb[16].mxu1 %vm11759_vm0, %v4586_v6  ;;  %vm11769_vm15 = vcmask 57376  }
 0x6ef   : > { %4171 = vst.msk [vmem:[#allocation3 + $0x98] sm:$0xff] %vm11757_vm2, %v4095_v45  ;;  %3237 = vrot.lane.b32.xlu0 %v3062_v36, %s6675_s30  ;;  %vm11768_vm2 = vcmask 294146  }
 0x6f0   : > { %3934 = vrot.lane.b32.xlu1 %v8942_v29, %s11581_s26 }
 0x6f1   : > { %v3582_v12 = vpop.permute.xlu0 %3581 }
 0x6f2   : > { %v3584_v47 = vpop.permute.xlu1 %3583  ;;  %3657 = vst.msk [vmem:[#allocation3 + $0xa0] sm:$0xff] %vm11761_vm5, %v3582_v12  ;;  %vm11771_vm5 = vcmask 97346  }
 0x6f3   : > { %3658 = vst.msk [vmem:[#allocation3 + $0xa8] sm:$0xff] %vm11760_vm7, %v3584_v47  ;;  %3936 = vrot.lane.b32.xlu0 %v8940_v20, %s11581_s26  ;;  %vm11770_vm7 = vcmask 189600  }
 0x6f4   : > { %3938 = vrot.lane.b32.xlu1 %v3062_v36, %s11581_s26 }
 0x6f5   : > { %v4240_v57 = vpop.permute.xlu0 %4239 }
 0x6f6   : > { %v4242_v19 = vpop.permute.xlu1 %4241  ;;  %4356 = vst.msk [vmem:[#allocation3 + $0x8f] sm:$0xfe] %vm11763_vm9, %v4240_v57  ;;  %vm11773_vm9 = vcmask 91200  }
 0x6f7   : > { %4357 = vst.msk [vmem:[#allocation3 + $0x97] sm:$0xff] %vm11762_vm8, %v4242_v19  ;;  %4447 = vrot.lane.b32.xlu0 %v3062_v36, %s11585_s19  ;;  %vm11772_vm8 = vcmask 288000  }
 0x6f8   : > { %3425 = vrot.lane.b32.xlu1 %v8942_v29, %s11584_s18 }
 0x6f9   : > { %v3731_v52 = vpop.permute.xlu0 %3730 }
 0x6fa   : > { %v3733_v55 = vpop.permute.xlu1 %3732  ;;  %3844 = vst.msk [vmem:[#allocation3 + $0x9f] sm:$0xfe] %vm11765_vm3, %v3731_v52  ;;  %vm11775_vm3 = vcmask 228544  }
 0x6fb   : > { %3845 = vst.msk [vmem:[#allocation3 + $0xa7] sm:$0xff] %vm11764_vm10, %v3733_v55  ;;  %3427 = vrot.lane.b32.xlu0 %v8940_v20, %s11584_s18  ;;  %vm11774_vm10 = vcmask 97344  }
 0x6fc   : > { %3429 = vrot.lane.b32.xlu1 %v3062_v36, %s11584_s18 }
 0x6fd   : > { %v3735_v0 = vpop.permute.xlu0 %3734 }
 0x6fe   : > { %v4244_v30 = vpop.permute.xlu1 %4243  ;;  %3846 = vst.msk [vmem:[#allocation3 + $0xaf] sm:$0x1] %vm1474_vm12, %v3735_v0 }
 0x6ff   : > { %4358 = vst.msk [vmem:[#allocation3 + $0x9f] sm:$0x1] %vm11766_vm1, %v4244_v30  ;;  %4104 = vrot.lane.b32.xlu0 %v8953_v40, %s11586_s20  ;;  %vm11776_vm1 = vmmov %vm11775_vm3 }
 0x700   : > { %4106 = vrot.lane.b32.xlu1 %v8951_v43, %s11586_s20 }
 0x701   : > { %v4432_v38 = vpop.permute.xlu0 %4431 }
 0x702   : > { %v4434_v29 = vpop.permute.xlu1 %4433  ;;  %4548 = vst.msk [vmem:[#allocation3 + $0x8e] sm:$0xfc] %vm11768_vm2, %v4432_v38  ;;  %vm11778_vm2 = vcmask 130144  }
 0x703   : > { %4549 = vst.msk [vmem:[#allocation3 + $0x96] sm:$0xff] %vm11767_vm11, %v4434_v29  ;;  %3593 = vrot.lane.b32.xlu0 %v8953_v40, %s11255_s22  ;;  %vm11777_vm11 = vmmov %vm11759_vm0 }
 0x704   : > { %3595 = vrot.lane.b32.xlu1 %v8951_v43, %s11255_s22 }
 0x705   : > { %v3222_v56 = vpop.permute.xlu0 %3221 }
 0x706   : > { %v3224_v20 = vpop.permute.xlu1 %3223  ;;  %3332 = vst.msk [vmem:[#allocation3 + $0xaf] sm:$0xfe] %vm948_vm4, %v3222_v56 }
 0x707   : > { %3333 = vst.msk [vmem:[#allocation3 + $0xb7] sm:$0xff] %vm950_vm6, %v3224_v20  ;;  %4257 = vrot.lane.b32.xlu0 %v8953_v40, %s11256_s29 }
 0x708   : > { %4259 = vrot.lane.b32.xlu1 %v8951_v43, %s11256_s29 }
 0x709   : > { %v3226_v32 = vpop.permute.xlu0 %3225 }
 0x70a   : > { %v3923_v4 = vpop.permute.xlu1 %3922  ;;  %v4587_v58 = vld [vmem:[#allocation3 + $0x90] sm:$0xff]  ;;  %3334 = vst.msk [vmem:[#allocation3 + $0xbf] sm:$0x1] %vm11769_vm15, %v3226_v32  ;;  %vm11779_vm15 = vmmov %vm11778_vm2 }
 0x70b   : > { %4036 = vst.msk [vmem:[#allocation3 + $0x9e] sm:$0xfc] %vm1665_vm14, %v3923_v4  ;;  %6571 = vmatprep.mubr.msk.f32.mxu1 %vm11759_vm0, %v4587_v58  ;;  %3748 = vrot.lane.b32.xlu0 %v8953_v40, %s11257_s23  ;;  %vm11780_vm0 = vcmask 261344  }
 0x70c   : > { %3750 = vrot.lane.b32.xlu1 %v8951_v43, %s11257_s23 }
 0x70d   : > { %v3925_v25 = vpop.permute.xlu0 %3924 }
 0x70e   : > { %v3927_v36 = vpop.permute.xlu1 %3926  ;;  %4037 = vst.msk [vmem:[#allocation3 + $0xa6] sm:$0xff] %vm1667_vm13, %v3925_v25 }
 0x70f   : > { %4038 = vst.msk [vmem:[#allocation3 + $0xae] sm:$0x3] %vm11770_vm7, %v3927_v36  ;;  %3752 = vrot.lane.b32.xlu0 %v3065_v31, %s11257_s23  ;;  %vm11781_vm7 = vcmask 261345  }
 0x710   : > { %4261 = vrot.lane.b32.xlu1 %v3065_v31, %s11256_s29 }
 0x711   : > { %v9733_v13 = vpop.f32.mrb[8].mxu1  ;;  %v4436_v45 = vpop.permute.xlu0 %4435 }
 0x712   : > { %v3414_v18 = vpop.permute.xlu1 %3413  ;;  %v9736_v61 = vpop.f32.mrb[9].mxu1  ;;  %4550 = vst.msk [vmem:[#allocation3 + $0x9e] sm:$0x3] %vm11772_vm8, %v4436_v45  ;;  %vm11783_vm8 = vcmask 162945   ;;  %v3068_v45 = vld [vmem:[#allocation2 + $0x178] sm:$0x3] }
 0x713   : > { %3524 = vst.msk [vmem:[#allocation3 + $0xae] sm:$0xfc] %vm11771_vm5, %v3414_v18  ;;  %4449 = vrot.lane.b32.xlu0 %v8953_v40, %s11585_s19  ;;  %vm11782_vm5 = vcmask 162944  }
 0x714   : > { %4451 = vrot.lane.b32.xlu1 %v8951_v43, %s11585_s19 }
 0x715   : > { %v3416_v47 = vpop.permute.xlu0 %3415 }
 0x716   : > { %v3418_v6 = vpop.permute.xlu1 %3417  ;;  %3525 = vst.msk [vmem:[#allocation3 + $0xb6] sm:$0xff] %vm11774_vm10, %v3416_v47  ;;  %vm11785_vm10 = vcmask 294144  }
 0x717   : > { %3526 = vst.msk [vmem:[#allocation3 + $0xbe] sm:$0x3] %vm11773_vm9, %v3418_v6  ;;  %3239 = vrot.lane.b32.xlu0 %v8953_v40, %s6675_s30  ;;  %vm11784_vm9 = vcmask 254176  }
 0x718   : > { %3241 = vrot.lane.b32.xlu1 %v8951_v43, %s6675_s30 }
 0x719   : > { %v4097_v19 = vpop.permute.xlu0 %4096  ;;  %v4588_v57 = vld [vmem:[#allocation3 + $0x98] sm:$0xff] }
 0x71a   : > { %v4099_v12 = vpop.permute.xlu1 %4098  ;;  %4172 = vst.msk [vmem:[#allocation3 + $0xa0] sm:$0xff] %vm11776_vm1, %v4097_v19  ;;  %6572 = vmatmul.mubr.msk.f32.gmra.mrb[18].mxu1 %vm11777_vm11, %v4588_v57  ;;  %vm11787_vm1 = vcmask 57376  }
 0x71b   : > { %4173 = vst.msk [vmem:[#allocation3 + $0xa8] sm:$0xff] %vm11775_vm3, %v4099_v12  ;;  %3243 = vrot.lane.b32.xlu0 %v3065_v31, %s6675_s30  ;;  %vm11786_vm3 = vcmask 294146  }
 0x71c   : > { %3940 = vrot.lane.b32.xlu1 %v8953_v40, %s11581_s26 }
 0x71d   : > { %v3586_v52 = vpop.permute.xlu0 %3585 }
 0x71e   : > { %v3588_v55 = vpop.permute.xlu1 %3587  ;;  %3659 = vst.msk [vmem:[#allocation3 + $0xb0] sm:$0xff] %vm11779_vm15, %v3586_v52  ;;  %vm11789_vm15 = vcmask 97346  }
 0x71f   : > { %3660 = vst.msk [vmem:[#allocation3 + $0xb8] sm:$0xff] %vm11778_vm2, %v3588_v55  ;;  %3942 = vrot.lane.b32.xlu0 %v8951_v43, %s11581_s26  ;;  %vm11788_vm2 = vcmask 189600  }
 0x720   : > { %3944 = vrot.lane.b32.xlu1 %v3065_v31, %s11581_s26 }
 0x721   : > { %v4246_v0 = vpop.permute.xlu0 %4245 }
 0x722   : > { %v4248_v30 = vpop.permute.xlu1 %4247  ;;  %4359 = vst.msk [vmem:[#allocation3 + $0x9f] sm:$0xfe] %vm11781_vm7, %v4246_v0  ;;  %vm11791_vm7 = vcmask 91200  }
 0x723   : > { %4360 = vst.msk [vmem:[#allocation3 + $0xa7] sm:$0xff] %vm11780_vm0, %v4248_v30  ;;  %4453 = vrot.lane.b32.xlu0 %v3065_v31, %s11585_s19  ;;  %vm11790_vm0 = vcmask 288000  }
 0x724   : > { %3431 = vrot.lane.b32.xlu1 %v8953_v40, %s11584_s18 }
 0x725   : > { %v3737_v38 = vpop.permute.xlu0 %3736 }
 0x726   : > { %v3739_v29 = vpop.permute.xlu1 %3738  ;;  %3847 = vst.msk [vmem:[#allocation3 + $0xaf] sm:$0xfe] %vm11783_vm8, %v3737_v38  ;;  %vm11793_vm8 = vcmask 228544  }
 0x727   : > { %3848 = vst.msk [vmem:[#allocation3 + $0xb7] sm:$0xff] %vm11782_vm5, %v3739_v29  ;;  %3433 = vrot.lane.b32.xlu0 %v8951_v43, %s11584_s18  ;;  %vm11792_vm5 = vcmask 97344  }
 0x728   : > { %3435 = vrot.lane.b32.xlu1 %v3065_v31, %s11584_s18 }
 0x729   : > { %v3741_v56 = vpop.permute.xlu0 %3740 }
 0x72a   : > { %v4250_v20 = vpop.permute.xlu1 %4249  ;;  %3849 = vst.msk [vmem:[#allocation3 + $0xbf] sm:$0x1] %vm1474_vm12, %v3741_v56 }
 0x72b   : > { %4361 = vst.msk [vmem:[#allocation3 + $0xaf] sm:$0x1] %vm11784_vm9, %v4250_v20  ;;  %4108 = vrot.lane.b32.xlu0 %v8961_v62, %s11586_s20  ;;  %vm11794_vm9 = vmmov %vm11793_vm8 }
 0x72c   : > { %4110 = vrot.lane.b32.xlu1 %v8959_v28, %s11586_s20 }
 0x72d   : > { %v4438_v4 = vpop.permute.xlu0 %4437 }
 0x72e   : > { %v4440_v40 = vpop.permute.xlu1 %4439  ;;  %4551 = vst.msk [vmem:[#allocation3 + $0x9e] sm:$0xfc] %vm11786_vm3, %v4438_v4  ;;  %vm11796_vm3 = vcmask 130144  }
 0x72f   : > { %4552 = vst.msk [vmem:[#allocation3 + $0xa6] sm:$0xff] %vm11785_vm10, %v4440_v40  ;;  %3597 = vrot.lane.b32.xlu0 %v8961_v62, %s11255_s22  ;;  %vm11795_vm10 = vmmov %vm11777_vm11 }
 0x730   : > { %3599 = vrot.lane.b32.xlu1 %v8959_v28, %s11255_s22 }
 0x731   : > { %v3228_v32 = vpop.permute.xlu0 %3227 }
 0x732   : > { %v3230_v43 = vpop.permute.xlu1 %3229  ;;  %3335 = vst.msk [vmem:[#allocation3 + $0xbf] sm:$0xfe] %vm948_vm4, %v3228_v32 }
 0x733   : > { %3336 = vst.msk [vmem:[#allocation3 + $0xc7] sm:$0xff] %vm950_vm6, %v3230_v43  ;;  %4263 = vrot.lane.b32.xlu0 %v8961_v62, %s11256_s29 }
 0x734   : > { %4265 = vrot.lane.b32.xlu1 %v8959_v28, %s11256_s29 }
 0x735   : > { %v3232_v36 = vpop.permute.xlu0 %3231 }
 0x736   : > { %v3929_v58 = vpop.permute.xlu1 %3928  ;;  %v4589_v25 = vld [vmem:[#allocation3 + $0xa0] sm:$0xff]  ;;  %3337 = vst.msk [vmem:[#allocation3 + $0xcf] sm:$0x1] %vm11787_vm1, %v3232_v36  ;;  %vm11797_vm1 = vmmov %vm11796_vm3 }
 0x737   : > { %4039 = vst.msk [vmem:[#allocation3 + $0xae] sm:$0xfc] %vm1665_vm14, %v3929_v58  ;;  %6574 = vmatprep.mubr.msk.f32.mxu1 %vm11777_vm11, %v4589_v25  ;;  %3754 = vrot.lane.b32.xlu0 %v8961_v62, %s11257_s23  ;;  %vm11798_vm11 = vcmask 261344   ;;  %v3070_v58 = vld [vmem:[#allocation2 + $0x188] sm:$0xff] }
 0x738   : > { %3756 = vrot.lane.b32.xlu1 %v8959_v28, %s11257_s23 }
 0x739   : > { %v3931_v18 = vpop.permute.xlu0 %3930 }
 0x73a   : > { %v3933_v31 = vpop.permute.xlu1 %3932  ;;  %4040 = vst.msk [vmem:[#allocation3 + $0xb6] sm:$0xff] %vm1667_vm13, %v3931_v18 }
 0x73b   : > { %4041 = vst.msk [vmem:[#allocation3 + $0xbe] sm:$0x3] %vm11788_vm2, %v3933_v31  ;;  %3758 = vrot.lane.b32.xlu0 %v3068_v45, %s11257_s23  ;;  %vm11799_vm2 = vcmask 261345  }
 0x73c   : > { %4267 = vrot.lane.b32.xlu1 %v3068_v45, %s11256_s29 }
 0x73d   : > { %v4442_v47 = vpop.permute.xlu0 %4441  ;;  %v9800_v12 = vpop.f32.mrb[10].mxu1 }
 0x73e   : > { %v3420_v6 = vpop.permute.xlu1 %3419  ;;  %4553 = vst.msk [vmem:[#allocation3 + $0xae] sm:$0x3] %vm11790_vm0, %v4442_v47  ;;  %v9803_v19 = vpop.f32.mrb[11].mxu1  ;;  %vm11801_vm0 = vcmask 162945  }
 0x73f   : > { %3527 = vst.msk [vmem:[#allocation3 + $0xbe] sm:$0xfc] %vm11789_vm15, %v3420_v6  ;;  %4455 = vrot.lane.b32.xlu0 %v8961_v62, %s11585_s19  ;;  %vm11800_vm15 = vcmask 162944  }
 0x740   : > { %4457 = vrot.lane.b32.xlu1 %v8959_v28, %s11585_s19 }
 0x741   : > { %v3422_v55 = vpop.permute.xlu0 %3421 }
 0x742   : > { %v3424_v57 = vpop.permute.xlu1 %3423  ;;  %3528 = vst.msk [vmem:[#allocation3 + $0xc6] sm:$0xff] %vm11792_vm5, %v3422_v55  ;;  %vm11803_vm5 = vcmask 294144   ;;  %v3071_v55 = vld [vmem:[#allocation2 + $0x190] sm:$0x3] }
 0x743   : > { %3529 = vst.msk [vmem:[#allocation3 + $0xce] sm:$0x3] %vm11791_vm7, %v3424_v57  ;;  %3245 = vrot.lane.b32.xlu0 %v8961_v62, %s6675_s30  ;;  %vm11802_vm7 = vcmask 254176  }
 0x744   : > { %3247 = vrot.lane.b32.xlu1 %v8959_v28, %s6675_s30 }
 0x745   : > { %v4101_v30 = vpop.permute.xlu0 %4100  ;;  %v4590_v0 = vld [vmem:[#allocation3 + $0xa8] sm:$0xff] }
 0x746   : > { %v4103_v52 = vpop.permute.xlu1 %4102  ;;  %4174 = vst.msk [vmem:[#allocation3 + $0xb0] sm:$0xff] %vm11794_vm9, %v4101_v30  ;;  %6575 = vmatmul.mubr.msk.f32.gmra.mrb[20].mxu1 %vm11795_vm10, %v4590_v0  ;;  %vm11805_vm9 = vcmask 57376  }
 0x747   : > { %4175 = vst.msk [vmem:[#allocation3 + $0xb8] sm:$0xff] %vm11793_vm8, %v4103_v52  ;;  %3249 = vrot.lane.b32.xlu0 %v3068_v45, %s6675_s30  ;;  %vm11804_vm8 = vcmask 294146  }
 0x748   : > { %3946 = vrot.lane.b32.xlu1 %v8961_v62, %s11581_s26 }
 0x749   : > { %v3590_v38 = vpop.permute.xlu0 %3589 }
 0x74a   : > { %v3592_v29 = vpop.permute.xlu1 %3591  ;;  %3661 = vst.msk [vmem:[#allocation3 + $0xc0] sm:$0xff] %vm11797_vm1, %v3590_v38  ;;  %vm11807_vm1 = vcmask 97346  }
 0x74b   : > { %3662 = vst.msk [vmem:[#allocation3 + $0xc8] sm:$0xff] %vm11796_vm3, %v3592_v29  ;;  %3948 = vrot.lane.b32.xlu0 %v8959_v28, %s11581_s26  ;;  %vm11806_vm3 = vcmask 189600  }
 0x74c   : > { %3950 = vrot.lane.b32.xlu1 %v3068_v45, %s11581_s26 }
 0x74d   : > { %v4252_v56 = vpop.permute.xlu0 %4251 }
 0x74e   : > { %v4254_v20 = vpop.permute.xlu1 %4253  ;;  %4362 = vst.msk [vmem:[#allocation3 + $0xaf] sm:$0xfe] %vm11799_vm2, %v4252_v56  ;;  %vm11809_vm2 = vcmask 91200  }
 0x74f   : > { %4363 = vst.msk [vmem:[#allocation3 + $0xb7] sm:$0xff] %vm11798_vm11, %v4254_v20  ;;  %4459 = vrot.lane.b32.xlu0 %v3068_v45, %s11585_s19  ;;  %vm11808_vm11 = vcmask 288000  }
 0x750   : > { %3437 = vrot.lane.b32.xlu1 %v8961_v62, %s11584_s18  ;;  %v3069_v62 = vld [vmem:[#allocation2 + $0x180] sm:$0xff] }
 0x751   : > { %v3743_v4 = vpop.permute.xlu0 %3742 }
 0x752   : > { %v3745_v40 = vpop.permute.xlu1 %3744  ;;  %3850 = vst.msk [vmem:[#allocation3 + $0xbf] sm:$0xfe] %vm11801_vm0, %v3743_v4  ;;  %vm11811_vm0 = vcmask 228544  }
 0x753   : > { %3851 = vst.msk [vmem:[#allocation3 + $0xc7] sm:$0xff] %vm11800_vm15, %v3745_v40  ;;  %3439 = vrot.lane.b32.xlu0 %v8959_v28, %s11584_s18  ;;  %vm11810_vm15 = vcmask 97344  }
 0x754   : > { %3441 = vrot.lane.b32.xlu1 %v3068_v45, %s11584_s18 }
 0x755   : > { %v3747_v32 = vpop.permute.xlu0 %3746 }
 0x756   : > { %v4256_v43 = vpop.permute.xlu1 %4255  ;;  %3852 = vst.msk [vmem:[#allocation3 + $0xcf] sm:$0x1] %vm1474_vm12, %v3747_v32 }
 0x757   : > { %4364 = vst.msk [vmem:[#allocation3 + $0xbf] sm:$0x1] %vm11802_vm7, %v4256_v43  ;;  %4112 = vrot.lane.b32.xlu0 %v3069_v62, %s11586_s20  ;;  %vm11812_vm7 = vmmov %vm11811_vm0  ;;  %v3073_v43 = vld [vmem:[#allocation2 + $0x1a0] sm:$0xff] }
 0x758   : > { %4114 = vrot.lane.b32.xlu1 %v3070_v58, %s11586_s20 }
 0x759   : > { %v4444_v25 = vpop.permute.xlu0 %4443 }
 0x75a   : > { %v4446_v36 = vpop.permute.xlu1 %4445  ;;  %4554 = vst.msk [vmem:[#allocation3 + $0xae] sm:$0xfc] %vm11804_vm8, %v4444_v25  ;;  %vm11814_vm8 = vcmask 130144  }
 0x75b   : > { %4555 = vst.msk [vmem:[#allocation3 + $0xb6] sm:$0xff] %vm11803_vm5, %v4446_v36  ;;  %3601 = vrot.lane.b32.xlu0 %v3069_v62, %s11255_s22  ;;  %vm11813_vm5 = vmmov %vm11795_vm10  ;;  %v3072_v36 = vld [vmem:[#allocation2 + $0x198] sm:$0xff] }
 0x75c   : > { %3603 = vrot.lane.b32.xlu1 %v3070_v58, %s11255_s22 }
 0x75d   : > { %v3234_v31 = vpop.permute.xlu0 %3233 }
 0x75e   : > { %v3236_v28 = vpop.permute.xlu1 %3235  ;;  %3338 = vst.msk [vmem:[#allocation3 + $0xcf] sm:$0xfe] %vm948_vm4, %v3234_v31  ;;  %v3074_v31 = vld [vmem:[#allocation2 + $0x1a8] sm:$0x3] }
 0x75f   : > { %3339 = vst.msk [vmem:[#allocation3 + $0xd7] sm:$0xff] %vm950_vm6, %v3236_v28  ;;  %4269 = vrot.lane.b32.xlu0 %v3069_v62, %s11256_s29 }
 0x760   : > { %4271 = vrot.lane.b32.xlu1 %v3070_v58, %s11256_s29 }
 0x761   : > { %v3238_v45 = vpop.permute.xlu0 %3237 }
 0x762   : > { %v3935_v18 = vpop.permute.xlu1 %3934  ;;  %v4591_v6 = vld [vmem:[#allocation3 + $0xb0] sm:$0xff]  ;;  %3340 = vst.msk [vmem:[#allocation3 + $0xdf] sm:$0x1] %vm11805_vm9, %v3238_v45  ;;  %vm11815_vm9 = vmmov %vm11814_vm8 }
 0x763   : > { %4042 = vst.msk [vmem:[#allocation3 + $0xbe] sm:$0xfc] %vm1665_vm14, %v3935_v18  ;;  %6577 = vmatprep.mubr.msk.f32.mxu1 %vm11795_vm10, %v4591_v6  ;;  %3760 = vrot.lane.b32.xlu0 %v3069_v62, %s11257_s23  ;;  %vm11816_vm10 = vcmask 261344  }
 0x764   : > { %3762 = vrot.lane.b32.xlu1 %v3070_v58, %s11257_s23 }
 0x765   : > { %v3937_v57 = vpop.permute.xlu0 %3936 }
 0x766   : > { %v3939_v47 = vpop.permute.xlu1 %3938  ;;  %4043 = vst.msk [vmem:[#allocation3 + $0xc6] sm:$0xff] %vm1667_vm13, %v3937_v57 }
 0x767   : > { %4044 = vst.msk [vmem:[#allocation3 + $0xce] sm:$0x3] %vm11806_vm3, %v3939_v47  ;;  %3764 = vrot.lane.b32.xlu0 %v3071_v55, %s11257_s23  ;;  %vm11817_vm3 = vcmask 261345  }
 0x768   : > { %4273 = vrot.lane.b32.xlu1 %v3071_v55, %s11256_s29 }
 0x769   : > { %v4448_v30 = vpop.permute.xlu0 %4447  ;;  %v9858_v0 = vpop.f32.mrb[12].mxu1 }
 0x76a   : > { %v3426_v52 = vpop.permute.xlu1 %3425  ;;  %4556 = vst.msk [vmem:[#allocation3 + $0xbe] sm:$0x3] %vm11808_vm11, %v4448_v30  ;;  %v9861_v29 = vpop.f32.mrb[13].mxu1  ;;  %vm11819_vm11 = vcmask 162945  }
 0x76b   : > { %3530 = vst.msk [vmem:[#allocation3 + $0xce] sm:$0xfc] %vm11807_vm1, %v3426_v52  ;;  %4461 = vrot.lane.b32.xlu0 %v3069_v62, %s11585_s19  ;;  %vm11818_vm1 = vcmask 162944  }
 0x76c   : > { %4463 = vrot.lane.b32.xlu1 %v3070_v58, %s11585_s19 }
 0x76d   : > { %v3428_v20 = vpop.permute.xlu0 %3427 }
 0x76e   : > { %v3430_v38 = vpop.permute.xlu1 %3429  ;;  %3531 = vst.msk [vmem:[#allocation3 + $0xd6] sm:$0xff] %vm11810_vm15, %v3428_v20  ;;  %vm11821_vm15 = vcmask 294144  }
 0x76f   : > { %3532 = vst.msk [vmem:[#allocation3 + $0xde] sm:$0x3] %vm11809_vm2, %v3430_v38  ;;  %3952 = vrot.lane.b32.xlu0 %v3069_v62, %s11581_s26  ;;  %vm11820_vm2 = vcmask 254176  }
 0x770   : > { %3954 = vrot.lane.b32.xlu1 %v3070_v58, %s11581_s26 }
 0x771   : > { %v4105_v40 = vpop.permute.xlu0 %4104  ;;  %v4592_v4 = vld [vmem:[#allocation3 + $0xb8] sm:$0xff] }
 0x772   : > { %v4107_v56 = vpop.permute.xlu1 %4106  ;;  %4176 = vst.msk [vmem:[#allocation3 + $0xc0] sm:$0xff] %vm11812_vm7, %v4105_v40  ;;  %6578 = vmatmul.mubr.msk.f32.gmra.mrb[22].mxu1 %vm11813_vm5, %v4592_v4  ;;  %vm11823_vm7 = vcmask 57376  }
 0x773   : > { %4177 = vst.msk [vmem:[#allocation3 + $0xc8] sm:$0xff] %vm11811_vm0, %v4107_v56  ;;  %3956 = vrot.lane.b32.xlu0 %v3071_v55, %s11581_s26  ;;  %vm11822_vm0 = vcmask 294146  }
 0x774   : > { %4465 = vrot.lane.b32.xlu1 %v3071_v55, %s11585_s19 }
 0x775   : > { %v3594_v58 = vpop.permute.xlu0 %3593 }
 0x776   : > { %v3596_v32 = vpop.permute.xlu1 %3595  ;;  %3663 = vst.msk [vmem:[#allocation3 + $0xd0] sm:$0xff] %vm11815_vm9, %v3594_v58  ;;  %vm11825_vm9 = vcmask 97346  }
 0x777   : > { %3664 = vst.msk [vmem:[#allocation3 + $0xd8] sm:$0xff] %vm11814_vm8, %v3596_v32  ;;  %4116 = vrot.lane.b32.xlu0 %v3072_v36, %s11586_s20  ;;  %vm11824_vm8 = vcmask 189600  }
 0x778   : > { %4118 = vrot.lane.b32.xlu1 %v3073_v43, %s11586_s20 }
 0x779   : > { %v4258_v25 = vpop.permute.xlu0 %4257 }
 0x77a   : > { %v4260_v62 = vpop.permute.xlu1 %4259  ;;  %4365 = vst.msk [vmem:[#allocation3 + $0xbf] sm:$0xfe] %vm11817_vm3, %v4258_v25  ;;  %vm11827_vm3 = vcmask 91200  }
 0x77b   : > { %4366 = vst.msk [vmem:[#allocation3 + $0xc7] sm:$0xff] %vm11816_vm10, %v4260_v62  ;;  %4275 = vrot.lane.b32.xlu0 %v3072_v36, %s11256_s29  ;;  %vm11826_vm10 = vcmask 288000  }
 0x77c   : > { %4277 = vrot.lane.b32.xlu1 %v3073_v43, %s11256_s29 }
 0x77d   : > { %v3749_v18 = vpop.permute.xlu0 %3748 }
 0x77e   : > { %v3751_v28 = vpop.permute.xlu1 %3750  ;;  %3853 = vst.msk [vmem:[#allocation3 + $0xcf] sm:$0xfe] %vm11819_vm11, %v3749_v18  ;;  %vm11829_vm11 = vcmask 228544  }
 0x77f   : > { %3854 = vst.msk [vmem:[#allocation3 + $0xd7] sm:$0xff] %vm11818_vm1, %v3751_v28  ;;  %4279 = vrot.lane.b32.xlu0 %v3074_v31, %s11256_s29  ;;  %vm11828_vm1 = vcmask 97344  }
 0x780   : > { %4467 = vrot.lane.b32.xlu1 %v3072_v36, %s11585_s19 }
 0x781   : > { %v3753_v6 = vpop.permute.xlu0 %3752 }
 0x782   : > { %v4262_v45 = vpop.permute.xlu1 %4261  ;;  %3855 = vst.msk [vmem:[#allocation3 + $0xdf] sm:$0x1] %vm1474_vm12, %v3753_v6 }
 0x783   : > { %4367 = vst.msk [vmem:[#allocation3 + $0xcf] sm:$0x1] %vm11820_vm2, %v4262_v45  ;;  %4469 = vrot.lane.b32.xlu0 %v3073_v43, %s11585_s19  ;;  %vm11830_vm2 = vmmov %vm11829_vm11 }
 0x784   : > { %4471 = vrot.lane.b32.xlu1 %v3074_v31, %s11585_s19  ;;  %s12117_s19 = sshll.u32 %s12181_s25, 8 }
 0x785   : > { %v4450_v57 = vpop.permute.xlu0 %4449  ;;  %s10978_s21 = scalar_lea.vmem %s11104_s17, %s12117_s19 }
 0x786   : > { %v4452_v47 = vpop.permute.xlu1 %4451  ;;  %4557 = vst.msk [vmem:[#allocation3 + $0xbe] sm:$0xfc] %vm11822_vm0, %v4450_v57  ;;  %vm11832_vm0 = vcmask 130144  }
 0x787   : > { %4558 = vst.msk [vmem:[#allocation3 + $0xc6] sm:$0xff] %vm11821_vm15, %v4452_v47  ;;  %vm11831_vm15 = vmmov %vm11813_vm5 }
 0x789   : > { %v3240_v52 = vpop.permute.xlu0 %3239 }
 0x78a   : > { %v3242_v55 = vpop.permute.xlu1 %3241  ;;  %3341 = vst.msk [vmem:[#allocation3 + $0xdf] sm:$0xfe] %vm948_vm4, %v3240_v52 }
 0x78b   : > { %3342 = vst.msk [vmem:[#allocation3 + $0xe7] sm:$0xff] %vm950_vm6, %v3242_v55 }
 0x78d   : > { %v3244_v38 = vpop.permute.xlu0 %3243 }
 0x78e   : > { %v3941_v30 = vpop.permute.xlu1 %3940  ;;  %v4593_v20 = vld [vmem:[#allocation3 + $0xc0] sm:$0xff]  ;;  %3343 = vst.msk [vmem:[#allocation3 + $0xef] sm:$0x1] %vm11823_vm7, %v3244_v38  ;;  %vm11833_vm7 = vmmov %vm11832_vm0 }
 0x78f   : > { %4045 = vst.msk [vmem:[#allocation3 + $0xce] sm:$0xfc] %vm1665_vm14, %v3941_v30  ;;  %6580 = vmatprep.mubr.msk.f32.mxu1 %vm11813_vm5, %v4593_v20  ;;  %vm11834_vm5 = vcmask 261344  }
 0x791   : > { %v3943_v40 = vpop.permute.xlu0 %3942 }
 0x792   : > { %v3945_v56 = vpop.permute.xlu1 %3944  ;;  %4046 = vst.msk [vmem:[#allocation3 + $0xd6] sm:$0xff] %vm1667_vm13, %v3943_v40 }
 0x793   : > { %4047 = vst.msk [vmem:[#allocation3 + $0xde] sm:$0x3] %vm11824_vm8, %v3945_v56  ;;  %vm11835_vm8 = vcmask 261345  }
 0x795   : > { %v4454_v43 = vpop.permute.xlu0 %4453  ;;  %v9900_v32 = vpop.f32.mrb[14].mxu1 }
 0x796   : > { %v3432_v4 = vpop.permute.xlu1 %3431  ;;  %4559 = vst.msk [vmem:[#allocation3 + $0xce] sm:$0x3] %vm11826_vm10, %v4454_v43  ;;  %v9903_v36 = vpop.f32.mrb[15].mxu1  ;;  %vm11837_vm10 = vcmask 162945  }
 0x797   : > { %3533 = vst.msk [vmem:[#allocation3 + $0xde] sm:$0xfc] %vm11825_vm9, %v3432_v4  ;;  %vm11836_vm9 = vcmask 162944  }
 0x799   : > { %v3434_v62 = vpop.permute.xlu0 %3433 }
 0x79a   : > { %v3436_v58 = vpop.permute.xlu1 %3435  ;;  %3534 = vst.msk [vmem:[#allocation3 + $0xe6] sm:$0xff] %vm11828_vm1, %v3434_v62  ;;  %vm11839_vm1 = vcmask 294144  }
 0x79b   : > { %3535 = vst.msk [vmem:[#allocation3 + $0xee] sm:$0x3] %vm11827_vm3, %v3436_v58  ;;  %vm11838_vm3 = vcmask 254176  }
 0x79d   : > { %v4109_v28 = vpop.permute.xlu0 %4108  ;;  %v4594_v31 = vld [vmem:[#allocation3 + $0xc8] sm:$0xff] }
 0x79e   : > { %v4111_v25 = vpop.permute.xlu1 %4110  ;;  %4178 = vst.msk [vmem:[#allocation3 + $0xd0] sm:$0xff] %vm11830_vm2, %v4109_v28  ;;  %6581 = vmatmul.mubr.msk.f32.gmra.mrb[24].mxu1 %vm11831_vm15, %v4594_v31  ;;  %vm11841_vm2 = vcmask 57376  }
 0x79f   : > { %4179 = vst.msk [vmem:[#allocation3 + $0xd8] sm:$0xff] %vm11829_vm11, %v4111_v25  ;;  %vm11840_vm11 = vcmask 294146  }
 0x7a1   : > { %v3598_v45 = vpop.permute.xlu0 %3597 }
 0x7a2   : > { %v3600_v18 = vpop.permute.xlu1 %3599  ;;  %3665 = vst.msk [vmem:[#allocation3 + $0xe0] sm:$0xff] %vm11833_vm7, %v3598_v45  ;;  %vm11845_vm7 = vcmask 91200  }
 0x7a3   : > { %3666 = vst.msk [vmem:[#allocation3 + $0xe8] sm:$0xff] %vm11832_vm0, %v3600_v18  ;;  %vm11842_vm0 = vcmask 189600  }
 0x7a5   : > { %v4264_v47 = vpop.permute.xlu0 %4263 }
 0x7a6   : > { %v4266_v6 = vpop.permute.xlu1 %4265  ;;  %4368 = vst.msk [vmem:[#allocation3 + $0xcf] sm:$0xfe] %vm11835_vm8, %v4264_v47  ;;  %vm11847_vm8 = vcmask 228544  }
 0x7a7   : > { %4369 = vst.msk [vmem:[#allocation3 + $0xd7] sm:$0xff] %vm11834_vm5, %v4266_v6  ;;  %vm11846_vm5 = vcmask 97344  }
 0x7a9   : > { %v3755_v55 = vpop.permute.xlu0 %3754 }
 0x7aa   : > { %v3757_v57 = vpop.permute.xlu1 %3756  ;;  %3856 = vst.msk [vmem:[#allocation3 + $0xdf] sm:$0xfe] %vm11837_vm10, %v3755_v55  ;;  %vm11849_vm10 = vmmov %vm11831_vm15 }
 0x7ab   : > { %3857 = vst.msk [vmem:[#allocation3 + $0xe7] sm:$0xff] %vm11836_vm9, %v3757_v57  ;;  %vm11848_vm9 = vmmov %vm11847_vm8 }
 0x7ad   : > { %v3759_v30 = vpop.permute.xlu0 %3758 }
 0x7ae   : > { %v4268_v52 = vpop.permute.xlu1 %4267  ;;  %3858 = vst.msk [vmem:[#allocation3 + $0xef] sm:$0x1] %vm1474_vm12, %v3759_v30 }
 0x7af   : > { %4370 = vst.msk [vmem:[#allocation3 + $0xdf] sm:$0x1] %vm11838_vm3, %v4268_v52  ;;  %vm11850_vm3 = vcmask 130144  }
 0x7b1   : > { %v4456_v20 = vpop.permute.xlu0 %4455 }
 0x7b2   : > { %v4458_v38 = vpop.permute.xlu1 %4457  ;;  %4560 = vst.msk [vmem:[#allocation3 + $0xce] sm:$0xfc] %vm11840_vm11, %v4456_v20  ;;  %vm11852_vm11 = vcmask 261344  }
 0x7b3   : > { %4561 = vst.msk [vmem:[#allocation3 + $0xd6] sm:$0xff] %vm11839_vm1, %v4458_v38  ;;  %vm11851_vm1 = vmmov %vm11850_vm3 }
 0x7b5   : > { %v3246_v40 = vpop.permute.xlu0 %3245 }
 0x7b6   : > { %v3248_v56 = vpop.permute.xlu1 %3247  ;;  %3344 = vst.msk [vmem:[#allocation3 + $0xef] sm:$0xfe] %vm948_vm4, %v3246_v40  ;;  %vm11844_vm4 = vcmask 288000  }
 0x7b7   : > { %3345 = vst.msk [vmem:[#allocation3 + $0xf7] sm:$0xff] %vm950_vm6, %v3248_v56  ;;  %vm11843_vm6 = vcmask 97346  }
 0x7b9   : > { %v3250_v43 = vpop.permute.xlu0 %3249 }
 0x7ba   : > { %v3947_v4 = vpop.permute.xlu1 %3946  ;;  %v4595_v58 = vld [vmem:[#allocation3 + $0xd0] sm:$0xff]  ;;  %3346 = vst.msk [vmem:[#allocation3 + $0xff] sm:$0x1] %vm11841_vm2, %v3250_v43  ;;  %vm11853_vm2 = vcmask 261345  }
 0x7bb   : > { %4048 = vst.msk [vmem:[#allocation3 + $0xde] sm:$0xfc] %vm1665_vm14, %v3947_v4  ;;  %6583 = vmatprep.mubr.msk.f32.mxu1 %vm11831_vm15, %v4595_v58  ;;  %vm11854_vm15 = vcmask 162944  }
 0x7bd   : > { %v3949_v25 = vpop.permute.xlu0 %3948 }
 0x7be   : > { %v3951_v62 = vpop.permute.xlu1 %3950  ;;  %4049 = vst.msk [vmem:[#allocation3 + $0xe6] sm:$0xff] %vm1667_vm13, %v3949_v25 }
 0x7bf   : > { %4050 = vst.msk [vmem:[#allocation3 + $0xee] sm:$0x3] %vm11842_vm0, %v3951_v62  ;;  %vm11855_vm0 = vcmask 162945  }
 0x7c1   : > { %v4460_v31 = vpop.permute.xlu0 %4459  ;;  %v9928_v18 = vpop.f32.mrb[16].mxu1 }
 0x7c2   : > { %v3438_v28 = vpop.permute.xlu1 %3437  ;;  %4562 = vst.msk [vmem:[#allocation3 + $0xde] sm:$0x3] %vm11844_vm4, %v4460_v31  ;;  %v9931_v45 = vpop.f32.mrb[17].mxu1  ;;  %vm11857_vm4 = vcmask 294144  }
 0x7c3   : > { %3536 = vst.msk [vmem:[#allocation3 + $0xee] sm:$0xfc] %vm11843_vm6, %v3438_v28  ;;  %vm11856_vm6 = vcmask 254176  }
 0x7c5   : > { %v3440_v47 = vpop.permute.xlu0 %3439 }
 0x7c6   : > { %v3442_v6 = vpop.permute.xlu1 %3441  ;;  %3537 = vst.msk [vmem:[#allocation3 + $0xf6] sm:$0xff] %vm11846_vm5, %v3440_v47  ;;  %vm11859_vm5 = vcmask 288000  }
 0x7c7   : > { %3538 = vst.msk [vmem:[#allocation3 + $0xfe] sm:$0x3] %vm11845_vm7, %v3442_v6  ;;  %vm11858_vm7 = vcmask 294146  }
 0x7c9   : > { %v4113_v55 = vpop.permute.xlu0 %4112  ;;  %v4596_v52 = vld [vmem:[#allocation3 + $0xd8] sm:$0xff] }
 0x7ca   : > { %v4115_v57 = vpop.permute.xlu1 %4114  ;;  %4180 = vst.msk [vmem:[#allocation3 + $0xe0] sm:$0xff] %vm11848_vm9, %v4113_v55  ;;  %6584 = vmatmul.mubr.msk.f32.gmra.mrb[26].mxu1 %vm11849_vm10, %v4596_v52 }
 0x7cb   : > { %4181 = vst.msk [vmem:[#allocation3 + $0xe8] sm:$0xff] %vm11847_vm8, %v4115_v57  ;;  %vm11860_vm8 = vcmask 189600  }
 0x7cd   : > { %v3602_v38 = vpop.permute.xlu0 %3601 }
 0x7ce   : > { %v3604_v30 = vpop.permute.xlu1 %3603  ;;  %3667 = vst.msk [vmem:[#allocation3 + $0xf0] sm:$0xff] %vm11851_vm1, %v3602_v38  ;;  %vm11866_vm1 = vmmov %vm11858_vm7 }
 0x7cf   : > { %3668 = vst.msk [vmem:[#allocation3 + $0xf8] sm:$0xff] %vm11850_vm3, %v3604_v30  ;;  %vm11865_vm3 = vmmov %vm11853_vm2 }
 0x7d1   : > { %v4270_v56 = vpop.permute.xlu0 %4269 }
 0x7d2   : > { %v4272_v20 = vpop.permute.xlu1 %4271  ;;  %4371 = vst.msk [vmem:[#allocation3 + $0xdf] sm:$0xfe] %vm11853_vm2, %v4270_v56  ;;  %vm11868_vm2 = vmmov %vm11859_vm5 }
 0x7d3   : > { %4372 = vst.msk [vmem:[#allocation3 + $0xe7] sm:$0xff] %vm11852_vm11, %v4272_v20 }
 0x7d5   : > { %v3761_v4 = vpop.permute.xlu0 %3760 }
 0x7d6   : > { %v3763_v40 = vpop.permute.xlu1 %3762  ;;  %3859 = vst.msk [vmem:[#allocation3 + $0xef] sm:$0xfe] %vm11855_vm0, %v3761_v4 }
 0x7d7   : > { %3860 = vst.msk [vmem:[#allocation3 + $0xf7] sm:$0xff] %vm11854_vm15, %v3763_v40  ;;  %vm11869_vm15 = vmmov %vm11857_vm4 }
 0x7d9   : > { %v3765_v58 = vpop.permute.xlu0 %3764 }
 0x7da   : > { %v4274_v43 = vpop.permute.xlu1 %4273  ;;  %3861 = vst.msk [vmem:[#allocation3 + $0xff] sm:$0x1] %vm1474_vm12, %v3765_v58  ;;  %vm11861_vm12 = vmmov %vm11849_vm10 }
 0x7db   : > { %4373 = vst.msk [vmem:[#allocation3 + $0xef] sm:$0x1] %vm11856_vm6, %v4274_v43  ;;  %vm11862_vm10 = vmmov %vm11848_vm9 }
 0x7dc   : > { %vm11870_vm0 = vmmov %vm11861_vm12 }
 0x7dd   : > { %v4462_v25 = vpop.permute.xlu0 %4461 }
 0x7de   : > { %v4464_v62 = vpop.permute.xlu1 %4463  ;;  %4563 = vst.msk [vmem:[#allocation3 + $0xde] sm:$0xfc] %vm11858_vm7, %v4462_v25 }
 0x7df   : > { %4564 = vst.msk [vmem:[#allocation3 + $0xe6] sm:$0xff] %vm11857_vm4, %v4464_v62  ;;  %vm11872_vm4 = vcmask 31744  }
 0x7e0   : > { %vm11873_vm7 = vmmov %vm11872_vm4 }
 0x7e1   : > { %v3953_v31 = vpop.permute.xlu0 %3952 }
 0x7e2   : > { %v3955_v28 = vpop.permute.xlu1 %3954  ;;  %4051 = vst.msk [vmem:[#allocation3 + $0xee] sm:$0xfc] %vm1665_vm14, %v3953_v31  ;;  %vm11864_vm14 = vmmov %vm11861_vm12 }
 0x7e3   : > { %4052 = vst.msk [vmem:[#allocation3 + $0xf6] sm:$0xff] %vm1667_vm13, %v3955_v28  ;;  %vm11863_vm13 = vmmov %vm11852_vm11 }
 0x7e4   : > { %vm11867_vm11 = vmmov %vm11856_vm6 }
 0x7e5   : > { %v3957_v47 = vpop.permute.xlu0 %3956  ;;  %vm11871_vm6 = vmmov %vm11870_vm0 }
 0x7e6   : > { %v4466_v6 = vpop.permute.xlu1 %4465  ;;  %v4597_v57 = vld [vmem:[#allocation3 + $0xe0] sm:$0xff]  ;;  %4053 = vst.msk [vmem:[#allocation3 + $0xfe] sm:$0x3] %vm11860_vm8, %v3957_v47  ;;  %vm11875_vm8 = vmmov %vm11872_vm4 }
 0x7e7   : > { %4565 = vst.msk [vmem:[#allocation3 + $0xee] sm:$0x3] %vm11859_vm5, %v4466_v6  ;;  %6586 = vmatprep.mubr.msk.f32.mxu1 %vm11861_vm12, %v4597_v57  ;;  %vm11874_vm5 = vmmov %vm11872_vm4 }
 0x7e8   : > { %vm11876_vm12 = vmmov %vm11872_vm4 }
 0x7e9   : > { %v4117_v52 = vpop.permute.xlu0 %4116 }
 0x7ea   : > { %v4119_v55 = vpop.permute.xlu1 %4118  ;;  %4182 = vst.msk [vmem:[#allocation3 + $0xf0] sm:$0xff] %vm11862_vm10, %v4117_v52  ;;  %vm11878_vm10 = vmmov %vm11872_vm4 }
 0x7eb   : > { %4183 = vst.msk [vmem:[#allocation3 + $0xf8] sm:$0xff] %vm11848_vm9, %v4119_v55  ;;  %v9979_v55 = vld [vmem:[%s11093_s6] ss:$0 sm:$0xff]  ;;  %vm11877_vm9 = vmmov %vm11872_vm4 }
 0x7ec   : > { %v9983_v52 = vadd.f32 %v9469_v5, %v9979_v55  ;;  %v10017_v44 = vadd.f32 %v9601_v49, %v9979_v55  ;;  %v10033_v49 = vadd.f32 %v9979_v55, %v9736_v61 }
 0x7ed   : > { %v4276_v20 = vpop.permute.xlu0 %4275  ;;  %v9956_v56 = vpop.f32.mrb[18].mxu1 }
 0x7ee   : > { %v4278_v30 = vpop.permute.xlu1 %4277  ;;  %v4598_v38 = vld [vmem:[#allocation3 + $0xe8] sm:$0xff]  ;;  %4374 = vst.msk [vmem:[#allocation3 + $0xef] sm:$0xfe] %vm11865_vm3, %v4276_v20  ;;  %v9960_v40 = vpop.f32.mrb[19].mxu1  ;;  %vm11881_vm3 = vmmov %vm11872_vm4  ;;  %v10101_v15 = vadd.f32 %v9956_v56, %v9979_v55 }
 0x7ef   : > { %4375 = vst.msk [vmem:[#allocation3 + $0xf7] sm:$0xff] %vm11863_vm13, %v4278_v30  ;;  %6587 = vmatmul.mubr.msk.f32.gmra.mrb[28].mxu1 %vm11864_vm14, %v4598_v38  ;;  %v9987_v30 = vadd.f32 %v9979_v55, %v9472_v39  ;;  %v9991_v38 = vadd.f32 %v9979_v55, %v9538_v17  ;;  %v10005_v39 = vadd.f32 %v9535_v54, %v9979_v55  ;;  %vm11879_vm13 = vmmov %vm11872_vm4 }
 0x7f0   : > { %v10009_v17 = vadd.f32 %v9979_v55, %v9604_v26  ;;  %v10021_v54 = vadd.f32 %v9979_v55, %v9670_v63  ;;  %v4946_v26 = vsel %vm11877_vm9, %v10017_v44, 0.0  ;;  %vm11880_vm14 = vmmov %vm11872_vm4 }
 0x7f1   : > { %v4280_v43 = vpop.permute.xlu0 %4279  ;;  %v4940_v5 = vsel %vm11874_vm5, %v9991_v38, 0.0 }
 0x7f2   : > { %v4468_v4 = vpop.permute.xlu1 %4467  ;;  %4376 = vst.msk [vmem:[#allocation3 + $0xff] sm:$0x1] %vm11867_vm11, %v4280_v43  ;;  %v4937_v43 = vsel %vm11873_vm7, %v9987_v30, 0.0  ;;  %v4944_v51 = vsel %vm11876_vm12, %v10009_v17, 0.0 }
 0x7f3   : > { %4566 = vst.msk [vmem:[#allocation3 + $0xee] sm:$0xfc] %vm11866_vm1, %v4468_v4  ;;  %v4938_v4 = vsel %vm11872_vm4, %v9983_v52, 0.0  ;;  %vm11882_vm1 = vmmov %vm11881_vm3 }
 0x7f4   : > { %vm11883_vm11 = vmmov %vm11882_vm1 }
 0x7f5   : > { %v4470_v62 = vpop.permute.xlu0 %4469 }
 0x7f6   : > { %v4472_v58 = vpop.permute.xlu1 %4471  ;;  %4567 = vst.msk [vmem:[#allocation3 + $0xf6] sm:$0xff] %vm11869_vm15, %v4470_v62  ;;  %v4939_v62 = vadd.f32 %v4938_v4, %v4937_v43  ;;  %v4948_v43 = vsel %vm11878_vm10, %v10021_v54, 0.0  ;;  %vm11885_vm15 = vmmov %vm11882_vm1 }
 0x7f7   : > { %4568 = vst.msk [vmem:[#allocation3 + $0xfe] sm:$0x3] %vm11868_vm2, %v4472_v58  ;;  %vm11884_vm2 = vmmov %vm11882_vm1 }
 0x7fd   : > { %v4599_v25 = vld [vmem:[#allocation3 + $0xf0] sm:$0xff] }
 0x7fe   : > { %v4600_v28 = vld [vmem:[#allocation3 + $0xf8] sm:$0xff]  ;;  %6589 = vmatprep.mubr.msk.f32.mxu1 %vm11870_vm0, %v4599_v25  ;;  %v4941_v25 = vadd.f32 %v4940_v5, %v4939_v62  ;;  %v10029_v62 = vadd.f32 %v9667_v59, %v9979_v55  ;;  %v10045_v59 = vadd.f32 %v9979_v55, %v9803_v19  ;;  %vm11886_vm0 = vmmov %vm11882_vm1 }
 0x7ff   : > { %6590 = vmatmul.mubr.msk.f32.gmra.mrb[30].mxu1 %vm11871_vm6, %v4600_v28  ;;  %v4942_v28 = vsel %vm11875_vm8, %v10005_v39, 0.0  ;;  %vm11887_vm6 = vmmov %vm11886_vm0 }
 0x800   : > { %v4943_v27 = vadd.f32 %v4942_v28, %v4941_v25  ;;  %v4950_v63 = vsel %vm11879_vm13, %v10029_v62, 0.0  ;;  %v10041_v28 = vadd.f32 %v9733_v13, %v9979_v55  ;;  %v10057_v13 = vadd.f32 %v9979_v55, %v9861_v29  ;;  %vm11888_vm4 = vmmov %vm11886_vm0 }
 0x801   : > { %vm11889_vm7 = vmmov %vm11886_vm0 }
 0x802   : > { %v4945_v4 = vadd.f32 %v4944_v51, %v4943_v27  ;;  %v4952_v27 = vsel %vm11880_vm14, %v10033_v49, 0.0  ;;  %v4954_v61 = vsel %vm11881_vm3, %v10041_v28, 0.0  ;;  %vm11890_vm5 = vmmov %vm11886_vm0 }
 0x803   : > { %vm11891_vm8 = vmmov %vm11886_vm0 }
 0x804   : > { %v4947_v5 = vadd.f32 %v4946_v26, %v4945_v4  ;;  %v4956_v26 = vsel %vm11882_vm1, %v10045_v59, 0.0  ;;  %vm11892_vm12 = vmmov %vm11886_vm0 }
 0x805   : > { %vm11893_vm9 = vmmov %vm11886_vm0 }
 0x806   : > { %v4949_v25 = vadd.f32 %v4948_v43, %v4947_v5  ;;  %v10053_v5 = vadd.f32 %v9800_v12, %v9979_v55  ;;  %v10069_v12 = vadd.f32 %v9979_v55, %v9903_v36  ;;  %vm11894_vm10 = vmmov %vm11886_vm0 }
 0x807   : > { %vm11895_vm13 = vmmov %vm11886_vm0 }
 0x808   : > { %v4951_v51 = vadd.f32 %v4950_v63, %v4949_v25  ;;  %v4958_v19 = vsel %vm11883_vm11, %v10053_v5, 0.0  ;;  %v4960_v63 = vsel %vm11884_vm2, %v10057_v13, 0.0  ;;  %vm11896_vm14 = vmmov %vm11886_vm0 }
 0x809   : > { %vm11897_vm3 = vmmov %vm11886_vm0 }
 0x80a   : > { %v4953_v4 = vadd.f32 %v4952_v27, %v4951_v51  ;;  %v10065_v51 = vadd.f32 %v9858_v0, %v9979_v55  ;;  %v10081_v0 = vadd.f32 %v9979_v55, %v9931_v45  ;;  %vm11898_vm1 = vmmov %vm11886_vm0 }
 0x80b   : > { %vm11899_vm11 = vmmov %vm11886_vm0 }
 0x80c   : > { %v4955_v43 = vadd.f32 %v4954_v61, %v4953_v4  ;;  %v4962_v29 = vsel %vm11885_vm15, %v10065_v51, 0.0  ;;  %v4964_v61 = vsel %vm11886_vm0, %v10069_v12, 0.0  ;;  %vm11900_vm2 = vmmov %vm11886_vm0 }
 0x80d   : > { %vm11901_vm15 = vmmov %vm11886_vm0 }
 0x80e   : > { %v4957_v25 = vadd.f32 %v4956_v26, %v4955_v43  ;;  %v10077_v43 = vadd.f32 %v9900_v32, %v9979_v55  ;;  %v10093_v32 = vadd.f32 %v9979_v55, %v9960_v40  ;;  %v4974_v40 = vsel %vm11891_vm8, %v10101_v15, 0.0  ;;  %vm11906_vm8 = vmmov %vm11886_vm0 }
 0x810   : > { %v4959_v27 = vadd.f32 %v4958_v19, %v4957_v25  ;;  %v4966_v36 = vsel %vm11887_vm6, %v10077_v43, 0.0  ;;  %vm11902_vm6 = vmmov %vm11886_vm0 }
 0x812   : > { %v4961_v4 = vadd.f32 %v4960_v63, %v4959_v27  ;;  %v4968_v63 = vsel %vm11888_vm4, %v10081_v0, 0.0  ;;  %vm11903_vm4 = vmmov %vm11886_vm0 }
 0x814   : > { %v4963_v26 = vadd.f32 %v4962_v29, %v4961_v4  ;;  %v10089_v4 = vadd.f32 %v9928_v18, %v9979_v55 }
 0x816   : > { %v4965_v25 = vadd.f32 %v4964_v61, %v4963_v26  ;;  %v4970_v29 = vsel %vm11889_vm7, %v10089_v4, 0.0  ;;  %v4972_v61 = vsel %vm11890_vm5, %v10093_v32, 0.0  ;;  %vm11904_vm7 = vmmov %vm11886_vm0 }
 0x817   : > { %vm11905_vm5 = vmmov %vm11886_vm0 }
 0x818   : > { %v4967_v23 = vadd.f32 %v4966_v36, %v4965_v25 }
 0x819   : > { %v9968_v31 = vpop.f32.mrb[20].mxu1 }
 0x81a   : > { %v9970_v6 = vpop.f32.mrb[21].mxu1  ;;  %v4969_v45 = vadd.f32 %v4968_v63, %v4967_v23  ;;  %v10113_v63 = vadd.f32 %v9968_v31, %v9979_v55 }
 0x81b   : > { %v10105_v18 = vadd.f32 %v9979_v55, %v9970_v6 }
 0x81c   : > { %v4971_v26 = vadd.f32 %v4970_v29, %v4969_v45  ;;  %v4978_v6 = vsel %vm11893_vm9, %v10113_v63, 0.0  ;;  %vm11908_vm9 = vmmov %vm11886_vm0 }
 0x81d   : > { %v4976_v23 = vsel %vm11892_vm12, %v10105_v18, 0.0  ;;  %vm11907_vm12 = vmmov %vm11886_vm0 }
 0x81e   : > { %v4973_v25 = vadd.f32 %v4972_v61, %v4971_v26 }
 0x820   : > { %v4975_v36 = vadd.f32 %v4974_v40, %v4973_v25 }
 0x822   : > { %v4977_v45 = vadd.f32 %v4976_v23, %v4975_v36 }
 0x824   : > { %v4979_v61 = vadd.f32 %v4978_v6, %v4977_v45 }
 0x845   : > { %v9972_v47 = vpop.f32.mrb[22].mxu1 }
 0x846   : > { %v9974_v57 = vpop.f32.mrb[23].mxu1  ;;  %v10125_v26 = vadd.f32 %v9972_v47, %v9979_v55 }
 0x847   : > { %v10117_v56 = vadd.f32 %v9979_v55, %v9974_v57 }
 0x848   : > { %v4982_v57 = vsel %vm11895_vm13, %v10125_v26, 0.0  ;;  %vm11910_vm13 = vmmov %vm11886_vm0 }
 0x849   : > { %v4980_v29 = vsel %vm11894_vm10, %v10117_v56, 0.0  ;;  %vm11909_vm10 = vmmov %vm11886_vm0 }
 0x84a   : > { %v4981_v25 = vadd.f32 %v4980_v29, %v4979_v61 }
 0x84c   : > { %v4983_v23 = vadd.f32 %v4982_v57, %v4981_v25 }
 0x871   : > { %v9993_v20 = vpop.f32.mrb[24].mxu1 }
 0x872   : > { %v9999_v58 = vpop.f32.mrb[25].mxu1  ;;  %v10137_v36 = vadd.f32 %v9993_v20, %v9979_v55 }
 0x873   : > { %v10129_v31 = vadd.f32 %v9979_v55, %v9999_v58 }
 0x874   : > { %v4986_v58 = vsel %vm11897_vm3, %v10137_v36, 0.0  ;;  %vm11912_vm3 = vmmov %vm11886_vm0 }
 0x875   : > { %v4984_v40 = vsel %vm11896_vm14, %v10129_v31, 0.0  ;;  %vm11911_vm14 = vmmov %vm11886_vm0 }
 0x876   : > { %v4985_v47 = vadd.f32 %v4984_v40, %v4983_v23 }
 0x878   : > { %v4987_v29 = vadd.f32 %v4986_v58, %v4985_v47 }
 0x89d   : > { %v6585_v19 = vpop.f32.mrb[26].mxu1 }
 0x89e   : > { %v4908_v27 = vpop.f32.mrb[27].mxu1  ;;  %v10147_v61 = vadd.f32 %v6585_v19, %v9979_v55 }
 0x89f   : > { %v10140_v45 = vadd.f32 %v9979_v55, %v4908_v27 }
 0x8a0   : > { %v4990_v20 = vsel %vm11899_vm11, %v10147_v61, 0.0  ;;  %vm11914_vm11 = vmmov %vm11886_vm0 }
 0x8a1   : > { %v4988_v6 = vsel %vm11898_vm1, %v10140_v45, 0.0  ;;  %vm11913_vm1 = vmmov %vm11886_vm0 }
 0x8a2   : > { %v4989_v50 = vadd.f32 %v4988_v6, %v4987_v29 }
 0x8a4   : > { %v4991_v23 = vadd.f32 %v4990_v20, %v4989_v50 }
 0x8c2   : > { %v6588_v25 = vpop.f32.mrb[28].mxu1 }
 0x8c3   : > { %v4918_v57 = vpop.f32.mrb[29].mxu1  ;;  %v4924_v27 = vadd.f32 %v6588_v25, %v9979_v55 }
 0x8c4   : > { %v4919_v40 = vadd.f32 %v9979_v55, %v4918_v57 }
 0x8c5   : > { %v4994_v21 = vsel %vm11901_vm15, %v4924_v27, 0.0  ;;  %vm11916_vm15 = vmmov %vm11886_vm0 }
 0x8c6   : > { %v4992_v14 = vsel %vm11900_vm2, %v4919_v40, 0.0  ;;  %vm11915_vm2 = vmmov %vm11886_vm0 }
 0x8c7   : > { %v4993_v33 = vadd.f32 %v4992_v14, %v4991_v23 }
 0x8c9   : > { %v4995_v47 = vadd.f32 %v4994_v21, %v4993_v33 }
 0x8d2   : > { %v6591_v58 = vpop.f32.mrb[30].mxu1 }
 0x8d3   : > { %v4928_v19 = vpop.f32.mrb[31].mxu1  ;;  %v4934_v6 = vadd.f32 %v6591_v58, %v9979_v55 }
 0x8d4   : > { %v4929_v29 = vadd.f32 %v9979_v55, %v4928_v19 }
 0x8d5   : > { %v4998_v25 = vsel %vm11902_vm6, %v4934_v6, 0.0  ;;  %vm11917_vm6 = vmmov %vm11886_vm0 }
 0x8d6   : > { %v4996_v10 = vsel %vm11886_vm0, %v4929_v29, 0.0 }
 0x8d7   : > { %v4997_v8 = vadd.f32 %v4996_v10, %v4995_v47 }
 0x8d9   : > { %v4999_v3 = vadd.f32 %v4998_v25, %v4997_v8 }
 0x8db   : > { %v5000_v57 = vrot.slane %v4999_v3, 4 }
 0x8dd   : > { %v5001_v50 = vadd.f32 %v5000_v57, %v4999_v3 }
 0x8df   : > { %v5002_v20 = vrot.slane %v5001_v50, 2 }
 0x8e1   : > { %v5003_v1 = vadd.f32 %v5002_v20, %v5001_v50 }
 0x8e3   : > { %v5004_v14 = vrot.slane %v5003_v1, 1 }
 0x8e5   : > { %v5005_v23 = vadd.f32 %v5004_v14, %v5003_v1 }
 0x8e7   : > { %v10159_v46 = vmul.f32 0.00390625, %v5005_v23 }
 0x8e9   : > { %v10162_v21 = vsub.f32 %v4919_v40, %v10159_v46  ;;  %v10165_v33 = vsub.f32 %v4924_v27, %v10159_v46  ;;  %v10168_v55 = vsub.f32 %v4929_v29, %v10159_v46  ;;  %v10171_v10 = vsub.f32 %v4934_v6, %v10159_v46 }
 0x8ea   : > { %v10175_v3 = vsub.f32 %v9987_v30, %v10159_v46  ;;  %v10179_v1 = vsub.f32 %v9983_v52, %v10159_v46  ;;  %v10183_v8 = vsub.f32 %v9991_v38, %v10159_v46  ;;  %v10187_v27 = vsub.f32 %v10005_v39, %v10159_v46 }
 0x8eb   : > { %v10195_v30 = vsub.f32 %v10009_v17, %v10159_v46  ;;  %v10201_v38 = vsub.f32 %v10017_v44, %v10159_v46  ;;  %v10209_v29 = vsub.f32 %v10021_v54, %v10159_v46  ;;  %v10216_v44 = vsub.f32 %v10029_v62, %v10159_v46 }
 0x8ec   : > { %v5039_v40 = vmul.f32 %v10175_v3, %v10175_v3  ;;  %v5040_v47 = vmul.f32 %v10179_v1, %v10179_v1  ;;  %v5041_v52 = vmul.f32 %v10183_v8, %v10183_v8  ;;  %v5042_v39 = vmul.f32 %v10187_v27, %v10187_v27 }
 0x8ed   : > { %v5043_v17 = vmul.f32 %v10195_v30, %v10195_v30  ;;  %v5044_v50 = vmul.f32 %v10201_v38, %v10201_v38  ;;  %v10223_v54 = vsub.f32 %v10033_v49, %v10159_v46  ;;  %v5045_v23 = vmul.f32 %v10209_v29, %v10209_v29 }
 0x8ee   : > { %v5071_v58 = vsel %vm11903_vm4, %v5039_v40, 0.0  ;;  %v5072_v19 = vsel %vm11904_vm7, %v5040_v47, 0.0  ;;  %v5074_v25 = vsel %vm11905_vm5, %v5041_v52, 0.0  ;;  %v5076_v20 = vsel %vm11906_vm8, %v5042_v39, 0.0  ;;  %vm11918_vm4 = vmmov %vm11886_vm0 }
 0x8ef   : > { %v5073_v6 = vadd.f32 %v5072_v19, %v5071_v58  ;;  %v5078_v40 = vsel %vm11907_vm12, %v5043_v17, 0.0  ;;  %v10230_v62 = vsub.f32 %v10041_v28, %v10159_v46  ;;  %v5046_v52 = vmul.f32 %v10216_v44, %v10216_v44  ;;  %vm11919_vm7 = vmmov %vm11886_vm0 }
 0x8f0   : > { %v5080_v39 = vsel %vm11908_vm9, %v5044_v50, 0.0  ;;  %v10237_v49 = vsub.f32 %v10045_v59, %v10159_v46  ;;  %v5047_v19 = vmul.f32 %v10223_v54, %v10223_v54  ;;  %v10244_v28 = vsub.f32 %v10053_v5, %v10159_v46  ;;  %vm11920_vm5 = vmmov %vm11886_vm0 }
 0x8f1   : > { %v5075_v57 = vadd.f32 %v5074_v25, %v5073_v6  ;;  %v5082_v6 = vsel %vm11909_vm10, %v5045_v23, 0.0  ;;  %v5048_v25 = vmul.f32 %v10230_v62, %v10230_v62  ;;  %v10251_v59 = vsub.f32 %v10057_v13, %v10159_v46  ;;  %vm11921_vm8 = vmmov %vm11886_vm0 }
 0x8f2   : > { %v10258_v5 = vsub.f32 %v10065_v51, %v10159_v46  ;;  %v10265_v13 = vsub.f32 %v10069_v12, %v10159_v46  ;;  %v10272_v51 = vsub.f32 %v10077_v43, %v10159_v46  ;;  %v10279_v12 = vsub.f32 %v10081_v0, %v10159_v46  ;;  %vm11922_vm12 = vmmov %vm11886_vm0 }
 0x8f3   : > { %v5077_v14 = vadd.f32 %v5076_v20, %v5075_v57  ;;  %v5084_v57 = vsel %vm11910_vm13, %v5046_v52, 0.0  ;;  %v5049_v20 = vmul.f32 %v10237_v49, %v10237_v49  ;;  %v10286_v43 = vsub.f32 %v10089_v4, %v10159_v46  ;;  %vm11923_vm9 = vmmov %vm11886_vm0 }
 0x8f4   : > { %v10293_v0 = vsub.f32 %v10093_v32, %v10159_v46  ;;  %v10300_v4 = vsub.f32 %v10101_v15, %v10159_v46  ;;  %v10307_v32 = vsub.f32 %v10105_v18, %v10159_v46  ;;  %v10314_v15 = vsub.f32 %v10113_v63, %v10159_v46  ;;  %vm11924_vm10 = vmmov %vm11886_vm0 }
 0x8f5   : > { %v5079_v47 = vadd.f32 %v5078_v40, %v5077_v14  ;;  %v5086_v14 = vsel %vm11911_vm14, %v5047_v19, 0.0  ;;  %v5050_v40 = vmul.f32 %v10244_v28, %v10244_v28  ;;  %v10321_v18 = vsub.f32 %v10117_v56, %v10159_v46  ;;  %vm11925_vm13 = vmmov %vm11886_vm0 }
 0x8f6   : > { %v10328_v63 = vsub.f32 %v10125_v26, %v10159_v46  ;;  %v10335_v56 = vsub.f32 %v10129_v31, %v10159_v46  ;;  %v10342_v26 = vsub.f32 %v10137_v36, %v10159_v46  ;;  %v10349_v31 = vsub.f32 %v10140_v45, %v10159_v46  ;;  %vm11926_vm14 = vmmov %vm11886_vm0 }
 0x8f7   : > { %v5081_v58 = vadd.f32 %v5080_v39, %v5079_v47  ;;  %v5088_v47 = vsel %vm11912_vm3, %v5048_v25, 0.0  ;;  %v5051_v39 = vmul.f32 %v10251_v59, %v10251_v59  ;;  %v10356_v36 = vsub.f32 %v10147_v61, %v10159_v46  ;;  %vm11928_vm3 = vmmov %vm11886_vm0 }
 0x8f8   : > { %v5065_v45 = vmul.f32 %v10349_v31, %v10349_v31 }
 0x8f9   : > { %v5083_v17 = vadd.f32 %v5082_v6, %v5081_v58  ;;  %v5090_v58 = vsel %vm11913_vm1, %v5049_v20, 0.0  ;;  %v5052_v6 = vmul.f32 %v10258_v5, %v10258_v5  ;;  %v5066_v46 = vmul.f32 %v10356_v36, %v10356_v36 }
 0x8fa   : > { %vm11929_vm1 = vcmask 1043456  }
 0x8fb   : > { %v5085_v50 = vadd.f32 %v5084_v57, %v5083_v17  ;;  %v5092_v17 = vsel %vm11914_vm11, %v5050_v40, 0.0  ;;  %v5053_v57 = vmul.f32 %v10265_v13, %v10265_v13  ;;  %vm11930_vm11 = vmmov %vm11929_vm1 }
 0x8fd   : > { %v5087_v23 = vadd.f32 %v5086_v14, %v5085_v50  ;;  %v5094_v50 = vsel %vm11915_vm2, %v5051_v39, 0.0  ;;  %v5054_v14 = vmul.f32 %v10272_v51, %v10272_v51  ;;  %vm11931_vm2 = vmmov %vm11886_vm0 }
 0x8ff   : > { %v5089_v52 = vadd.f32 %v5088_v47, %v5087_v23  ;;  %v5096_v23 = vsel %vm11916_vm15, %v5052_v6, 0.0  ;;  %v5055_v47 = vmul.f32 %v10279_v12, %v10279_v12  ;;  %vm11932_vm15 = vmmov %vm11929_vm1 }
 0x901   : > { %v5091_v19 = vadd.f32 %v5090_v58, %v5089_v52  ;;  %v5098_v52 = vsel %vm11886_vm0, %v5053_v57, 0.0  ;;  %v5056_v58 = vmul.f32 %v10286_v43, %v10286_v43 }
 0x903   : > { %v5093_v25 = vadd.f32 %v5092_v17, %v5091_v19  ;;  %v5100_v19 = vsel %vm11917_vm6, %v5054_v14, 0.0  ;;  %v5057_v17 = vmul.f32 %v10293_v0, %v10293_v0  ;;  %vm11933_vm6 = vmmov %vm11886_vm0 }
 0x905   : > { %v5095_v20 = vadd.f32 %v5094_v50, %v5093_v25  ;;  %v5102_v25 = vsel %vm11918_vm4, %v5055_v47, 0.0  ;;  %v5058_v50 = vmul.f32 %v10300_v4, %v10300_v4  ;;  %vm11934_vm4 = vmmov %vm11886_vm0 }
 0x907   : > { %v5097_v40 = vadd.f32 %v5096_v23, %v5095_v20  ;;  %v5104_v20 = vsel %vm11919_vm7, %v5056_v58, 0.0  ;;  %v5059_v23 = vmul.f32 %v10307_v32, %v10307_v32  ;;  %vm11935_vm7 = vmmov %vm11886_vm0 }
 0x909   : > { %v5099_v39 = vadd.f32 %v5098_v52, %v5097_v40  ;;  %v5106_v40 = vsel %vm11920_vm5, %v5057_v17, 0.0  ;;  %v5060_v52 = vmul.f32 %v10314_v15, %v10314_v15  ;;  %vm11936_vm5 = vmmov %vm11886_vm0 }
 0x90b   : > { %v5101_v6 = vadd.f32 %v5100_v19, %v5099_v39  ;;  %v5108_v39 = vsel %vm11921_vm8, %v5058_v50, 0.0  ;;  %v5061_v19 = vmul.f32 %v10321_v18, %v10321_v18  ;;  %vm11939_vm8 = vmmov %vm11886_vm0 }
 0x90d   : > { %v5103_v57 = vadd.f32 %v5102_v25, %v5101_v6  ;;  %v5110_v6 = vsel %vm11922_vm12, %v5059_v23, 0.0  ;;  %v5062_v25 = vmul.f32 %v10328_v63, %v10328_v63  ;;  %vm11941_vm12 = vmmov %vm11886_vm0 }
 0x90f   : > { %v5105_v14 = vadd.f32 %v5104_v20, %v5103_v57  ;;  %v5112_v57 = vsel %vm11923_vm9, %v5060_v52, 0.0  ;;  %v5063_v20 = vmul.f32 %v10335_v56, %v10335_v56  ;;  %vm11973_vm9 = vmmov %vm11886_vm0 }
 0x911   : > { %v5107_v47 = vadd.f32 %v5106_v40, %v5105_v14  ;;  %v5114_v14 = vsel %vm11924_vm10, %v5061_v19, 0.0  ;;  %v5064_v40 = vmul.f32 %v10342_v26, %v10342_v26  ;;  %v10367_v19 = vld [vmem:[%s11096_s9] sm:$0xf]  ;;  %vm11974_vm10 = vmmov %vm11886_vm0 }
 0x912   : > { %11927 = vst [vmem:[#allocation36_spill] sm:$0xff] %v10367_v19  ;;  %6592 = vmatprep.subr.msk.mxu0 %vm11929_vm1, %v10367_v19  ;;  %vm11980_vm1 = vmmov %vm11886_vm0 }
 0x913   : > { %v5109_v58 = vadd.f32 %v5108_v39, %v5107_v47  ;;  %v5116_v47 = vsel %vm11925_vm13, %v5062_v25, 0.0  ;;  %v5118_v39 = vsel %vm11926_vm14, %v5063_v20, 0.0  ;;  %v5120_v61 = vsel %vm11928_vm3, %v5064_v40, 0.0  ;;  %6593 = vmatpush3.msk.msra.mxu0 %vm11930_vm11, %v10367_v19  ;;  %vm11975_vm13 = vmmov %vm11886_vm0 }
 0x914   : > { %v5122_v25 = vsel %vm11931_vm2, %v5065_v45, 0.0  ;;  %6602 = vmatprep.subr.msk.mxu0 %vm11932_vm15, %v10367_v19  ;;  %v5124_v20 = vsel %vm11886_vm0, %v5066_v46, 0.0  ;;  %vm11976_vm14 = vmmov %vm11886_vm0 }
 0x915   : > { %v5111_v17 = vadd.f32 %v5110_v6, %v5109_v58  ;;  %vm11978_vm3 = vmmov %vm11886_vm0 }
 0x916   : > { %vm11982_vm11 = vmmov %vm11886_vm0 }
 0x917   : > { %v5113_v50 = vadd.f32 %v5112_v57, %v5111_v17  ;;  %v5067_v17 = vmul.f32 %v10162_v21, %v10162_v21  ;;  %vm11984_vm2 = vmmov %vm11886_vm0 }
 0x918   : > { %vm11986_vm15 = vmmov %vm11886_vm0 }
 0x919   : > { %v5115_v23 = vadd.f32 %v5114_v14, %v5113_v50  ;;  %v5068_v50 = vmul.f32 %v10165_v33, %v10165_v33  ;;  %v5126_v40 = vsel %vm11933_vm6, %v5067_v17, 0.0  ;;  %vm11989_vm6 = vmmov %vm11886_vm0 }
 0x91b   : > { %v5117_v52 = vadd.f32 %v5116_v47, %v5115_v23  ;;  %v5069_v23 = vmul.f32 %v10168_v55, %v10168_v55  ;;  %v5128_v45 = vsel %vm11934_vm4, %v5068_v50, 0.0  ;;  %vm11991_vm4 = vmmov %vm11886_vm0 }
 0x91d   : > { %v5119_v58 = vadd.f32 %v5118_v39, %v5117_v52  ;;  %v5070_v52 = vmul.f32 %v10171_v10, %v10171_v10 }
 0x91f   : > { %v5121_v6 = vadd.f32 %v5120_v61, %v5119_v58  ;;  %v5130_v58 = vsel %vm11935_vm7, %v5069_v23, 0.0  ;;  %v5633_v61 = vld [vmem:[%s11100_s13] sm:$0xff]  ;;  %vm11993_vm7 = vmmov %vm11886_vm0 }
 0x920   : > { %6597 = vmatprep.subr.mxu1 %v5633_v61 }
 0x921   : > { %v5123_v57 = vadd.f32 %v5122_v25, %v5121_v6  ;;  %v5132_v6 = vsel %vm11936_vm5, %v5070_v52, 0.0  ;;  %6598 = vmatpush3.msra.mxu1 %v5633_v61  ;;  %vm11995_vm5 = vmmov %vm11886_vm0 }
 0x923   : > { %v5125_v14 = vadd.f32 %v5124_v20, %v5123_v57 }
 0x925   : > { %v5127_v47 = vadd.f32 %v5126_v40, %v5125_v14 }
 0x927   : > { %v5129_v39 = vadd.f32 %v5128_v45, %v5127_v47  ;;  %v10398_v45 = vld [vmem:[%s11094_s7] ss:$0 sm:$0xff] }
 0x929   : > { %v5131_v46 = vadd.f32 %v5130_v58, %v5129_v39  ;;  %v10405_v58 = vld [vmem:[%s11095_s8] ss:$0 sm:$0xff] }
 0x92b   : > { %v5133_v25 = vadd.f32 %v5132_v6, %v5131_v46 }
 0x92d   : > { %v5134_v17 = vrot.slane %v5133_v25, 4 }
 0x92f   : > { %v5135_v57 = vadd.f32 %v5134_v17, %v5133_v25 }
 0x931   : > { %v5136_v20 = vrot.slane %v5135_v57, 2 }
 0x933   : > { %v5137_v14 = vadd.f32 %v5136_v20, %v5135_v57 }
 0x935   : > { %v5138_v40 = vrot.slane %v5137_v14, 1 }
 0x937   : > { %v5139_v37 = vadd.f32 %v5138_v40, %v5137_v14 }
 0x939   : > { %v5140_v50 = vmul.f32 0.00390625, %v5139_v37 }
 0x93b   : > { %v5141_v47 = vadd.f32 1e-05, %v5140_v50 }
 0x93d   : > { %6648 = vrsqrt.f32 %v5141_v47 }
 0x947   : > { %v6649_v23 = vpop.eup %6648 }
 0x948   : > { %v5173_v39 = vmul.f32 %v6649_v23, %v10168_v55  ;;  %v5174_v52 = vmul.f32 %v6649_v23, %v10171_v10  ;;  %v5143_v61 = vmul.f32 %v6649_v23, %v10175_v3  ;;  %v5144_v37 = vmul.f32 %v6649_v23, %v10179_v1 }
 0x949   : > { %v5145_v46 = vmul.f32 %v6649_v23, %v10183_v8  ;;  %v5146_v6 = vmul.f32 %v6649_v23, %v10187_v27  ;;  %v5147_v55 = vmul.f32 %v6649_v23, %v10195_v30  ;;  %v5148_v10 = vmul.f32 %v6649_v23, %v10201_v38 }
 0x94a   : > { %v5212_v25 = vmul.f32 %v10398_v45, %v5173_v39  ;;  %v5213_v17 = vmul.f32 %v10398_v45, %v5174_v52  ;;  %v5149_v57 = vmul.f32 %v6649_v23, %v10209_v29  ;;  %v5150_v20 = vmul.f32 %v6649_v23, %v10216_v44 }
 0x94b   : > { %v5151_v3 = vmul.f32 %v6649_v23, %v10223_v54  ;;  %v5152_v1 = vmul.f32 %v6649_v23, %v10230_v62  ;;  %v5153_v14 = vmul.f32 %v6649_v23, %v10237_v49  ;;  %v5154_v30 = vmul.f32 %v6649_v23, %v10244_v28 }
 0x94c   : > { %v10420_v8 = vadd.f32 %v10405_v58, %v5212_v25  ;;  %v10423_v27 = vadd.f32 %v10405_v58, %v5213_v17  ;;  %v5155_v38 = vmul.f32 %v6649_v23, %v10251_v59  ;;  %v5156_v29 = vmul.f32 %v6649_v23, %v10258_v5 }
 0x94d   : > { %v5159_v44 = vmul.f32 %v6649_v23, %v10279_v12  ;;  %v5160_v54 = vmul.f32 %v6649_v23, %v10286_v43  ;;  %v5161_v50 = vmul.f32 %v6649_v23, %v10293_v0  ;;  %v5162_v47 = vmul.f32 %v6649_v23, %v10300_v4 }
 0x94e   : > { %11937 = vst [vmem:[#allocation37_spill] sm:$0xff] %v10420_v8  ;;  %11938 = vst [vmem:[#allocation38_spill] sm:$0xff] %v10423_v27  ;;  %v11185_v62 = vmax.f32 %v10420_v8, 0.0  ;;  %v11184_v40 = vmax.f32 %v10423_v27, 0.0  ;;  %v5163_v49 = vmul.f32 %v6649_v23, %v10307_v32  ;;  %v5164_v28 = vmul.f32 %v6649_v23, %v10314_v15 }
 0x94f   : > { %v5165_v59 = vmul.f32 %v6649_v23, %v10321_v18  ;;  %v5166_v5 = vmul.f32 %v6649_v23, %v10328_v63  ;;  %v5167_v0 = vmul.f32 %v6649_v23, %v10335_v56  ;;  %v5168_v4 = vmul.f32 %v6649_v23, %v10342_v26 }
 0x950   : > { %v10442_v12 = vsel %vm11939_vm8, %v11185_v62, 0.0  ;;  %v10447_v43 = vsel %vm11941_vm12, %v11184_v40, 0.0  ;;  %v5169_v15 = vmul.f32 %v6649_v23, %v10349_v31  ;;  %v5170_v18 = vmul.f32 %v6649_v23, %v10356_v36  ;;  %vm11997_vm8 = vmmov %vm11886_vm0 }
 0x951   : > { %11940 = vst [vmem:[#allocation39_spill] sm:$0xff] %v10442_v12  ;;  %11942 = vst [vmem:[#allocation40_spill] sm:$0xff] %v10447_v43  ;;  %v5422_v32 = vadd.f32 %v10447_v43, %v10442_v12  ;;  %v5171_v63 = vmul.f32 %v6649_v23, %v10162_v21  ;;  %v5157_v39 = vmul.f32 %v6649_v23, %v10265_v13 }
 0x952   : > { %v5158_v52 = vmul.f32 %v6649_v23, %v10272_v51  ;;  %v5172_v25 = vmul.f32 %v6649_v23, %v10165_v33  ;;  %v5182_v17 = vmul.f32 %v10398_v45, %v5143_v61  ;;  %v5183_v26 = vmul.f32 %v10398_v45, %v5144_v37  ;;  %vm11999_vm12 = vmmov %vm11886_vm0 }
 0x953   : > { %v5423_v56 = vrot.slane %v5422_v32, 4  ;;  %v5184_v40 = vmul.f32 %v10398_v45, %v5145_v46  ;;  %v5185_v62 = vmul.f32 %v10398_v45, %v5146_v6  ;;  %v5186_v31 = vmul.f32 %v10398_v45, %v5147_v55 }
 0x954   : > { %v5187_v36 = vmul.f32 %v10398_v45, %v5148_v10  ;;  %v5188_v21 = vmul.f32 %v10398_v45, %v5149_v57  ;;  %v5189_v13 = vmul.f32 %v10398_v45, %v5150_v20  ;;  %v5190_v33 = vmul.f32 %v10398_v45, %v5151_v3 }
 0x955   : > { %v10467_v51 = vadd.f32 %v5423_v56, %v5422_v32  ;;  %v5191_v23 = vmul.f32 %v10398_v45, %v5152_v1  ;;  %v5192_v61 = vmul.f32 %v10398_v45, %v5153_v14  ;;  %v5193_v37 = vmul.f32 %v10398_v45, %v5154_v30 }
 0x956   : > { %v5194_v46 = vmul.f32 %v10398_v45, %v5155_v38  ;;  %v5195_v6 = vmul.f32 %v10398_v45, %v5156_v29  ;;  %v5196_v55 = vmul.f32 %v10398_v45, %v5157_v39  ;;  %v5197_v57 = vmul.f32 %v10398_v45, %v5158_v52 }
 0x957   : > { %v5198_v20 = vmul.f32 %v10398_v45, %v5159_v44  ;;  %v5199_v3 = vmul.f32 %v10398_v45, %v5160_v54  ;;  %v5200_v1 = vmul.f32 %v10398_v45, %v5161_v50  ;;  %v5201_v14 = vmul.f32 %v10398_v45, %v5162_v47 }
 0x958   : > { %v5202_v30 = vmul.f32 %v10398_v45, %v5163_v49  ;;  %v5203_v38 = vmul.f32 %v10398_v45, %v5164_v28  ;;  %v5204_v29 = vmul.f32 %v10398_v45, %v5165_v59  ;;  %v5205_v32 = vmul.f32 %v10398_v45, %v5166_v5 }
 0x959   : > { %v5206_v39 = vmul.f32 %v10398_v45, %v5167_v0  ;;  %v5207_v52 = vmul.f32 %v10398_v45, %v5168_v4  ;;  %v5208_v44 = vmul.f32 %v10398_v45, %v5169_v15  ;;  %v5209_v54 = vmul.f32 %v10398_v45, %v5170_v18 }
 0x95a   : > { %v5210_v50 = vmul.f32 %v10398_v45, %v5171_v63  ;;  %v5211_v47 = vmul.f32 %v10398_v45, %v5172_v25  ;;  %v10493_v49 = vadd.f32 %v10405_v58, %v5182_v17  ;;  %v10496_v28 = vadd.f32 %v10405_v58, %v5183_v26 }
 0x95b   : > { %v10499_v59 = vadd.f32 %v10405_v58, %v5184_v40  ;;  %v10502_v5 = vadd.f32 %v10405_v58, %v5185_v62  ;;  %v10505_v0 = vadd.f32 %v10405_v58, %v5186_v31  ;;  %v10508_v4 = vadd.f32 %v10405_v58, %v5187_v36 }
 0x95c   : > { %11943 = vst [vmem:[#allocation41_spill] sm:$0xff] %v10493_v49  ;;  %11944 = vst [vmem:[#allocation42_spill] sm:$0xff] %v10496_v28  ;;  %v10511_v45 = vadd.f32 %v10405_v58, %v5188_v21  ;;  %v10514_v15 = vadd.f32 %v10405_v58, %v5189_v13  ;;  %v10517_v18 = vadd.f32 %v10405_v58, %v5190_v33 }
 0x95d   : > { %11945 = vst [vmem:[#allocation43_spill] sm:$0xff] %v10499_v59  ;;  %11946 = vst [vmem:[#allocation44_spill] sm:$0xff] %v10502_v5  ;;  %v10520_v40 = vadd.f32 %v10405_v58, %v5191_v23  ;;  %v10523_v62 = vadd.f32 %v10405_v58, %v5192_v61  ;;  %v10526_v63 = vadd.f32 %v10405_v58, %v5193_v37 }
 0x95e   : > { %11947 = vst [vmem:[#allocation45_spill] sm:$0xff] %v10505_v0  ;;  %11948 = vst [vmem:[#allocation46_spill] sm:$0xff] %v10508_v4  ;;  %v10529_v25 = vadd.f32 %v10405_v58, %v5194_v46  ;;  %v10532_v17 = vadd.f32 %v10405_v58, %v5195_v6  ;;  %v10535_v56 = vadd.f32 %v10405_v58, %v5196_v55 }
 0x95f   : > { %11949 = vst [vmem:[#allocation47_spill] sm:$0xff] %v10511_v45  ;;  %11950 = vst [vmem:[#allocation48_spill] sm:$0xff] %v10514_v15  ;;  %v10538_v26 = vadd.f32 %v10405_v58, %v5197_v57  ;;  %v10541_v31 = vadd.f32 %v10405_v58, %v5198_v20  ;;  %v10544_v36 = vadd.f32 %v10405_v58, %v5199_v3  ;;  %v11990_v16 = vmax.f32 %v10526_v63, 0.0 }
 0x960   : > { %11951 = vst [vmem:[#allocation49_spill] sm:$0xff] %v10517_v18  ;;  %11952 = vst [vmem:[#allocation50_spill] sm:$0xff] %v10520_v40  ;;  %v10547_v21 = vadd.f32 %v10405_v58, %v5200_v1  ;;  %v10550_v13 = vadd.f32 %v10405_v58, %v5201_v14  ;;  %v10553_v33 = vadd.f32 %v10405_v58, %v5202_v30  ;;  %v11186_v1 = vmax.f32 %v10493_v49, 0.0 }
 0x961   : > { %11953 = vst [vmem:[#allocation51_spill] sm:$0xff] %v10523_v62  ;;  %11954 = vst [vmem:[#allocation52_spill] sm:$0xff] %v10526_v63  ;;  %v10556_v23 = vadd.f32 %v10405_v58, %v5203_v38  ;;  %v10559_v61 = vadd.f32 %v10405_v58, %v5204_v29  ;;  %v10562_v37 = vadd.f32 %v10405_v58, %v5205_v32  ;;  %v11187_v14 = vmax.f32 %v10496_v28, 0.0 }
 0x962   : > { %11955 = vst [vmem:[#allocation53_spill] sm:$0xff] %v10529_v25  ;;  %11956 = vst [vmem:[#allocation54_spill] sm:$0xff] %v10532_v17  ;;  %v10565_v46 = vadd.f32 %v10405_v58, %v5206_v39  ;;  %v10568_v6 = vadd.f32 %v10405_v58, %v5207_v52  ;;  %v10571_v55 = vadd.f32 %v10405_v58, %v5208_v44  ;;  %v11188_v30 = vmax.f32 %v10499_v59, 0.0 }
 0x963   : > { %11957 = vst [vmem:[#allocation55_spill] sm:$0xff] %v10535_v56  ;;  %11958 = vst [vmem:[#allocation56_spill] sm:$0xff] %v10538_v26  ;;  %v10574_v57 = vadd.f32 %v10405_v58, %v5209_v54  ;;  %v10577_v20 = vadd.f32 %v10405_v58, %v5210_v50  ;;  %v10580_v3 = vadd.f32 %v10405_v58, %v5211_v47  ;;  %v11189_v38 = vmax.f32 %v10502_v5, 0.0 }
 0x964   : > { %11959 = vst [vmem:[#allocation57_spill] sm:$0xff] %v10541_v31  ;;  %11960 = vst [vmem:[#allocation58_spill] sm:$0xff] %v10544_v36  ;;  %v10613_v58 = vsel %vm11973_vm9, %v11186_v1, 0.0  ;;  %v10618_v50 = vsel %vm11974_vm10, %v11187_v14, 0.0  ;;  %v10625_v32 = vsel %vm11975_vm13, %v11188_v30, 0.0  ;;  %v11977_v1 = vmax.f32 %v10505_v0, 0.0 }
 0x965   : > { %11961 = vst [vmem:[#allocation59_spill] sm:$0xff] %v10547_v21  ;;  %11962 = vst [vmem:[#allocation60_spill] sm:$0xff] %v10550_v13  ;;  %v5287_v10 = vadd.f32 %v10618_v50, %v10613_v58  ;;  %v10630_v52 = vsel %vm11976_vm14, %v11189_v38, 0.0  ;;  %v11979_v29 = vmax.f32 %v10508_v4, 0.0  ;;  %v11981_v30 = vmax.f32 %v10511_v45, 0.0 }
 0x966   : > { %11963 = vst [vmem:[#allocation61_spill] sm:$0xff] %v10553_v33  ;;  %11964 = vst [vmem:[#allocation62_spill] sm:$0xff] %v10556_v23  ;;  %v10635_v39 = vsel %vm11978_vm3, %v11977_v1, 0.0  ;;  %v5296_v14 = vadd.f32 %v10630_v52, %v10625_v32  ;;  %v11983_v38 = vmax.f32 %v10514_v15, 0.0  ;;  %v10676_v42 = vsel %vm11991_vm4, %v11990_v16, 0.0 }
 0x967   : > { %11965 = vst [vmem:[#allocation63_spill] sm:$0xff] %v10559_v61  ;;  %11966 = vst [vmem:[#allocation64_spill] sm:$0xff] %v10562_v37  ;;  %v10642_v47 = vsel %vm11980_vm1, %v11979_v29, 0.0  ;;  %v10647_v54 = vsel %vm11982_vm11, %v11981_v30, 0.0  ;;  %v5288_v1 = vrot.slane %v5287_v10, 4  ;;  %v11985_v29 = vmax.f32 %v10517_v18, 0.0 }
 0x968   : > { %11967 = vst [vmem:[#allocation65_spill] sm:$0xff] %v10565_v46  ;;  %11968 = vst [vmem:[#allocation66_spill] sm:$0xff] %v10568_v6  ;;  %v10652_v44 = vsel %vm11984_vm2, %v11983_v38, 0.0  ;;  %v5305_v48 = vadd.f32 %v10642_v47, %v10635_v39  ;;  %v5297_v24 = vrot.slane %v5296_v14, 4  ;;  %v11987_v30 = vmax.f32 %v10520_v40, 0.0 }
 0x969   : > { %11969 = vst [vmem:[#allocation67_spill] sm:$0xff] %v10571_v55  ;;  %11970 = vst [vmem:[#allocation68_spill] sm:$0xff] %v10574_v57  ;;  %v5314_v53 = vadd.f32 %v10652_v44, %v10647_v54  ;;  %v10661_v35 = vsel %vm11986_vm15, %v11985_v29, 0.0  ;;  %v11988_v38 = vmax.f32 %v10523_v62, 0.0  ;;  %v5289_v34 = vadd.f32 %v5288_v1, %v5287_v10 }
 0x96a   : > { %11971 = vst [vmem:[#allocation69_spill] sm:$0xff] %v10577_v20  ;;  %11972 = vst [vmem:[#allocation70_spill] sm:$0xff] %v10580_v3  ;;  %v10666_v60 = vsel %vm11886_vm0, %v11987_v30, 0.0  ;;  %v5306_v22 = vrot.slane %v5305_v48, 4  ;;  %v5298_v9 = vadd.f32 %v5297_v24, %v5296_v14  ;;  %v11992_v7 = vmax.f32 %v10529_v25, 0.0 }
 0x96b   : > { %v10671_v41 = vsel %vm11989_vm6, %v11988_v38, 0.0  ;;  %v5315_v29 = vrot.slane %v5314_v53, 4  ;;  %v5323_v11 = vadd.f32 %v10666_v60, %v10661_v35  ;;  %v11994_v2 = vmax.f32 %v10532_v17, 0.0  ;;  %vm12001_vm9 = vmmov %vm11886_vm0 }
 0x96c   : > { %v5332_v30 = vadd.f32 %v10676_v42, %v10671_v41  ;;  %v10685_v38 = vsel %vm11993_vm7, %v11992_v7, 0.0  ;;  %v5290_v10 = vrot.slane %v5289_v34, 2  ;;  %v5307_v1 = vadd.f32 %v5306_v22, %v5305_v48  ;;  %vm12003_vm10 = vmmov %vm11886_vm0 }
 0x96d   : > { %v10690_v16 = vsel %vm11995_vm5, %v11994_v2, 0.0  ;;  %v5316_v62 = vadd.f32 %v5315_v29, %v5314_v53  ;;  %v5324_v18 = vrot.slane %v5323_v11, 4  ;;  %v5299_v45 = vrot.slane %v5298_v9, 2  ;;  %vm12005_vm13 = vmmov %vm11886_vm0 }
 0x96e   : > { %v5333_v0 = vrot.slane %v5332_v30, 4  ;;  %v5341_v24 = vadd.f32 %v10690_v16, %v10685_v38  ;;  %v11996_v14 = vmax.f32 %v10535_v56, 0.0  ;;  %v5291_v7 = vadd.f32 %v5290_v10, %v5289_v34  ;;  %vm12007_vm14 = vmmov %vm11886_vm0 }
 0x96f   : > { %v5308_v59 = vrot.slane %v5307_v1, 2  ;;  %v5317_v49 = vrot.slane %v5316_v62, 2  ;;  %v5325_v17 = vadd.f32 %v5324_v18, %v5323_v11  ;;  %v5300_v2 = vadd.f32 %v5299_v45, %v5298_v9  ;;  %vm12009_vm3 = vmmov %vm11886_vm0 }
 0x970   : > { %v10697_v25 = vsel %vm11997_vm8, %v11996_v14, 0.0  ;;  %v10699_v63 = vadd.f32 %v5333_v0, %v5332_v30  ;;  %v5342_v22 = vrot.slane %v5341_v24, 4  ;;  %v11998_v53 = vmax.f32 %v10538_v26, 0.0  ;;  %vm12011_vm1 = vmmov %vm11886_vm0 }
 0x971   : > { %v5292_v29 = vrot.slane %v5291_v7, 1  ;;  %v5309_v40 = vadd.f32 %v5308_v59, %v5307_v1  ;;  %v10706_v15 = vadd.f32 %v5317_v49, %v5316_v62  ;;  %v5326_v56 = vrot.slane %v5325_v17, 2  ;;  %vm12014_vm11 = vmmov %vm11886_vm0 }
 0x972   : > { %v10704_v48 = vsel %vm11999_vm12, %v11998_v53, 0.0  ;;  %v5301_v10 = vrot.slane %v5300_v2, 1  ;;  %v10711_v45 = vadd.f32 %v5342_v22, %v5341_v24  ;;  %v12000_v62 = vmax.f32 %v10541_v31, 0.0  ;;  %vm12016_vm2 = vmmov %vm11886_vm0 }
 0x973   : > { %v5293_v11 = vadd.f32 %v5292_v29, %v5291_v7  ;;  %v5310_v0 = vrot.slane %v5309_v40, 1  ;;  %v10715_v18 = vadd.f32 %v10704_v48, %v10697_v25  ;;  %v10718_v49 = vadd.f32 %v5326_v56, %v5325_v17  ;;  %vm12019_vm15 = vmmov %vm11886_vm0 }
 0x974   : > { %v10723_v30 = vsel %vm12001_vm9, %v12000_v62, 0.0  ;;  %v12002_v1 = vmax.f32 %v10544_v36, 0.0  ;;  %v5302_v24 = vadd.f32 %v5301_v10, %v5300_v2  ;;  %v12004_v53 = vmax.f32 %v10547_v21, 0.0  ;;  %vm12024_vm6 = vmmov %vm11886_vm0 }
 0x975   : > { %v12006_v17 = vmax.f32 %v10550_v13, 0.0  ;;  %v12010_v10 = vmax.f32 %v10556_v23, 0.0  ;;  %v12015_v14 = vmax.f32 %v10562_v37, 0.0  ;;  %v12023_v27 = vmax.f32 %v10571_v55, 0.0  ;;  %vm12027_vm4 = vmmov %vm11886_vm0 }
 0x976   : > { %v10728_v7 = vsel %vm12003_vm10, %v12002_v1, 0.0  ;;  %v10735_v29 = vsel %vm12005_vm13, %v12004_v53, 0.0  ;;  %v12008_v1 = vmax.f32 %v10553_v33, 0.0  ;;  %v12013_v53 = vmax.f32 %v10559_v61, 0.0  ;;  %vm12030_vm7 = vmmov %vm11886_vm0 }
 0x977   : > { %v5359_v22 = vadd.f32 %v10728_v7, %v10723_v30  ;;  %v10740_v56 = vsel %vm12007_vm14, %v12006_v17, 0.0  ;;  %v10752_v59 = vsel %vm12011_vm1, %v12010_v10, 0.0  ;;  %v10764_v26 = vsel %vm12016_vm2, %v12015_v14, 0.0  ;;  %vm12033_vm5 = vmmov %vm11886_vm0 }
 0x978   : > { %v5368_v62 = vadd.f32 %v10740_v56, %v10735_v29  ;;  %v10747_v2 = vsel %vm12009_vm3, %v12008_v1, 0.0  ;;  %12012 = vst [vmem:[#allocation71_spill] sm:$0xff] %v10752_v59  ;;  %v10757_v9 = vsel %vm12014_vm11, %v12013_v53, 0.0  ;;  %12017 = vst [vmem:[#allocation72_spill] sm:$0xff] %v10764_v26  ;;  %v12018_v1 = vmax.f32 %v10565_v46, 0.0 }
 0x979   : > { %v5360_v17 = vrot.slane %v5359_v22, 4  ;;  %v5377_v34 = vadd.f32 %v10752_v59, %v10747_v2  ;;  %v5386_v5 = vadd.f32 %v10764_v26, %v10757_v9  ;;  %v12021_v53 = vmax.f32 %v10568_v6, 0.0  ;;  %vm12038_vm1 = vmmov %vm11886_vm0 }
 0x97a   : > { %v10769_v4 = vsel %vm12019_vm15, %v12018_v1, 0.0  ;;  %v5369_v10 = vrot.slane %v5368_v62, 4  ;;  %v10781_v8 = vsel %vm12024_vm6, %v12023_v27, 0.0  ;;  %v12026_v46 = vmax.f32 %v10574_v57, 0.0  ;;  %vm12040_vm11 = vmmov %vm11886_vm0 }
 0x97b   : > { %12020 = vst [vmem:[#allocation73_spill] sm:$0xff] %v10769_v4  ;;  %v10776_v28 = vsel %vm11886_vm0, %v12021_v53, 0.0  ;;  %12025 = vst [vmem:[#allocation75_spill] sm:$0xff] %v10781_v8  ;;  %v5361_v14 = vadd.f32 %v5360_v17, %v5359_v22  ;;  %v5378_v37 = vrot.slane %v5377_v34, 4  ;;  %v5387_v6 = vrot.slane %v5386_v5, 4 }
 0x97c   : > { %12022 = vst [vmem:[#allocation74_spill] sm:$0xff] %v10776_v28  ;;  %v5395_v1 = vadd.f32 %v10776_v28, %v10769_v4  ;;  %v10788_v61 = vsel %vm12027_vm4, %v12026_v46, 0.0  ;;  %v5370_v23 = vadd.f32 %v5369_v10, %v5368_v62  ;;  %v12029_v55 = vmax.f32 %v10577_v20, 0.0  ;;  %vm12052_vm15 = vmmov %vm11886_vm0 }
 0x97d   : > { %12028 = vst [vmem:[#allocation76_spill] sm:$0xff] %v10788_v61  ;;  %v5404_v53 = vadd.f32 %v10788_v61, %v10781_v8  ;;  %v5362_v22 = vrot.slane %v5361_v14, 2  ;;  %v5379_v17 = vadd.f32 %v5378_v37, %v5377_v34  ;;  %v12032_v13 = vmax.f32 %v10580_v3, 0.0  ;;  %vm12130_vm4 = vmmov %vm11886_vm0 }
 0x97e   : > { %v10795_v27 = vsel %vm12030_vm7, %v12029_v55, 0.0  ;;  %v5396_v33 = vrot.slane %v5395_v1, 4  ;;  %v5371_v46 = vrot.slane %v5370_v23, 2  ;;  %v5388_v21 = vadd.f32 %v5387_v6, %v5386_v5  ;;  %vm12131_vm7 = vmmov %vm11886_vm0 }
 0x97f   : > { %12031 = vst [vmem:[#allocation77_spill] sm:$0xff] %v10795_v27  ;;  %v10800_v57 = vsel %vm12033_vm5, %v12032_v13, 0.0  ;;  %v5405_v62 = vrot.slane %v5404_v53, 4  ;;  %v5351_v36 = vrot.slane %v10715_v18, 4  ;;  %v5363_v20 = vadd.f32 %v5362_v22, %v5361_v14  ;;  %vm12132_vm5 = vmmov %vm11886_vm0 }
 0x980   : > { %12034 = vst [vmem:[#allocation78_spill] sm:$0xff] %v10800_v57  ;;  %v5413_v10 = vadd.f32 %v10800_v57, %v10795_v27  ;;  %v5380_v31 = vrot.slane %v5379_v17, 2  ;;  %v5397_v55 = vadd.f32 %v5396_v33, %v5395_v1  ;;  %v5372_v43 = vadd.f32 %v5371_v46, %v5370_v23 }
 0x981   : > { %v5389_v12 = vrot.slane %v5388_v21, 2  ;;  %v5406_v37 = vadd.f32 %v5405_v62, %v5404_v53  ;;  %v5311_v61 = vadd.f32 %v5310_v0, %v5309_v40  ;;  %v5364_v3 = vrot.slane %v5363_v20, 1 }
 0x982   : > { %v5414_v34 = vrot.slane %v5413_v10, 4  ;;  %v5381_v8 = vadd.f32 %v5380_v31, %v5379_v17  ;;  %v5398_v13 = vrot.slane %v5397_v55, 2  ;;  %v5373_v28 = vrot.slane %v5372_v43, 1 }
 0x983   : > { %v5390_v26 = vadd.f32 %v5389_v12, %v5388_v21  ;;  %v5407_v5 = vrot.slane %v5406_v37, 2  ;;  %v5365_v4 = vadd.f32 %v5364_v3, %v5363_v20  ;;  %v5430_v27 = vmul.f32 0.0625, %v5293_v11 }
 0x984   : > { %v5415_v6 = vadd.f32 %v5414_v34, %v5413_v10  ;;  %v5382_v19 = vrot.slane %v5381_v8, 1  ;;  %v5399_v57 = vadd.f32 %v5398_v13, %v5397_v55  ;;  %v5374_v59 = vadd.f32 %v5373_v28, %v5372_v43 }
 0x985   : > { %v5391_v14 = vrot.slane %v5390_v26, 1  ;;  %v5408_v22 = vadd.f32 %v5407_v5, %v5406_v37  ;;  %v5431_v53 = vmul.f32 0.0625, %v5302_v24  ;;  %v5446_v40 = vadd.f32 %v10625_v32, %v10613_v58 }
 0x986   : > { %v5416_v33 = vrot.slane %v5415_v6, 2  ;;  %v5383_v23 = vadd.f32 %v5382_v19, %v5381_v8  ;;  %v5400_v1 = vrot.slane %v5399_v57, 1  ;;  %vm5502_vm8 = vcmask 1041409  }
 0x987   : > { %v5392_v31 = vadd.f32 %v5391_v14, %v5390_v26  ;;  %v5409_v0 = vrot.slane %v5408_v22, 1  ;;  %v5432_v12 = vmul.f32 0.0625, %v5311_v61  ;;  %v5438_v21 = vmul.f32 0.0625, %v5365_v4 }
 0x988   : > { %vm5504_vm12 = vcmask 1042434   ;;  %v5417_v20 = vadd.f32 %v5416_v33, %v5415_v6  ;;  %v5439_v3 = vmul.f32 0.0625, %v5374_v59  ;;  %v5447_v11 = vadd.f32 %v5446_v40, %v10635_v39 }
 0x989   : > { %v5461_v43 = vadd.f32 %v10630_v52, %v10618_v50  ;;  %vm5506_vm9 = vcmask 1043459   ;;  %v5401_v19 = vadd.f32 %v5400_v1, %v5399_v57  ;;  %v5440_v8 = vmul.f32 0.0625, %v5383_v23 }
 0x98a   : > { %v5328_v28 = vrot.slane %v10718_v49, 1  ;;  %v12035_v32 = vrot.slane %v10699_v63, 2  ;;  %vm5508_vm10 = vcmask 1044484   ;;  %v5441_v61 = vmul.f32 0.0625, %v5392_v31 }
 0x98b   : > { %v5448_v4 = vadd.f32 %v5447_v11, %v10647_v54  ;;  %v5462_v58 = vadd.f32 %v5461_v43, %v10642_v47  ;;  %v5344_v39 = vrot.slane %v10711_v45, 2  ;;  %vm5510_vm13 = vcmask 1045509  }
 0x98c   : > { %v5336_v26 = vadd.f32 %v12035_v32, %v10699_v63  ;;  %v12036_v52 = vrot.slane %v10706_v15, 1  ;;  %v5329_v50 = vadd.f32 %v5328_v28, %v10718_v49  ;;  %v5352_v24 = vadd.f32 %v5351_v36, %v10715_v18 }
 0x98d   : > { %vm5512_vm14 = vcmask 1046534   ;;  %v5449_v63 = vadd.f32 %v5448_v4, %v10661_v35  ;;  %v5463_v17 = vadd.f32 %v5462_v58, %v10652_v44  ;;  %v5345_v54 = vadd.f32 %v5344_v39, %v10711_v45  ;;  %v12041_v39 = vld [vmem:[#allocation36_spill] sm:$0xff] }
 0x98e   : > { %v5320_v57 = vadd.f32 %v12036_v52, %v10706_v15  ;;  %v5337_v59 = vrot.slane %v5336_v26, 1  ;;  %v5418_v47 = vrot.slane %v5417_v20, 1  ;;  %vm5514_vm3 = vcmask 1047559   ;;  %v12043_v52 = vld [vmem:[#allocation73_spill] sm:$0xff] }
 0x98f   : > { %v5353_v62 = vrot.slane %v5352_v24, 2  ;;  %v5410_v10 = vadd.f32 %v5409_v0, %v5408_v22  ;;  %v12037_v15 = vrot.slane %v10467_v51, 2  ;;  %v5442_v49 = vmul.f32 0.0625, %v5401_v19 }
 0x990   : > { %v5338_v46 = vadd.f32 %v5337_v59, %v5336_v26  ;;  %v5450_v37 = vadd.f32 %v5449_v63, %v10671_v41  ;;  %v5464_v36 = vadd.f32 %v5463_v17, %v10666_v60  ;;  %v5346_v18 = vrot.slane %v5345_v54, 1  ;;  %v12047_v17 = vld [vmem:[#allocation76_spill] sm:$0xff] }
 0x991   : > { %v5426_v55 = vadd.f32 %v12037_v15, %v10467_v51  ;;  %v5354_v35 = vadd.f32 %v5353_v62, %v5352_v24  ;;  %v5419_v34 = vadd.f32 %v5418_v47, %v5417_v20  ;;  %v5433_v13 = vmul.f32 0.0625, %v5320_v57  ;;  %v12046_v24 = vld [vmem:[#allocation75_spill] sm:$0xff]  ;;  %v12048_v47 = vld [vmem:[#allocation77_spill] sm:$0xff] }
 0x992   : > { %v5451_v45 = vadd.f32 %v5450_v37, %v10685_v38  ;;  %v5465_v5 = vadd.f32 %v5464_v36, %v10676_v42  ;;  %v5347_v6 = vadd.f32 %v5346_v18, %v5345_v54  ;;  %v5434_v14 = vmul.f32 0.0625, %v5329_v50  ;;  %v5828_v18 = vld [vmem:[%s11102_s15] sm:$0xff] }
 0x993   : > { %v5427_v44 = vrot.slane %v5426_v55, 1  ;;  %v5355_v22 = vrot.slane %v5354_v35, 1  ;;  %v5435_v33 = vmul.f32 0.0625, %v5338_v46  ;;  %v5443_v23 = vmul.f32 0.0625, %v5410_v10  ;;  %v12050_v10 = vld [vmem:[#allocation39_spill] sm:$0xff]  ;;  %6607 = vmatprep.subr.mxu1 %v5828_v18 }
 0x994   : > { %v5503_v51 = vsel %vm5502_vm8, %v5431_v53, %v5430_v27  ;;  %v5452_v41 = vadd.f32 %v5451_v45, %v10697_v25  ;;  %v5466_v60 = vadd.f32 %v5465_v5, %v10690_v16  ;;  %v5436_v0 = vmul.f32 0.0625, %v5347_v6  ;;  %v6376_v5 = vld [vmem:[%s11099_s12] ss:$0 sm:$0xff] }
 0x995   : > { %v5428_v1 = vadd.f32 %v5427_v44, %v5426_v55  ;;  %v5505_v40 = vsel %vm5504_vm12, %v5432_v12, %v5503_v51  ;;  %v5356_v31 = vadd.f32 %v5355_v22, %v5354_v35  ;;  %v5516_v42 = vsel %vm5502_vm8, %v5439_v3, %v5438_v21  ;;  %v12051_v55 = vld [vmem:[#allocation40_spill] sm:$0xff]  ;;  %v6371_v35 = vld [vmem:[%s11097_s10] ss:$0 sm:$0xff]  ;;  %vm12133_vm8 = vmmov %vm11886_vm0 }
 0x996   : > { %v5507_v38 = vsel %vm5506_vm9, %v5433_v13, %v5505_v40  ;;  %v5453_v20 = vadd.f32 %v5452_v41, %v10723_v30  ;;  %v5467_v11 = vadd.f32 %v5466_v60, %v10704_v48  ;;  %v5517_v27 = vsel %vm5504_vm12, %v5440_v8, %v5516_v42  ;;  %v6375_v44 = vld [vmem:[%s11098_s11] ss:$0 sm:$0xff]  ;;  %vm12138_vm12 = vmmov %vm11886_vm0 }
 0x997   : > { %v5509_v43 = vsel %vm5508_vm10, %v5434_v14, %v5507_v38  ;;  %v5437_v25 = vmul.f32 0.0625, %v5356_v31  ;;  %v5444_v53 = vmul.f32 0.0625, %v5419_v34  ;;  %v5518_v12 = vsel %vm5506_vm9, %v5441_v61, %v5517_v27  ;;  %v12039_v61 = vld [vmem:[#allocation71_spill] sm:$0xff]  ;;  %vm12139_vm9 = vmmov %vm11886_vm0 }
 0x998   : > { %v5511_v16 = vsel %vm5510_vm13, %v5435_v33, %v5509_v43  ;;  %v5454_v19 = vadd.f32 %v5453_v20, %v10735_v29  ;;  %v5468_v28 = vadd.f32 %v5467_v11, %v10728_v7  ;;  %v5519_v30 = vsel %vm5508_vm10, %v5442_v49, %v5518_v12  ;;  %vm12140_vm10 = vmmov %vm11886_vm0 }
 0x999   : > { %v5513_v21 = vsel %vm5512_vm14, %v5436_v0, %v5511_v16  ;;  %v5445_v3 = vmul.f32 0.0625, %v5428_v1  ;;  %v5520_v32 = vsel %vm5510_vm13, %v5443_v23, %v5519_v30  ;;  %vm12042_vm2 = vcmask 1043456   ;;  %vm12141_vm13 = vmmov %vm11886_vm0 }
 0x99a   : > { %v5515_v48 = vsel %vm5514_vm3, %v5437_v25, %v5513_v21  ;;  %v5455_v8 = vadd.f32 %v5454_v19, %v10747_v2  ;;  %v5469_v26 = vadd.f32 %v5468_v28, %v10740_v56  ;;  %v5521_v4 = vsel %vm5512_vm14, %v5444_v53, %v5520_v32  ;;  %v12044_v2 = vld [vmem:[#allocation72_spill] sm:$0xff]  ;;  %v12045_v56 = vld [vmem:[#allocation74_spill] sm:$0xff]  ;;  %vm12142_vm14 = vmmov %vm11886_vm0 }
 0x99b   : > { %6594 = vmatprep.mubr.msk.f32.mxu0 %vm12038_vm1, %v5515_v48  ;;  %v5522_v29 = vsel %vm5514_vm3, %v5445_v3, %v5521_v4  ;;  %vm5641_vm6 = vcmask 64512   ;;  %vm12143_vm3 = vmmov %vm11886_vm0 }
 0x99c   : > { %v5456_v7 = vadd.f32 %v5455_v8, %v10757_v9  ;;  %v5470_v58 = vadd.f32 %v5469_v26, %v12039_v61  ;;  %6595 = vmatmul.mubr.msk.f32.vlgmr.msra.gmra.mrb[32].mxu0 %vm12040_vm11, %v5522_v29  ;;  %v12049_v9 = vld [vmem:[#allocation78_spill] sm:$0xff]  ;;  %vm12144_vm1 = vmmov %vm11886_vm0 }
 0x99d   : > { %6603 = vmatpush3.msk.msra.mxu0 %vm12042_vm2, %v12041_v39  ;;  %vm12145_vm11 = vmmov %vm11886_vm0 }
 0x99e   : > { %v5457_v57 = vadd.f32 %v5456_v7, %v12043_v52  ;;  %v5471_v50 = vadd.f32 %v5470_v58, %v12044_v2  ;;  %v6377_v7 = vld [vmem:[%s11101_s14] ss:$0 sm:$0xff]  ;;  %vm12146_vm2 = vmmov %vm11886_vm0 }
 0x9a0   : > { %v5472_v59 = vadd.f32 %v5471_v50, %v12045_v56  ;;  %v5458_v63 = vadd.f32 %v5457_v57, %v12046_v24 }
 0x9a2   : > { %v5473_v54 = vadd.f32 %v5472_v59, %v12047_v17  ;;  %v5459_v46 = vadd.f32 %v5458_v63, %v12048_v47 }
 0x9a4   : > { %v5474_v62 = vadd.f32 %v5473_v54, %v12049_v9  ;;  %v5460_v15 = vadd.f32 %v5459_v46, %v12050_v10  ;;  %v6383_v46 = vld [vmem:[%s11103_s16] ss:$0 sm:$0xff]  ;;  %v6683_v9 = vmov 1966171168   ;;  %v5933_v10 = vlaneseq }
 0x9a6   : > { %v5475_v49 = vadd.f32 %v5474_v62, %v12051_v55  ;;  %v5476_v37 = vmul.f32 0.0625, %v5460_v15  ;;  %v5931_v62 = vunpack.c.l.s4 %v6683_v9  ;;  %v12061_v9 = vld [vmem:[#allocation61_spill] sm:$0xff] }
 0x9a8   : > { %6604 = vmatprep.mubr.msk.f32.mxu0 %vm12052_vm15, %v5476_v37  ;;  %v5477_v36 = vmul.f32 0.0625, %v5475_v49  ;;  %v5932_v49 = vunpack.c.0.s8 %v5931_v62  ;;  %v5934_v37 = vshrl.u32 %v5933_v10, 7  ;;  %v12062_v62 = vmax.f32 %v12061_v9, 0.0  ;;  %vm12147_vm15 = vmmov %vm11886_vm0 }
 0x9aa   : > { %6605 = vmatmul.mubr.msk.f32.vlgmr.msra.gmra.mrb[34].mxu0 %vm11886_vm0, %v5477_v36 }
 0xa6f   : > { %v6596_v34 = vpop.f32.mrb[32].mxu0 }
 0xa70   : > { %v5602_v13 = vadd.f32 %v6596_v34, %v6371_v35  ;;  %v5596_v45 = vpop.f32.mrb[33].mxu0 }
 0xa71   : > { %v5597_v6 = vadd.f32 %v6371_v35, %v5596_v45 }
 0xa72   : > { %v5613_v14 = vmul.f32 %v6375_v44, %v5602_v13 }
 0xa73   : > { %v5612_v22 = vmul.f32 %v6375_v44, %v5597_v6 }
 0xa74   : > { %v5622_v33 = vadd.f32 %v6376_v5, %v5613_v14 }
 0xa75   : > { %v5621_v23 = vadd.f32 %v6376_v5, %v5612_v22 }
 0xa76   : > { %v5624_v51 = vadd.f32 3.0, %v5622_v33 }
 0xa77   : > { %v5623_v41 = vadd.f32 3.0, %v5621_v23 }
 0xa78   : > { %v5626_v60 = vmax.f32 %v5624_v51, 0.0 }
 0xa79   : > { %v5625_v1 = vmax.f32 %v5623_v41, 0.0 }
 0xa7a   : > { %v5628_v40 = vmin.f32 %v5626_v60, 6.0 }
 0xa7b   : > { %v5627_v31 = vmin.f32 %v5625_v1, 6.0 }
 0xa7c   : > { %v5630_v0 = vmul.f32 %v5628_v40, %v5622_v33  ;;  %v6029_v40 = vsub.s32 0, %v5934_v37 }
 0xa7d   : > { %v5629_v38 = vmul.f32 %v5627_v31, %v5621_v23  ;;  %v6606_v42 = vpop.f32.mrb[34].mxu0 }
 0xa7e   : > { %v5811_v20 = vadd.f32 %v6606_v42, %v6371_v35  ;;  %v5805_v11 = vpop.f32.mrb[35].mxu0  ;;  %v5632_v25 = vmul.f32 0.16666667, %v5630_v0 }
 0xa7f   : > { %v5631_v43 = vmul.f32 0.16666667, %v5629_v38  ;;  %v5806_v27 = vadd.f32 %v6371_v35, %v5805_v11  ;;  %v5935_v35 = vsub.s32 %v5932_v49, %v5934_v37 }
 0xa80   : > { %v5815_v53 = vmul.f32 %v6375_v44, %v5811_v20 }
 0xa81   : > { %v5814_v16 = vmul.f32 %v6375_v44, %v5806_v27  ;;  %6599 = vmatprep.mubr.msk.f32.mxu1 %vm5641_vm6, %v5631_v43 }
 0xa82   : > { %v5817_v12 = vadd.f32 %v6376_v5, %v5815_v53  ;;  %6600 = vmatmul.mubr.msk.f32.vlgmr.msra.gmra.mrb[32].mxu1 %vm5641_vm6, %v5632_v25 }
 0xa83   : > { %v5816_v19 = vadd.f32 %v6376_v5, %v5814_v16  ;;  %6608 = vmatpush3.msra.mxu1 %v5828_v18 }
 0xa84   : > { %v5819_v28 = vadd.f32 3.0, %v5817_v12 }
 0xa85   : > { %v5818_v21 = vadd.f32 3.0, %v5816_v19 }
 0xa86   : > { %v5821_v30 = vmax.f32 %v5819_v28, 0.0 }
 0xa87   : > { %v5820_v3 = vmax.f32 %v5818_v21, 0.0 }
 0xa88   : > { %v5823_v48 = vmin.f32 %v5821_v30, 6.0 }
 0xa89   : > { %v5822_v32 = vmin.f32 %v5820_v3, 6.0 }
 0xa8a   : > { %v5825_v8 = vmul.f32 %v5823_v48, %v5817_v12 }
 0xa8b   : > { %v5824_v26 = vmul.f32 %v5822_v32, %v5816_v19 }
 0xa8c   : > { %v5827_v29 = vmul.f32 0.16666667, %v5825_v8 }
 0xa8d   : > { %v5826_v4 = vmul.f32 0.16666667, %v5824_v26 }
 0xa8f   : > { %6609 = vmatprep.mubr.msk.f32.mxu1 %vm5641_vm6, %v5826_v4  ;;  %v12053_v4 = vld [vmem:[#allocation57_spill] sm:$0xff] }
 0xa90   : > { %6610 = vmatmul.mubr.msk.f32.vlgmr.msra.gmra.mrb[34].mxu1 %vm5641_vm6, %v5827_v29  ;;  %v12054_v29 = vmax.f32 %v12053_v4, 0.0  ;;  %v12085_v4 = vld [vmem:[#allocation42_spill] sm:$0xff]  ;;  %vm12148_vm6 = vmmov %vm11886_vm0 }
 0xb55   : > { %v6601_v61 = vpop.f32.mrb[32].mxu1 }
 0xb56   : > { %v5720_v58 = vadd.f32 %v6601_v61, %v6377_v7  ;;  %v5714_v39 = vpop.f32.mrb[33].mxu1 }
 0xb57   : > { %v5715_v52 = vadd.f32 %v6377_v7, %v5714_v39 }
 0xb58   : > { %v5724_v57 = vsub.f32 0.0, %v5720_v58  ;;  %v12055_v58 = vld [vmem:[#allocation58_spill] sm:$0xff] }
 0xb59   : > { %v5723_v2 = vsub.f32 0.0, %v5715_v52  ;;  %v12056_v39 = vmax.f32 %v12055_v58, 0.0 }
 0xb5a   : > { %v5727_v50 = vmul.f32 1.442695, %v5724_v57 }
 0xb5b   : > { %v5725_v56 = vmul.f32 1.442695, %v5723_v2 }
 0xb5c   : > { %6650 = vpow2.f32 %v5727_v50 }
 0xb5d   : > { %6652 = vpow2.f32 %v5725_v56 }
 0xb63   : > { %v6611_v59 = vpop.f32.mrb[34].mxu1 }
 0xb64   : > { %v5908_v24 = vpop.f32.mrb[35].mxu1  ;;  %v5914_v15 = vadd.f32 %v6611_v59, %v6383_v46 }
 0xb65   : > { %v5909_v55 = vadd.f32 %v6383_v46, %v5908_v24  ;;  %v12057_v24 = vld [vmem:[#allocation59_spill] sm:$0xff] }
 0xb66   : > { %v6651_v63 = vpop.eup %6650  ;;  %v5918_v36 = vsub.f32 0.0, %v5914_v15  ;;  %v12063_v15 = vld [vmem:[#allocation62_spill] sm:$0xff] }
 0xb67   : > { %v6653_v17 = vpop.eup %6652  ;;  %v5730_v54 = vadd.f32 1.0, %v6651_v63  ;;  %v5917_v18 = vsub.f32 0.0, %v5909_v55  ;;  %v12058_v63 = vmax.f32 %v12057_v24, 0.0  ;;  %v12064_v55 = vmax.f32 %v12063_v15, 0.0  ;;  %v12091_v24 = vld [vmem:[#allocation48_spill] sm:$0xff] }
 0xb68   : > { %v5729_v47 = vadd.f32 1.0, %v6653_v17  ;;  %v5921_v44 = vmul.f32 1.442695, %v5918_v36  ;;  %v12065_v36 = vld [vmem:[#allocation63_spill] sm:$0xff] }
 0xb69   : > { %6654 = vrcp.f32 %v5730_v54  ;;  %v5919_v13 = vmul.f32 1.442695, %v5917_v18  ;;  %v12059_v54 = vld [vmem:[#allocation60_spill] sm:$0xff]  ;;  %v12066_v18 = vmax.f32 %v12065_v36, 0.0 }
 0xb6a   : > { %6656 = vrcp.f32 %v5729_v47  ;;  %v12060_v47 = vmax.f32 %v12059_v54, 0.0  ;;  %v12093_v54 = vld [vmem:[#allocation50_spill] sm:$0xff] }
 0xb6b   : > { %6658 = vpow2.f32 %v5921_v44 }
 0xb6c   : > { %6660 = vpow2.f32 %v5919_v13 }
 0xb73   : > { %v6655_v34 = vpop.eup %6654 }
 0xb74   : > { %v6657_v45 = vpop.eup %6656  ;;  %v5978_v5 = vcombine.high %v6655_v34, %v6655_v34  ;;  %v5985_v6 = vrot.slane %v6655_v34, %v5935_v35  ;;  %v12067_v34 = vld [vmem:[#allocation64_spill] sm:$0xff] }
 0xb75   : > { %v5929_v14 = vcombine.high %v6657_v45, %v6657_v45  ;;  %v5936_v23 = vrot.slane %v6657_v45, %v5935_v35  ;;  %v6659_v42 = vpop.eup %6658  ;;  %v12068_v44 = vmax.f32 %v12067_v34, 0.0  ;;  %v12069_v45 = vld [vmem:[#allocation65_spill] sm:$0xff] }
 0xb76   : > { %v5992_v22 = vrot.slane %v5978_v5, %v5935_v35  ;;  %v5993_v33 = vcombine.high %v5985_v6, %v5985_v6  ;;  %v6001_v41 = vrot.slane %v5985_v6, %v5935_v35  ;;  %v6661_v11 = vpop.eup %6660  ;;  %v5924_v21 = vadd.f32 1.0, %v6659_v42  ;;  %v12073_v42 = vld [vmem:[#allocation67_spill] sm:$0xff] }
 0xb77   : > { %v5943_v51 = vrot.slane %v5929_v14, %v5935_v35  ;;  %v5944_v31 = vcombine.high %v5936_v23, %v5936_v23  ;;  %v5952_v53 = vrot.slane %v5936_v23, %v5935_v35  ;;  %v5923_v48 = vadd.f32 1.0, %v6661_v11 }
 0xb78   : > { %v5994_v60 = vcombine.high %v5992_v22, %v5992_v22  ;;  %v6015_v1 = vrot.slane %v5993_v33, %v5935_v35  ;;  %v6008_v0 = vrot.slane %v5992_v22, %v5935_v35  ;;  %v6023_v20 = vcombine.high %v6001_v41, %v6001_v41 }
 0xb79   : > { %v5945_v38 = vcombine.high %v5943_v51, %v5943_v51  ;;  %v6062_v25 = vrot.slane %v6001_v41, %v6029_v40  ;;  %v5966_v16 = vrot.slane %v5944_v31, %v5935_v35  ;;  %v5959_v19 = vrot.slane %v5943_v51, %v5935_v35  ;;  %v12071_v31 = vld [vmem:[#allocation66_spill] sm:$0xff] }
 0xb7a   : > { %v6022_v43 = vrot.slane %v5994_v60, %v5935_v35  ;;  %v6025_v27 = vcombine.high %v6015_v1, %v6015_v1  ;;  %v6024_v12 = vcombine.high %v6008_v0, %v6008_v0  ;;  %v6066_v30 = vrot.slane %v6015_v1, %v6029_v40 }
 0xb7b   : > { %v5973_v28 = vrot.slane %v5945_v38, %v5935_v35  ;;  %v6070_v3 = vrot.slane %v6023_v20, %v6029_v40  ;;  %v6078_v26 = vrot.slane %v6008_v0, %v6029_v40  ;;  %v10895_v7 = vmul.f32 %v6062_v25, %v12054_v29 }
 0xb7c   : > { %v6026_v32 = vcombine.high %v6022_v43, %v6022_v43  ;;  %v6074_v8 = vrot.slane %v6025_v27, %v6029_v40  ;;  %v6082_v61 = vrot.slane %v6022_v43, %v6029_v40  ;;  %v6124_v52 = vmul.f32 %v6062_v25, %v12056_v39  ;;  %v12075_v43 = vld [vmem:[#allocation68_spill] sm:$0xff] }
 0xb7d   : > { %v5974_v57 = vcombine.high %v5952_v53, %v5952_v53  ;;  %v5976_v2 = vcombine.high %v5966_v16, %v5966_v16  ;;  %v6086_v50 = vrot.slane %v6024_v12, %v6029_v40  ;;  %v5975_v56 = vcombine.high %v5959_v19, %v5959_v19  ;;  %v12077_v12 = vld [vmem:[#allocation69_spill] sm:$0xff]  ;;  %v12087_v39 = vld [vmem:[#allocation44_spill] sm:$0xff] }
 0xb7e   : > { %v5977_v59 = vcombine.high %v5973_v28, %v5973_v28  ;;  %6662 = vrcp.f32 %v5924_v21  ;;  %v10901_v17 = vmul.f32 %v6066_v30, %v12058_v63  ;;  %v6126_v46 = vmul.f32 %v6066_v30, %v12060_v47 }
 0xb7f   : > { %v10907_v10 = vmul.f32 %v6070_v3, %v12062_v62  ;;  %v6128_v49 = vmul.f32 %v6070_v3, %v12064_v55  ;;  %v6090_v37 = vrot.slane %v6026_v32, %v6029_v40  ;;  %v10913_v35 = vmul.f32 %v6074_v8, %v12066_v18  ;;  %v12083_v32 = vld [vmem:[#allocation38_spill] sm:$0xff]  ;;  %v12095_v62 = vld [vmem:[#allocation52_spill] sm:$0xff] }
 0xb80   : > { %v6130_v13 = vmul.f32 %v6074_v8, %v12068_v44  ;;  %v12070_v5 = vmax.f32 %v12069_v45, 0.0  ;;  %v6030_v14 = vrot.slane %v5952_v53, %v6029_v40  ;;  %v6034_v22 = vrot.slane %v5966_v16, %v6029_v40  ;;  %v12079_v16 = vld [vmem:[#allocation70_spill] sm:$0xff]  ;;  %v12099_v18 = vld [vmem:[#allocation56_spill] sm:$0xff]  ;;  %v12101_v45 = vld [vmem:[#allocation41_spill] sm:$0xff] }
 0xb81   : > { %v6038_v33 = vrot.slane %v5974_v57, %v6029_v40  ;;  %v6042_v23 = vrot.slane %v5976_v2, %v6029_v40  ;;  %v6046_v51 = vrot.slane %v5959_v19, %v6029_v40  ;;  %v6050_v41 = vrot.slane %v5973_v28, %v6029_v40  ;;  %v12081_v28 = vld [vmem:[#allocation37_spill] sm:$0xff]  ;;  %v12089_v2 = vld [vmem:[#allocation46_spill] sm:$0xff] }
 0xb82   : > { %v10919_v6 = vmul.f32 %v6078_v26, %v12070_v5  ;;  %v6054_v60 = vrot.slane %v5975_v56, %v6029_v40  ;;  %v6058_v1 = vrot.slane %v5977_v59, %v6029_v40  ;;  %v12072_v0 = vmax.f32 %v12071_v31, 0.0 }
 0xb83   : > { %v12074_v20 = vmax.f32 %v12073_v42, 0.0  ;;  %v12076_v27 = vmax.f32 %v12075_v43, 0.0  ;;  %v12078_v21 = vmax.f32 %v12077_v12, 0.0  ;;  %v12080_v30 = vmax.f32 %v12079_v16, 0.0  ;;  %v12105_v43 = vld [vmem:[#allocation45_spill] sm:$0xff] }
 0xb84   : > { %v6132_v38 = vmul.f32 %v6078_v26, %v12072_v0  ;;  %v12082_v3 = vmax.f32 %v12081_v28, 0.0  ;;  %v12084_v8 = vmax.f32 %v12083_v32, 0.0  ;;  %6664 = vrcp.f32 %v5923_v48  ;;  %v12103_v0 = vld [vmem:[#allocation43_spill] sm:$0xff] }
 0xb85   : > { %v10925_v11 = vmul.f32 %v6082_v61, %v12074_v20  ;;  %v6134_v25 = vmul.f32 %v6082_v61, %v12076_v27  ;;  %v10931_v53 = vmul.f32 %v6086_v50, %v12078_v21  ;;  %v6136_v19 = vmul.f32 %v6086_v50, %v12080_v30  ;;  %v12107_v21 = vld [vmem:[#allocation47_spill] sm:$0xff] }
 0xb86   : > { %v10937_v40 = vmul.f32 %v6090_v37, %v12082_v3  ;;  %v6138_v26 = vmul.f32 %v6090_v37, %v12084_v8  ;;  %v12086_v29 = vmax.f32 %v12085_v4, 0.0  ;;  %v12088_v61 = vmax.f32 %v12087_v39, 0.0  ;;  %v12097_v37 = vld [vmem:[#allocation54_spill] sm:$0xff]  ;;  %v12109_v3 = vld [vmem:[#allocation49_spill] sm:$0xff]  ;;  %v12111_v4 = vld [vmem:[#allocation51_spill] sm:$0xff] }
 0xb87   : > { %v12090_v56 = vmax.f32 %v12089_v2, 0.0  ;;  %v12092_v63 = vmax.f32 %v12091_v24, 0.0  ;;  %v12094_v47 = vmax.f32 %v12093_v54, 0.0  ;;  %v12096_v15 = vmax.f32 %v12095_v62, 0.0 }
 0xb88   : > { %v6108_v58 = vmul.f32 %v6030_v14, %v12086_v29  ;;  %v6110_v57 = vmul.f32 %v6034_v22, %v12088_v61  ;;  %v12098_v48 = vmax.f32 %v12097_v37, 0.0  ;;  %v12100_v34 = vmax.f32 %v12099_v18, 0.0  ;;  %v6663_v28 = vpop.eup %6662  ;;  %v12113_v61 = vld [vmem:[#allocation53_spill] sm:$0xff] }
 0xb89   : > { %v6112_v59 = vmul.f32 %v6038_v33, %v12090_v56  ;;  %v6114_v50 = vmul.f32 %v6042_v23, %v12092_v63  ;;  %v6116_v9 = vmul.f32 %v6046_v51, %v12094_v47  ;;  %v6118_v55 = vmul.f32 %v6050_v41, %v12096_v15  ;;  %v12115_v56 = vld [vmem:[#allocation55_spill] sm:$0xff] }
 0xb8a   : > { %v6120_v36 = vmul.f32 %v6054_v60, %v12098_v48  ;;  %v6122_v44 = vmul.f32 %v6058_v1, %v12100_v34  ;;  %v12102_v5 = vmax.f32 %v12101_v45, 0.0  ;;  %v12104_v42 = vmax.f32 %v12103_v0, 0.0  ;;  %v12123_v45 = vld [vmem:[#allocation15_spill] sm:$0xff]  ;;  %v12126_v0 = vld [vmem:[#allocation21_spill] sm:$0xff] }
 0xb8b   : > { %v12106_v27 = vmax.f32 %v12105_v43, 0.0  ;;  %v12108_v16 = vmax.f32 %v12107_v21, 0.0  ;;  %v12110_v32 = vmax.f32 %v12109_v3, 0.0  ;;  %v12112_v29 = vmax.f32 %v12111_v4, 0.0  ;;  %v12127_v43 = vld [vmem:[#allocation23_spill] sm:$0xff]  ;;  %v12128_v21 = vld [vmem:[#allocation25_spill] sm:$0xff] }
 0xb8c   : > { %v6107_v31 = vmul.f32 %v6030_v14, %v12102_v5  ;;  %v6109_v20 = vmul.f32 %v6034_v22, %v12104_v42  ;;  %v12114_v2 = vmax.f32 %v12113_v61, 0.0  ;;  %v12116_v24 = vmax.f32 %v12115_v56, 0.0 }
 0xb8d   : > { %v6111_v12 = vmul.f32 %v6038_v33, %v12106_v27  ;;  %v6113_v30 = vmul.f32 %v6042_v23, %v12108_v16  ;;  %v6115_v8 = vmul.f32 %v6046_v51, %v12110_v32  ;;  %v6117_v39 = vmul.f32 %v6050_v41, %v12112_v29  ;;  %v12134_v32 = vld [vmem:[#allocation29_spill] sm:$0xff]  ;;  %v12135_v29 = vld [vmem:[#allocation31_spill] sm:$0xff] }
 0xb8e   : > { %v6119_v14 = vmul.f32 %v6054_v60, %v12114_v2  ;;  %v6121_v22 = vmul.f32 %v6058_v1, %v12116_v24  ;;  %v6140_v63 = vmul.f32 %v6663_v28, %v6108_v58  ;;  %v6142_v54 = vmul.f32 %v6663_v28, %v6110_v57  ;;  %v12118_v57 = vld [vmem:[#allocation5_spill] sm:$0xff]  ;;  %v12137_v24 = vld [vmem:[#allocation35_spill] sm:$0xff] }
 0xb8f   : > { %v6144_v33 = vmul.f32 %v6663_v28, %v6112_v59  ;;  %v6146_v47 = vmul.f32 %v6663_v28, %v6114_v50  ;;  %v6148_v62 = vmul.f32 %v6663_v28, %v6116_v9  ;;  %v6150_v23 = vmul.f32 %v6663_v28, %v6118_v55  ;;  %v12119_v50 = vld [vmem:[#allocation7_spill] sm:$0xff]  ;;  %v6665_v55 = vpop.eup %6664  ;;  %v12136_v2 = vld [vmem:[#allocation33_spill] sm:$0xff] }
 0xb90   : > { %v6152_v15 = vmul.f32 %v6663_v28, %v6120_v36  ;;  %v6154_v37 = vmul.f32 %v6663_v28, %v6122_v44  ;;  %v6156_v48 = vmul.f32 %v6663_v28, %v6124_v52  ;;  %v6158_v51 = vmul.f32 %v6663_v28, %v6126_v46  ;;  %v12120_v46 = vld [vmem:[#allocation9_spill] sm:$0xff] }
 0xb91   : > { %v6160_v18 = vmul.f32 %v6663_v28, %v6128_v49  ;;  %v6162_v34 = vmul.f32 %v6663_v28, %v6130_v13  ;;  %v6164_v41 = vmul.f32 %v6663_v28, %v6132_v38  ;;  %v6166_v60 = vmul.f32 %v6663_v28, %v6134_v25  ;;  %v12121_v13 = vld [vmem:[#allocation11_spill] sm:$0xff]  ;;  %v12122_v36 = vld [vmem:[#allocation13_spill] sm:$0xff] }
 0xb92   : > { %v6168_v1 = vmul.f32 %v6663_v28, %v6136_v19  ;;  %v6170_v58 = vmul.f32 %v6663_v28, %v6138_v26  ;;  %v6172_v59 = vadd.f32 %v6140_v63, %v12118_v57  ;;  %v6174_v52 = vadd.f32 %v6142_v54, %v12119_v50  ;;  %v12124_v25 = vld [vmem:[#allocation17_spill] sm:$0xff]  ;;  %v12125_v26 = vld [vmem:[#allocation19_spill] sm:$0xff]  ;;  %v12156_v57 = vld [vmem:[#allocation18_spill] sm:$0xff] }
 0xb93   : > { %v6176_v49 = vadd.f32 %v6144_v33, %v12120_v46  ;;  %v6178_v9 = vadd.f32 %v6146_v47, %v12121_v13  ;;  %v6180_v44 = vadd.f32 %v6148_v62, %v12122_v36  ;;  %v6182_v38 = vadd.f32 %v6150_v23, %v12123_v45  ;;  %v12129_v28 = vld [vmem:[#allocation27_spill] sm:$0xff]  ;;  %v12165_v36 = vld [vmem:[#allocation28_spill] sm:$0xff]  ;;  %v12166_v45 = vld [vmem:[#allocation30_spill] sm:$0xff] }
 0xb94   : > { %v6184_v19 = vadd.f32 %v6152_v15, %v12124_v25  ;;  %v6186_v5 = vadd.f32 %v6154_v37, %v12125_v26  ;;  %v6188_v42 = vadd.f32 %v6156_v48, %v12126_v0  ;;  %v6190_v27 = vadd.f32 %v6158_v51, %v12127_v43  ;;  %6204 = vst.msk [vmem:[%s10978_s21 + $0x8] sm:$0xff] %vm12130_vm4, %v6172_v59  ;;  %v12157_v59 = vld [vmem:[#allocation20_spill] sm:$0xff]  ;;  %vm12161_vm4 = vmmov %vm11886_vm0  ;;  %v12168_v26 = vld [vmem:[#allocation34_spill] sm:$0xff] }
 0xb95   : > { %v6192_v16 = vadd.f32 %v6160_v18, %v12128_v21  ;;  %v6194_v3 = vadd.f32 %v6162_v34, %v12129_v28  ;;  %6206 = vst.msk [vmem:[%s10978_s21 + $0x18] sm:$0xff] %vm12131_vm7, %v6174_v52  ;;  %v6196_v4 = vadd.f32 %v6164_v41, %v12134_v32  ;;  %v6198_v61 = vadd.f32 %v6166_v60, %v12135_v29  ;;  %v12152_v41 = vld [vmem:[#allocation10_spill] sm:$0xff]  ;;  %v12153_v60 = vld [vmem:[#allocation12_spill] sm:$0xff]  ;;  %vm12162_vm7 = vmmov %vm11886_vm0 }
 0xb96   : > { %6208 = vst.msk [vmem:[%s10978_s21 + $0x28] sm:$0xff] %vm12132_vm5, %v6176_v49  ;;  %v6200_v56 = vadd.f32 %v6168_v1, %v12136_v2  ;;  %v6202_v63 = vadd.f32 %v6170_v58, %v12137_v24  ;;  %v6139_v54 = vmul.f32 %v6665_v55, %v6107_v31  ;;  %v6141_v33 = vmul.f32 %v6665_v55, %v6109_v20  ;;  %v12154_v1 = vld [vmem:[#allocation14_spill] sm:$0xff]  ;;  %v12155_v58 = vld [vmem:[#allocation16_spill] sm:$0xff]  ;;  %vm12163_vm5 = vmmov %vm11886_vm0 }
 0xb97   : > { %6210 = vst.msk [vmem:[%s10978_s21 + $0x38] sm:$0xff] %vm12133_vm8, %v6178_v9  ;;  %v6143_v47 = vmul.f32 %v6665_v55, %v6111_v12  ;;  %v6145_v62 = vmul.f32 %v6665_v55, %v6113_v30  ;;  %v6147_v23 = vmul.f32 %v6665_v55, %v6115_v8  ;;  %v6149_v15 = vmul.f32 %v6665_v55, %v6117_v39  ;;  %v12149_v39 = vld [vmem:[#allocation4_spill] sm:$0xff]  ;;  %v12158_v52 = vld [vmem:[#allocation22_spill] sm:$0xff]  ;;  %vm12164_vm8 = vmmov %vm11886_vm0 }
 0xb98   : > { %6212 = vst.msk [vmem:[%s10978_s21 + $0x48] sm:$0xff] %vm12138_vm12, %v6180_v44  ;;  %v6151_v37 = vmul.f32 %v6665_v55, %v6119_v14  ;;  %v6153_v48 = vmul.f32 %v6665_v55, %v6121_v22  ;;  %v6155_v51 = vmul.f32 %v6665_v55, %v10895_v7  ;;  %v6157_v18 = vmul.f32 %v6665_v55, %v10901_v17  ;;  %v12150_v14 = vld [vmem:[#allocation6_spill] sm:$0xff]  ;;  %v12151_v22 = vld [vmem:[#allocation8_spill] sm:$0xff]  ;;  %vm12169_vm12 = vmmov %vm11886_vm0 }
 0xb99   : > { %6214 = vst.msk [vmem:[%s10978_s21 + $0x58] sm:$0xff] %vm12139_vm9, %v6182_v38  ;;  %v6159_v31 = vmul.f32 %v6665_v55, %v10907_v10  ;;  %v6161_v20 = vmul.f32 %v6665_v55, %v10913_v35  ;;  %v6163_v12 = vmul.f32 %v6665_v55, %v10919_v6  ;;  %v6165_v30 = vmul.f32 %v6665_v55, %v10925_v11  ;;  %v12159_v49 = vld [vmem:[#allocation24_spill] sm:$0xff]  ;;  %v12160_v9 = vld [vmem:[#allocation26_spill] sm:$0xff]  ;;  %vm12170_vm9 = vmmov %vm11886_vm0 }
 0xb9a   : > { %6216 = vst.msk [vmem:[%s10978_s21 + $0x68] sm:$0xff] %vm12140_vm10, %v6184_v19  ;;  %v6167_v34 = vmul.f32 %v6665_v55, %v10931_v53  ;;  %v6169_v8 = vmul.f32 %v6665_v55, %v10937_v40  ;;  %v6171_v7 = vadd.f32 %v6139_v54, %v12149_v39  ;;  %v6173_v17 = vadd.f32 %v6141_v33, %v12150_v14  ;;  %v12167_v25 = vld [vmem:[#allocation32_spill] sm:$0xff]  ;;  %vm12171_vm10 = vmmov %vm11886_vm0 }
 0xb9b   : > { %6218 = vst.msk [vmem:[%s10978_s21 + $0x78] sm:$0xff] %vm12141_vm13, %v6186_v5  ;;  %v6175_v10 = vadd.f32 %v6143_v47, %v12151_v22  ;;  %v6177_v35 = vadd.f32 %v6145_v62, %v12152_v41  ;;  %v6179_v6 = vadd.f32 %v6147_v23, %v12153_v60  ;;  %v6181_v11 = vadd.f32 %v6149_v15, %v12154_v1  ;;  %vm12172_vm13 = vmmov %vm11886_vm0 }
 0xb9c   : > { %6220 = vst.msk [vmem:[%s10978_s21 + $0x88] sm:$0xff] %vm12142_vm14, %v6188_v42  ;;  %v6183_v53 = vadd.f32 %v6151_v37, %v12155_v58  ;;  %v6185_v40 = vadd.f32 %v6153_v48, %v12156_v57  ;;  %v6187_v50 = vadd.f32 %v6155_v51, %v12157_v59  ;;  %v6189_v46 = vadd.f32 %v6157_v18, %v12158_v52  ;;  %vm12173_vm14 = vmmov %vm11886_vm0 }
 0xb9d   : > { %6222 = vst.msk [vmem:[%s10978_s21 + $0x98] sm:$0xff] %vm12143_vm3, %v6190_v27  ;;  %v6191_v13 = vadd.f32 %v6159_v31, %v12159_v49  ;;  %v6193_v55 = vadd.f32 %v6161_v20, %v12160_v9  ;;  %v6195_v44 = vadd.f32 %v6163_v12, %v12165_v36  ;;  %v6197_v38 = vadd.f32 %v6165_v30, %v12166_v45  ;;  %vm12174_vm3 = vmmov %vm11886_vm0 }
 0xb9e   : > { %6224 = vst.msk [vmem:[%s10978_s21 + $0xa8] sm:$0xff] %vm12144_vm1, %v6192_v16  ;;  %v6199_v19 = vadd.f32 %v6167_v34, %v12167_v25  ;;  %v6201_v5 = vadd.f32 %v6169_v8, %v12168_v26  ;;  %vm12175_vm1 = vmmov %vm11886_vm0 }
 0xb9f   : > { %6226 = vst.msk [vmem:[%s10978_s21 + $0xb8] sm:$0xff] %vm12145_vm11, %v6194_v3  ;;  %vm12176_vm11 = vmmov %vm11886_vm0 }
 0xba0   : > { %6228 = vst.msk [vmem:[%s10978_s21 + $0xc8] sm:$0xff] %vm12146_vm2, %v6196_v4  ;;  %vm12177_vm2 = vmmov %vm11886_vm0 }
 0xba1   : > { %6230 = vst.msk [vmem:[%s10978_s21 + $0xd8] sm:$0xff] %vm12147_vm15, %v6198_v61  ;;  %vm12178_vm15 = vmmov %vm11886_vm0 }
 0xba2   : > { %6232 = vst.msk [vmem:[%s10978_s21 + $0xe8] sm:$0xff] %vm11886_vm0, %v6200_v56  ;;  %6231 = vst.msk [vmem:[%s10978_s21 + $0xe0] sm:$0xff] %vm11886_vm0, %v6199_v19 }
 0xba3   : > { %6234 = vst.msk [vmem:[%s10978_s21 + $0xf8] sm:$0xff] %vm12148_vm6, %v6202_v63  ;;  %vm12179_vm6 = vmmov %vm11886_vm0 }
 0xba4   : > { %6203 = vst.msk [vmem:[%s10978_s21] sm:$0xff] %vm12161_vm4, %v6171_v7 }
 0xba5   : > { %6205 = vst.msk [vmem:[%s10978_s21 + $0x10] sm:$0xff] %vm12162_vm7, %v6173_v17 }
 0xba6   : > { %6207 = vst.msk [vmem:[%s10978_s21 + $0x20] sm:$0xff] %vm12163_vm5, %v6175_v10 }
 0xba7   : > { %6209 = vst.msk [vmem:[%s10978_s21 + $0x30] sm:$0xff] %vm12164_vm8, %v6177_v35 }
 0xba8   : > { %6211 = vst.msk [vmem:[%s10978_s21 + $0x40] sm:$0xff] %vm12169_vm12, %v6179_v6 }
 0xba9   : > { %6213 = vst.msk [vmem:[%s10978_s21 + $0x50] sm:$0xff] %vm12170_vm9, %v6181_v11 }
 0xbaa   : > { %6215 = vst.msk [vmem:[%s10978_s21 + $0x60] sm:$0xff] %vm12171_vm10, %v6183_v53 }
 0xbab   : > { %6217 = vst.msk [vmem:[%s10978_s21 + $0x70] sm:$0xff] %vm12172_vm13, %v6185_v40 }
 0xbac   : > { %6219 = vst.msk [vmem:[%s10978_s21 + $0x80] sm:$0xff] %vm12173_vm14, %v6187_v50 }
 0xbad   : > { %6221 = vst.msk [vmem:[%s10978_s21 + $0x90] sm:$0xff] %vm12174_vm3, %v6189_v46 }
 0xbae   : > { %6223 = vst.msk [vmem:[%s10978_s21 + $0xa0] sm:$0xff] %vm12175_vm1, %v6191_v13 }
 0xbaf   : > { %6225 = vst.msk [vmem:[%s10978_s21 + $0xb0] sm:$0xff] %vm12176_vm11, %v6193_v55 }
 0xbb0   : > { %6227 = vst.msk [vmem:[%s10978_s21 + $0xc0] sm:$0xff] %vm12177_vm2, %v6195_v44 }
 0xbb1   : > { %6229 = vst.msk [vmem:[%s10978_s21 + $0xd0] sm:$0xff] %vm12178_vm15, %v6197_v38 }
 0xbb2   : > { %6233 = vst.msk [vmem:[%s10978_s21 + $0xf0] sm:$0xff] %vm12179_vm6, %v6201_v5 }
 0xbb3 PF: > { %s27_s24 = sadd.s32 1, %s6672_s24  }
 0xbb4   : > { %p24_p4 = scmp.ge.s32.totalorder %s27_s24, 4  }
 0xbb6   :  { %26 = sbr.rel (!%p24_p4) target bundleno = 3 (0x3), region = 119 }

</bundles_post_ra>
